<compile_context>
chip_gen: v7x
topology: tpu7x:2x2x1
jax: 0.10.0
libtpu: 0.0.40
codegen_flags: <defaults>
</compile_context>

<pallas_src>
import jax
import jax.numpy as jnp
import numpy as np
from jax.experimental import pallas as pl
from jax.experimental.pallas import tpu as pltpu


# ----------------------------- kernel ---------------------------------------

def _conv3x3_bn_relu(src_ref, w_ref, s_ref, b_ref, nb, H, W):
    """3x3 conv (padding already materialized in src_ref) + folded BN + ReLU.

    src_ref: (nb, H+2, W+2, C)  bf16  zero-padded activation (VMEM scratch)
    w_ref:   (3, 3*C, Cout)     bf16  weights, dy-major, K ordered (dx, channel)
    s/b:     (1, Cout)          f32   folded BatchNorm scale / bias
    returns: (nb*H*W, Cout)     f32
    """
    C = src_ref.shape[-1]
    cout = w_ref.shape[-1]
    # dx-fold (im2col-lite): 3 shifted copies -> one (nb, H+2, W, 3*C) band,
    # so the conv is 3 MXU matmuls with K=3*C instead of 9 matmuls with K=C.
    band = jnp.concatenate(
        [src_ref[:, :, pl.ds(dx, W), :] for dx in range(3)], axis=-1)
    acc = jnp.zeros((nb * H * W, cout), jnp.float32)
    for dy in range(3):                                    # statically unrolled
        lhs = band[:, dy:dy + H].reshape(nb * H * W, 3 * C)
        acc = acc + jnp.dot(lhs, w_ref[dy], preferred_element_type=jnp.float32)
    # fused inference BatchNorm (per-channel affine) + ReLU, in f32.
    return jnp.maximum(acc * s_ref[...] + b_ref[...], 0.0)


def _double_conv_pool_kernel(x_ref, w1_ref, s1_ref, b1_ref,
                             w2_ref, s2_ref, b2_ref,
                             skip_ref, pool_ref,
                             xpad_ref, mid_ref):
    """One fused UNET encoder stage for a batch block of nb images.

    x_ref   : (nb, H, W, Cin)              bf16  stage input (un-padded)
    w1/w2   : (3, 3*Cin, Cmid)/(3, 3*Cmid, Cout) bf16 dx-folded weights
    s*/b*   : (1, C)                       f32   folded BN scale / bias
    skip_ref: (nb, H, W*Cout)              bf16  lane-dense skip connection
    pool_ref: (nb, H/2, (W/2)*Cout)        bf16  lane-dense 2x2/2 max-pool out
    xpad_ref: (nb, H+2, W+2, Cin)          bf16  VMEM scratch, padded input
    mid_ref : (nb, H+2, W+2, Cmid)         bf16  VMEM scratch, padded conv1 out
    """
    nb, H, W, _ = x_ref.shape
    Cmid = w1_ref.shape[-1]
    Cout = w2_ref.shape[-1]
    Ho, Wo = H // 2, W // 2

    # Zero the padded scratches once: later steps rewrite the interior only,
    # so the 1-pixel halo stays zero.  Safe because the grid axis is
    # "arbitrary" (sequential), hence step 0 always runs first on this core.
    @pl.when(pl.program_id(0) == 0)
    def _zero_scratches():
        xpad_ref[...] = jnp.zeros_like(xpad_ref)
        mid_ref[...] = jnp.zeros_like(mid_ref)

    # padding=1 handled in VMEM: write the interior, borders stay zero.
    xpad_ref[:, pl.ds(1, H), pl.ds(1, W), :] = x_ref[...]

    # conv1 + BN + ReLU; intermediate stays in VMEM (bf16), already padded.
    y1 = _conv3x3_bn_relu(xpad_ref, w1_ref, s1_ref, b1_ref, nb, H, W)
    mid_ref[:, pl.ds(1, H), pl.ds(1, W), :] = (
        y1.reshape(nb, H, W, Cmid).astype(mid_ref.dtype))

    # conv2 + BN + ReLU -> (nb*H*W, Cout) f32.
    y2 = _conv3x3_bn_relu(mid_ref, w2_ref, s2_ref, b2_ref, nb, H, W)

    # Lane-dense skip store: relayout (nb*H*W, Cout) -> (nb, H, W*Cout) so the
    # HBM writeback uses full 128-lane stores instead of Cout-wide masked ones.
    y2g = y2.reshape(nb * H, W, Cout)
    cols = [y2g[:, w, :] for w in range(W)]                 # (nb*H, Cout) each
    skip_ref[...] = (jnp.concatenate(cols, axis=-1)
                     .reshape(nb, H, W * Cout).astype(skip_ref.dtype))

    # Fused 2x2 / stride-2 max pool on the in-register conv2 result, also
    # stored lane-dense (no extra HBM round-trip, no separate pallas_call).
    wmax = jnp.concatenate(
        [jnp.maximum(cols[2 * k], cols[2 * k + 1]) for k in range(Wo)], axis=-1)
    w4 = wmax.reshape(nb * Ho, 2, Wo * Cout)
    pooled = jnp.maximum(w4[:, 0, :], w4[:, 1, :])          # (nb*Ho, Wo*Cout)
    pool_ref[...] = pooled.reshape(nb, Ho, Wo * Cout).astype(pool_ref.dtype)


# ----------------------------- wrappers --------------------------------------

def double_conv_pool(x, p, *, images_per_step=None):
    """One Double2DConv stage + 2x2 maxpool.  x: (N,H,W,Cin) NHWC (any float).

    Returns (skip, pooled), both NHWC bfloat16.
    """
    N, H, W, Cin = x.shape
    Cmid = p["w1"].shape[-1]
    Cout = p["w2"].shape[-1]
    assert H % 2 == 0 and W % 2 == 0, "MaxPool2d(2,2) requires even H and W"
    nb = N if images_per_step is None else images_per_step
    assert N % nb == 0

    x = x.astype(jnp.bfloat16)        # bf16 MXU operands; accumulation is f32

    flops = 2 * N * H * W * 9 * (Cin * Cmid + Cmid * Cout)
    bytes_accessed = (
        N * H * W * Cin * 2                                 # input (bf16)
        + 2 * 9 * (Cin * Cmid + Cmid * Cout)                # weights (bf16)
        + 4 * 2 * (Cmid + Cout)                             # scale/bias (f32)
        + N * H * W * Cout * 2                              # skip (bf16)
        + N * (H // 2) * (W // 2) * Cout * 2)               # pool (bf16)

    skip2d, pool2d = pl.pallas_call(
        _double_conv_pool_kernel,
        out_shape=(
            jax.ShapeDtypeStruct((N, H, W * Cout), jnp.bfloat16),
            jax.ShapeDtypeStruct((N, H // 2, (W // 2) * Cout), jnp.bfloat16),
        ),
        grid_spec=pltpu.PrefetchScalarGridSpec(
            num_scalar_prefetch=0,
            grid=(N // nb,),
            in_specs=[
                pl.BlockSpec((nb, H, W, Cin), lambda n: (n, 0, 0, 0)),
                pl.BlockSpec((3, 3 * Cin, Cmid), lambda n: (0, 0, 0)),
                pl.BlockSpec((1, Cmid), lambda n: (0, 0)),
                pl.BlockSpec((1, Cmid), lambda n: (0, 0)),
                pl.BlockSpec((3, 3 * Cmid, Cout), lambda n: (0, 0, 0)),
                pl.BlockSpec((1, Cout), lambda n: (0, 0)),
                pl.BlockSpec((1, Cout), lambda n: (0, 0)),
            ],
            out_specs=(
                pl.BlockSpec((nb, H, W * Cout), lambda n: (n, 0, 0)),
                pl.BlockSpec((nb, H // 2, (W // 2) * Cout), lambda n: (n, 0, 0)),
            ),
            scratch_shapes=[
                pltpu.VMEM((nb, H + 2, W + 2, Cin), jnp.bfloat16),
                pltpu.VMEM((nb, H + 2, W + 2, Cmid), jnp.bfloat16),
            ],
        ),
        compiler_params=pltpu.CompilerParams(
            dimension_semantics=("arbitrary",)),
        cost_estimate=pl.CostEstimate(
            flops=flops, transcendentals=0, bytes_accessed=bytes_accessed),
    )(x, p["w1"], p["s1"], p["b1"], p["w2"], p["s2"], p["b2"])

    # Lane-dense HBM layout back to NHWC views (minor-dim split: free reshape).
    skip = skip2d.reshape(N, H, W, Cout)
    pooled = pool2d.reshape(N, H // 2, W // 2, Cout)
    return skip, pooled


def unet_encoder_2d(x_nchw, params, *, nchw_out=True):
    """Mirrors UNETEncoder2D.forward: returns (x_after_last_pool, skips).

    Kernels run NHWC with bf16 activations; with nchw_out=True (PyTorch
    drop-in) outputs are transposed to NCHW at the boundary.  An NHWC-native
    decoder should pass nchw_out=False to skip the boundary transposes.
    """
    x = jnp.transpose(x_nchw, (0, 2, 3, 1)).astype(jnp.bfloat16)  # NCHW -> NHWC
    assert x.shape[1] % (2 ** len(params)) == 0, "H must divide 2^num_stages"
    assert x.shape[2] % (2 ** len(params)) == 0, "W must divide 2^num_stages"
    skips = []
    for p in params:                                              # Double2DConv
        skip, x = double_conv_pool(x, p)
        skips.append(skip)
    if nchw_out:
        skips = [jnp.transpose(s, (0, 3, 1, 2)) for s in skips]
        x = jnp.transpose(x, (0, 3, 1, 2))
    return x, skips


# ------------------------ parameters & reference -----------------------------

def init_params(key, in_channels, features):
    params = []
    c_in = in_channels
    for feat in features:
        level = {}
        for idx, (ci, co) in enumerate([(c_in, feat), (feat, feat)], start=1):
            key, kw, kg, kb, km, kv = jax.random.split(key, 6)
            bound = 1.0 / np.sqrt(ci * 9)
            w_pt = jax.random.uniform(kw, (co, ci, 3, 3), jnp.float32,
                                      -bound, bound)              # OIHW (PyTorch)
            # dx-folded layout: (ky, 3*Cin, Cout), K ordered (dx, channel).
            w = jnp.transpose(w_pt, (2, 3, 1, 0)).reshape(3, 3 * ci, co)
            gamma = 1.0 + 0.1 * jax.random.normal(kg, (co,), jnp.float32)
            beta = 0.1 * jax.random.normal(kb, (co,), jnp.float32)
            rmean = 0.1 * jax.random.normal(km, (co,), jnp.float32)
            rvar = jax.random.uniform(kv, (co,), jnp.float32, 0.5, 1.5)
            scale = gamma * jax.lax.rsqrt(rvar + 1e-5)
            bias = beta - rmean * scale
            level[f"w{idx}"] = w.astype(jnp.bfloat16)
            level[f"s{idx}"] = scale.reshape(1, co)
            level[f"b{idx}"] = bias.reshape(1, co)
        params.append(level)
        c_in = feat
    return params


def _ref_forward(x_nchw, params):
    """Pure-JAX reference (XLA conv, same bf16-operand / f32-accum numerics)."""
    x = jnp.transpose(x_nchw, (0, 2, 3, 1)).astype(jnp.float32)
    skips = []
    for p in params:
        for i in ("1", "2"):
            w = p["w" + i]                                # (3, 3*cin, cout) bf16
            cin, cout = w.shape[1] // 3, w.shape[2]
            w_hwio = w.reshape(3, 3, cin, cout)
            y = jax.lax.conv_general_dilated(
                x.astype(jnp.bfloat16), w_hwio, (1, 1), ((1, 1), (1, 1)),
                dimension_numbers=("NHWC", "HWIO", "NHWC"),
                preferred_element_type=jnp.float32)
            x = jnp.maximum(y * p["s" + i] + p["b" + i], 0.0)
        skips.append(jnp.transpose(x, (0, 3, 1, 2)))
        N, H, W, C = x.shape
        x = x.reshape(N, H // 2, 2, W // 2, 2, C).max(axis=(2, 4))
    return jnp.transpose(x, (0, 3, 1, 2)), skips


# ------------------------------- main ----------------------------------------

if __name__ == "__main__":
    key = jax.random.PRNGKey(0)
    kx, kp = jax.random.split(key)

    N, Cin, H, W = 2, 3, 16, 16
    features = [8, 16, 32, 64]

    x = jax.random.normal(kx, (N, Cin, H, W), jnp.float32)        # NCHW input
    params = init_params(kp, Cin, features)

    out, skips = unet_encoder_2d(x, params)                       # NCHW, bf16
    out = jax.block_until_ready(out)
    skips = [jax.block_until_ready(s) for s in skips]

    ref_out, ref_skips = _ref_forward(x, params)
    assert out.shape == (N, features[-1], H // 16, W // 16)
    np.testing.assert_allclose(np.asarray(out.astype(jnp.float32)),
                               np.asarray(ref_out), rtol=2e-2, atol=2e-2)
    for s, rs in zip(skips, ref_skips):
        np.testing.assert_allclose(np.asarray(s.astype(jnp.float32)),
                                   np.asarray(rs), rtol=2e-2, atol=2e-2)

    print("KERNEL_OK")
</pallas_src>

<mosaic_0001>
module attributes {stable_mosaic.version = 11 : i64} {
  func.func @_double_conv_pool_kernel(%arg0: i32, %arg1: memref<2x16x16x3xbf16, #tpu.memory_space<vmem>>, %arg2: memref<3x9x8xbf16, #tpu.memory_space<vmem>>, %arg3: memref<1x8xf32, #tpu.memory_space<vmem>>, %arg4: memref<1x8xf32, #tpu.memory_space<vmem>>, %arg5: memref<3x24x8xbf16, #tpu.memory_space<vmem>>, %arg6: memref<1x8xf32, #tpu.memory_space<vmem>>, %arg7: memref<1x8xf32, #tpu.memory_space<vmem>>, %arg8: memref<2x16x128xbf16, #tpu.memory_space<vmem>>, %arg9: memref<2x8x64xbf16, #tpu.memory_space<vmem>>, %arg10: memref<2x18x18x3xbf16, #tpu.memory_space<vmem>>, %arg11: memref<2x18x18x8xbf16, #tpu.memory_space<vmem>>) attributes {dimension_semantics = [#tpu.dimension_semantics<arbitrary>], iteration_bounds = array<i64: 1>, scalar_prefetch = 0 : i64, scratch_operands = 2 : i64, tpu.core_type = #tpu.core_type<tc>, window_params = [{transform_indices = @transform_0, window_bounds = array<i64: 2, 16, 16, 3>}, {pipeline_mode = #tpu.pipeline_mode<synchronous>, transform_indices = @transform_1, window_bounds = array<i64: 3, 9, 8>}, {pipeline_mode = #tpu.pipeline_mode<synchronous>, transform_indices = @transform_2, window_bounds = array<i64: 1, 8>}, {pipeline_mode = #tpu.pipeline_mode<synchronous>, transform_indices = @transform_3, window_bounds = array<i64: 1, 8>}, {pipeline_mode = #tpu.pipeline_mode<synchronous>, transform_indices = @transform_4, window_bounds = array<i64: 3, 24, 8>}, {pipeline_mode = #tpu.pipeline_mode<synchronous>, transform_indices = @transform_5, window_bounds = array<i64: 1, 8>}, {pipeline_mode = #tpu.pipeline_mode<synchronous>, transform_indices = @transform_6, window_bounds = array<i64: 1, 8>}, {transform_indices = @transform_7, window_bounds = array<i64: 2, 16, 128>}, {transform_indices = @transform_8, window_bounds = array<i64: 2, 8, 64>}]} {
    %c0_i32 = arith.constant 0 : i32
    %0 = arith.cmpi eq, %arg0, %c0_i32 : i32
    %1 = arith.extui %0 : i1 to i32
    %c0_i32_0 = arith.constant 0 : i32
    %2 = arith.cmpi ne, %1, %c0_i32_0 : i32
    scf.if %2 {
      %cst_75 = arith.constant 0.000000e+00 : bf16
      %125 = vector.broadcast %cst_75 : bf16 to vector<2x18x18x3xbf16>
      %c0_76 = arith.constant 0 : index
      %c0_77 = arith.constant 0 : index
      %c0_78 = arith.constant 0 : index
      %c0_79 = arith.constant 0 : index
      %126 = vector.load %arg10[%c0_76, %c0_77, %c0_78, %c0_79] : memref<2x18x18x3xbf16, #tpu.memory_space<vmem>>, vector<2x18x18x3xbf16>
      tpu.vector_store %arg10[%c0_76, %c0_77, %c0_78, %c0_79], %125 {strides = array<i32>} : memref<2x18x18x3xbf16, #tpu.memory_space<vmem>>, vector<2x18x18x3xbf16>,
      %cst_80 = arith.constant 0.000000e+00 : bf16
      %127 = vector.broadcast %cst_80 : bf16 to vector<2x18x18x8xbf16>
      %c0_81 = arith.constant 0 : index
      %c0_82 = arith.constant 0 : index
      %c0_83 = arith.constant 0 : index
      %c0_84 = arith.constant 0 : index
      %128 = vector.load %arg11[%c0_81, %c0_82, %c0_83, %c0_84] : memref<2x18x18x8xbf16, #tpu.memory_space<vmem>>, vector<2x18x18x8xbf16>
      tpu.vector_store %arg11[%c0_81, %c0_82, %c0_83, %c0_84], %127 {strides = array<i32>} : memref<2x18x18x8xbf16, #tpu.memory_space<vmem>>, vector<2x18x18x8xbf16>,
    } else {
    }
    %c0 = arith.constant 0 : index
    %c0_1 = arith.constant 0 : index
    %c0_2 = arith.constant 0 : index
    %c0_3 = arith.constant 0 : index
    %3 = vector.load %arg1[%c0, %c0_1, %c0_2, %c0_3] : memref<2x16x16x3xbf16, #tpu.memory_space<vmem>>, vector<2x16x16x3xbf16>
    %c0_4 = arith.constant 0 : index
    %c1 = arith.constant 1 : index
    %c1_5 = arith.constant 1 : index
    %c0_6 = arith.constant 0 : index
    %4 = vector.load %arg10[%c0_4, %c1, %c1_5, %c0_6] : memref<2x18x18x3xbf16, #tpu.memory_space<vmem>>, vector<2x16x16x3xbf16>
    tpu.vector_store %arg10[%c0_4, %c1, %c1_5, %c0_6], %3 {strides = array<i32>} : memref<2x18x18x3xbf16, #tpu.memory_space<vmem>>, vector<2x16x16x3xbf16>,
    %c0_7 = arith.constant 0 : index
    %c0_8 = arith.constant 0 : index
    %c0_9 = arith.constant 0 : index
    %c0_10 = arith.constant 0 : index
    %5 = vector.load %arg10[%c0_7, %c0_8, %c0_9, %c0_10] : memref<2x18x18x3xbf16, #tpu.memory_space<vmem>>, vector<2x18x16x3xbf16>
    %c0_11 = arith.constant 0 : index
    %c0_12 = arith.constant 0 : index
    %c1_13 = arith.constant 1 : index
    %c0_14 = arith.constant 0 : index
    %6 = vector.load %arg10[%c0_11, %c0_12, %c1_13, %c0_14] : memref<2x18x18x3xbf16, #tpu.memory_space<vmem>>, vector<2x18x16x3xbf16>
    %c0_15 = arith.constant 0 : index
    %c0_16 = arith.constant 0 : index
    %c2 = arith.constant 2 : index
    %c0_17 = arith.constant 0 : index
    %7 = vector.load %arg10[%c0_15, %c0_16, %c2, %c0_17] : memref<2x18x18x3xbf16, #tpu.memory_space<vmem>>, vector<2x18x16x3xbf16>
    %8 = tpu.concatenate %5, %6, %7 in 3 : vector<2x18x16x3xbf16>, vector<2x18x16x3xbf16>, vector<2x18x16x3xbf16> -> vector<2x18x16x9xbf16>
    %cst = arith.constant 0.000000e+00 : f32
    %9 = vector.broadcast %cst : f32 to vector<512x8xf32>
    %10 = vector.extract_strided_slice %8 {offsets = [0, 0, 0, 0], sizes = [2, 16, 16, 9], strides = [1, 1, 1, 1]} : vector<2x18x16x9xbf16> to vector<2x16x16x9xbf16>
    %11 = vector.shape_cast %10 : vector<2x16x16x9xbf16> to vector<512x9xbf16>
    %c0_18 = arith.constant 0 : index
    %c0_19 = arith.constant 0 : index
    %c0_20 = arith.constant 0 : index
    %12 = vector.load %arg2[%c0_18, %c0_19, %c0_20] : memref<3x9x8xbf16, #tpu.memory_space<vmem>>, vector<1x9x8xbf16>
    %13 = vector.shape_cast %12 : vector<1x9x8xbf16> to vector<9x8xbf16>
    %cst_21 = arith.constant dense<0.000000e+00> : vector<512x8xf32>
    %14 = tpu.matmul %11, %13, %cst_21 {dimension_numbers = #tpu.dot_dimension_numbers<[1], [0], [0], [1], [0, 0, 1, 1], [], []>} : vector<512x9xbf16>, vector<9x8xbf16>, vector<512x8xf32> -> vector<512x8xf32>
    %15 = arith.addf %9, %14 : vector<512x8xf32>
    %16 = vector.extract_strided_slice %8 {offsets = [0, 1, 0, 0], sizes = [2, 16, 16, 9], strides = [1, 1, 1, 1]} : vector<2x18x16x9xbf16> to vector<2x16x16x9xbf16>
    %17 = vector.shape_cast %16 : vector<2x16x16x9xbf16> to vector<512x9xbf16>
    %c1_22 = arith.constant 1 : index
    %c0_23 = arith.constant 0 : index
    %c0_24 = arith.constant 0 : index
    %18 = vector.load %arg2[%c1_22, %c0_23, %c0_24] : memref<3x9x8xbf16, #tpu.memory_space<vmem>>, vector<1x9x8xbf16>
    %19 = vector.shape_cast %18 : vector<1x9x8xbf16> to vector<9x8xbf16>
    %cst_25 = arith.constant dense<0.000000e+00> : vector<512x8xf32>
    %20 = tpu.matmul %17, %19, %cst_25 {dimension_numbers = #tpu.dot_dimension_numbers<[1], [0], [0], [1], [0, 0, 1, 1], [], []>} : vector<512x9xbf16>, vector<9x8xbf16>, vector<512x8xf32> -> vector<512x8xf32>
    %21 = arith.addf %15, %20 : vector<512x8xf32>
    %22 = vector.extract_strided_slice %8 {offsets = [0, 2, 0, 0], sizes = [2, 16, 16, 9], strides = [1, 1, 1, 1]} : vector<2x18x16x9xbf16> to vector<2x16x16x9xbf16>
    %23 = vector.shape_cast %22 : vector<2x16x16x9xbf16> to vector<512x9xbf16>
    %c2_26 = arith.constant 2 : index
    %c0_27 = arith.constant 0 : index
    %c0_28 = arith.constant 0 : index
    %24 = vector.load %arg2[%c2_26, %c0_27, %c0_28] : memref<3x9x8xbf16, #tpu.memory_space<vmem>>, vector<1x9x8xbf16>
    %25 = vector.shape_cast %24 : vector<1x9x8xbf16> to vector<9x8xbf16>
    %cst_29 = arith.constant dense<0.000000e+00> : vector<512x8xf32>
    %26 = tpu.matmul %23, %25, %cst_29 {dimension_numbers = #tpu.dot_dimension_numbers<[1], [0], [0], [1], [0, 0, 1, 1], [], []>} : vector<512x9xbf16>, vector<9x8xbf16>, vector<512x8xf32> -> vector<512x8xf32>
    %27 = arith.addf %21, %26 : vector<512x8xf32>
    %c0_30 = arith.constant 0 : index
    %c0_31 = arith.constant 0 : index
    %28 = vector.load %arg3[%c0_30, %c0_31] : memref<1x8xf32, #tpu.memory_space<vmem>>, vector<1x8xf32>
    %29 = vector.broadcast %28 : vector<1x8xf32> to vector<512x8xf32>
    %30 = arith.mulf %27, %29 : vector<512x8xf32>
    %c0_32 = arith.constant 0 : index
    %c0_33 = arith.constant 0 : index
    %31 = vector.load %arg4[%c0_32, %c0_33] : memref<1x8xf32, #tpu.memory_space<vmem>>, vector<1x8xf32>
    %32 = vector.broadcast %31 : vector<1x8xf32> to vector<512x8xf32>
    %33 = arith.addf %30, %32 : vector<512x8xf32>
    %cst_34 = arith.constant 0.000000e+00 : f32
    %34 = vector.broadcast %cst_34 : f32 to vector<512x8xf32>
    %35 = arith.maximumf %33, %34 : vector<512x8xf32>
    %36 = vector.shape_cast %35 : vector<512x8xf32> to vector<2x16x16x8xf32>
    %37 = arith.truncf %36 : vector<2x16x16x8xf32> to vector<2x16x16x8xbf16>
    %c0_35 = arith.constant 0 : index
    %c1_36 = arith.constant 1 : index
    %c1_37 = arith.constant 1 : index
    %c0_38 = arith.constant 0 : index
    %38 = vector.load %arg11[%c0_35, %c1_36, %c1_37, %c0_38] : memref<2x18x18x8xbf16, #tpu.memory_space<vmem>>, vector<2x16x16x8xbf16>
    tpu.vector_store %arg11[%c0_35, %c1_36, %c1_37, %c0_38], %37 {strides = array<i32>} : memref<2x18x18x8xbf16, #tpu.memory_space<vmem>>, vector<2x16x16x8xbf16>,
    %c0_39 = arith.constant 0 : index
    %c0_40 = arith.constant 0 : index
    %c0_41 = arith.constant 0 : index
    %c0_42 = arith.constant 0 : index
    %39 = vector.load %arg11[%c0_39, %c0_40, %c0_41, %c0_42] : memref<2x18x18x8xbf16, #tpu.memory_space<vmem>>, vector<2x18x16x8xbf16>
    %c0_43 = arith.constant 0 : index
    %c0_44 = arith.constant 0 : index
    %c1_45 = arith.constant 1 : index
    %c0_46 = arith.constant 0 : index
    %40 = vector.load %arg11[%c0_43, %c0_44, %c1_45, %c0_46] : memref<2x18x18x8xbf16, #tpu.memory_space<vmem>>, vector<2x18x16x8xbf16>
    %c0_47 = arith.constant 0 : index
    %c0_48 = arith.constant 0 : index
    %c2_49 = arith.constant 2 : index
    %c0_50 = arith.constant 0 : index
    %41 = vector.load %arg11[%c0_47, %c0_48, %c2_49, %c0_50] : memref<2x18x18x8xbf16, #tpu.memory_space<vmem>>, vector<2x18x16x8xbf16>
    %42 = tpu.concatenate %39, %40, %41 in 3 : vector<2x18x16x8xbf16>, vector<2x18x16x8xbf16>, vector<2x18x16x8xbf16> -> vector<2x18x16x24xbf16>
    %cst_51 = arith.constant 0.000000e+00 : f32
    %43 = vector.broadcast %cst_51 : f32 to vector<512x8xf32>
    %44 = vector.extract_strided_slice %42 {offsets = [0, 0, 0, 0], sizes = [2, 16, 16, 24], strides = [1, 1, 1, 1]} : vector<2x18x16x24xbf16> to vector<2x16x16x24xbf16>
    %45 = vector.shape_cast %44 : vector<2x16x16x24xbf16> to vector<512x24xbf16>
    %c0_52 = arith.constant 0 : index
    %c0_53 = arith.constant 0 : index
    %c0_54 = arith.constant 0 : index
    %46 = vector.load %arg5[%c0_52, %c0_53, %c0_54] : memref<3x24x8xbf16, #tpu.memory_space<vmem>>, vector<1x24x8xbf16>
    %47 = vector.shape_cast %46 : vector<1x24x8xbf16> to vector<24x8xbf16>
    %cst_55 = arith.constant dense<0.000000e+00> : vector<512x8xf32>
    %48 = tpu.matmul %45, %47, %cst_55 {dimension_numbers = #tpu.dot_dimension_numbers<[1], [0], [0], [1], [0, 0, 1, 1], [], []>} : vector<512x24xbf16>, vector<24x8xbf16>, vector<512x8xf32> -> vector<512x8xf32>
    %49 = arith.addf %43, %48 : vector<512x8xf32>
    %50 = vector.extract_strided_slice %42 {offsets = [0, 1, 0, 0], sizes = [2, 16, 16, 24], strides = [1, 1, 1, 1]} : vector<2x18x16x24xbf16> to vector<2x16x16x24xbf16>
    %51 = vector.shape_cast %50 : vector<2x16x16x24xbf16> to vector<512x24xbf16>
    %c1_56 = arith.constant 1 : index
    %c0_57 = arith.constant 0 : index
    %c0_58 = arith.constant 0 : index
    %52 = vector.load %arg5[%c1_56, %c0_57, %c0_58] : memref<3x24x8xbf16, #tpu.memory_space<vmem>>, vector<1x24x8xbf16>
    %53 = vector.shape_cast %52 : vector<1x24x8xbf16> to vector<24x8xbf16>
    %cst_59 = arith.constant dense<0.000000e+00> : vector<512x8xf32>
    %54 = tpu.matmul %51, %53, %cst_59 {dimension_numbers = #tpu.dot_dimension_numbers<[1], [0], [0], [1], [0, 0, 1, 1], [], []>} : vector<512x24xbf16>, vector<24x8xbf16>, vector<512x8xf32> -> vector<512x8xf32>
    %55 = arith.addf %49, %54 : vector<512x8xf32>
    %56 = vector.extract_strided_slice %42 {offsets = [0, 2, 0, 0], sizes = [2, 16, 16, 24], strides = [1, 1, 1, 1]} : vector<2x18x16x24xbf16> to vector<2x16x16x24xbf16>
    %57 = vector.shape_cast %56 : vector<2x16x16x24xbf16> to vector<512x24xbf16>
    %c2_60 = arith.constant 2 : index
    %c0_61 = arith.constant 0 : index
    %c0_62 = arith.constant 0 : index
    %58 = vector.load %arg5[%c2_60, %c0_61, %c0_62] : memref<3x24x8xbf16, #tpu.memory_space<vmem>>, vector<1x24x8xbf16>
    %59 = vector.shape_cast %58 : vector<1x24x8xbf16> to vector<24x8xbf16>
    %cst_63 = arith.constant dense<0.000000e+00> : vector<512x8xf32>
    %60 = tpu.matmul %57, %59, %cst_63 {dimension_numbers = #tpu.dot_dimension_numbers<[1], [0], [0], [1], [0, 0, 1, 1], [], []>} : vector<512x24xbf16>, vector<24x8xbf16>, vector<512x8xf32> -> vector<512x8xf32>
    %61 = arith.addf %55, %60 : vector<512x8xf32>
    %c0_64 = arith.constant 0 : index
    %c0_65 = arith.constant 0 : index
    %62 = vector.load %arg6[%c0_64, %c0_65] : memref<1x8xf32, #tpu.memory_space<vmem>>, vector<1x8xf32>
    %63 = vector.broadcast %62 : vector<1x8xf32> to vector<512x8xf32>
    %64 = arith.mulf %61, %63 : vector<512x8xf32>
    %c0_66 = arith.constant 0 : index
    %c0_67 = arith.constant 0 : index
    %65 = vector.load %arg7[%c0_66, %c0_67] : memref<1x8xf32, #tpu.memory_space<vmem>>, vector<1x8xf32>
    %66 = vector.broadcast %65 : vector<1x8xf32> to vector<512x8xf32>
    %67 = arith.addf %64, %66 : vector<512x8xf32>
    %cst_68 = arith.constant 0.000000e+00 : f32
    %68 = vector.broadcast %cst_68 : f32 to vector<512x8xf32>
    %69 = arith.maximumf %67, %68 : vector<512x8xf32>
    %70 = vector.shape_cast %69 : vector<512x8xf32> to vector<32x16x8xf32>
    %71 = vector.extract_strided_slice %70 {offsets = [0, 0, 0], sizes = [32, 1, 8], strides = [1, 1, 1]} : vector<32x16x8xf32> to vector<32x1x8xf32>
    %72 = vector.shape_cast %71 : vector<32x1x8xf32> to vector<32x8xf32>
    %73 = vector.extract_strided_slice %70 {offsets = [0, 1, 0], sizes = [32, 1, 8], strides = [1, 1, 1]} : vector<32x16x8xf32> to vector<32x1x8xf32>
    %74 = vector.shape_cast %73 : vector<32x1x8xf32> to vector<32x8xf32>
    %75 = vector.extract_strided_slice %70 {offsets = [0, 2, 0], sizes = [32, 1, 8], strides = [1, 1, 1]} : vector<32x16x8xf32> to vector<32x1x8xf32>
    %76 = vector.shape_cast %75 : vector<32x1x8xf32> to vector<32x8xf32>
    %77 = vector.extract_strided_slice %70 {offsets = [0, 3, 0], sizes = [32, 1, 8], strides = [1, 1, 1]} : vector<32x16x8xf32> to vector<32x1x8xf32>
    %78 = vector.shape_cast %77 : vector<32x1x8xf32> to vector<32x8xf32>
    %79 = vector.extract_strided_slice %70 {offsets = [0, 4, 0], sizes = [32, 1, 8], strides = [1, 1, 1]} : vector<32x16x8xf32> to vector<32x1x8xf32>
    %80 = vector.shape_cast %79 : vector<32x1x8xf32> to vector<32x8xf32>
    %81 = vector.extract_strided_slice %70 {offsets = [0, 5, 0], sizes = [32, 1, 8], strides = [1, 1, 1]} : vector<32x16x8xf32> to vector<32x1x8xf32>
    %82 = vector.shape_cast %81 : vector<32x1x8xf32> to vector<32x8xf32>
    %83 = vector.extract_strided_slice %70 {offsets = [0, 6, 0], sizes = [32, 1, 8], strides = [1, 1, 1]} : vector<32x16x8xf32> to vector<32x1x8xf32>
    %84 = vector.shape_cast %83 : vector<32x1x8xf32> to vector<32x8xf32>
    %85 = vector.extract_strided_slice %70 {offsets = [0, 7, 0], sizes = [32, 1, 8], strides = [1, 1, 1]} : vector<32x16x8xf32> to vector<32x1x8xf32>
    %86 = vector.shape_cast %85 : vector<32x1x8xf32> to vector<32x8xf32>
    %87 = vector.extract_strided_slice %70 {offsets = [0, 8, 0], sizes = [32, 1, 8], strides = [1, 1, 1]} : vector<32x16x8xf32> to vector<32x1x8xf32>
    %88 = vector.shape_cast %87 : vector<32x1x8xf32> to vector<32x8xf32>
    %89 = vector.extract_strided_slice %70 {offsets = [0, 9, 0], sizes = [32, 1, 8], strides = [1, 1, 1]} : vector<32x16x8xf32> to vector<32x1x8xf32>
    %90 = vector.shape_cast %89 : vector<32x1x8xf32> to vector<32x8xf32>
    %91 = vector.extract_strided_slice %70 {offsets = [0, 10, 0], sizes = [32, 1, 8], strides = [1, 1, 1]} : vector<32x16x8xf32> to vector<32x1x8xf32>
    %92 = vector.shape_cast %91 : vector<32x1x8xf32> to vector<32x8xf32>
    %93 = vector.extract_strided_slice %70 {offsets = [0, 11, 0], sizes = [32, 1, 8], strides = [1, 1, 1]} : vector<32x16x8xf32> to vector<32x1x8xf32>
    %94 = vector.shape_cast %93 : vector<32x1x8xf32> to vector<32x8xf32>
    %95 = vector.extract_strided_slice %70 {offsets = [0, 12, 0], sizes = [32, 1, 8], strides = [1, 1, 1]} : vector<32x16x8xf32> to vector<32x1x8xf32>
    %96 = vector.shape_cast %95 : vector<32x1x8xf32> to vector<32x8xf32>
    %97 = vector.extract_strided_slice %70 {offsets = [0, 13, 0], sizes = [32, 1, 8], strides = [1, 1, 1]} : vector<32x16x8xf32> to vector<32x1x8xf32>
    %98 = vector.shape_cast %97 : vector<32x1x8xf32> to vector<32x8xf32>
    %99 = vector.extract_strided_slice %70 {offsets = [0, 14, 0], sizes = [32, 1, 8], strides = [1, 1, 1]} : vector<32x16x8xf32> to vector<32x1x8xf32>
    %100 = vector.shape_cast %99 : vector<32x1x8xf32> to vector<32x8xf32>
    %101 = vector.extract_strided_slice %70 {offsets = [0, 15, 0], sizes = [32, 1, 8], strides = [1, 1, 1]} : vector<32x16x8xf32> to vector<32x1x8xf32>
    %102 = vector.shape_cast %101 : vector<32x1x8xf32> to vector<32x8xf32>
    %103 = tpu.concatenate %72, %74, %76, %78, %80, %82, %84, %86, %88, %90, %92, %94, %96, %98, %100, %102 in 1 : vector<32x8xf32>, vector<32x8xf32>, vector<32x8xf32>, vector<32x8xf32>, vector<32x8xf32>, vector<32x8xf32>, vector<32x8xf32>, vector<32x8xf32>, vector<32x8xf32>, vector<32x8xf32>, vector<32x8xf32>, vector<32x8xf32>, vector<32x8xf32>, vector<32x8xf32>, vector<32x8xf32>, vector<32x8xf32> -> vector<32x128xf32>
    %104 = vector.shape_cast %103 : vector<32x128xf32> to vector<2x16x128xf32>
    %105 = arith.truncf %104 : vector<2x16x128xf32> to vector<2x16x128xbf16>
    %c0_69 = arith.constant 0 : index
    %c0_70 = arith.constant 0 : index
    %c0_71 = arith.constant 0 : index
    %106 = vector.load %arg8[%c0_69, %c0_70, %c0_71] : memref<2x16x128xbf16, #tpu.memory_space<vmem>>, vector<2x16x128xbf16>
    tpu.vector_store %arg8[%c0_69, %c0_70, %c0_71], %105 {strides = array<i32>} : memref<2x16x128xbf16, #tpu.memory_space<vmem>>, vector<2x16x128xbf16>,
    %107 = arith.maximumf %72, %74 : vector<32x8xf32>
    %108 = arith.maximumf %76, %78 : vector<32x8xf32>
    %109 = arith.maximumf %80, %82 : vector<32x8xf32>
    %110 = arith.maximumf %84, %86 : vector<32x8xf32>
    %111 = arith.maximumf %88, %90 : vector<32x8xf32>
    %112 = arith.maximumf %92, %94 : vector<32x8xf32>
    %113 = arith.maximumf %96, %98 : vector<32x8xf32>
    %114 = arith.maximumf %100, %102 : vector<32x8xf32>
    %115 = tpu.concatenate %107, %108, %109, %110, %111, %112, %113, %114 in 1 : vector<32x8xf32>, vector<32x8xf32>, vector<32x8xf32>, vector<32x8xf32>, vector<32x8xf32>, vector<32x8xf32>, vector<32x8xf32>, vector<32x8xf32> -> vector<32x64xf32>
    %116 = vector.shape_cast %115 : vector<32x64xf32> to vector<16x2x64xf32>
    %117 = vector.extract_strided_slice %116 {offsets = [0, 0, 0], sizes = [16, 1, 64], strides = [1, 1, 1]} : vector<16x2x64xf32> to vector<16x1x64xf32>
    %118 = vector.shape_cast %117 : vector<16x1x64xf32> to vector<16x64xf32>
    %119 = vector.extract_strided_slice %116 {offsets = [0, 1, 0], sizes = [16, 1, 64], strides = [1, 1, 1]} : vector<16x2x64xf32> to vector<16x1x64xf32>
    %120 = vector.shape_cast %119 : vector<16x1x64xf32> to vector<16x64xf32>
    %121 = arith.maximumf %118, %120 : vector<16x64xf32>
    %122 = vector.shape_cast %121 : vector<16x64xf32> to vector<2x8x64xf32>
    %123 = arith.truncf %122 : vector<2x8x64xf32> to vector<2x8x64xbf16>
    %c0_72 = arith.constant 0 : index
    %c0_73 = arith.constant 0 : index
    %c0_74 = arith.constant 0 : index
    %124 = vector.load %arg9[%c0_72, %c0_73, %c0_74] : memref<2x8x64xbf16, #tpu.memory_space<vmem>>, vector<2x8x64xbf16>
    tpu.vector_store %arg9[%c0_72, %c0_73, %c0_74], %123 {strides = array<i32>} : memref<2x8x64xbf16, #tpu.memory_space<vmem>>, vector<2x8x64xbf16>,
    return
  }
  func.func @transform_0(%arg0: i32) -> (i32, i32, i32, i32) {
    %c0_i32 = arith.constant 0 : i32
    %c0_i32_0 = arith.constant 0 : i32
    %c0_i32_1 = arith.constant 0 : i32
    %c0_i32_2 = arith.constant 0 : i32
    return %arg0, %c0_i32, %c0_i32_0, %c0_i32_1 : i32, i32, i32, i32
  }
  func.func @transform_1(%arg0: i32) -> (i32, i32, i32) {
    %c0_i32 = arith.constant 0 : i32
    %c0_i32_0 = arith.constant 0 : i32
    %c0_i32_1 = arith.constant 0 : i32
    %c0_i32_2 = arith.constant 0 : i32
    return %c0_i32, %c0_i32_0, %c0_i32_1 : i32, i32, i32
  }
  func.func @transform_2(%arg0: i32) -> (i32, i32) {
    %c0_i32 = arith.constant 0 : i32
    %c0_i32_0 = arith.constant 0 : i32
    %c0_i32_1 = arith.constant 0 : i32
    return %c0_i32, %c0_i32_0 : i32, i32
  }
  func.func @transform_3(%arg0: i32) -> (i32, i32) {
    %c0_i32 = arith.constant 0 : i32
    %c0_i32_0 = arith.constant 0 : i32
    %c0_i32_1 = arith.constant 0 : i32
    return %c0_i32, %c0_i32_0 : i32, i32
  }
  func.func @transform_4(%arg0: i32) -> (i32, i32, i32) {
    %c0_i32 = arith.constant 0 : i32
    %c0_i32_0 = arith.constant 0 : i32
    %c0_i32_1 = arith.constant 0 : i32
    %c0_i32_2 = arith.constant 0 : i32
    return %c0_i32, %c0_i32_0, %c0_i32_1 : i32, i32, i32
  }
  func.func @transform_5(%arg0: i32) -> (i32, i32) {
    %c0_i32 = arith.constant 0 : i32
    %c0_i32_0 = arith.constant 0 : i32
    %c0_i32_1 = arith.constant 0 : i32
    return %c0_i32, %c0_i32_0 : i32, i32
  }
  func.func @transform_6(%arg0: i32) -> (i32, i32) {
    %c0_i32 = arith.constant 0 : i32
    %c0_i32_0 = arith.constant 0 : i32
    %c0_i32_1 = arith.constant 0 : i32
    return %c0_i32, %c0_i32_0 : i32, i32
  }
  func.func @transform_7(%arg0: i32) -> (i32, i32, i32) {
    %c0_i32 = arith.constant 0 : i32
    %c0_i32_0 = arith.constant 0 : i32
    %c0_i32_1 = arith.constant 0 : i32
    return %arg0, %c0_i32, %c0_i32_0 : i32, i32, i32
  }
  func.func @transform_8(%arg0: i32) -> (i32, i32, i32) {
    %c0_i32 = arith.constant 0 : i32
    %c0_i32_0 = arith.constant 0 : i32
    %c0_i32_1 = arith.constant 0 : i32
    return %arg0, %c0_i32, %c0_i32_0 : i32, i32, i32
  }
}

</mosaic_0001>

<bundles_post_ra>
// kernel: tpu_custom_call.1
= control target key start
LH: loop header
LB: loop body
LE: loop exit
PB: predicated region body
PF: predicated region fallthrough
CT: control target
= control target key end

     0   :  { %14 = vsyncpa [#allocation5], 0  ;;  %vm35_vm0 = vcmask 19456   ;;  %vm38_vm1 = vcmask 16384   ;;  %v17603_v1 = vmov 0   ;;  %vm2238_vm8 = vcmask 1046528   ;;  %s17594_s0 = inlined_call_operand.vmem [shape: bf16[2,16,16,3], index: 0, kind: input, shape index: {}]   ;;  %s17595_s1 = inlined_call_operand.vmem [shape: bf16[3,9,8], index: 1, kind: input, shape index: {}]   ;;  %s17596_s2 = inlined_call_operand.vmem [shape: f32[1,8], index: 2, kind: input, shape index: {}]   ;;  %s17597_s3 = inlined_call_operand.vmem [shape: f32[1,8], index: 3, kind: input, shape index: {}]   ;;  %s17598_s4 = inlined_call_operand.vmem [shape: bf16[3,24,8], index: 4, kind: input, shape index: {}]   ;;  %s17599_s5 = inlined_call_operand.vmem [shape: f32[1,8], index: 5, kind: input, shape index: {}]   ;;  %s17600_s6 = inlined_call_operand.vmem [shape: f32[1,8], index: 6, kind: input, shape index: {}]   ;;  %s17601_s7 = inlined_call_operand.hbm [shape: bf16[2,16,128], index: 7, kind: output, shape index: {0}]   ;;  %s17602_s8 = inlined_call_operand.hbm [shape: bf16[2,8,64], index: 8, kind: output, shape index: {1}]  }
   0x1   :  { %v11783_v0 = vld [vmem:[%s17594_s0] sm:$0xf]  ;;  %40 = vst.msk [vmem:[#allocation2 + $0xc] sm:$0xf] %vm35_vm0, %v17603_v1  ;;  %41 = vst.msk [vmem:[#allocation2 + $0x10] sm:$0xf] %vm35_vm0, %v17603_v1 }
   0x2   :  { %42 = vst.msk [vmem:[#allocation2 + $0x14] sm:$0x1] %vm38_vm1, %v17603_v1  ;;  %v11794_v2 = vld [vmem:[%s17594_s0 + $0x4] sm:$0xf]  ;;  %vm319_vm2 = vsmask.f32 256 }
   0x3   :  { %vm320_vm3 = vsmask.f32 4368  ;;  %36 = vst.msk [vmem:[#allocation2] sm:$0xf] %vm35_vm0, %v17603_v1  ;;  %37 = vst.msk [vmem:[#allocation2 + $0x4] sm:$0xf] %vm35_vm0, %v17603_v1 }
   0x4   :  { %39 = vst.msk [vmem:[#allocation2 + $0x8] sm:$0x1] %vm38_vm1, %v17603_v1  ;;  %45 = vst.msk [vmem:[#allocation2 + $0x20] sm:$0x1] %vm38_vm1, %v17603_v1  ;;  %v323_v3 = vshrl.u32 %v11783_v0, 16  ;;  %v326_v4 = vshll.u32 %v11783_v0, 16 }
   0x5   :  { %43 = vst.msk [vmem:[#allocation2 + $0x18] sm:$0xf] %vm35_vm0, %v17603_v1  ;;  %44 = vst.msk [vmem:[#allocation2 + $0x1c] sm:$0xf] %vm35_vm0, %v17603_v1  ;;  %v331_v5 = vshrl.u32 %v11794_v2, 16  ;;  %v334_v6 = vshll.u32 %v11794_v2, 16 }
   0x6   :  { %46 = vst.msk [vmem:[#allocation2 + $0x24] sm:$0xf] %vm35_vm0, %v17603_v1  ;;  %47 = vst.msk [vmem:[#allocation2 + $0x28] sm:$0xf] %vm35_vm0, %v17603_v1  ;;  %vm964_vm4 = vsmask.f32 7938 }
   0x7   :  { %48 = vst.msk [vmem:[#allocation2 + $0x2c] sm:$0x1] %vm38_vm1, %v17603_v1  ;;  %51 = vst.msk [vmem:[#allocation2 + $0x38] sm:$0x1] %vm38_vm1, %v17603_v1  ;;  %v257_v7 = vld [vmem:[%s17594_s0 + $0x8] sm:$0xf] }
   0x8   :  { %49 = vst.msk [vmem:[#allocation2 + $0x30] sm:$0xf] %vm35_vm0, %v17603_v1  ;;  %50 = vst.msk [vmem:[#allocation2 + $0x34] sm:$0xf] %vm35_vm0, %v17603_v1  ;;  %v325_v9 = vrot.slane %v323_v3, 7  ;;  %v333_v10 = vrot.slane %v331_v5, 7 }
   0x9   :  { %52 = vst.msk [vmem:[#allocation2 + $0x3c] sm:$0xf] %vm35_vm0, %v17603_v1  ;;  %53 = vst.msk [vmem:[#allocation2 + $0x40] sm:$0xf] %vm35_vm0, %v17603_v1  ;;  %v258_v11 = vld [vmem:[%s17594_s0 + $0xc] sm:$0xf] }
   0xa   :  { %54 = vst.msk [vmem:[#allocation2 + $0x44] sm:$0x1] %vm38_vm1, %v17603_v1  ;;  %57 = vst.msk [vmem:[#allocation2 + $0x50] sm:$0x1] %vm38_vm1, %v17603_v1  ;;  %v340_v12 = vshrl.u32 %v257_v7, 16  ;;  %v343_v14 = vshll.u32 %v257_v7, 16  ;;  %v328_v18 = vor.u32 %v326_v4, %v325_v9  ;;  %v336_v20 = vor.u32 %v334_v6, %v333_v10 }
   0xb   :  { %55 = vst.msk [vmem:[#allocation2 + $0x48] sm:$0xf] %vm35_vm0, %v17603_v1  ;;  %56 = vst.msk [vmem:[#allocation2 + $0x4c] sm:$0xf] %vm35_vm0, %v17603_v1  ;;  %v348_v15 = vshrl.u32 %v258_v11, 16  ;;  %v351_v16 = vshll.u32 %v258_v11, 16 }
   0xc   :  { %58 = vst.msk [vmem:[#allocation2 + $0x54] sm:$0xf] %vm35_vm0, %v17603_v1  ;;  %59 = vst.msk [vmem:[#allocation2 + $0x58] sm:$0xf] %vm35_vm0, %v17603_v1  ;;  %v261_v17 = vld [vmem:[%s17594_s0 + $0x18] sm:$0xf] }
   0xd   :  { %60 = vst.msk [vmem:[#allocation2 + $0x5c] sm:$0x1] %vm38_vm1, %v17603_v1  ;;  %63 = vst.msk [vmem:[#allocation2 + $0x68] sm:$0x1] %vm38_vm1, %v17603_v1  ;;  %v329_v19 = vrot.slane %v325_v9, 4  ;;  %v338_v21 = vrot.slane %v333_v10, 4 }
   0xe   :  { %61 = vst.msk [vmem:[#allocation2 + $0x60] sm:$0xf] %vm35_vm0, %v17603_v1  ;;  %62 = vst.msk [vmem:[#allocation2 + $0x64] sm:$0xf] %vm35_vm0, %v17603_v1  ;;  %v262_v23 = vld [vmem:[%s17594_s0 + $0x1c] sm:$0xf] }
   0xf   :  { %64 = vst.msk [vmem:[#allocation2 + $0x6c] sm:$0xf] %vm35_vm0, %v17603_v1  ;;  %65 = vst.msk [vmem:[#allocation2 + $0x70] sm:$0xf] %vm35_vm0, %v17603_v1  ;;  %v342_v24 = vrot.slane %v340_v12, 7  ;;  %v350_v25 = vrot.slane %v348_v15, 7 }
  0x10   :  { %66 = vst.msk [vmem:[#allocation2 + $0x74] sm:$0x1] %vm38_vm1, %v17603_v1  ;;  %69 = vst.msk [vmem:[#allocation2 + $0x80] sm:$0x1] %vm38_vm1, %v17603_v1  ;;  %v374_v26 = vshrl.u32 %v261_v17, 16  ;;  %v377_v27 = vshll.u32 %v261_v17, 16 }
  0x11   :  { %67 = vst.msk [vmem:[#allocation2 + $0x78] sm:$0xf] %vm35_vm0, %v17603_v1  ;;  %68 = vst.msk [vmem:[#allocation2 + $0x7c] sm:$0xf] %vm35_vm0, %v17603_v1  ;;  %v259_v28 = vld [vmem:[%s17594_s0 + $0x10] sm:$0xf]  ;;  %v345_v35 = vor.u32 %v343_v14, %v342_v24  ;;  %v353_v39 = vor.u32 %v351_v16, %v350_v25 }
  0x12   :  { %70 = vst.msk [vmem:[#allocation2 + $0x84] sm:$0xf] %vm35_vm0, %v17603_v1  ;;  %71 = vst.msk [vmem:[#allocation2 + $0x88] sm:$0xf] %vm35_vm0, %v17603_v1  ;;  %v966_v30 = vld [vmem:[#allocation2 + $0xc] sm:$0xf] }
  0x13   :  { %72 = vst.msk [vmem:[#allocation2 + $0x8c] sm:$0x1] %vm38_vm1, %v17603_v1  ;;  %75 = vst.msk [vmem:[#allocation2 + $0x98] sm:$0x1] %vm38_vm1, %v17603_v1  ;;  %v973_v31 = vld [vmem:[#allocation2 + $0x14] sm:$0x1] }
  0x14   :  { %73 = vst.msk [vmem:[#allocation2 + $0x90] sm:$0xf] %vm35_vm0, %v17603_v1  ;;  %74 = vst.msk [vmem:[#allocation2 + $0x94] sm:$0xf] %vm35_vm0, %v17603_v1  ;;  %v976_v32 = vld [vmem:[#allocation2 + $0x18] sm:$0xf] }
  0x15   :  { %76 = vst.msk [vmem:[#allocation2 + $0x9c] sm:$0xf] %vm35_vm0, %v17603_v1  ;;  %77 = vst.msk [vmem:[#allocation2 + $0xa0] sm:$0xf] %vm35_vm0, %v17603_v1  ;;  %v346_v36 = vrot.slane %v342_v24, 4  ;;  %v355_v40 = vrot.slane %v350_v25, 4 }
  0x16   :  { %78 = vst.msk [vmem:[#allocation2 + $0xa4] sm:$0x1] %vm38_vm1, %v17603_v1  ;;  %81 = vst.msk [vmem:[#allocation2 + $0xb0] sm:$0x1] %vm38_vm1, %v17603_v1  ;;  %v980_v37 = vld [vmem:[#allocation2 + $0x20] sm:$0x1] }
  0x17   :  { %79 = vst.msk [vmem:[#allocation2 + $0xa8] sm:$0xf] %vm35_vm0, %v17603_v1  ;;  %80 = vst.msk [vmem:[#allocation2 + $0xac] sm:$0xf] %vm35_vm0, %v17603_v1  ;;  %v260_v38 = vld [vmem:[%s17594_s0 + $0x14] sm:$0xf] }
  0x18   :  { %82 = vst.msk [vmem:[#allocation2 + $0xb4] sm:$0xf] %vm35_vm0, %v17603_v1  ;;  %83 = vst.msk [vmem:[#allocation2 + $0xb8] sm:$0xf] %vm35_vm0, %v17603_v1  ;;  %v376_v41 = vrot.slane %v374_v26, 7  ;;  %v382_v42 = vshrl.u32 %v262_v23, 16 }
  0x19   :  { %84 = vst.msk [vmem:[#allocation2 + $0xbc] sm:$0x1] %vm38_vm1, %v17603_v1  ;;  %87 = vst.msk [vmem:[#allocation2 + $0xc8] sm:$0x1] %vm38_vm1, %v17603_v1  ;;  %v265_v43 = vld [vmem:[%s17594_s0 + $0x28] sm:$0xf] }
  0x1a   :  { %85 = vst.msk [vmem:[#allocation2 + $0xc0] sm:$0xf] %vm35_vm0, %v17603_v1  ;;  %86 = vst.msk [vmem:[#allocation2 + $0xc4] sm:$0xf] %vm35_vm0, %v17603_v1  ;;  %v385_v45 = vshll.u32 %v262_v23, 16  ;;  %v357_v47 = vshrl.u32 %v259_v28, 16  ;;  %v379_v51 = vor.u32 %v377_v27, %v376_v41 }
  0x1b   :  { %88 = vst.msk [vmem:[#allocation2 + $0xcc] sm:$0xf] %vm35_vm0, %v17603_v1  ;;  %89 = vst.msk [vmem:[#allocation2 + $0xd0] sm:$0xf] %vm35_vm0, %v17603_v1  ;;  %v990_v46 = vld [vmem:[#allocation2 + $0x30] sm:$0xf] }
  0x1c   :  { %90 = vst.msk [vmem:[#allocation2 + $0xd4] sm:$0x1] %vm38_vm1, %v17603_v1  ;;  %93 = vst.msk [vmem:[#allocation2 + $0xe0] sm:$0x1] %vm38_vm1, %v17603_v1  ;;  %v360_v48 = vshll.u32 %v259_v28, 16  ;;  %v380_v52 = vrot.slane %v376_v41, 4 }
  0x1d   :  { %91 = vst.msk [vmem:[#allocation2 + $0xd8] sm:$0xf] %vm35_vm0, %v17603_v1  ;;  %92 = vst.msk [vmem:[#allocation2 + $0xdc] sm:$0xf] %vm35_vm0, %v17603_v1  ;;  %v266_v53 = vld [vmem:[%s17594_s0 + $0x2c] sm:$0xf] }
  0x1e   :  { %94 = vst.msk [vmem:[#allocation2 + $0xe4] sm:$0xf] %vm35_vm0, %v17603_v1  ;;  %95 = vst.msk [vmem:[#allocation2 + $0xe8] sm:$0xf] %vm35_vm0, %v17603_v1  ;;  %v384_v54 = vrot.slane %v382_v42, 7  ;;  %v359_v56 = vrot.slane %v357_v47, 7 }
  0x1f   :  { %96 = vst.msk [vmem:[#allocation2 + $0xec] sm:$0x1] %vm38_vm1, %v17603_v1  ;;  %99 = vst.msk [vmem:[#allocation2 + $0xf8] sm:$0x1] %vm38_vm1, %v17603_v1  ;;  %v994_v55 = vld [vmem:[#allocation2 + $0x38] sm:$0x1] }
  0x20   :  { %97 = vst.msk [vmem:[#allocation2 + $0xf0] sm:$0xf] %vm35_vm0, %v17603_v1  ;;  %98 = vst.msk [vmem:[#allocation2 + $0xf4] sm:$0xf] %vm35_vm0, %v17603_v1  ;;  %v365_v57 = vshrl.u32 %v260_v38, 16  ;;  %v368_v58 = vshll.u32 %v260_v38, 16  ;;  %v387_v0 = vor.u32 %v385_v45, %v384_v54  ;;  %v362_v3 = vor.u32 %v360_v48, %v359_v56 }
  0x21   :  { %100 = vst.msk [vmem:[#allocation2 + $0xfc] sm:$0xf] %vm35_vm0, %v17603_v1  ;;  %101 = vst.msk [vmem:[#allocation2 + $0x100] sm:$0xf] %vm35_vm0, %v17603_v1  ;;  %v983_v60 = vld [vmem:[#allocation2 + $0x24] sm:$0xf] }
  0x22   :  { %102 = vst.msk [vmem:[#allocation2 + $0x104] sm:$0x1] %vm38_vm1, %v17603_v1  ;;  %105 = vst.msk [vmem:[#allocation2 + $0x110] sm:$0x1] %vm38_vm1, %v17603_v1  ;;  %v408_v61 = vshrl.u32 %v265_v43, 16  ;;  %v411_v62 = vshll.u32 %v265_v43, 16 }
  0x23   :  { %103 = vst.msk [vmem:[#allocation2 + $0x108] sm:$0xf] %vm35_vm0, %v17603_v1  ;;  %104 = vst.msk [vmem:[#allocation2 + $0x10c] sm:$0xf] %vm35_vm0, %v17603_v1  ;;  %v416_v63 = vshrl.u32 %v266_v53, 16  ;;  %v389_v2 = vrot.slane %v384_v54, 4 }
  0x24   :  { %106 = vst.msk [vmem:[#allocation2 + $0x114] sm:$0xf] %vm35_vm0, %v17603_v1  ;;  %107 = vst.msk [vmem:[#allocation2 + $0x118] sm:$0xf] %vm35_vm0, %v17603_v1  ;;  %vm1625_vm9 = vsmask.f32 7424 }
  0x25   :  { %108 = vst.msk [vmem:[#allocation2 + $0x11c] sm:$0x1] %vm38_vm1, %v17603_v1  ;;  %111 = vst.msk [vmem:[#allocation2 + $0x128] sm:$0x1] %vm38_vm1, %v17603_v1  ;;  %v363_v4 = vrot.slane %v359_v56, 4  ;;  %v367_v6 = vrot.slane %v365_v57, 7 }
  0x26   :  { %109 = vst.msk [vmem:[#allocation2 + $0x120] sm:$0xf] %vm35_vm0, %v17603_v1  ;;  %110 = vst.msk [vmem:[#allocation2 + $0x124] sm:$0xf] %vm35_vm0, %v17603_v1  ;;  %v410_v7 = vrot.slane %v408_v61, 7  ;;  %v418_v9 = vrot.slane %v416_v63, 7 }
  0x27   :  { %112 = vst.msk [vmem:[#allocation2 + $0x12c] sm:$0xf] %vm35_vm0, %v17603_v1  ;;  %113 = vst.msk [vmem:[#allocation2 + $0x130] sm:$0xf] %vm35_vm0, %v17603_v1  ;;  %v419_v10 = vshll.u32 %v266_v53, 16  ;;  %s11713_s27 = smov 6  }
  0x28   :  { %114 = vst.msk [vmem:[#allocation2 + $0x134] sm:$0x1] %vm38_vm1, %v17603_v1  ;;  %117 = vst.msk [vmem:[#allocation2 + $0x140] sm:$0x1] %vm38_vm1, %v17603_v1  ;;  %v987_v23 = vld [vmem:[#allocation2 + $0x2c] sm:$0x1]  ;;  %v413_v26 = vor.u32 %v411_v62, %v410_v7 }
  0x29   :  { %115 = vst.msk [vmem:[#allocation2 + $0x138] sm:$0xf] %vm35_vm0, %v17603_v1  ;;  %116 = vst.msk [vmem:[#allocation2 + $0x13c] sm:$0xf] %vm35_vm0, %v17603_v1  ;;  %v414_v27 = vrot.slane %v410_v7, 4  ;;  %v421_v28 = vor.u32 %v419_v10, %v418_v9  ;;  %s11714_s30 = smov 3  }
  0x2a   :  { %118 = vst.msk [vmem:[#allocation2 + $0x144] sm:$0xf] %vm35_vm0, %v17603_v1  ;;  %119 = vst.msk [vmem:[#allocation2 + $0x148] sm:$0xf] %vm35_vm0, %v17603_v1  ;;  %v1008_v45 = vld [vmem:[#allocation2 + $0x50] sm:$0x1] }
  0x2b   :  { %120 = vst.msk [vmem:[#allocation2 + $0x14c] sm:$0x1] %vm38_vm1, %v17603_v1  ;;  %123 = vst.msk [vmem:[#allocation2 + $0x158] sm:$0x1] %vm38_vm1, %v17603_v1  ;;  %v264_v57 = vld [vmem:[%s17594_s0 + $0x24] sm:$0xf] }
  0x2c   :  { %121 = vst.msk [vmem:[#allocation2 + $0x150] sm:$0xf] %vm35_vm0, %v17603_v1  ;;  %122 = vst.msk [vmem:[#allocation2 + $0x154] sm:$0xf] %vm35_vm0, %v17603_v1  ;;  %v399_v7 = vshrl.u32 %v264_v57, 16  ;;  %vm2419_vm10 = vcmask 23552  }
  0x2d   :  { %124 = vst.msk [vmem:[#allocation2 + $0x15c] sm:$0xf] %vm35_vm0, %v17603_v1  ;;  %125 = vst.msk [vmem:[#allocation2 + $0x160] sm:$0xf] %vm35_vm0, %v17603_v1  ;;  %vm2640_vm11 = vcmask 1043456   ;;  %vm2641_vm12 = vcmask 1044480  }
  0x2e   :  { %126 = vst.msk [vmem:[#allocation2 + $0x164] sm:$0x1] %vm38_vm1, %v17603_v1  ;;  %129 = vst.msk [vmem:[#allocation2 + $0x170] sm:$0x1] %vm38_vm1, %v17603_v1 }
  0x2f   :  { %127 = vst.msk [vmem:[#allocation2 + $0x168] sm:$0xf] %vm35_vm0, %v17603_v1  ;;  %128 = vst.msk [vmem:[#allocation2 + $0x16c] sm:$0xf] %vm35_vm0, %v17603_v1 }
  0x30   :  { %130 = vst.msk [vmem:[#allocation2 + $0x174] sm:$0xf] %vm35_vm0, %v17603_v1  ;;  %131 = vst.msk [vmem:[#allocation2 + $0x178] sm:$0xf] %vm35_vm0, %v17603_v1 }
  0x31   :  { %132 = vst.msk [vmem:[#allocation2 + $0x17c] sm:$0x1] %vm38_vm1, %v17603_v1  ;;  %135 = vst.msk [vmem:[#allocation2 + $0x188] sm:$0x1] %vm38_vm1, %v17603_v1 }
  0x32   :  { %133 = vst.msk [vmem:[#allocation2 + $0x180] sm:$0xf] %vm35_vm0, %v17603_v1  ;;  %134 = vst.msk [vmem:[#allocation2 + $0x184] sm:$0xf] %vm35_vm0, %v17603_v1 }
  0x33   :  { %136 = vst.msk [vmem:[#allocation2 + $0x18c] sm:$0xf] %vm35_vm0, %v17603_v1  ;;  %137 = vst.msk [vmem:[#allocation2 + $0x190] sm:$0xf] %vm35_vm0, %v17603_v1 }
  0x34   :  { %138 = vst.msk [vmem:[#allocation2 + $0x194] sm:$0x1] %vm38_vm1, %v17603_v1  ;;  %141 = vst.msk [vmem:[#allocation2 + $0x1a0] sm:$0x1] %vm38_vm1, %v17603_v1 }
  0x35   :  { %139 = vst.msk [vmem:[#allocation2 + $0x198] sm:$0xf] %vm35_vm0, %v17603_v1  ;;  %140 = vst.msk [vmem:[#allocation2 + $0x19c] sm:$0xf] %vm35_vm0, %v17603_v1 }
  0x36   :  { %142 = vst.msk [vmem:[#allocation2 + $0x1a4] sm:$0xf] %vm35_vm0, %v17603_v1  ;;  %143 = vst.msk [vmem:[#allocation2 + $0x1a8] sm:$0xf] %vm35_vm0, %v17603_v1 }
  0x37   :  { %144 = vst.msk [vmem:[#allocation2 + $0x1ac] sm:$0x1] %vm38_vm1, %v17603_v1  ;;  %vm12015_vm5 = vmor %vm319_vm2, %vm320_vm3 }
  0x38   :  { %vm12024_vm6 = vmand %vm38_vm1, %vm319_vm2  ;;  %v337_v29 = vsel %vm12015_vm5, %v329_v19, %v336_v20  ;;  %v354_v49 = vsel %vm12015_vm5, %v346_v36, %v353_v39  ;;  %v388_v14 = vsel %vm12015_vm5, %v380_v52, %v387_v0  ;;  %v370_v20 = vor.u32 %v368_v58, %v367_v6 }
  0x39   :  { %vm12033_vm7 = vmand %vm35_vm0, %vm964_vm4  ;;  %970 = vst.msk [vmem:[#allocation2 + $0x10] sm:$0xf] %vm35_vm0, %v337_v29  ;;  %v974_v34 = vsel %vm12024_vm6, %v338_v21, %v973_v31  ;;  %v981_v50 = vsel %vm12024_vm6, %v355_v40, %v980_v37  ;;  %v995_v15 = vsel %vm12024_vm6, %v389_v2, %v994_v55  ;;  %v372_v21 = vrot.slane %v367_v6, 4 }
  0x3a   :  { %v967_v33 = vsel %vm12033_vm7, %v328_v18, %v966_v30  ;;  %975 = vst [vmem:[#allocation2 + $0x14] sm:$0x1] %v974_v34  ;;  %v977_v44 = vsel %vm12033_vm7, %v345_v35, %v976_v32  ;;  %979 = vst.msk [vmem:[#allocation2 + $0x1c] sm:$0xf] %vm35_vm0, %v354_v49  ;;  %v991_v59 = vsel %vm12033_vm7, %v379_v51, %v990_v46  ;;  %v423_v29 = vrot.slane %v418_v9, 4 }
  0x3b   :  { %968 = vst [vmem:[#allocation2 + $0xc] sm:$0xf] %v967_v33  ;;  %978 = vst [vmem:[#allocation2 + $0x18] sm:$0xf] %v977_v44  ;;  %v984_v16 = vsel %vm12033_vm7, %v362_v3, %v983_v60  ;;  %v1004_v30 = vld [vmem:[#allocation2 + $0x48] sm:$0xf]  ;;  %v371_v40 = vsel %vm12015_vm5, %v363_v4, %v370_v20  ;;  %v988_v43 = vsel %vm12024_vm6, %v372_v21, %v987_v23 }
  0x3c   :  { %982 = vst [vmem:[#allocation2 + $0x20] sm:$0x1] %v981_v50  ;;  %992 = vst [vmem:[#allocation2 + $0x30] sm:$0xf] %v991_v59  ;;  %v422_v44 = vsel %vm12015_vm5, %v414_v27, %v421_v28  ;;  %v263_v46 = vld [vmem:[%s17594_s0 + $0x20] sm:$0xf]  ;;  %v1005_v56 = vsel %vm12033_vm7, %v413_v26, %v1004_v30  ;;  %v1009_v60 = vsel %vm12024_vm6, %v423_v29, %v1008_v45 }
  0x3d   :  { %993 = vst.msk [vmem:[#allocation2 + $0x34] sm:$0xf] %vm35_vm0, %v388_v14  ;;  %996 = vst [vmem:[#allocation2 + $0x38] sm:$0x1] %v995_v15  ;;  %v394_v6 = vshll.u32 %v263_v46, 16  ;;  %v401_v20 = vrot.slane %v399_v7, 7 }
  0x3e   :  { %985 = vst [vmem:[#allocation2 + $0x24] sm:$0xf] %v984_v16  ;;  %986 = vst.msk [vmem:[#allocation2 + $0x28] sm:$0xf] %vm35_vm0, %v371_v40 }
  0x3f   :  { %989 = vst [vmem:[#allocation2 + $0x2c] sm:$0x1] %v988_v43  ;;  %1007 = vst.msk [vmem:[#allocation2 + $0x4c] sm:$0xf] %vm35_vm0, %v422_v44  ;;  %v269_v44 = vld [vmem:[%s17594_s0 + $0x38] sm:$0xf] }
  0x40   :  { %v1196_v5 = vld [vmem:[#allocation2 + $0x10] sm:$0xf]  ;;  %1006 = vst [vmem:[#allocation2 + $0x48] sm:$0xf] %v1005_v56  ;;  %1010 = vst [vmem:[#allocation2 + $0x50] sm:$0x1] %v1009_v60 }
  0x41   :  { %v11459_v17 = vld [vmem:[#allocation2 + $0x14] ss:$0 sps:$4 sm:$0x11]   ;;  %v1198_v35 = vld [vmem:[#allocation2 + $0x1c] sm:$0xf]  ;;  %v445_v7 = vshll.u32 %v269_v44, 16 }
  0x42   :  { %v1302_v11 = vld [vmem:[#allocation2 + $0xc] sm:$0xe]  ;;  %v1197_v24 = vld [vmem:[#allocation2 + $0x18] sm:$0xf]  ;;  %v2243_v32 = vrot.slane %v11459_v17, 1  ;;  %v1646_v36 = vshll.u32 %v11459_v17, 16 }
  0x43   :  { %v1195_v12 = vld [vmem:[#allocation2 + $0xc] sm:$0xf]  ;;  %v9871_v18 = vcombine.low %v1302_v11, %v1196_v5  ;;  %v1303_v25 = vld [vmem:[#allocation2 + $0x18] sm:$0xe]  ;;  %v12079_v37 = vcombine.low %v1197_v24, %v1198_v35  ;;  %v1201_v51 = vld [vmem:[#allocation2 + $0x30] sm:$0xf] }
  0x44   :  { %v12074_v19 = vcombine.low %v1195_v12, %v1196_v5  ;;  %v11463_v38 = vld [vmem:[#allocation2 + $0x20] ss:$0 sps:$4 sm:$0x11]   ;;  %v9872_v39 = vcombine.low %v1303_v25, %v1198_v35  ;;  %v1648_v47 = vrot.slane %v1646_v36, 1  ;;  %v1305_v55 = vld [vmem:[#allocation2 + $0x30] sm:$0xe] }
  0x45   :  { %v2242_v31 = vrot.slane %v9871_v18, 1  ;;  %v2246_v49 = vrot.slane %v11463_v38, 1  ;;  %v1651_v50 = vshrl.u32 %v12079_v37, 16  ;;  %v1653_v53 = vshll.u32 %v12079_v37, 16  ;;  %v1202_v59 = vld [vmem:[#allocation2 + $0x34] sm:$0xf] }
  0x46   :  { %v1639_v33 = vshrl.u32 %v12074_v19, 16  ;;  %v1641_v34 = vshll.u32 %v12074_v19, 16  ;;  %v2245_v48 = vrot.slane %v9872_v39, 1  ;;  %v1658_v54 = vshll.u32 %v11463_v38, 16  ;;  %v1199_v3 = vld [vmem:[#allocation2 + $0x24] sm:$0xf] }
  0x47   :  { %v2244_v41 = vsel %vm2238_vm8, %v2242_v31, %v2243_v32  ;;  %v1655_v62 = vrot.slane %v1653_v53, 1  ;;  %v12105_v0 = vcombine.low %v1201_v51, %v1202_v59  ;;  %v11466_v2 = vld [vmem:[#allocation2 + $0x38] ss:$0 sps:$4 sm:$0x11]   ;;  %v9874_v4 = vcombine.low %v1305_v55, %v1202_v59  ;;  %v1304_v14 = vld [vmem:[#allocation2 + $0x24] sm:$0xe] }
  0x48   :  { %v1643_v42 = vrot.slane %v1641_v34, 1  ;;  %2349 = vrot.lane.b32.xlu1 %v2244_v41, %s11713_s27  ;;  %v2247_v58 = vsel %vm2238_vm8, %v2245_v48, %v2246_v49  ;;  %v1660_v63 = vrot.slane %v1658_v54, 1  ;;  %v391_v5 = vshrl.u32 %v263_v46, 16  ;;  %v1200_v15 = vld [vmem:[#allocation2 + $0x28] sm:$0xf] }
  0x49   :  { %v1656_v9 = vor.u32 %v1655_v62, %v1651_v50  ;;  %v1675_v10 = vshrl.u32 %v12105_v0, 16  ;;  %v1677_v11 = vshll.u32 %v12105_v0, 16  ;;  %v1682_v12 = vshll.u32 %v11466_v2, 16  ;;  %v1206_v26 = vld [vmem:[#allocation2 + $0x4c] sm:$0xf] }
  0x4a   :  { %v1644_v52 = vor.u32 %v1643_v42, %v1639_v33  ;;  %v2251_v16 = vrot.slane %v9874_v4, 1  ;;  %v2252_v17 = vrot.slane %v11466_v2, 1  ;;  %v393_v18 = vrot.slane %v391_v5, 7  ;;  %v11468_v27 = vld [vmem:[#allocation2 + $0x2c] ss:$0 sps:$4 sm:$0x11]  }
  0x4b   :  { %v1661_v21 = vsel %vm1625_vm9, %v1656_v9, %v1660_v63  ;;  %v1679_v23 = vrot.slane %v1677_v11, 1  ;;  %v1684_v24 = vrot.slane %v1682_v12, 1  ;;  %v12112_v25 = vcombine.low %v1199_v3, %v1200_v15  ;;  %v997_v32 = vld [vmem:[#allocation2 + $0x3c] sm:$0xf]  ;;  %v1205_v36 = vld [vmem:[#allocation2 + $0x48] sm:$0xf] }
  0x4c   :  { %v1649_v61 = vsel %vm1625_vm9, %v1644_v52, %v1648_v47  ;;  %2351 = vrot.lane.b32.xlu1 %v2247_v58, %s11713_s27  ;;  %v2253_v28 = vsel %vm2238_vm8, %v2251_v16, %v2252_v17  ;;  %v9873_v29 = vcombine.low %v1304_v14, %v1200_v15  ;;  %v396_v30 = vor.u32 %v394_v6, %v393_v18  ;;  %v1001_v39 = vld [vmem:[#allocation2 + $0x44] sm:$0x1]  ;;  %v11471_v47 = vld [vmem:[#allocation2 + $0x50] ss:$0 sps:$4 sm:$0x11]  }
  0x4d   :  { %2060 = vrot.lane.b32.xlu0 %v1649_v61, %s11714_s30  ;;  %v397_v31 = vrot.slane %v393_v18, 4  ;;  %v1680_v33 = vor.u32 %v1679_v23, %v1675_v10  ;;  %v1663_v34 = vshrl.u32 %v12112_v25, 16  ;;  %v1665_v35 = vshll.u32 %v12112_v25, 16  ;;  %v1307_v54 = vld [vmem:[#allocation2 + $0x48] sm:$0xe] }
  0x4e   :  { %v402_v38 = vshll.u32 %v264_v57, 16  ;;  %v1670_v40 = vshll.u32 %v11468_v27, 16  ;;  %v2248_v41 = vrot.slane %v9873_v29, 1  ;;  %v2249_v42 = vrot.slane %v11468_v27, 1  ;;  %v270_v59 = vld [vmem:[%s17594_s0 + $0x3c] sm:$0xf] }
  0x4f   :  { %v12118_v43 = vcombine.low %v1205_v36, %v1206_v26  ;;  %v1685_v45 = vsel %vm1625_vm9, %v1680_v33, %v1684_v24  ;;  %v1667_v46 = vrot.slane %v1665_v35, 1  ;;  %v406_v49 = vrot.slane %v401_v20, 4  ;;  %v267_v2 = vld [vmem:[%s17594_s0 + $0x30] sm:$0xf]  ;;  %v268_v3 = vld [vmem:[%s17594_s0 + $0x34] sm:$0xf] }
  0x50   :  { %v404_v48 = vor.u32 %v402_v38, %v401_v20  ;;  %2066 = vrot.lane.b32.xlu1 %v1685_v45, %s11714_s30  ;;  %v1672_v50 = vrot.slane %v1670_v40, 1  ;;  %v2250_v51 = vsel %vm2238_vm8, %v2248_v41, %v2249_v42  ;;  %v1706_v56 = vshll.u32 %v11471_v47, 16  ;;  %v273_v18 = vld [vmem:[%s17594_s0 + $0x48] sm:$0xf]  ;;  %v1018_v23 = vld [vmem:[#allocation2 + $0x60] sm:$0xf] }
  0x51   :  { %2062 = vrot.lane.b32.xlu0 %v1661_v21, %s11714_s30  ;;  %v1699_v52 = vshrl.u32 %v12118_v43, 16  ;;  %v1701_v53 = vshll.u32 %v12118_v43, 16  ;;  %v1668_v55 = vor.u32 %v1667_v46, %v1663_v34  ;;  %v998_v58 = vsel %vm12033_vm7, %v396_v30, %v997_v32  ;;  %v1022_v24 = vld [vmem:[#allocation2 + $0x68] sm:$0x1]  ;;  %v1015_v34 = vld [vmem:[#allocation2 + $0x5c] sm:$0x1] }
  0x52   :  { %v405_v57 = vsel %vm12015_vm5, %v397_v31, %v404_v48  ;;  %999 = vst [vmem:[#allocation2 + $0x3c] sm:$0xf] %v998_v58  ;;  %v1002_v61 = vsel %vm12024_vm6, %v406_v49, %v1001_v39  ;;  %v9876_v62 = vcombine.low %v1307_v54, %v1206_v26  ;;  %v2258_v63 = vrot.slane %v11471_v47, 1  ;;  %v1011_v31 = vld [vmem:[#allocation2 + $0x54] sm:$0xf] }
  0x53   :  { %v1703_v60 = vrot.slane %v1701_v53, 1  ;;  %1000 = vst.msk [vmem:[#allocation2 + $0x40] sm:$0xf] %vm35_vm0, %v405_v57  ;;  %v1673_v4 = vsel %vm1625_vm9, %v1668_v55, %v1672_v50  ;;  %v1708_v5 = vrot.slane %v1706_v56, 1  ;;  %1003 = vst [vmem:[#allocation2 + $0x44] sm:$0x1] %v1002_v61 }
  0x54   :  { %v442_v6 = vshrl.u32 %v269_v44, 16  ;;  %2355 = vrot.lane.b32.xlu1 %v2253_v28, %s11713_s27  ;;  %v2257_v10 = vrot.slane %v9876_v62, 1  ;;  %v450_v11 = vshrl.u32 %v270_v59, 16  ;;  %v453_v12 = vshll.u32 %v270_v59, 16  ;;  %v274_v46 = vld [vmem:[%s17594_s0 + $0x4c] sm:$0xf] }
  0x55   :  { %2064 = vrot.lane.b32.xlu0 %v1673_v4, %s11714_s30  ;;  %v1704_v9 = vor.u32 %v1703_v60, %v1699_v52  ;;  %v425_v15 = vshrl.u32 %v267_v2, 16  ;;  %v428_v16 = vshll.u32 %v267_v2, 16  ;;  %v433_v17 = vshrl.u32 %v268_v3, 16  ;;  %v1032_v56 = vld [vmem:[#allocation2 + $0x78] sm:$0xf] }
  0x56   :  { %v444_v14 = vrot.slane %v442_v6, 7  ;;  %v452_v21 = vrot.slane %v450_v11, 7  ;;  %v436_v26 = vshll.u32 %v268_v3, 16  ;;  %v476_v35 = vshrl.u32 %v273_v18, 16  ;;  %v271_v61 = vld [vmem:[%s17594_s0 + $0x40] sm:$0xf] }
  0x57   :  { %v1709_v20 = vsel %vm1625_vm9, %v1704_v9, %v1708_v5  ;;  %v427_v29 = vrot.slane %v425_v15, 7  ;;  %v435_v30 = vrot.slane %v433_v17, 7  ;;  %v479_v36 = vshll.u32 %v273_v18, 16  ;;  %v272_v4 = vld [vmem:[%s17594_s0 + $0x44] sm:$0xf] }
  0x58   :  { %v447_v27 = vor.u32 %v445_v7, %v444_v14  ;;  %v448_v28 = vrot.slane %v444_v14, 4  ;;  %2070 = vrot.lane.b32.xlu1 %v1709_v20, %s11714_s30  ;;  %v455_v32 = vor.u32 %v453_v12, %v452_v21  ;;  %v457_v33 = vrot.slane %v452_v21, 4 }
  0x59   :  { %2353 = vrot.lane.b32.xlu0 %v2250_v51, %s11713_s27  ;;  %v1203_v38 = vld [vmem:[#allocation2 + $0x3c] sm:$0xf]  ;;  %v2259_v40 = vsel %vm2238_vm8, %v2257_v10, %v2258_v63  ;;  %v430_v44 = vor.u32 %v428_v16, %v427_v29  ;;  %v438_v45 = vor.u32 %v436_v26, %v435_v30  ;;  %v431_v52 = vrot.slane %v427_v29, 4  ;;  %v1036_v16 = vld [vmem:[#allocation2 + $0x80] sm:$0x1] }
  0x5a   :  { %v1204_v39 = vld [vmem:[#allocation2 + $0x40] sm:$0xf]  ;;  %v1306_v41 = vld [vmem:[#allocation2 + $0x3c] sm:$0xe]  ;;  %v1019_v42 = vsel %vm12033_vm7, %v447_v27, %v1018_v23  ;;  %v456_v50 = vsel %vm12015_vm5, %v448_v28, %v455_v32  ;;  %v1023_v51 = vsel %vm12024_vm6, %v457_v33, %v1022_v24  ;;  %v440_v53 = vrot.slane %v435_v30, 4 }
  0x5b   :  { %v12159_v47 = vcombine.low %v1203_v38, %v1204_v39  ;;  %v11473_v48 = vld [vmem:[#allocation2 + $0x44] ss:$0 sps:$4 sm:$0x11]   ;;  %v9875_v49 = vcombine.low %v1306_v41, %v1204_v39  ;;  %1020 = vst [vmem:[#allocation2 + $0x60] sm:$0xf] %v1019_v42  ;;  %v1012_v54 = vsel %vm12033_vm7, %v430_v44, %v1011_v31  ;;  %v478_v55 = vrot.slane %v476_v35, 7 }
  0x5c   :  { %1021 = vst.msk [vmem:[#allocation2 + $0x64] sm:$0xf] %vm35_vm0, %v456_v50  ;;  %1024 = vst [vmem:[#allocation2 + $0x68] sm:$0x1] %v1023_v51  ;;  %v1694_v59 = vshll.u32 %v11473_v48, 16  ;;  %2359 = vrot.lane.b32.xlu1 %v2259_v40, %s11713_s27  ;;  %v2255_v62 = vrot.slane %v11473_v48, 1  ;;  %v439_v63 = vsel %vm12015_vm5, %v431_v52, %v438_v45  ;;  %v1016_v2 = vsel %vm12024_vm6, %v440_v53, %v1015_v34 }
  0x5d   :  { %v1687_v57 = vshrl.u32 %v12159_v47, 16  ;;  %v1689_v58 = vshll.u32 %v12159_v47, 16  ;;  %v2254_v60 = vrot.slane %v9875_v49, 1  ;;  %1013 = vst [vmem:[#allocation2 + $0x54] sm:$0xf] %v1012_v54  ;;  %v481_v3 = vor.u32 %v479_v36, %v478_v55 }
  0x5e   :  { %v1696_v6 = vrot.slane %v1694_v59, 1  ;;  %1014 = vst.msk [vmem:[#allocation2 + $0x58] sm:$0xf] %vm35_vm0, %v439_v63  ;;  %1017 = vst [vmem:[#allocation2 + $0x5c] sm:$0x1] %v1016_v2  ;;  %v484_v7 = vshrl.u32 %v274_v46, 16 }
  0x5f   :  { %v1691_v5 = vrot.slane %v1689_v58, 1  ;;  %v482_v9 = vrot.slane %v478_v55, 4  ;;  %v487_v10 = vshll.u32 %v274_v46, 16  ;;  %v1033_v11 = vsel %vm12033_vm7, %v481_v3, %v1032_v56  ;;  %v1025_v32 = vld [vmem:[#allocation2 + $0x6c] sm:$0xf] }
  0x60   :  { %v459_v12 = vshrl.u32 %v271_v61, 16  ;;  %v486_v15 = vrot.slane %v484_v7, 7  ;;  %1034 = vst [vmem:[#allocation2 + $0x78] sm:$0xf] %v1033_v11  ;;  %v462_v17 = vshll.u32 %v271_v61, 16  ;;  %v467_v18 = vshrl.u32 %v272_v4, 16 }
  0x61   :  { %v1692_v14 = vor.u32 %v1691_v5, %v1687_v57  ;;  %v2256_v20 = vsel %vm2238_vm8, %v2254_v60, %v2255_v62  ;;  %v470_v26 = vshll.u32 %v272_v4, 16  ;;  %v1029_v33 = vld [vmem:[#allocation2 + $0x74] sm:$0x1]  ;;  %v277_v48 = vld [vmem:[%s17594_s0 + $0x58] sm:$0xf] }
  0x62   :  { %v1209_v21 = vld [vmem:[#allocation2 + $0x60] sm:$0xf]  ;;  %v461_v24 = vrot.slane %v459_v12, 7  ;;  %v489_v29 = vor.u32 %v487_v10, %v486_v15  ;;  %v491_v30 = vrot.slane %v486_v15, 4  ;;  %v469_v31 = vrot.slane %v467_v18, 7 }
  0x63   :  { %v1309_v23 = vld [vmem:[#allocation2 + $0x60] sm:$0xe]  ;;  %v1697_v27 = vsel %vm1625_vm9, %v1692_v14, %v1696_v6  ;;  %v1210_v28 = vld [vmem:[#allocation2 + $0x64] sm:$0xf]  ;;  %v278_v62 = vld [vmem:[%s17594_s0 + $0x5c] sm:$0xf] }
  0x64   :  { %2068 = vrot.lane.b32.xlu0 %v1697_v27, %s11714_s30  ;;  %v12187_v34 = vcombine.low %v1209_v21, %v1210_v28  ;;  %v11476_v35 = vld [vmem:[#allocation2 + $0x68] ss:$0 sps:$4 sm:$0x11]   ;;  %v1207_v36 = vld [vmem:[#allocation2 + $0x54] sm:$0xf]  ;;  %v9878_v38 = vcombine.low %v1309_v23, %v1210_v28  ;;  %v464_v39 = vor.u32 %v462_v17, %v461_v24  ;;  %v465_v40 = vrot.slane %v461_v24, 4 }
  0x65   :  { %v1308_v41 = vld [vmem:[#allocation2 + $0x54] sm:$0xe]  ;;  %v490_v42 = vsel %vm12015_vm5, %v482_v9, %v489_v29  ;;  %v1037_v44 = vsel %vm12024_vm6, %v491_v30, %v1036_v16  ;;  %v472_v45 = vor.u32 %v470_v26, %v469_v31  ;;  %v474_v46 = vrot.slane %v469_v31, 4  ;;  %v1208_v52 = vld [vmem:[#allocation2 + $0x58] sm:$0xf] }
  0x66   :  { %v1723_v49 = vshrl.u32 %v12187_v34, 16  ;;  %v1725_v50 = vshll.u32 %v12187_v34, 16  ;;  %v1730_v51 = vshll.u32 %v11476_v35, 16  ;;  %1035 = vst.msk [vmem:[#allocation2 + $0x7c] sm:$0xf] %vm35_vm0, %v490_v42  ;;  %v12199_v53 = vcombine.low %v1207_v36, %v1208_v52 }
  0x67   :  { %1038 = vst [vmem:[#allocation2 + $0x80] sm:$0x1] %v1037_v44  ;;  %v11478_v54 = vld [vmem:[#allocation2 + $0x5c] ss:$0 sps:$4 sm:$0x11]   ;;  %v2263_v55 = vrot.slane %v9878_v38, 1  ;;  %v9877_v56 = vcombine.low %v1308_v41, %v1208_v52  ;;  %v473_v57 = vsel %vm12015_vm5, %v465_v40, %v472_v45  ;;  %v1026_v60 = vsel %vm12033_vm7, %v464_v39, %v1025_v32 }
  0x68   :  { %2357 = vrot.lane.b32.xlu0 %v2256_v20, %s11713_s27  ;;  %v1727_v58 = vrot.slane %v1725_v50, 1  ;;  %v1732_v59 = vrot.slane %v1730_v51, 1  ;;  %1028 = vst.msk [vmem:[#allocation2 + $0x70] sm:$0xf] %vm35_vm0, %v473_v57  ;;  %v1030_v61 = vsel %vm12024_vm6, %v474_v46, %v1029_v33  ;;  %v1711_v63 = vshrl.u32 %v12199_v53, 16 }
  0x69   :  { %v1713_v2 = vshll.u32 %v12199_v53, 16  ;;  %v1718_v3 = vshll.u32 %v11478_v54, 16  ;;  %v2264_v4 = vrot.slane %v11476_v35, 1  ;;  %1027 = vst [vmem:[#allocation2 + $0x6c] sm:$0xf] %v1026_v60  ;;  %v2260_v7 = vrot.slane %v9877_v56, 1 }
  0x6a   :  { %1031 = vst [vmem:[#allocation2 + $0x74] sm:$0x1] %v1030_v61  ;;  %v12217_v5 = vld [vmem:[%s17594_s0 + $0x50] sm:$0xf]  ;;  %v1728_v6 = vor.u32 %v1727_v58, %v1723_v49  ;;  %v2261_v9 = vrot.slane %v11478_v54, 1  ;;  %v510_v11 = vshrl.u32 %v277_v48, 16 }
  0x6b   :  { %v1213_v10 = vld [vmem:[#allocation2 + $0x78] sm:$0xf]  ;;  %v1715_v12 = vrot.slane %v1713_v2, 1  ;;  %v1720_v14 = vrot.slane %v1718_v3, 1  ;;  %v513_v16 = vshll.u32 %v277_v48, 16  ;;  %v518_v17 = vshrl.u32 %v278_v62, 16 }
  0x6c   :  { %v1311_v15 = vld [vmem:[#allocation2 + $0x78] sm:$0xe]  ;;  %v1733_v18 = vsel %vm1625_vm9, %v1728_v6, %v1732_v59  ;;  %v512_v20 = vrot.slane %v510_v11, 7  ;;  %v521_v21 = vshll.u32 %v278_v62, 16  ;;  %v2265_v24 = vsel %vm2238_vm8, %v2263_v55, %v2264_v4  ;;  %v1046_v35 = vld [vmem:[#allocation2 + $0x90] sm:$0xf] }
  0x6d   :  { %2074 = vrot.lane.b32.xlu1 %v1733_v18, %s11714_s30  ;;  %v1716_v23 = vor.u32 %v1715_v12, %v1711_v63  ;;  %v1214_v26 = vld [vmem:[#allocation2 + $0x7c] sm:$0xf]  ;;  %v520_v27 = vrot.slane %v518_v17, 7  ;;  %v493_v28 = vshrl.u32 %v12217_v5, 16  ;;  %v2262_v38 = vsel %vm2238_vm8, %v2260_v7, %v2261_v9  ;;  %v1050_v42 = vld [vmem:[#allocation2 + $0x98] sm:$0x1] }
  0x6e   :  { %v12223_v29 = vcombine.low %v1213_v10, %v1214_v26  ;;  %v11481_v30 = vld [vmem:[#allocation2 + $0x80] ss:$0 sps:$4 sm:$0x11]   ;;  %v9880_v31 = vcombine.low %v1311_v15, %v1214_v26  ;;  %v515_v32 = vor.u32 %v513_v16, %v512_v20  ;;  %v516_v33 = vrot.slane %v512_v20, 4  ;;  %v276_v49 = vld [vmem:[%s17594_s0 + $0x54] sm:$0xf] }
  0x6f   :  { %v1721_v36 = vsel %vm1625_vm9, %v1716_v23, %v1720_v14  ;;  %v1212_v39 = vld [vmem:[#allocation2 + $0x70] sm:$0xf]  ;;  %v523_v40 = vor.u32 %v521_v21, %v520_v27  ;;  %v525_v41 = vrot.slane %v520_v27, 4  ;;  %v1754_v46 = vshll.u32 %v11481_v30, 16  ;;  %v1039_v4 = vld [vmem:[#allocation2 + $0x84] sm:$0xf] }
  0x70   :  { %2072 = vrot.lane.b32.xlu0 %v1721_v36, %s11714_s30  ;;  %v1747_v44 = vshrl.u32 %v12223_v29, 16  ;;  %v1749_v45 = vshll.u32 %v12223_v29, 16  ;;  %v1211_v48 = vld [vmem:[#allocation2 + $0x6c] sm:$0xf]  ;;  %v495_v50 = vrot.slane %v493_v28, 7  ;;  %v2269_v54 = vrot.slane %v9880_v31, 1 }
  0x71   :  { %2363 = vrot.lane.b32.xlu1 %v2265_v24, %s11713_s27  ;;  %v12234_v51 = vcombine.low %v1211_v48, %v1212_v39  ;;  %v11483_v52 = vld [vmem:[#allocation2 + $0x74] ss:$0 sps:$4 sm:$0x11]   ;;  %v524_v55 = vsel %vm12015_vm5, %v516_v33, %v523_v40  ;;  %v1047_v56 = vsel %vm12033_vm7, %v515_v32, %v1046_v35  ;;  %v1756_v58 = vrot.slane %v1754_v46, 1  ;;  %v1310_v59 = vld [vmem:[#allocation2 + $0x6c] sm:$0xe] }
  0x72   :  { %v1751_v57 = vrot.slane %v1749_v45, 1  ;;  %1048 = vst [vmem:[#allocation2 + $0x90] sm:$0xf] %v1047_v56  ;;  %1049 = vst.msk [vmem:[#allocation2 + $0x94] sm:$0xf] %vm35_vm0, %v524_v55  ;;  %v1051_v60 = vsel %vm12024_vm6, %v525_v41, %v1050_v42  ;;  %v496_v61 = vshll.u32 %v12217_v5, 16  ;;  %v9879_v7 = vcombine.low %v1310_v59, %v1212_v39 }
  0x73   :  { %v1735_v62 = vshrl.u32 %v12234_v51, 16  ;;  %v1737_v63 = vshll.u32 %v12234_v51, 16  ;;  %v1742_v2 = vshll.u32 %v11483_v52, 16  ;;  %v2270_v3 = vrot.slane %v11481_v30, 1  ;;  %1052 = vst [vmem:[#allocation2 + $0x98] sm:$0x1] %v1051_v60 }
  0x74   :  { %2361 = vrot.lane.b32.xlu0 %v2262_v38, %s11713_s27  ;;  %v1752_v6 = vor.u32 %v1751_v57, %v1747_v44  ;;  %v2267_v9 = vrot.slane %v11483_v52, 1  ;;  %v498_v10 = vor.u32 %v496_v61, %v495_v50  ;;  %v281_v11 = vld [vmem:[%s17594_s0 + $0x68] sm:$0xf]  ;;  %v282_v5 = vld [vmem:[%s17594_s0 + $0x6c] sm:$0xf]  ;;  %v499_v15 = vrot.slane %v495_v50, 4 }
  0x75   :  { %v1739_v12 = vrot.slane %v1737_v63, 1  ;;  %v1744_v14 = vrot.slane %v1742_v2, 1  ;;  %v501_v16 = vshrl.u32 %v276_v49, 16  ;;  %v12256_v17 = vld [vmem:[%s17594_s0 + $0x60] sm:$0xf]  ;;  %v2266_v20 = vrot.slane %v9879_v7, 1 }
  0x76   :  { %v1757_v18 = vsel %vm1625_vm9, %v1752_v6, %v1756_v58  ;;  %v504_v21 = vshll.u32 %v276_v49, 16  ;;  %v1040_v23 = vsel %vm12033_vm7, %v498_v10, %v1039_v4  ;;  %v1043_v27 = vld [vmem:[#allocation2 + $0x8c] sm:$0x1]  ;;  %v544_v28 = vshrl.u32 %v281_v11, 16  ;;  %v1060_v35 = vld [vmem:[#allocation2 + $0xa8] sm:$0xf] }
  0x77   :  { %2078 = vrot.lane.b32.xlu1 %v1757_v18, %s11714_s30  ;;  %v1740_v24 = vor.u32 %v1739_v12, %v1735_v62  ;;  %v503_v26 = vrot.slane %v501_v16, 7  ;;  %1041 = vst [vmem:[#allocation2 + $0x84] sm:$0xf] %v1040_v23  ;;  %v547_v30 = vshll.u32 %v281_v11, 16  ;;  %v2271_v31 = vsel %vm2238_vm8, %v2269_v54, %v2270_v3  ;;  %v1064_v57 = vld [vmem:[#allocation2 + $0xb0] sm:$0x1] }
  0x78   :  { %v552_v32 = vshrl.u32 %v282_v5, 16  ;;  %v555_v33 = vshll.u32 %v282_v5, 16  ;;  %v527_v36 = vshrl.u32 %v12256_v17, 16  ;;  %v546_v44 = vrot.slane %v544_v28, 7  ;;  %v280_v62 = vld [vmem:[%s17594_s0 + $0x64] sm:$0xf] }
  0x79   :  { %v1745_v38 = vsel %vm1625_vm9, %v1740_v24, %v1744_v14  ;;  %v1217_v39 = vld [vmem:[#allocation2 + $0x90] sm:$0xf]  ;;  %v1218_v40 = vld [vmem:[#allocation2 + $0x94] sm:$0xf]  ;;  %v506_v41 = vor.u32 %v504_v21, %v503_v26  ;;  %v508_v42 = vrot.slane %v503_v26, 4  ;;  %v2268_v45 = vsel %vm2238_vm8, %v2266_v20, %v2267_v9 }
  0x7a   :  { %2076 = vrot.lane.b32.xlu0 %v1745_v38, %s11714_s30  ;;  %v12267_v46 = vcombine.low %v1217_v39, %v1218_v40  ;;  %v11486_v48 = vld [vmem:[#allocation2 + $0x98] ss:$0 sps:$4 sm:$0x11]   ;;  %v554_v49 = vrot.slane %v552_v32, 7  ;;  %v1313_v54 = vld [vmem:[#allocation2 + $0x90] sm:$0xe]  ;;  %v549_v55 = vor.u32 %v547_v30, %v546_v44 }
  0x7b   :  { %2367 = vrot.lane.b32.xlu1 %v2271_v31, %s11713_s27  ;;  %v507_v50 = vsel %vm12015_vm5, %v499_v15, %v506_v41  ;;  %v1044_v52 = vsel %vm12024_vm6, %v508_v42, %v1043_v27  ;;  %v550_v56 = vrot.slane %v546_v44, 4  ;;  %v1778_v60 = vshll.u32 %v11486_v48, 16  ;;  %v1053_v10 = vld [vmem:[#allocation2 + $0x9c] sm:$0xf]  ;;  %v285_v11 = vld [vmem:[%s17594_s0 + $0x78] sm:$0xf] }
  0x7c   :  { %v1771_v58 = vshrl.u32 %v12267_v46, 16  ;;  %v1773_v59 = vshll.u32 %v12267_v46, 16  ;;  %1042 = vst.msk [vmem:[#allocation2 + $0x88] sm:$0xf] %vm35_vm0, %v507_v50  ;;  %1045 = vst [vmem:[#allocation2 + $0x8c] sm:$0x1] %v1044_v52  ;;  %v9882_v61 = vcombine.low %v1313_v54, %v1218_v40  ;;  %v557_v63 = vor.u32 %v555_v33, %v554_v49 }
  0x7d   :  { %v559_v2 = vrot.slane %v554_v49, 4  ;;  %v1061_v3 = vsel %vm12033_vm7, %v549_v55, %v1060_v35  ;;  %v1780_v6 = vrot.slane %v1778_v60, 1  ;;  %v2276_v7 = vrot.slane %v11486_v48, 1  ;;  %v286_v16 = vld [vmem:[%s17594_s0 + $0x7c] sm:$0xf] }
  0x7e   :  { %2365 = vrot.lane.b32.xlu0 %v2268_v45, %s11713_s27  ;;  %v1775_v4 = vrot.slane %v1773_v59, 1  ;;  %1062 = vst [vmem:[#allocation2 + $0xa8] sm:$0xf] %v1061_v3  ;;  %v529_v9 = vrot.slane %v527_v36, 7  ;;  %v558_v5 = vsel %vm12015_vm5, %v550_v56, %v557_v63  ;;  %v530_v14 = vshll.u32 %v12256_v17, 16 }
  0x7f   :  { %v1065_v12 = vsel %vm12024_vm6, %v559_v2, %v1064_v57  ;;  %v535_v15 = vshrl.u32 %v280_v62, 16  ;;  %v12297_v18 = vld [vmem:[%s17594_s0 + $0x70] sm:$0xf]  ;;  %v1215_v21 = vld [vmem:[#allocation2 + $0x84] sm:$0xf]  ;;  %v2275_v23 = vrot.slane %v9882_v61, 1 }
  0x80   :  { %v1776_v20 = vor.u32 %v1775_v4, %v1771_v58  ;;  %1063 = vst.msk [vmem:[#allocation2 + $0xac] sm:$0xf] %vm35_vm0, %v558_v5  ;;  %1066 = vst [vmem:[#allocation2 + $0xb0] sm:$0x1] %v1065_v12  ;;  %v533_v24 = vrot.slane %v529_v9, 4  ;;  %v538_v26 = vshll.u32 %v280_v62, 16  ;;  %v532_v17 = vor.u32 %v530_v14, %v529_v9 }
  0x81   :  { %v1312_v27 = vld [vmem:[#allocation2 + $0x84] sm:$0xe]  ;;  %v537_v28 = vrot.slane %v535_v15, 7  ;;  %v578_v30 = vshrl.u32 %v285_v11, 16  ;;  %v581_v31 = vshll.u32 %v285_v11, 16  ;;  %v586_v35 = vshrl.u32 %v286_v16, 16 }
  0x82   :  { %v1781_v32 = vsel %vm1625_vm9, %v1776_v20, %v1780_v6  ;;  %v1057_v33 = vld [vmem:[#allocation2 + $0xa4] sm:$0x1]  ;;  %v589_v36 = vshll.u32 %v286_v16, 16  ;;  %v561_v38 = vshrl.u32 %v12297_v18, 16  ;;  %v1054_v42 = vsel %vm12033_vm7, %v532_v17, %v1053_v10  ;;  %v1074_v54 = vld [vmem:[#allocation2 + $0xc0] sm:$0xf] }
  0x83   :  { %2082 = vrot.lane.b32.xlu1 %v1781_v32, %s11714_s30  ;;  %v1216_v39 = vld [vmem:[#allocation2 + $0x88] sm:$0xf]  ;;  %v540_v40 = vor.u32 %v538_v26, %v537_v28  ;;  %v542_v41 = vrot.slane %v537_v28, 4  ;;  %v580_v44 = vrot.slane %v578_v30, 7  ;;  %v2277_v49 = vsel %vm2238_vm8, %v2275_v23, %v2276_v7  ;;  %1055 = vst [vmem:[#allocation2 + $0x9c] sm:$0xf] %v1054_v42 }
  0x84   :  { %v12305_v45 = vcombine.low %v1215_v21, %v1216_v39  ;;  %v11488_v48 = vld [vmem:[#allocation2 + $0x8c] ss:$0 sps:$4 sm:$0x11]   ;;  %v9881_v50 = vcombine.low %v1312_v27, %v1216_v39  ;;  %v588_v52 = vrot.slane %v586_v35, 7  ;;  %v1078_v2 = vld [vmem:[#allocation2 + $0xc8] sm:$0x1] }
  0x85   :  { %v1221_v55 = vld [vmem:[#allocation2 + $0xa8] sm:$0xf]  ;;  %v541_v56 = vsel %vm12015_vm5, %v533_v24, %v540_v40  ;;  %v1058_v57 = vsel %vm12024_vm6, %v542_v41, %v1057_v33  ;;  %v583_v59 = vor.u32 %v581_v31, %v580_v44  ;;  %v584_v60 = vrot.slane %v580_v44, 4  ;;  %v284_v23 = vld [vmem:[%s17594_s0 + $0x74] sm:$0xf] }
  0x86   :  { %v1315_v58 = vld [vmem:[#allocation2 + $0xa8] sm:$0xe]  ;;  %v1759_v61 = vshrl.u32 %v12305_v45, 16  ;;  %v1761_v62 = vshll.u32 %v12305_v45, 16  ;;  %v1766_v63 = vshll.u32 %v11488_v48, 16  ;;  %v12315_v3 = vrot.slane %v561_v38, 7 }
  0x87   :  { %1056 = vst.msk [vmem:[#allocation2 + $0xa0] sm:$0xf] %vm35_vm0, %v541_v56  ;;  %1059 = vst [vmem:[#allocation2 + $0xa4] sm:$0x1] %v1058_v57  ;;  %2371 = vrot.lane.b32.xlu1 %v2277_v49, %s11713_s27  ;;  %v2272_v4 = vrot.slane %v9881_v50, 1  ;;  %v591_v7 = vor.u32 %v589_v36, %v588_v52  ;;  %v593_v9 = vrot.slane %v588_v52, 4  ;;  %v1075_v10 = vsel %vm12033_vm7, %v583_v59, %v1074_v54 }
  0x88   :  { %v1222_v6 = vld [vmem:[#allocation2 + $0xac] sm:$0xf]  ;;  %v1763_v11 = vrot.slane %v1761_v62, 1  ;;  %v1768_v5 = vrot.slane %v1766_v63, 1  ;;  %1076 = vst [vmem:[#allocation2 + $0xc0] sm:$0xf] %v1075_v10 }
  0x89   :  { %v12320_v12 = vcombine.low %v1221_v55, %v1222_v6  ;;  %v11491_v14 = vld [vmem:[#allocation2 + $0xb0] ss:$0 sps:$4 sm:$0x11]   ;;  %v9884_v15 = vcombine.low %v1315_v58, %v1222_v6  ;;  %v2273_v16 = vrot.slane %v11488_v48, 1  ;;  %v592_v20 = vsel %vm12015_vm5, %v584_v60, %v591_v7  ;;  %v1067_v30 = vld [vmem:[#allocation2 + $0xb4] sm:$0xf] }
  0x8a   :  { %v1079_v21 = vsel %vm12024_vm6, %v593_v9, %v1078_v2  ;;  %v564_v24 = vshll.u32 %v12297_v18, 16  ;;  %v1764_v26 = vor.u32 %v1763_v11, %v1759_v61  ;;  %v1802_v28 = vshll.u32 %v11491_v14, 16  ;;  %1077 = vst.msk [vmem:[#allocation2 + $0xc4] sm:$0xf] %vm35_vm0, %v592_v20  ;;  %v1219_v31 = vld [vmem:[#allocation2 + $0x9c] sm:$0xf] }
  0x8b   :  { %v1795_v27 = vshrl.u32 %v12320_v12, 16  ;;  %v1797_v17 = vshll.u32 %v12320_v12, 16  ;;  %1080 = vst [vmem:[#allocation2 + $0xc8] sm:$0x1] %v1079_v21  ;;  %v2281_v32 = vrot.slane %v9884_v15, 1  ;;  %v2282_v18 = vrot.slane %v11491_v14, 1 }
  0x8c   :  { %v1314_v33 = vld [vmem:[#allocation2 + $0x9c] sm:$0xe]  ;;  %v566_v35 = vor.u32 %v564_v24, %v12315_v3  ;;  %v1769_v36 = vsel %vm1625_vm9, %v1764_v26, %v1768_v5  ;;  %v1804_v39 = vrot.slane %v1802_v28, 1  ;;  %v289_v40 = vld [vmem:[%s17594_s0 + $0x88] sm:$0xf]  ;;  %v569_v42 = vshrl.u32 %v284_v23, 16 }
  0x8d   :  { %v1799_v38 = vrot.slane %v1797_v17, 1  ;;  %2080 = vrot.lane.b32.xlu0 %v1769_v36, %s11714_s30  ;;  %v572_v44 = vshll.u32 %v284_v23, 16  ;;  %v2274_v49 = vsel %vm2238_vm8, %v2272_v4, %v2273_v16  ;;  %v567_v57 = vrot.slane %v12315_v3, 4  ;;  %v1071_v4 = vld [vmem:[#allocation2 + $0xbc] sm:$0x1] }
  0x8e   :  { %v1220_v41 = vld [vmem:[#allocation2 + $0xa0] sm:$0xf]  ;;  %v1068_v48 = vsel %vm12033_vm7, %v566_v35, %v1067_v30  ;;  %v11493_v54 = vld [vmem:[#allocation2 + $0xa4] ss:$0 sps:$4 sm:$0x11]   ;;  %v571_v58 = vrot.slane %v569_v42, 7  ;;  %v2283_v7 = vsel %vm2238_vm8, %v2281_v32, %v2282_v18 }
  0x8f   :  { %v1800_v50 = vor.u32 %v1799_v38, %v1795_v27  ;;  %v12342_v52 = vcombine.low %v1219_v31, %v1220_v41  ;;  %v9883_v55 = vcombine.low %v1314_v33, %v1220_v41  ;;  %1069 = vst [vmem:[#allocation2 + $0xb4] sm:$0xf] %v1068_v48  ;;  %v1225_v56 = vld [vmem:[#allocation2 + $0xc0] sm:$0xf]  ;;  %v612_v59 = vshrl.u32 %v289_v40, 16 }
  0x90   :  { %v615_v60 = vshll.u32 %v289_v40, 16  ;;  %v1790_v2 = vshll.u32 %v11493_v54, 16  ;;  %v1317_v6 = vld [vmem:[#allocation2 + $0xc0] sm:$0xe]  ;;  %v2279_v3 = vrot.slane %v11493_v54, 1  ;;  %v574_v11 = vor.u32 %v572_v44, %v571_v58 }
  0x91   :  { %v1805_v61 = vsel %vm1625_vm9, %v1800_v50, %v1804_v39  ;;  %v1783_v62 = vshrl.u32 %v12342_v52, 16  ;;  %v1785_v63 = vshll.u32 %v12342_v52, 16  ;;  %2369 = vrot.lane.b32.xlu0 %v2274_v49, %s11713_s27  ;;  %v2278_v9 = vrot.slane %v9883_v55, 1  ;;  %v1226_v10 = vld [vmem:[#allocation2 + $0xc4] sm:$0xf] }
  0x92   :  { %2086 = vrot.lane.b32.xlu1 %v1805_v61, %s11714_s30  ;;  %v1792_v14 = vrot.slane %v1790_v2, 1  ;;  %v12351_v15 = vcombine.low %v1225_v56, %v1226_v10  ;;  %v11496_v16 = vld [vmem:[#allocation2 + $0xc8] ss:$0 sps:$4 sm:$0x11]   ;;  %v576_v20 = vrot.slane %v571_v58, 4  ;;  %v575_v21 = vsel %vm12015_vm5, %v567_v57, %v574_v11 }
  0x93   :  { %v1787_v5 = vrot.slane %v1785_v63, 1  ;;  %v9886_v23 = vcombine.low %v1317_v6, %v1226_v10  ;;  %v290_v24 = vld [vmem:[%s17594_s0 + $0x8c] sm:$0xf]  ;;  %v614_v26 = vrot.slane %v612_v59, 7  ;;  %v1826_v30 = vshll.u32 %v11496_v16, 16 }
  0x94   :  { %v1819_v17 = vshrl.u32 %v12351_v15, 16  ;;  %v1821_v28 = vshll.u32 %v12351_v15, 16  ;;  %1070 = vst.msk [vmem:[#allocation2 + $0xb8] sm:$0xf] %vm35_vm0, %v575_v21  ;;  %v1088_v31 = vld [vmem:[#allocation2 + $0xf0] sm:$0xf]  ;;  %v1072_v32 = vsel %vm12024_vm6, %v576_v20, %v1071_v4  ;;  %v2280_v40 = vsel %vm2238_vm8, %v2278_v9, %v2279_v3 }
  0x95   :  { %v1788_v27 = vor.u32 %v1787_v5, %v1783_v62  ;;  %v2287_v33 = vrot.slane %v9886_v23, 1  ;;  %v2288_v35 = vrot.slane %v11496_v16, 1  ;;  %v617_v36 = vor.u32 %v615_v60, %v614_v26  ;;  %v287_v38 = vld [vmem:[%s17594_s0 + $0x80] sm:$0xf]  ;;  %v288_v39 = vld [vmem:[%s17594_s0 + $0x84] sm:$0xf] }
  0x96   :  { %2375 = vrot.lane.b32.xlu1 %v2283_v7, %s11713_s27  ;;  %v1823_v41 = vrot.slane %v1821_v28, 1  ;;  %v1828_v42 = vrot.slane %v1826_v30, 1  ;;  %1073 = vst [vmem:[#allocation2 + $0xbc] sm:$0x1] %v1072_v32  ;;  %v293_v44 = vld [vmem:[%s17594_s0 + $0x98] sm:$0xf] }
  0x97   :  { %v1793_v18 = vsel %vm1625_vm9, %v1788_v27, %v1792_v14  ;;  %v618_v48 = vrot.slane %v614_v26, 4  ;;  %v620_v49 = vshrl.u32 %v290_v24, 16  ;;  %v623_v50 = vshll.u32 %v290_v24, 16  ;;  %v12381_v55 = vld [vmem:[%s17594_s0 + $0x9c] sm:$0xf] }
  0x98   :  { %2084 = vrot.lane.b32.xlu0 %v1793_v18, %s11714_s30  ;;  %v1089_v54 = vsel %vm12033_vm7, %v617_v36, %v1088_v31  ;;  %v1824_v56 = vor.u32 %v1823_v41, %v1819_v17  ;;  %v1223_v57 = vld [vmem:[#allocation2 + $0xb4] sm:$0xf]  ;;  %v1092_v58 = vld [vmem:[#allocation2 + $0xf8] sm:$0x1]  ;;  %v595_v59 = vshrl.u32 %v287_v38, 16  ;;  %v598_v60 = vshll.u32 %v287_v38, 16 }
  0x99   :  { %1090 = vst [vmem:[#allocation2 + $0xf0] sm:$0xf] %v1089_v54  ;;  %v603_v61 = vshrl.u32 %v288_v39, 16  ;;  %v2289_v62 = vsel %vm2238_vm8, %v2287_v33, %v2288_v35  ;;  %v1316_v63 = vld [vmem:[#allocation2 + $0xb4] sm:$0xe]  ;;  %v622_v2 = vrot.slane %v620_v49, 7 }
  0x9a   :  { %v606_v4 = vshll.u32 %v288_v39, 16  ;;  %v646_v6 = vshrl.u32 %v293_v44, 16  ;;  %v1829_v7 = vsel %vm1625_vm9, %v1824_v56, %v1828_v42  ;;  %v597_v9 = vrot.slane %v595_v59, 7  ;;  %v1081_v10 = vld [vmem:[#allocation2 + $0xe4] sm:$0xf] }
  0x9b   :  { %v605_v3 = vrot.slane %v603_v61, 7  ;;  %v649_v11 = vshll.u32 %v293_v44, 16  ;;  %2090 = vrot.lane.b32.xlu1 %v1829_v7, %s11714_s30  ;;  %v1224_v5 = vld [vmem:[#allocation2 + $0xb8] sm:$0xf]  ;;  %v625_v14 = vor.u32 %v623_v50, %v622_v2  ;;  %v627_v16 = vrot.slane %v622_v2, 4 }
  0x9c   :  { %2373 = vrot.lane.b32.xlu0 %v2280_v40, %s11713_s27  ;;  %v648_v20 = vrot.slane %v646_v6, 7  ;;  %v654_v21 = vshrl.u32 %v12381_v55, 16  ;;  %v12388_v23 = vcombine.low %v1223_v57, %v1224_v5  ;;  %v9885_v24 = vcombine.low %v1316_v63, %v1224_v5  ;;  %v1085_v17 = vld [vmem:[#allocation2 + $0xec] sm:$0x1]  ;;  %v291_v18 = vld [vmem:[%s17594_s0 + $0x90] sm:$0xf] }
  0x9d   :  { %v600_v26 = vor.u32 %v598_v60, %v597_v9  ;;  %v601_v27 = vrot.slane %v597_v9, 4  ;;  %v11498_v28 = vld [vmem:[#allocation2 + $0xbc] ss:$0 sps:$4 sm:$0x11]   ;;  %v626_v30 = vsel %vm12015_vm5, %v618_v48, %v625_v14  ;;  %v1093_v31 = vsel %vm12024_vm6, %v627_v16, %v1092_v58  ;;  %v1102_v48 = vld [vmem:[#allocation2 + $0x108] sm:$0xf] }
  0x9e   :  { %v608_v32 = vor.u32 %v606_v4, %v605_v3  ;;  %v610_v33 = vrot.slane %v605_v3, 4  ;;  %v1807_v35 = vshrl.u32 %v12388_v23, 16  ;;  %v1809_v36 = vshll.u32 %v12388_v23, 16  ;;  %1091 = vst.msk [vmem:[#allocation2 + $0xf4] sm:$0xf] %vm35_vm0, %v626_v30 }
  0x9f   :  { %1094 = vst [vmem:[#allocation2 + $0xf8] sm:$0x1] %v1093_v31  ;;  %v1082_v38 = vsel %vm12033_vm7, %v600_v26, %v1081_v10  ;;  %v657_v39 = vshll.u32 %v12381_v55, 16  ;;  %v1814_v40 = vshll.u32 %v11498_v28, 16  ;;  %2379 = vrot.lane.b32.xlu1 %v2289_v62, %s11713_s27  ;;  %v2284_v41 = vrot.slane %v9885_v24, 1 }
  0xa0   :  { %v609_v42 = vsel %vm12015_vm5, %v601_v27, %v608_v32  ;;  %1083 = vst [vmem:[#allocation2 + $0xe4] sm:$0xf] %v1082_v38  ;;  %v1086_v44 = vsel %vm12024_vm6, %v610_v33, %v1085_v17  ;;  %v292_v49 = vld [vmem:[%s17594_s0 + $0x94] sm:$0xf]  ;;  %v1811_v50 = vrot.slane %v1809_v36, 1  ;;  %v651_v54 = vor.u32 %v649_v11, %v648_v20 }
  0xa1   :  { %1084 = vst.msk [vmem:[#allocation2 + $0xe8] sm:$0xf] %vm35_vm0, %v609_v42  ;;  %1087 = vst [vmem:[#allocation2 + $0xec] sm:$0x1] %v1086_v44  ;;  %v652_v55 = vrot.slane %v648_v20, 4  ;;  %v656_v56 = vrot.slane %v654_v21, 7 }
  0xa2   :  { %v12415_v57 = vld [vmem:[%s17594_s0 + $0xa8] sm:$0xf]  ;;  %v1816_v58 = vrot.slane %v1814_v40, 1  ;;  %v2285_v59 = vrot.slane %v11498_v28, 1  ;;  %v1106_v60 = vld [vmem:[#allocation2 + $0x110] sm:$0x1]  ;;  %v1812_v63 = vor.u32 %v1811_v50, %v1807_v35  ;;  %v1103_v7 = vsel %vm12033_vm7, %v651_v54, %v1102_v48 }
  0xa3   :  { %v629_v61 = vshrl.u32 %v291_v18, 16  ;;  %v632_v62 = vshll.u32 %v291_v18, 16  ;;  %v1233_v2 = vld [vmem:[#allocation2 + $0xf0] sm:$0xf]  ;;  %v659_v4 = vor.u32 %v657_v39, %v656_v56  ;;  %v661_v6 = vrot.slane %v656_v56, 4 }
  0xa4   :  { %v1321_v9 = vld [vmem:[#allocation2 + $0xf0] sm:$0xe]  ;;  %1104 = vst [vmem:[#allocation2 + $0x108] sm:$0xf] %v1103_v7  ;;  %v637_v10 = vshrl.u32 %v292_v49, 16  ;;  %v640_v11 = vshll.u32 %v292_v49, 16  ;;  %v1817_v14 = vsel %vm1625_vm9, %v1812_v63, %v1816_v58  ;;  %v2286_v30 = vsel %vm2238_vm8, %v2284_v41, %v2285_v59 }
  0xa5   :  { %v631_v3 = vrot.slane %v629_v61, 7  ;;  %v680_v5 = vshrl.u32 %v12415_v57, 16  ;;  %v660_v16 = vsel %vm12015_vm5, %v652_v55, %v659_v4  ;;  %v1107_v20 = vsel %vm12024_vm6, %v661_v6, %v1106_v60  ;;  %v1095_v21 = vld [vmem:[#allocation2 + $0xfc] sm:$0xf]  ;;  %2088 = vrot.lane.b32.xlu0 %v1817_v14, %s11714_s30  ;;  %v1234_v26 = vld [vmem:[#allocation2 + $0xf4] sm:$0xf] }
  0xa6   :  { %v683_v24 = vshll.u32 %v12415_v57, 16  ;;  %1105 = vst.msk [vmem:[#allocation2 + $0x10c] sm:$0xf] %vm35_vm0, %v660_v16  ;;  %1108 = vst [vmem:[#allocation2 + $0x110] sm:$0x1] %v1107_v20  ;;  %v639_v28 = vrot.slane %v637_v10, 7  ;;  %v12429_v31 = vcombine.low %v1233_v2, %v1234_v26  ;;  %v9890_v35 = vcombine.low %v1321_v9, %v1234_v26 }
  0xa7   :  { %v634_v27 = vor.u32 %v632_v62, %v631_v3  ;;  %v635_v17 = vrot.slane %v631_v3, 4  ;;  %v11501_v32 = vld [vmem:[#allocation2 + $0xf8] ss:$0 sps:$4 sm:$0x11]   ;;  %v1231_v33 = vld [vmem:[#allocation2 + $0xe4] sm:$0xf] }
  0xa8   :  { %17795 = vst [vmem:[#allocation10_spill] sm:$0xff] %v12429_v31  ;;  %v12431_v36 = vrot.slane %v680_v5, 7  ;;  %v1232_v38 = vld [vmem:[#allocation2 + $0xe8] sm:$0xf]  ;;  %v1320_v39 = vld [vmem:[#allocation2 + $0xe4] sm:$0xe]  ;;  %v642_v18 = vor.u32 %v640_v11, %v639_v28 }
  0xa9   :  { %v1096_v40 = vsel %vm12033_vm7, %v634_v27, %v1095_v21  ;;  %v1867_v42 = vshrl.u32 %v12429_v31, 16  ;;  %v1869_v44 = vshll.u32 %v12429_v31, 16  ;;  %v1874_v48 = vshll.u32 %v11501_v32, 16  ;;  %v11503_v41 = vld [vmem:[#allocation2 + $0xec] ss:$0 sps:$4 sm:$0x11]   ;;  %2377 = vrot.lane.b32.xlu0 %v2286_v30, %s11713_s27 }
  0xaa   :  { %v12437_v49 = vcombine.low %v1231_v33, %v1232_v38  ;;  %1097 = vst [vmem:[#allocation2 + $0xfc] sm:$0xf] %v1096_v40  ;;  %v2299_v50 = vrot.slane %v9890_v35, 1  ;;  %v2300_v54 = vrot.slane %v11501_v32, 1  ;;  %v9889_v55 = vcombine.low %v1320_v39, %v1232_v38  ;;  %v1099_v57 = vld [vmem:[#allocation2 + $0x104] sm:$0x1] }
  0xab   :  { %v643_v56 = vsel %vm12015_vm5, %v635_v17, %v642_v18  ;;  %v1871_v58 = vrot.slane %v1869_v44, 1  ;;  %v1876_v59 = vrot.slane %v1874_v48, 1  ;;  %v1237_v62 = vld [vmem:[#allocation2 + $0x108] sm:$0xf]  ;;  %v1862_v63 = vshll.u32 %v11503_v41, 16 }
  0xac   :  { %v1855_v60 = vshrl.u32 %v12437_v49, 16  ;;  %v1857_v61 = vshll.u32 %v12437_v49, 16  ;;  %1098 = vst.msk [vmem:[#allocation2 + $0x100] sm:$0xf] %vm35_vm0, %v643_v56  ;;  %v2296_v2 = vrot.slane %v9889_v55, 1  ;;  %v2297_v4 = vrot.slane %v11503_v41, 1 }
  0xad   :  { %v1323_v6 = vld [vmem:[#allocation2 + $0x108] sm:$0xe]  ;;  %v1872_v7 = vor.u32 %v1871_v58, %v1867_v42  ;;  %v2301_v3 = vsel %vm2238_vm8, %v2299_v50, %v2300_v54  ;;  %v1238_v10 = vld [vmem:[#allocation2 + $0x10c] sm:$0xf]  ;;  %v644_v11 = vrot.slane %v639_v28, 4  ;;  %v1864_v5 = vrot.slane %v1862_v63, 1 }
  0xae   :  { %v1859_v9 = vrot.slane %v1857_v61, 1  ;;  %v12446_v14 = vcombine.low %v1237_v62, %v1238_v10  ;;  %v11506_v16 = vld [vmem:[#allocation2 + $0x110] ss:$0 sps:$4 sm:$0x11]   ;;  %v9892_v20 = vcombine.low %v1323_v6, %v1238_v10  ;;  %v298_v21 = vld [vmem:[%s17594_s0 + $0xac] sm:$0xf]  ;;  %v685_v26 = vor.u32 %v683_v24, %v12431_v36 }
  0xaf   :  { %v1877_v27 = vsel %vm1625_vm9, %v1872_v7, %v1876_v59  ;;  %v2298_v30 = vsel %vm2238_vm8, %v2296_v2, %v2297_v4  ;;  %v1100_v32 = vsel %vm12024_vm6, %v644_v11, %v1099_v57  ;;  %v1116_v28 = vld [vmem:[#allocation2 + $0x120] sm:$0xf]  ;;  %v296_v35 = vld [vmem:[%s17594_s0 + $0xa4] sm:$0xf]  ;;  %v1898_v39 = vshll.u32 %v11506_v16, 16 }
  0xb0   :  { %17796 = vst [vmem:[#allocation11_spill] sm:$0xff] %v12446_v14  ;;  %v1860_v17 = vor.u32 %v1859_v9, %v1855_v60  ;;  %v295_v33 = vld [vmem:[%s17594_s0 + $0xa0] sm:$0xf]  ;;  %2098 = vrot.lane.b32.xlu1 %v1877_v27, %s11714_s30  ;;  %v1891_v24 = vshrl.u32 %v12446_v14, 16  ;;  %v1893_v38 = vshll.u32 %v12446_v14, 16  ;;  %v686_v40 = vrot.slane %v12431_v36, 4 }
  0xb1   :  { %1101 = vst [vmem:[#allocation2 + $0x104] sm:$0x1] %v1100_v32  ;;  %v1235_v18 = vld [vmem:[#allocation2 + $0xfc] sm:$0xf]  ;;  %v2305_v44 = vrot.slane %v9892_v20, 1  ;;  %v688_v41 = vshrl.u32 %v298_v21, 16  ;;  %v1117_v57 = vsel %vm12033_vm7, %v685_v26, %v1116_v28 }
  0xb2   :  { %v1865_v42 = vsel %vm1625_vm9, %v1860_v17, %v1864_v5  ;;  %v1322_v48 = vld [vmem:[#allocation2 + $0xfc] sm:$0xe]  ;;  %v691_v50 = vshll.u32 %v298_v21, 16  ;;  %v1895_v54 = vrot.slane %v1893_v38, 1  ;;  %v1900_v55 = vrot.slane %v1898_v39, 1 }
  0xb3   :  { %2096 = vrot.lane.b32.xlu0 %v1865_v42, %s11714_s30  ;;  %v1236_v56 = vld [vmem:[#allocation2 + $0x100] sm:$0xf]  ;;  %v663_v58 = vshrl.u32 %v295_v33, 16  ;;  %v2306_v60 = vrot.slane %v11506_v16, 1  ;;  %v690_v36 = vrot.slane %v688_v41, 7  ;;  %v666_v4 = vshll.u32 %v295_v33, 16 }
  0xb4   :  { %v12470_v59 = vcombine.low %v1235_v18, %v1236_v56  ;;  %v9891_v61 = vcombine.low %v1322_v48, %v1236_v56  ;;  %1118 = vst [vmem:[#allocation2 + $0x120] sm:$0xf] %v1117_v57  ;;  %2387 = vrot.lane.b32.xlu1 %v2301_v3, %s11713_s27  ;;  %v1896_v62 = vor.u32 %v1895_v54, %v1891_v24  ;;  %v1120_v63 = vld [vmem:[#allocation2 + $0x128] sm:$0x1]  ;;  %v671_v6 = vshrl.u32 %v296_v35, 16 }
  0xb5   :  { %v665_v2 = vrot.slane %v663_v58, 7  ;;  %v693_v11 = vor.u32 %v691_v50, %v690_v36  ;;  %v1109_v5 = vld [vmem:[#allocation2 + $0x114] sm:$0xf]  ;;  %v695_v20 = vrot.slane %v690_v36, 4  ;;  %v301_v3 = vld [vmem:[%s17594_s0 + $0xb8] sm:$0xf]  ;;  %v2307_v32 = vsel %vm2238_vm8, %v2305_v44, %v2306_v60 }
  0xb6   :  { %17797 = vst [vmem:[#allocation12_spill] sm:$0xff] %v12470_v59  ;;  %v1879_v7 = vshrl.u32 %v12470_v59, 16  ;;  %v1881_v9 = vshll.u32 %v12470_v59, 16  ;;  %v2302_v10 = vrot.slane %v9891_v61, 1  ;;  %v1901_v16 = vsel %vm1625_vm9, %v1896_v62, %v1900_v55  ;;  %v1113_v39 = vld [vmem:[#allocation2 + $0x11c] sm:$0x1] }
  0xb7   :  { %2385 = vrot.lane.b32.xlu0 %v2298_v30, %s11713_s27  ;;  %v668_v21 = vor.u32 %v666_v4, %v665_v2  ;;  %v669_v26 = vrot.slane %v665_v2, 4  ;;  %v694_v28 = vsel %vm12015_vm5, %v686_v40, %v693_v11  ;;  %v1121_v30 = vsel %vm12024_vm6, %v695_v20, %v1120_v63  ;;  %v302_v18 = vld [vmem:[%s17594_s0 + $0xbc] sm:$0xf]  ;;  %v299_v41 = vld [vmem:[%s17594_s0 + $0xb0] sm:$0xf] }
  0xb8   :  { %v11508_v27 = vld [vmem:[#allocation2 + $0x104] ss:$0 sps:$4 sm:$0x11]   ;;  %v1883_v17 = vrot.slane %v1881_v9, 1  ;;  %2102 = vrot.lane.b32.xlu1 %v1901_v16, %s11714_s30  ;;  %1119 = vst.msk [vmem:[#allocation2 + $0x124] sm:$0xf] %vm35_vm0, %v694_v28 }
  0xb9   :  { %v673_v33 = vrot.slane %v671_v6, 7  ;;  %v674_v24 = vshll.u32 %v296_v35, 16  ;;  %v1110_v38 = vsel %vm12033_vm7, %v668_v21, %v1109_v5  ;;  %v1886_v44 = vshll.u32 %v11508_v27, 16  ;;  %1122 = vst [vmem:[#allocation2 + $0x128] sm:$0x1] %v1121_v30 }
  0xba   :  { %v1884_v42 = vor.u32 %v1883_v17, %v1879_v7  ;;  %v2303_v40 = vrot.slane %v11508_v27, 1  ;;  %1111 = vst [vmem:[#allocation2 + $0x114] sm:$0xf] %v1110_v38  ;;  %v714_v48 = vshrl.u32 %v301_v3, 16  ;;  %v717_v54 = vshll.u32 %v301_v3, 16 }
  0xbb   :  { %v676_v50 = vor.u32 %v674_v24, %v673_v33  ;;  %v678_v35 = vrot.slane %v673_v33, 4  ;;  %v1888_v55 = vrot.slane %v1886_v44, 1  ;;  %v722_v58 = vshrl.u32 %v302_v18, 16  ;;  %v300_v60 = vld [vmem:[%s17594_s0 + $0xb4] sm:$0xf] }
  0xbc   :  { %v2304_v56 = vsel %vm2238_vm8, %v2302_v10, %v2303_v40  ;;  %v716_v57 = vrot.slane %v714_v48, 7  ;;  %2391 = vrot.lane.b32.xlu1 %v2307_v32, %s11713_s27  ;;  %v725_v62 = vshll.u32 %v302_v18, 16  ;;  %v1130_v63 = vld [vmem:[#allocation2 + $0x138] sm:$0xf]  ;;  %v697_v2 = vshrl.u32 %v299_v41, 16 }
  0xbd   :  { %v677_v61 = vsel %vm12015_vm5, %v669_v26, %v676_v50  ;;  %v1114_v36 = vsel %vm12024_vm6, %v678_v35, %v1113_v39  ;;  %v12507_v4 = vld [vmem:[%s17594_s0 + $0xc8] sm:$0xf]  ;;  %v1889_v6 = vsel %vm1625_vm9, %v1884_v42, %v1888_v55  ;;  %v1241_v7 = vld [vmem:[#allocation2 + $0x120] sm:$0xf]  ;;  %v724_v5 = vrot.slane %v722_v58, 7 }
  0xbe   :  { %1112 = vst.msk [vmem:[#allocation2 + $0x118] sm:$0xf] %vm35_vm0, %v677_v61  ;;  %1115 = vst [vmem:[#allocation2 + $0x11c] sm:$0x1] %v1114_v36  ;;  %v1325_v9 = vld [vmem:[#allocation2 + $0x120] sm:$0xe]  ;;  %v719_v10 = vor.u32 %v717_v54, %v716_v57  ;;  %2100 = vrot.lane.b32.xlu0 %v1889_v6, %s11714_s30 }
  0xbf   :  { %v720_v11 = vrot.slane %v716_v57, 4  ;;  %v1134_v16 = vld [vmem:[#allocation2 + $0x140] sm:$0x1]  ;;  %v699_v20 = vrot.slane %v697_v2, 7  ;;  %v700_v21 = vshll.u32 %v299_v41, 16  ;;  %v705_v26 = vshrl.u32 %v300_v60, 16 }
  0xc0   :  { %v708_v3 = vshll.u32 %v300_v60, 16  ;;  %v1242_v27 = vld [vmem:[#allocation2 + $0x124] sm:$0xf]  ;;  %v727_v17 = vor.u32 %v725_v62, %v724_v5  ;;  %v729_v32 = vrot.slane %v724_v5, 4  ;;  %v1131_v28 = vsel %vm12033_vm7, %v719_v10, %v1130_v63  ;;  %v1123_v30 = vld [vmem:[#allocation2 + $0x12c] sm:$0xf] }
  0xc1   :  { %v748_v33 = vshrl.u32 %v12507_v4, 16  ;;  %v12515_v24 = vcombine.low %v1241_v7, %v1242_v27  ;;  %v11511_v38 = vld [vmem:[#allocation2 + $0x128] ss:$0 sps:$4 sm:$0x11]   ;;  %v9894_v39 = vcombine.low %v1325_v9, %v1242_v27  ;;  %1132 = vst [vmem:[#allocation2 + $0x138] sm:$0xf] %v1131_v28  ;;  %v702_v18 = vor.u32 %v700_v21, %v699_v20 }
  0xc2   :  { %v1239_v42 = vld [vmem:[#allocation2 + $0x114] sm:$0xf]  ;;  %v728_v44 = vsel %vm12015_vm5, %v720_v11, %v727_v17  ;;  %v1135_v40 = vsel %vm12024_vm6, %v729_v32, %v1134_v16  ;;  %v703_v48 = vrot.slane %v699_v20, 4  ;;  %v707_v41 = vrot.slane %v705_v26, 7  ;;  %2389 = vrot.lane.b32.xlu0 %v2304_v56, %s11713_s27  ;;  %v306_v5 = vld [vmem:[%s17594_s0 + $0xcc] sm:$0xf] }
  0xc3   :  { %17798 = vst [vmem:[#allocation13_spill] sm:$0xff] %v12515_v24  ;;  %v1127_v50 = vld [vmem:[#allocation2 + $0x134] sm:$0x1]  ;;  %v1915_v35 = vshrl.u32 %v12515_v24, 16  ;;  %v1917_v54 = vshll.u32 %v12515_v24, 16  ;;  %v1922_v55 = vshll.u32 %v11511_v38, 16  ;;  %v1124_v62 = vsel %vm12033_vm7, %v702_v18, %v1123_v30  ;;  %v12543_v30 = vpop.permute.xlu1 %2349 }
  0xc4   :  { %v1324_v57 = vld [vmem:[#allocation2 + $0x114] sm:$0xe]  ;;  %1133 = vst.msk [vmem:[#allocation2 + $0x13c] sm:$0xf] %vm35_vm0, %v728_v44  ;;  %1136 = vst [vmem:[#allocation2 + $0x140] sm:$0x1] %v1135_v40  ;;  %v710_v61 = vor.u32 %v708_v3, %v707_v41  ;;  %v12552_v44 = vpop.permute.xlu0 %2060 }
  0xc5   :  { %v12525_v58 = vrot.slane %v748_v33, 7  ;;  %v2311_v60 = vrot.slane %v9894_v39, 1  ;;  %v712_v36 = vrot.slane %v707_v41, 4  ;;  %v1919_v63 = vrot.slane %v1917_v54, 1  ;;  %v1240_v56 = vld [vmem:[#allocation2 + $0x118] sm:$0xf] }
  0xc6   :  { %v1924_v2 = vrot.slane %v1922_v55, 1  ;;  %1125 = vst [vmem:[#allocation2 + $0x12c] sm:$0xf] %v1124_v62  ;;  %v12529_v6 = vcombine.low %v1239_v42, %v1240_v56  ;;  %v11513_v7 = vld [vmem:[#allocation2 + $0x11c] ss:$0 sps:$4 sm:$0x11]   ;;  %v9893_v10 = vcombine.low %v1324_v57, %v1240_v56  ;;  %v711_v11 = vsel %vm12015_vm5, %v703_v48, %v710_v61 }
  0xc7   :  { %v2312_v9 = vrot.slane %v11511_v38, 1  ;;  %v1920_v16 = vor.u32 %v1919_v63, %v1915_v35  ;;  %1126 = vst.msk [vmem:[#allocation2 + $0x130] sm:$0xf] %vm35_vm0, %v711_v11  ;;  %v1128_v20 = vsel %vm12024_vm6, %v712_v36, %v1127_v50  ;;  %v751_v21 = vshll.u32 %v12507_v4, 16  ;;  %v1144_v26 = vld [vmem:[#allocation2 + $0x150] sm:$0xf] }
  0xc8   :  { %17799 = vst [vmem:[#allocation14_spill] sm:$0xff] %v12529_v6  ;;  %v1903_v3 = vshrl.u32 %v12529_v6, 16  ;;  %v1905_v27 = vshll.u32 %v12529_v6, 16  ;;  %v1910_v17 = vshll.u32 %v11513_v7, 16  ;;  %v1245_v32 = vld [vmem:[#allocation2 + $0x138] sm:$0xf] }
  0xc9   :  { %1129 = vst [vmem:[#allocation2 + $0x134] sm:$0x1] %v1128_v20  ;;  %v754_v28 = vrot.slane %v12525_v58, 4  ;;  %v1925_v33 = vsel %vm1625_vm9, %v1920_v16, %v1924_v2  ;;  %v2308_v38 = vrot.slane %v9893_v10, 1  ;;  %v1327_v39 = vld [vmem:[#allocation2 + $0x138] sm:$0xe]  ;;  %v753_v18 = vor.u32 %v751_v21, %v12525_v58 }
  0xca   :  { %v756_v42 = vshrl.u32 %v306_v5, 16  ;;  %v12550_v4 = vld [vmem:[%s17594_s0 + $0xc0] sm:$0xf]  ;;  %2106 = vrot.lane.b32.xlu1 %v1925_v33, %s11714_s30  ;;  %v1907_v40 = vrot.slane %v1905_v27, 1  ;;  %v1912_v48 = vrot.slane %v1910_v17, 1  ;;  %v2313_v41 = vsel %vm2238_vm8, %v2311_v60, %v2312_v9  ;;  %v12565_v27 = vpop.permute.xlu1 %2351 }
  0xcb   :  { %v1246_v50 = vld [vmem:[#allocation2 + $0x13c] sm:$0xf]  ;;  %v2309_v35 = vrot.slane %v11513_v7, 1  ;;  %v11516_v55 = vld [vmem:[#allocation2 + $0x140] ss:$0 sps:$4 sm:$0x11]   ;;  %v1145_v56 = vsel %vm12033_vm7, %v753_v18, %v1144_v26 }
  0xcc   :  { %v12556_v54 = vcombine.low %v1245_v32, %v1246_v50  ;;  %v9896_v57 = vcombine.low %v1327_v39, %v1246_v50  ;;  %v758_v58 = vrot.slane %v756_v42, 7  ;;  %v1148_v61 = vld [vmem:[#allocation2 + $0x158] sm:$0x1]  ;;  %v1908_v36 = vor.u32 %v1907_v40, %v1903_v3  ;;  %1146 = vst [vmem:[#allocation2 + $0x150] sm:$0xf] %v1145_v56  ;;  %v12570_v39 = vpop.permute.xlu0 %2062 }
  0xcd   :  { %v1243_v62 = vld [vmem:[#allocation2 + $0x12c] sm:$0xf]  ;;  %v759_v2 = vshll.u32 %v306_v5, 16  ;;  %v731_v10 = vshrl.u32 %v12550_v4, 16  ;;  %v1946_v7 = vshll.u32 %v11516_v55, 16  ;;  %v2318_v21 = vrot.slane %v11516_v55, 1 }
  0xce   :  { %17800 = vst [vmem:[#allocation15_spill] sm:$0xff] %v12556_v54  ;;  %v1326_v63 = vld [vmem:[#allocation2 + $0x12c] sm:$0xe]  ;;  %v1939_v11 = vshrl.u32 %v12556_v54, 16  ;;  %v1941_v60 = vshll.u32 %v12556_v54, 16  ;;  %v2317_v9 = vrot.slane %v9896_v57, 1  ;;  %v1913_v16 = vsel %vm1625_vm9, %v1908_v36, %v1912_v48  ;;  %2395 = vrot.lane.b32.xlu1 %v2313_v41, %s11713_s27 }
  0xcf   :  { %v1244_v20 = vld [vmem:[#allocation2 + $0x130] sm:$0xf]  ;;  %v761_v3 = vor.u32 %v759_v2, %v758_v58  ;;  %v763_v5 = vrot.slane %v758_v58, 4  ;;  %2104 = vrot.lane.b32.xlu0 %v1913_v16, %s11714_s30  ;;  %v1948_v17 = vrot.slane %v1946_v7, 1  ;;  %v2310_v18 = vsel %vm2238_vm8, %v2308_v38, %v2309_v35  ;;  %v304_v41 = vld [vmem:[%s17594_s0 + $0xc4] sm:$0xf] }
  0xd0   :  { %v1943_v26 = vrot.slane %v1941_v60, 1  ;;  %v12568_v32 = vcombine.low %v1243_v62, %v1244_v20  ;;  %v9895_v33 = vcombine.low %v1326_v63, %v1244_v20  ;;  %v11518_v42 = vld [vmem:[#allocation2 + $0x134] ss:$0 sps:$4 sm:$0x11]   ;;  %v733_v50 = vrot.slane %v731_v10, 7 }
  0xd1   :  { %v762_v40 = vsel %vm12015_vm5, %v754_v28, %v761_v3  ;;  %v1149_v48 = vsel %vm12024_vm6, %v763_v5, %v1148_v61  ;;  %v2319_v36 = vsel %vm2238_vm8, %v2317_v9, %v2318_v21  ;;  %v1137_v38 = vld [vmem:[#allocation2 + $0x144] sm:$0xf]  ;;  %v309_v28 = vld [vmem:[%s17594_s0 + $0xd8] sm:$0xf]  ;;  %v1934_v35 = vshll.u32 %v11518_v42, 16  ;;  %v12597_v3 = vpop.permute.xlu1 %2066 }
  0xd2   :  { %17801 = vst [vmem:[#allocation16_spill] sm:$0xff] %v12568_v32  ;;  %v1944_v55 = vor.u32 %v1943_v26, %v1939_v11  ;;  %v1927_v57 = vshrl.u32 %v12568_v32, 16  ;;  %v1929_v58 = vshll.u32 %v12568_v32, 16  ;;  %1147 = vst.msk [vmem:[#allocation2 + $0x154] sm:$0xf] %vm35_vm0, %v762_v40  ;;  %v2314_v61 = vrot.slane %v9895_v33, 1  ;;  %v12599_v40 = vpop.permute.xlu0 %2064 }
  0xd3   :  { %1150 = vst [vmem:[#allocation2 + $0x158] sm:$0x1] %v1149_v48  ;;  %v2315_v62 = vrot.slane %v11518_v42, 1  ;;  %v734_v63 = vshll.u32 %v12550_v4, 16  ;;  %v310_v2 = vld [vmem:[%s17594_s0 + $0xdc] sm:$0xf]  ;;  %2393 = vrot.lane.b32.xlu0 %v2310_v18, %s11713_s27 }
  0xd4   :  { %v1949_v56 = vsel %vm1625_vm9, %v1944_v55, %v1948_v17  ;;  %v1931_v10 = vrot.slane %v1929_v58, 1  ;;  %v739_v11 = vshrl.u32 %v304_v41, 16  ;;  %v742_v60 = vshll.u32 %v304_v41, 16  ;;  %v307_v7 = vld [vmem:[%s17594_s0 + $0xd0] sm:$0xf] }
  0xd5   :  { %2110 = vrot.lane.b32.xlu1 %v1949_v56, %s11714_s30  ;;  %v1936_v9 = vrot.slane %v1934_v35, 1  ;;  %v736_v16 = vor.u32 %v734_v63, %v733_v50  ;;  %v737_v4 = vrot.slane %v733_v50, 4  ;;  %v1141_v20 = vld [vmem:[#allocation2 + $0x14c] sm:$0x1]  ;;  %v782_v21 = vshrl.u32 %v309_v28, 16 }
  0xd6   :  { %v1932_v5 = vor.u32 %v1931_v10, %v1927_v57  ;;  %v1249_v26 = vld [vmem:[#allocation2 + $0x150] sm:$0xf]  ;;  %v741_v33 = vrot.slane %v739_v11, 7  ;;  %v785_v17 = vshll.u32 %v309_v28, 16  ;;  %v790_v18 = vshrl.u32 %v310_v2, 16 }
  0xd7   :  { %v1158_v42 = vld [vmem:[#allocation2 + $0x168] sm:$0xf]  ;;  %v1138_v48 = vsel %vm12033_vm7, %v736_v16, %v1137_v38  ;;  %v1329_v41 = vld [vmem:[#allocation2 + $0x150] sm:$0xe]  ;;  %v784_v55 = vrot.slane %v782_v21, 7  ;;  %v793_v58 = vshll.u32 %v310_v2, 16  ;;  %v2316_v28 = vsel %vm2238_vm8, %v2314_v61, %v2315_v62 }
  0xd8   :  { %v765_v35 = vshrl.u32 %v307_v7, 16  ;;  %v1937_v50 = vsel %vm1625_vm9, %v1932_v5, %v1936_v9  ;;  %v744_v63 = vor.u32 %v742_v60, %v741_v33  ;;  %v746_v56 = vrot.slane %v741_v33, 4  ;;  %1139 = vst [vmem:[#allocation2 + $0x144] sm:$0xf] %v1138_v48  ;;  %v1162_v10 = vld [vmem:[#allocation2 + $0x170] sm:$0x1] }
  0xd9   :  { %v792_v57 = vrot.slane %v790_v18, 7  ;;  %2108 = vrot.lane.b32.xlu0 %v1937_v50, %s11714_s30  ;;  %2399 = vrot.lane.b32.xlu1 %v2319_v36, %s11713_s27  ;;  %v1250_v11 = vld [vmem:[#allocation2 + $0x154] sm:$0xf]  ;;  %v787_v1 = vor.u32 %v785_v17, %v784_v55  ;;  %v788_v38 = vrot.slane %v784_v55, 4  ;;  %v768_v33 = vshll.u32 %v307_v7, 16 }
  0xda   :  { %v12607_v16 = vrot.slane %v765_v35, 7  ;;  %v12609_v2 = vcombine.low %v1249_v26, %v1250_v11  ;;  %v11521_v21 = vld [vmem:[#allocation2 + $0x158] ss:$0 sps:$4 sm:$0x11]   ;;  %v745_v60 = vsel %vm12015_vm5, %v737_v4, %v744_v63  ;;  %v1142_v9 = vsel %vm12024_vm6, %v746_v56, %v1141_v20  ;;  %v308_v36 = vld [vmem:[%s17594_s0 + $0xd4] sm:$0xf]  ;;  %v12624_v20 = vpop.permute.xlu1 %2355 }
  0xdb   :  { %v9898_v5 = vcombine.low %v1329_v41, %v1250_v11  ;;  %1140 = vst.msk [vmem:[#allocation2 + $0x148] sm:$0xf] %vm35_vm0, %v745_v60  ;;  %1143 = vst [vmem:[#allocation2 + $0x14c] sm:$0x1] %v1142_v9  ;;  %v795_v61 = vor.u32 %v793_v58, %v792_v57  ;;  %v797_v62 = vrot.slane %v792_v57, 4  ;;  %v1159_v26 = vsel %vm12033_vm7, %v787_v1, %v1158_v42  ;;  %v12628_v58 = vpop.permute.xlu0 %2353 }
  0xdc   :  { %17802 = vst [vmem:[#allocation17_spill] sm:$0xff] %v12609_v2  ;;  %v1151_v17 = vld [vmem:[#allocation2 + $0x15c] sm:$0xf]  ;;  %v313_v4 = vld [vmem:[%s17594_s0 + $0xe8] sm:$0xf]  ;;  %v1963_v18 = vshrl.u32 %v12609_v2, 16  ;;  %v770_v35 = vor.u32 %v768_v33, %v12607_v16 }
  0xdd   :  { %v1965_v48 = vshll.u32 %v12609_v2, 16  ;;  %v1970_v41 = vshll.u32 %v11521_v21, 16  ;;  %v2323_v55 = vrot.slane %v9898_v5, 1  ;;  %1160 = vst [vmem:[#allocation2 + $0x168] sm:$0xf] %v1159_v26  ;;  %2397 = vrot.lane.b32.xlu0 %v2316_v28, %s11713_s27  ;;  %v2324_v1 = vrot.slane %v11521_v21, 1 }
  0xde   :  { %v796_v7 = vsel %vm12015_vm5, %v788_v38, %v795_v61  ;;  %v1163_v42 = vsel %vm12024_vm6, %v797_v62, %v1162_v10  ;;  %v314_v50 = vld [vmem:[%s17594_s0 + $0xec] sm:$0xf]  ;;  %v12642_v63 = vld [vmem:[%s17594_s0 + $0xe0] sm:$0xf]  ;;  %v771_v28 = vrot.slane %v12607_v16, 4  ;;  %v773_v11 = vshrl.u32 %v308_v36, 16 }
  0xdf   :  { %v1967_v56 = vrot.slane %v1965_v48, 1  ;;  %v1972_v57 = vrot.slane %v1970_v41, 1  ;;  %1161 = vst.msk [vmem:[#allocation2 + $0x16c] sm:$0xf] %vm35_vm0, %v796_v7  ;;  %1164 = vst [vmem:[#allocation2 + $0x170] sm:$0x1] %v1163_v42  ;;  %v1152_v60 = vsel %vm12033_vm7, %v770_v35, %v1151_v17  ;;  %v2325_v48 = vsel %vm2238_vm8, %v2323_v55, %v2324_v1  ;;  %v12650_v42 = vpop.permute.xlu1 %2070 }
  0xe0   :  { %v1247_v10 = vld [vmem:[#allocation2 + $0x144] sm:$0xf]  ;;  %v776_v21 = vshll.u32 %v308_v36, 16  ;;  %v816_v5 = vshrl.u32 %v313_v4, 16  ;;  %v775_v62 = vrot.slane %v773_v11, 7  ;;  %v819_v26 = vshll.u32 %v313_v4, 16 }
  0xe1   :  { %v1328_v38 = vld [vmem:[#allocation2 + $0x144] sm:$0xe]  ;;  %v1155_v9 = vld [vmem:[#allocation2 + $0x164] sm:$0x1]  ;;  %v1968_v61 = vor.u32 %v1967_v56, %v1963_v18  ;;  %1153 = vst [vmem:[#allocation2 + $0x15c] sm:$0xf] %v1152_v60  ;;  %v12653_v56 = vpop.permute.xlu0 %2068 }
  0xe2   :  { %v824_v33 = vshrl.u32 %v314_v50, 16  ;;  %v818_v41 = vrot.slane %v816_v5, 7  ;;  %v827_v7 = vshll.u32 %v314_v50, 16  ;;  %v799_v16 = vshrl.u32 %v12642_v63, 16  ;;  %v1248_v2 = vld [vmem:[#allocation2 + $0x148] sm:$0xf] }
  0xe3   :  { %v1973_v36 = vsel %vm1625_vm9, %v1968_v61, %v1972_v57  ;;  %v778_v54 = vor.u32 %v776_v21, %v775_v62  ;;  %v780_v17 = vrot.slane %v775_v62, 4  ;;  %v1172_v32 = vld [vmem:[#allocation2 + $0x180] sm:$0xf]  ;;  %v1176_v18 = vld [vmem:[#allocation2 + $0x188] sm:$0x1]  ;;  %v12656_v4 = vcombine.low %v1247_v10, %v1248_v2 }
  0xe4   :  { %v826_v35 = vrot.slane %v824_v33, 7  ;;  %2114 = vrot.lane.b32.xlu1 %v1973_v36, %s11714_s30  ;;  %v11523_v55 = vld [vmem:[#allocation2 + $0x14c] ss:$0 sps:$4 sm:$0x11]   ;;  %v9897_v1 = vcombine.low %v1328_v38, %v1248_v2  ;;  %v1253_v50 = vld [vmem:[#allocation2 + $0x168] sm:$0xf]  ;;  %v821_v11 = vor.u32 %v819_v26, %v818_v41 }
  0xe5   :  { %17803 = vst [vmem:[#allocation18_spill] sm:$0xff] %v12656_v4  ;;  %v822_v60 = vrot.slane %v818_v41, 4  ;;  %v779_v57 = vsel %vm12015_vm5, %v771_v28, %v778_v54  ;;  %v1156_v21 = vsel %vm12024_vm6, %v780_v17, %v1155_v9  ;;  %v1331_v5 = vld [vmem:[#allocation2 + $0x168] sm:$0xe]  ;;  %v1951_v33 = vshrl.u32 %v12656_v4, 16 }
  0xe6   :  { %v829_v61 = vor.u32 %v827_v7, %v826_v35  ;;  %v831_v62 = vrot.slane %v826_v35, 4  ;;  %v1953_v36 = vshll.u32 %v12656_v4, 16  ;;  %v1958_v10 = vshll.u32 %v11523_v55, 16  ;;  %v1254_v24 = vld [vmem:[#allocation2 + $0x16c] sm:$0xf] }
  0xe7   :  { %1154 = vst.msk [vmem:[#allocation2 + $0x160] sm:$0xf] %vm35_vm0, %v779_v57  ;;  %1157 = vst [vmem:[#allocation2 + $0x164] sm:$0x1] %v1156_v21  ;;  %v802_v2 = vshll.u32 %v12642_v63, 16  ;;  %v2320_v38 = vrot.slane %v9897_v1, 1  ;;  %v12666_v26 = vcombine.low %v1253_v50, %v1254_v24  ;;  %v9900_v28 = vcombine.low %v1331_v5, %v1254_v24  ;;  %v12679_v24 = vpop.permute.xlu1 %2359 }
  0xe8   :  { %v11526_v54 = vld [vmem:[#allocation2 + $0x170] ss:$0 sps:$4 sm:$0x11]   ;;  %v830_v9 = vsel %vm12015_vm5, %v822_v60, %v829_v61  ;;  %v1955_v41 = vrot.slane %v1953_v36, 1  ;;  %v1960_v7 = vrot.slane %v1958_v10, 1  ;;  %2403 = vrot.lane.b32.xlu1 %v2325_v48, %s11713_s27  ;;  %v1173_v17 = vsel %vm12033_vm7, %v821_v11, %v1172_v32  ;;  %v12683_v11 = vpop.permute.xlu0 %2357 }
  0xe9   :  { %17804 = vst [vmem:[#allocation19_spill] sm:$0xff] %v12666_v26  ;;  %1175 = vst.msk [vmem:[#allocation2 + $0x184] sm:$0xf] %vm35_vm0, %v830_v9  ;;  %v1177_v63 = vsel %vm12024_vm6, %v831_v62, %v1176_v18  ;;  %v312_v35 = vld [vmem:[%s17594_s0 + $0xe4] sm:$0xf]  ;;  %v2321_v1 = vrot.slane %v11523_v55, 1 }
  0xea   :  { %v1987_v50 = vshrl.u32 %v12666_v26, 16  ;;  %v1989_v60 = vshll.u32 %v12666_v26, 16  ;;  %v1994_v48 = vshll.u32 %v11526_v54, 16  ;;  %v1251_v57 = vld [vmem:[#allocation2 + $0x15c] sm:$0xf]  ;;  %v1956_v18 = vor.u32 %v1955_v41, %v1951_v33 }
  0xeb   :  { %v1330_v21 = vld [vmem:[#allocation2 + $0x15c] sm:$0xe]  ;;  %1174 = vst [vmem:[#allocation2 + $0x180] sm:$0xf] %v1173_v17  ;;  %1178 = vst [vmem:[#allocation2 + $0x188] sm:$0x1] %v1177_v63  ;;  %v2322_v17 = vsel %vm2238_vm8, %v2320_v38, %v2321_v1  ;;  %v12695_v41 = vpop.permute.xlu1 %2074  ;;  %v2423_v1 = vsel %vm2419_vm10, %v12074_v19, %v12552_v44 }
  0xec   :  { %v1165_v32 = vld [vmem:[#allocation2 + $0x174] sm:$0xf]  ;;  %v2329_v5 = vrot.slane %v9900_v28, 1  ;;  %v2330_v61 = vrot.slane %v11526_v54, 1  ;;  %v801_v62 = vrot.slane %v799_v16, 7  ;;  %v1991_v36 = vrot.slane %v1989_v60, 1 }
  0xed   :  { %v1996_v10 = vrot.slane %v1994_v48, 1  ;;  %v807_v9 = vshrl.u32 %v312_v35, 16  ;;  %v810_v55 = vshll.u32 %v312_v35, 16  ;;  %v1961_v4 = vsel %vm1625_vm9, %v1956_v18, %v1960_v7  ;;  %v1169_v14 = vld [vmem:[#allocation2 + $0x17c] sm:$0x1] }
  0xee   :  { %v804_v6 = vor.u32 %v802_v2, %v801_v62  ;;  %v805_v26 = vrot.slane %v801_v62, 4  ;;  %2112 = vrot.lane.b32.xlu0 %v1961_v4, %s11714_s30  ;;  %v1992_v63 = vor.u32 %v1991_v36, %v1987_v50  ;;  %v1252_v59 = vld [vmem:[#allocation2 + $0x160] sm:$0xf]  ;;  %v12690_v16 = vld [vmem:[#allocation2 + $0x164] ss:$0 sps:$4 sm:$0x11]   ;;  %v2331_v54 = vsel %vm2238_vm8, %v2329_v5, %v2330_v61  ;;  %v12701_v50 = vpop.permute.xlu0 %2072 }
  0xef   :  { %v809_v31 = vrot.slane %v807_v9, 7  ;;  %v12688_v33 = vcombine.low %v1251_v57, %v1252_v59  ;;  %v9899_v28 = vcombine.low %v1330_v21, %v1252_v59  ;;  %v1982_v60 = vshll.u32 %v12690_v16, 16  ;;  %v317_v62 = vld [vmem:[%s17594_s0 + $0xf8] sm:$0xf] }
  0xf0   :  { %v1166_v2 = vsel %vm12033_vm7, %v804_v6, %v1165_v32  ;;  %v1997_v4 = vsel %vm1625_vm9, %v1992_v63, %v1996_v10  ;;  %v1258_v7 = vld [vmem:[#allocation2 + $0x184] sm:$0xf]  ;;  %v2327_v36 = vrot.slane %v12690_v16, 1 }
  0xf1   :  { %17805 = vst [vmem:[#allocation20_spill] sm:$0xff] %v12688_v33  ;;  %v812_v38 = vor.u32 %v810_v55, %v809_v31  ;;  %v814_v35 = vrot.slane %v809_v31, 4  ;;  %1167 = vst [vmem:[#allocation2 + $0x174] sm:$0xf] %v1166_v2  ;;  %2118 = vrot.lane.b32.xlu1 %v1997_v4, %s11714_s30  ;;  %v1975_v59 = vshrl.u32 %v12688_v33, 16  ;;  %v1977_v6 = vshll.u32 %v12688_v33, 16  ;;  %v12729_v4 = vpop.permute.xlu1 %2363 }
  0xf2   :  { %v1257_v48 = vld [vmem:[#allocation2 + $0x180] sm:$0xf]  ;;  %v11534_v31 = vld [vmem:[%s17595_s1 + $0x8] sm:$0x1f]   ;;  %2401 = vrot.lane.b32.xlu0 %v2322_v17, %s11713_s27  ;;  %v2326_v57 = vrot.slane %v9899_v28, 1  ;;  %v1984_v5 = vrot.slane %v1982_v60, 1 }
  0xf3   :  { %v12711_v19 = vcombine.low %v1257_v48, %v1258_v7  ;;  %v11531_v44 = vld [vmem:[#allocation2 + $0x188] ss:$0 sps:$4 sm:$0x11]   ;;  %v813_v21 = vsel %vm12015_vm5, %v805_v26, %v812_v38  ;;  %v1170_v32 = vsel %vm12024_vm6, %v814_v35, %v1169_v14  ;;  %v1979_v18 = vrot.slane %v1977_v6, 1  ;;  %v1333_v61 = vld [vmem:[#allocation2 + $0x180] sm:$0xe] }
  0xf4   :  { %1168 = vst.msk [vmem:[#allocation2 + $0x178] sm:$0xf] %vm35_vm0, %v813_v21  ;;  %1171 = vst [vmem:[#allocation2 + $0x17c] sm:$0x1] %v1170_v32  ;;  %v2018_v9 = vshll.u32 %v11531_v44, 16  ;;  %v9902_v17 = vcombine.low %v1333_v61, %v1258_v7  ;;  %v2336_v63 = vrot.slane %v11531_v44, 1 }
  0xf5   :  { %17806 = vst [vmem:[#allocation21_spill] sm:$0xff] %v12711_v19  ;;  %v2011_v10 = vshrl.u32 %v12711_v19, 16  ;;  %v2013_v26 = vshll.u32 %v12711_v19, 16  ;;  %v318_v14 = vld [vmem:[%s17594_s0 + $0xfc] sm:$0xf]  ;;  %v1980_v55 = vor.u32 %v1979_v18, %v1975_v59  ;;  %2407 = vrot.lane.b32.xlu1 %v2331_v54, %s11713_s27  ;;  %v11715_v28 = vmov 65535  }
  0xf6   :  { %v2642_v2 = vsel %vm2640_vm11, 4294967295, %v11715_v28 }
  0xf7   :  { %15 = vsyncpa [#allocation7], 0  ;;  %v2015_v16 = vrot.slane %v2013_v26, 1  ;;  %v2020_v38 = vrot.slane %v2018_v9, 1  ;;  %v12732_v35 = vsel %vm2641_vm12, %v2642_v2, 0  ;;  %vm2492_vm13 = vcmask 48128   ;;  %v12737_v6 = vpop.permute.xlu0 %2361 }
  0xf8   :  { %v11538_v59 = vld [vmem:[%s17595_s1] sm:$0x1f]   ;;  %v1985_v54 = vsel %vm1625_vm9, %v1980_v55, %v1984_v5  ;;  %v1255_v7 = vld [vmem:[#allocation2 + $0x174] sm:$0xf]  ;;  %v2335_v60 = vrot.slane %v9902_v17, 1  ;;  %v2645_v48 = vand.u32 %v11534_v31, %v12732_v35  ;;  %v12743_v44 = vsel %vm2492_vm13, %v2423_v1, %v12543_v30  ;;  %s11716_s19 = smov 8  }
  0xf9   :  { %17807 = vst [vmem:[#allocation22_spill] sm:$0xff] %v12743_v44  ;;  %v315_v21 = vld [vmem:[%s17594_s0 + $0xf0] sm:$0xf]  ;;  %2116 = vrot.lane.b32.xlu0 %v1985_v54, %s11714_s30  ;;  %v2016_v32 = vor.u32 %v2015_v16, %v2011_v10  ;;  %v1332_v18 = vld [vmem:[#allocation2 + $0x174] sm:$0xe]  ;;  %vm2575_vm14 = vcmask 72704   ;;  %v2328_v5 = vsel %vm2238_vm8, %v2326_v57, %v2327_v36  ;;  %v2946_v57 = vand.u32 %v11538_v59, %v12732_v35  ;;  %v12761_v54 = vpop.permute.xlu1 %2078 }
  0xfa   :  { %v850_v61 = vshrl.u32 %v317_v62, 16  ;;  %v853_v26 = vshll.u32 %v317_v62, 16  ;;  %v2337_v9 = vsel %vm2238_vm8, %v2335_v60, %v2336_v63  ;;  %10625 = vmatprep.subr.bf16.mxu0 %v2645_v48  ;;  %10627 = vmatprep.mubr.msk.bf16.mxu0 %vm2575_vm14, %v12743_v44  ;;  %v858_v30 = vshrl.u32 %v318_v14, 16  ;;  %v1186_v1 = vld [vmem:[#allocation2 + $0x198] sm:$0xf]  ;;  %s11717_s20 = smov 16  }
  0xfb   :  { %v316_v31 = vld [vmem:[%s17594_s0 + $0xf4] sm:$0xf]  ;;  %v2021_v10 = vsel %vm1625_vm9, %v2016_v32, %v2020_v38  ;;  %v1256_v55 = vld [vmem:[#allocation2 + $0x178] sm:$0xf]  ;;  %10626 = vmatpush3.bf16.msra.mxu0 %v2645_v48  ;;  %v861_v62 = vshll.u32 %v318_v14, 16  ;;  %v833_v16 = vshrl.u32 %v315_v21, 16  ;;  %v2425_v14 = vsel %vm2419_vm10, %v12079_v37, %v12570_v39  ;;  %v12767_v48 = vpop.permute.xlu0 %2076 }
  0xfc   :  { %v852_v17 = vrot.slane %v850_v61, 7  ;;  %2122 = vrot.lane.b32.xlu1 %v2021_v10, %s11714_s30  ;;  %v12759_v36 = vcombine.low %v1255_v7, %v1256_v55  ;;  %v11533_v63 = vld [vmem:[#allocation2 + $0x17c] ss:$0 sps:$4 sm:$0x11]   ;;  %v9901_v28 = vcombine.low %v1332_v18, %v1256_v55  ;;  %v860_v2 = vrot.slane %v858_v30, 7  ;;  %10691 = vmatprep.subr.bf16.mxu0 %v2946_v57  ;;  %s11718_s22 = smov 24  }
  0xfd   :  { %2405 = vrot.lane.b32.xlu0 %v2328_v5, %s11713_s27  ;;  %v841_v59 = vshrl.u32 %v316_v31, 16  ;;  %v2006_v18 = vshll.u32 %v11533_v63, 16  ;;  %v1190_v61 = vld [vmem:[#allocation2 + $0x1a0] sm:$0x1]  ;;  %v836_v30 = vshll.u32 %v315_v21, 16  ;;  %v835_v37 = vrot.slane %v833_v16, 7 }
  0xfe   :  { %17808 = vst [vmem:[#allocation23_spill] sm:$0xff] %v12759_v36  ;;  %v855_v60 = vor.u32 %v853_v26, %v852_v17  ;;  %v856_v38 = vrot.slane %v852_v17, 4  ;;  %v1999_v7 = vshrl.u32 %v12759_v36, 16  ;;  %v2001_v32 = vshll.u32 %v12759_v36, 16  ;;  %s11719_s23 = smov 56   ;;  %s11720_s24 = smov 32  }
  0xff   :  { %v2332_v10 = vrot.slane %v9901_v28, 1  ;;  %v863_v55 = vor.u32 %v861_v62, %v860_v2  ;;  %v865_v5 = vrot.slane %v860_v2, 4  ;;  %v2008_v44 = vrot.slane %v2006_v18, 1  ;;  %v1179_v62 = vld [vmem:[#allocation2 + $0x18c] sm:$0xf]  ;;  %s11721_s25 = smov 40  }
 0x100   :  { %v1187_v26 = vsel %vm12033_vm7, %v855_v60, %v1186_v1  ;;  %v2003_v17 = vrot.slane %v2001_v32, 1  ;;  %2411 = vrot.lane.b32.xlu1 %v2337_v9, %s11713_s27  ;;  %v843_v39 = vrot.slane %v841_v59, 7  ;;  %v2333_v19 = vrot.slane %v11533_v63, 1  ;;  %v1183_v2 = vld [vmem:[#allocation2 + $0x194] sm:$0x1]  ;;  %v12779_v32 = vpop.permute.xlu1 %2367  ;;  %s11722_s26 = smov 48  }
 0x101   :  { %1188 = vst [vmem:[#allocation2 + $0x198] sm:$0xf] %v1187_v26  ;;  %v864_v36 = vsel %vm12015_vm5, %v856_v38, %v863_v55  ;;  %v1191_v21 = vsel %vm12024_vm6, %v865_v5, %v1190_v61  ;;  %v844_v28 = vshll.u32 %v316_v31, 16  ;;  %v838_v1 = vor.u32 %v836_v30, %v835_v37  ;;  %v12788_v38 = vpop.permute.xlu0 %2365  ;;  %v1301_v18 = vld [vmem:[#allocation2] sm:$0xe]  ;;  %s11724_s10 = smov 72  }
 0x102   :  { %v2004_v33 = vor.u32 %v2003_v17, %v1999_v7  ;;  %1189 = vst.msk [vmem:[#allocation2 + $0x19c] sm:$0xf] %vm35_vm0, %v864_v36  ;;  %1192 = vst [vmem:[#allocation2 + $0x1a0] sm:$0x1] %v1191_v21  ;;  %v839_v60 = vrot.slane %v835_v37, 4  ;;  %v848_v9 = vrot.slane %v843_v39, 4  ;;  %v12783_v63 = vsel %vm2492_vm13, %v2425_v14, %v12565_v27 }
 0x103   :  { %v846_v16 = vor.u32 %v844_v28, %v843_v39  ;;  %v2427_v31 = vsel %vm2419_vm10, %v12112_v25, %v12599_v40  ;;  %v1180_v36 = vsel %vm12033_vm7, %v838_v1, %v1179_v62  ;;  %10628 = vmatmul.mubr.msk.bf16.vlgmr.msra.gmra.mrb[0].mxu0 %vm2575_vm14, %v12783_v63  ;;  %v2334_v22 = vsel %vm2238_vm8, %v2332_v10, %v2333_v19  ;;  %v1193_v40 = vld [vmem:[#allocation2] sm:$0xf]  ;;  %v12823_v5 = vld [vmem:[#allocation2 + $0x8] ss:$0 sps:$4 sm:$0x11]   ;;  %s11726_s11 = smov 88  }
 0x104   :  { %v2009_v59 = vsel %vm1625_vm9, %v2004_v33, %v2008_v44  ;;  %v1184_v7 = vsel %vm12024_vm6, %v848_v9, %v1183_v2  ;;  %v12799_v27 = vsel %vm2492_vm13, %v2427_v31, %v12628_v58  ;;  %1181 = vst [vmem:[#allocation2 + $0x18c] sm:$0xf] %v1180_v36  ;;  %10692 = vmatpush3.bf16.msra.mxu0 %v2946_v57  ;;  %v1194_v33 = vld [vmem:[#allocation2 + $0x4] sm:$0xf]  ;;  %v12811_v14 = vpop.permute.xlu1 %2082  ;;  %vm145_vm15 = vcmask 60416   ;;  %s11728_s12 = smov 104  }
 0x105   :  { %2120 = vrot.lane.b32.xlu0 %v2009_v59, %s11714_s30  ;;  %v847_v25 = vsel %vm12015_vm5, %v839_v60, %v846_v16  ;;  %1185 = vst [vmem:[#allocation2 + $0x194] sm:$0x1] %v1184_v7  ;;  %10631 = vmatprep.mubr.msk.bf16.mxu0 %vm2575_vm14, %v12799_v27  ;;  %v2429_v58 = vsel %vm2419_vm10, %v12105_v0, %v12597_v3  ;;  %v12817_v61 = vpop.permute.xlu0 %2080  ;;  %vm13477_vm1 = vmand %vm145_vm15, %vm964_vm4  ;;  %vm6170_vm4 = vcmask 130048   ;;  %vm17783_vm6 = vcmask 1041409   ;;  %s11729_s13 = smov 112   ;;  %s11730_s14 = smov 120  }
 0x106   :  { %1182 = vst.msk [vmem:[#allocation2 + $0x190] sm:$0xf] %vm35_vm0, %v847_v25  ;;  %v2431_v19 = vsel %vm2419_vm10, %v12159_v47, %v12653_v56  ;;  %v12821_v55 = vcombine.low %v1193_v40, %v1194_v33  ;;  %v12831_v26 = vsel %vm2492_vm13, %v2429_v58, %v12624_v20  ;;  %v1229_v47 = vld [vmem:[#allocation2 + $0xd8] sm:$0xf]  ;;  %v12833_v56 = vld [vmem:[#allocation2 + $0xdc] sm:$0xf]  ;;  %v9870_v62 = vcombine.low %v1301_v18, %v1194_v33 }
 0x107   :  { %v12827_v0 = vsel %vm2492_vm13, %v2431_v19, %v12683_v11  ;;  %v2433_v11 = vsel %vm2419_vm10, %v12118_v43, %v12650_v42  ;;  %v1634_v43 = vshll.u32 %v12823_v5, 16  ;;  %v12854_v25 = vcombine.low %v1229_v47, %v12833_v56  ;;  %v1319_v18 = vld [vmem:[#allocation2 + $0xd8] sm:$0xe] }
 0x108   :  { %v1261_v13 = vld [vmem:[#allocation2 + $0x198] sm:$0xf]  ;;  %v1627_v20 = vshrl.u32 %v12821_v55, 16  ;;  %v1629_v16 = vshll.u32 %v12821_v55, 16  ;;  %v12848_v31 = vpop.permute.xlu1 %2371  ;;  %v2435_v19 = vsel %vm2419_vm10, %v12199_v53, %v12701_v50  ;;  %vm148_vm0 = vcmask 57344  }
 0x109   :  { %v1335_v44 = vld [vmem:[#allocation2 + $0x198] sm:$0xe]  ;;  %2409 = vrot.lane.b32.xlu0 %v2334_v22, %s11713_s27  ;;  %v1262_v57 = vld [vmem:[#allocation2 + $0x19c] sm:$0xf]  ;;  %v12851_v42 = vpop.permute.xlu0 %2369  ;;  %vm13484_vm3 = vmand %vm148_vm0, %vm319_vm2  ;;  %vm6097_vm2 = vcmask 64512   ;;  %vm17782_vm7 = vcmask 1042434  }
 0x10a   :  { %v12819_v30 = vcombine.low %v1261_v13, %v1262_v57  ;;  %v11537_v10 = vld [vmem:[#allocation2 + $0x1a0] ss:$0 sps:$4 sm:$0x11]   ;;  %v9904_v3 = vcombine.low %v1335_v44, %v1262_v57  ;;  %v12860_v44 = vsel %vm2492_vm13, %v2433_v11, %v12679_v24  ;;  %v2239_v57 = vrot.slane %v9870_v62, 1 }
 0x10b   :  { %v2042_v39 = vshll.u32 %v11537_v10, 16  ;;  %v1259_v21 = vld [vmem:[#allocation2 + $0x18c] sm:$0xf]  ;;  %10632 = vmatmul.mubr.msk.bf16.gmra.mrb[4].mxu0 %vm2575_vm14, %v12831_v26  ;;  %v2342_v36 = vrot.slane %v11537_v10, 1  ;;  %v1631_v24 = vrot.slane %v1629_v16, 1  ;;  %v1636_v16 = vrot.slane %v1634_v43, 1 }
 0x10c   :  { %v2035_v17 = vshrl.u32 %v12819_v30, 16  ;;  %v2037_v37 = vshll.u32 %v12819_v30, 16  ;;  %10635 = vmatprep.mubr.msk.bf16.mxu0 %vm2575_vm14, %v12827_v0  ;;  %v11540_v9 = vld [vmem:[#allocation2 + $0x194] ss:$0 sps:$4 sm:$0x11]   ;;  %v2341_v59 = vrot.slane %v9904_v3, 1  ;;  %v2087_v62 = vpop.permute.xlu1 %2086 }
 0x10d   :  { %v1260_v28 = vld [vmem:[#allocation2 + $0x190] sm:$0xf]  ;;  %v2044_v1 = vrot.slane %v2042_v39, 1  ;;  %v1334_v7 = vld [vmem:[#allocation2 + $0x18c] sm:$0xe]  ;;  %v2030_v33 = vshll.u32 %v11540_v9, 16 }
 0x10e   :  { %v2039_v2 = vrot.slane %v2037_v37, 1  ;;  %v12845_v60 = vcombine.low %v1259_v21, %v1260_v28  ;;  %v9903_v58 = vcombine.low %v1334_v7, %v1260_v28  ;;  %v2343_v37 = vsel %vm2238_vm8, %v2341_v59, %v2342_v36  ;;  %v11546_v21 = vld [vmem:[#allocation2 + $0xe0] ss:$0 sps:$4 sm:$0x11]  }
 0x10f   :  { %v2032_v47 = vrot.slane %v2030_v33, 1  ;;  %v2240_v39 = vrot.slane %v12823_v5, 1  ;;  %v1845_v28 = vshll.u32 %v12854_v25, 16  ;;  %v2339_v11 = vrot.slane %v11540_v9, 1  ;;  %v2085_v5 = vpop.permute.xlu0 %2084 }
 0x110   :  { %v2040_v22 = vor.u32 %v2039_v2, %v2035_v17  ;;  %v2023_v13 = vshrl.u32 %v12845_v60, 16  ;;  %v2025_v40 = vshll.u32 %v12845_v60, 16  ;;  %v12868_v17 = vsel %vm2492_vm13, %v2435_v19, %v12737_v6  ;;  %v11548_v2 = vld [vmem:[%s17595_s1 + $0x10] sm:$0x1f]  }
 0x111   :  { %v2338_v50 = vrot.slane %v9903_v58, 1  ;;  %v9888_v6 = vcombine.low %v1319_v18, %v12833_v56  ;;  %v2437_v9 = vsel %vm2419_vm10, %v12187_v34, %v12695_v41  ;;  %v12887_v59 = vand.u32 %v11548_v2, %v12732_v35  ;;  %v2376_v35 = vpop.permute.xlu1 %2375 }
 0x112   :  { %v2045_v10 = vsel %vm1625_vm9, %v2040_v22, %v2044_v1  ;;  %v2027_v3 = vrot.slane %v2025_v40, 1  ;;  %v1632_v56 = vor.u32 %v1631_v24, %v1627_v20  ;;  %v2241_v36 = vsel %vm2238_vm8, %v2239_v57, %v2240_v39 }
 0x113   :  { %2126 = vrot.lane.b32.xlu1 %v2045_v10, %s11714_s30  ;;  %10636 = vmatmul.mubr.msk.bf16.gmra.mrb[8].mxu0 %vm2575_vm14, %v12860_v44  ;;  %v1843_v7 = vshrl.u32 %v12854_v25, 16  ;;  %v1850_v22 = vshll.u32 %v11546_v21, 16  ;;  %v1847_v43 = vrot.slane %v1845_v28, 1  ;;  %v2293_v40 = vrot.slane %v9888_v6, 1  ;;  %v2374_v58 = vpop.permute.xlu0 %2373 }
 0x114   :  { %v2028_v53 = vor.u32 %v2027_v3, %v2023_v13  ;;  %10639 = vmatprep.mubr.msk.bf16.mxu0 %vm2575_vm14, %v12868_v17  ;;  %v2340_v13 = vsel %vm2238_vm8, %v2338_v50, %v2339_v11  ;;  %v2294_v33 = vrot.slane %v11546_v21, 1  ;;  %10757 = vmatprep.subr.bf16.mxu0 %v12887_v59  ;;  %v2439_v34 = vsel %vm2419_vm10, %v12234_v51, %v12767_v48 }
 0x115   :  { %v12900_v41 = vsel %vm2492_vm13, %v2439_v34, %v12788_v38  ;;  %v12906_v20 = vsel %vm2492_vm13, %v2437_v9, %v12729_v4  ;;  %v1637_v57 = vsel %vm1625_vm9, %v1632_v56, %v1636_v16  ;;  %v1848_v51 = vor.u32 %v1847_v43, %v1843_v7  ;;  %v2091_v19 = vpop.permute.xlu1 %2090  ;;  %v17811_v7 = vld [vmem:[#allocation11_spill] sm:$0xff] }
 0x116   :  { %v2033_v1 = vsel %vm1625_vm9, %v2028_v53, %v2032_v47  ;;  %v1852_v48 = vrot.slane %v1850_v22, 1  ;;  %v2295_v38 = vsel %vm2238_vm8, %v2293_v40, %v2294_v33  ;;  %v2441_v4 = vsel %vm2419_vm10, %v12223_v29, %v12761_v54 }
 0x117   :  { %2124 = vrot.lane.b32.xlu0 %v2033_v1, %s11714_s30  ;;  %2415 = vrot.lane.b32.xlu1 %v2343_v37, %s11713_s27  ;;  %v2443_v10 = vsel %vm2419_vm10, %v12305_v45, %v12817_v61  ;;  %v2089_v3 = vpop.permute.xlu0 %2088  ;;  %v12929_v37 = vsel %vm2492_vm13, %v2441_v4, %v12779_v32  ;;  %v2445_v45 = vsel %vm2419_vm10, %v12267_v46, %v12811_v14  ;;  %v17810_v1 = vld [vmem:[#allocation12_spill] sm:$0xff]  ;;  %v1228_v4 = vld [vmem:[#allocation2 + $0xd0] sm:$0xf]  ;;  %vm7551_vm12 = vcmask 1047559  }
 0x118   :  { %v1853_v18 = vsel %vm1625_vm9, %v1848_v51, %v1852_v48  ;;  %v12925_v47 = vsel %vm2492_vm13, %v2443_v10, %v12851_v42  ;;  %v2447_v61 = vsel %vm2419_vm10, %v12342_v52, %v2085_v5  ;;  %v12946_v42 = vsel %vm2492_vm13, %v2445_v45, %v12848_v31  ;;  %v11550_v45 = vld [vmem:[#allocation2 + $0xd4] ss:$0 sps:$4 sm:$0x11]  }
 0x119   :  { %v2380_v29 = vpop.permute.xlu1 %2379  ;;  %v12942_v32 = vsel %vm2492_vm13, %v2447_v61, %v2374_v58  ;;  %v2449_v46 = vsel %vm2419_vm10, %v12320_v12, %v2087_v62  ;;  %v2451_v52 = vsel %vm2419_vm10, %v12388_v23, %v2089_v3  ;;  %v2453_v12 = vsel %vm2419_vm10, %v12351_v15, %v2091_v19  ;;  %v17809_v15 = vld [vmem:[#allocation10_spill] sm:$0xff]  ;;  %v17814_v19 = vld [vmem:[#allocation16_spill] sm:$0xff] }
 0x11a   :  { %v12960_v31 = vsel %vm2492_vm13, %v2449_v46, %v2376_v35  ;;  %v12974_v62 = vsel %vm2492_vm13, %v2453_v12, %v2380_v29  ;;  %v17815_v12 = vld [vmem:[#allocation15_spill] sm:$0xff] }
 0x11b   :  { %2413 = vrot.lane.b32.xlu0 %v2340_v13, %s11713_s27  ;;  %2347 = vrot.lane.b32.xlu1 %v2241_v36, %s11713_s27  ;;  %v2378_v54 = vpop.permute.xlu0 %2377  ;;  %v17812_v13 = vld [vmem:[#allocation14_spill] sm:$0xff] }
 0x11c   :  { %10640 = vmatmul.mubr.msk.bf16.gmra.mrb[12].mxu0 %vm2575_vm14, %v12906_v20  ;;  %v12957_v14 = vsel %vm2492_vm13, %v2451_v52, %v2378_v54  ;;  %v1838_v52 = vshll.u32 %v11550_v45, 16 }
 0x11d   :  { %10643 = vmatprep.mubr.msk.bf16.mxu0 %vm2575_vm14, %v12900_v41 }
 0x11f   :  { %2058 = vrot.lane.b32.xlu0 %v1637_v57, %s11714_s30  ;;  %2383 = vrot.lane.b32.xlu1 %v2295_v38, %s11713_s27  ;;  %v17813_v57 = vld [vmem:[#allocation13_spill] sm:$0xff]  ;;  %v1227_v38 = vld [vmem:[#allocation2 + $0xcc] sm:$0xf] }
 0x120   :  { %v13012_v3 = vcombine.low %v1227_v38, %v1228_v4 }
 0x122   :  { %v2099_v24 = vpop.permute.xlu1 %2098  ;;  %v1833_v61 = vshll.u32 %v13012_v3, 16 }
 0x123   :  { %2094 = vrot.lane.b32.xlu0 %v1853_v18, %s11714_s30  ;;  %v2461_v5 = vsel %vm2419_vm10, %v17809_v15, %v2099_v24 }
 0x124   :  { %10644 = vmatmul.mubr.msk.bf16.gmra.mrb[16].mxu0 %vm2575_vm14, %v12929_v37  ;;  %v1835_v46 = vrot.slane %v1833_v61, 1 }
 0x125   :  { %10647 = vmatprep.mubr.msk.bf16.mxu0 %vm2575_vm14, %v12925_v47  ;;  %v2097_v39 = vpop.permute.xlu0 %2096 }
 0x126   :  { %v2388_v21 = vpop.permute.xlu1 %2387  ;;  %v2459_v23 = vsel %vm2419_vm10, %v12437_v49, %v2097_v39  ;;  %v1831_v39 = vshrl.u32 %v13012_v3, 16 }
 0x127   :  { %v12988_v9 = vsel %vm2492_vm13, %v2461_v5, %v2388_v21  ;;  %v1318_v21 = vld [vmem:[#allocation2 + $0xcc] sm:$0xe] }
 0x129   :  { %v2386_v28 = vpop.permute.xlu0 %2385 }
 0x12a   :  { %v2103_v53 = vpop.permute.xlu1 %2102  ;;  %v12971_v11 = vsel %vm2492_vm13, %v2459_v23, %v2386_v28  ;;  %v9887_v28 = vcombine.low %v1318_v21, %v1228_v4  ;;  %v1836_v23 = vor.u32 %v1835_v46, %v1831_v39  ;;  %v17820_v46 = vld [vmem:[#allocation21_spill] sm:$0xff] }
 0x12b   :  { %v2465_v22 = vsel %vm2419_vm10, %v17811_v7, %v2103_v53  ;;  %v17816_v7 = vld [vmem:[#allocation17_spill] sm:$0xff] }
 0x12c   :  { %10648 = vmatmul.mubr.msk.bf16.gmra.mrb[20].mxu0 %vm2575_vm14, %v12946_v42 }
 0x12d   :  { %10651 = vmatprep.mubr.msk.bf16.mxu0 %vm2575_vm14, %v12942_v32 }
 0x12e   :  { %v2392_v6 = vpop.permute.xlu1 %2391 }
 0x12f   :  { %v13002_v35 = vsel %vm2492_vm13, %v2465_v22, %v2392_v6  ;;  %v2290_v6 = vrot.slane %v9887_v28, 1  ;;  %v17821_v28 = vld [vmem:[#allocation23_spill] sm:$0xff] }
 0x130   :  { %v2101_v50 = vpop.permute.xlu0 %2100 }
 0x131   :  { %v2463_v49 = vsel %vm2419_vm10, %v17810_v1, %v2101_v50  ;;  %v1840_v50 = vrot.slane %v1838_v52, 1 }
 0x133   :  { %v1841_v15 = vsel %vm1625_vm9, %v1836_v23, %v1840_v50 }
 0x134   :  { %10652 = vmatmul.mubr.msk.bf16.gmra.mrb[24].mxu0 %vm2575_vm14, %v12960_v31  ;;  %v2390_v2 = vpop.permute.xlu0 %2389  ;;  %2092 = vrot.lane.b32.xlu0 %v1841_v15, %s11714_s30 }
 0x135   :  { %10655 = vmatprep.mubr.msk.bf16.mxu0 %vm2575_vm14, %v12957_v14  ;;  %v12985_v16 = vsel %vm2492_vm13, %v2463_v49, %v2390_v2  ;;  %v2291_v2 = vrot.slane %v11550_v45, 1 }
 0x137   :  { %v2292_v1 = vsel %vm2238_vm8, %v2290_v6, %v2291_v2 }
 0x138   :  { %2381 = vrot.lane.b32.xlu1 %v2292_v1, %s11713_s27 }
 0x13c   :  { %10656 = vmatmul.mubr.msk.bf16.gmra.mrb[28].mxu0 %vm2575_vm14, %v12974_v62  ;;  %v2107_v56 = vpop.permute.xlu1 %2106 }
 0x13d   :  { %10659 = vmatprep.mubr.msk.bf16.mxu0 %vm2575_vm14, %v12971_v11  ;;  %v2469_v51 = vsel %vm2419_vm10, %v17813_v57, %v2107_v56 }
 0x140   :  { %v2396_v33 = vpop.permute.xlu1 %2395 }
 0x141   :  { %v2105_v36 = vpop.permute.xlu0 %2104  ;;  %v13015_v29 = vsel %vm2492_vm13, %v2469_v51, %v2396_v33 }
 0x142   :  { %v2467_v43 = vsel %vm2419_vm10, %v17812_v13, %v2105_v36  ;;  %v17817_v13 = vld [vmem:[#allocation18_spill] sm:$0xff] }
 0x144   :  { %10660 = vmatmul.mubr.msk.bf16.gmra.mrb[32].mxu0 %vm2575_vm14, %v12988_v9 }
 0x145   :  { %10663 = vmatprep.mubr.msk.bf16.mxu0 %vm2575_vm14, %v12985_v16  ;;  %v2394_v40 = vpop.permute.xlu0 %2393 }
 0x146   :  { %v12999_v34 = vsel %vm2492_vm13, %v2467_v43, %v2394_v40 }
 0x147   :  { %v2111_v48 = vpop.permute.xlu1 %2110 }
 0x148   :  { %v2473_v53 = vsel %vm2419_vm10, %v17815_v12, %v2111_v48  ;;  %v17818_v48 = vld [vmem:[#allocation19_spill] sm:$0xff] }
 0x14b   :  { %v2109_v58 = vpop.permute.xlu0 %2108  ;;  %v2400_v24 = vpop.permute.xlu1 %2399 }
 0x14c   :  { %10664 = vmatmul.mubr.msk.bf16.gmra.mrb[36].mxu0 %vm2575_vm14, %v13002_v35  ;;  %v2471_v18 = vsel %vm2419_vm10, %v17814_v19, %v2109_v58  ;;  %v13030_v5 = vsel %vm2492_vm13, %v2473_v53, %v2400_v24  ;;  %v17819_v19 = vld [vmem:[#allocation20_spill] sm:$0xff] }
 0x14d   :  { %10667 = vmatprep.mubr.msk.bf16.mxu0 %vm2575_vm14, %v12999_v34 }
 0x14f   :  { %v2398_v10 = vpop.permute.xlu0 %2397 }
 0x150   :  { %v13018_v54 = vsel %vm2492_vm13, %v2471_v18, %v2398_v10 }
 0x154   :  { %10668 = vmatmul.mubr.msk.bf16.gmra.mrb[40].mxu0 %vm2575_vm14, %v13015_v29 }
 0x155   :  { %10671 = vmatprep.mubr.msk.bf16.mxu0 %vm2575_vm14, %v13018_v54 }
 0x156   :  { %v2115_v49 = vpop.permute.xlu1 %2114 }
 0x157   :  { %v2477_v22 = vsel %vm2419_vm10, %v17816_v7, %v2115_v49 }
 0x15a   :  { %v2404_v36 = vpop.permute.xlu1 %2403 }
 0x15b   :  { %v13045_v58 = vsel %vm2492_vm13, %v2477_v22, %v2404_v36 }
 0x15c   :  { %10672 = vmatmul.mubr.msk.bf16.gmra.mrb[44].mxu0 %vm2575_vm14, %v13030_v5 }
 0x160   :  { %v2113_v56 = vpop.permute.xlu0 %2112 }
 0x161   :  { %v2475_v43 = vsel %vm2419_vm10, %v17817_v13, %v2113_v56 }
 0x163   :  { %v2119_v57 = vpop.permute.xlu1 %2118 }
 0x164   :  { %v2402_v40 = vpop.permute.xlu0 %2401  ;;  %v2481_v38 = vsel %vm2419_vm10, %v17818_v48, %v2119_v57 }
 0x165   :  { %v13042_v33 = vsel %vm2492_vm13, %v2475_v43, %v2402_v40  ;;  %v1264_v43 = vld [vmem:[#allocation2 + $0x1a8] sm:$0xf] }
 0x166   :  { %10675 = vmatprep.mubr.msk.bf16.mxu0 %vm2575_vm14, %v13042_v33 }
 0x167   :  { %10676 = vmatmul.mubr.msk.bf16.gmra.mrb[48].mxu0 %vm2575_vm14, %v13045_v58  ;;  %v2408_v4 = vpop.permute.xlu1 %2407 }
 0x168   :  { %v13059_v61 = vsel %vm2492_vm13, %v2481_v38, %v2408_v4 }
 0x16b   :  { %v2117_v51 = vpop.permute.xlu0 %2116 }
 0x16c   :  { %v2479_v18 = vsel %vm2419_vm10, %v17819_v19, %v2117_v51  ;;  %v11553_v51 = vld [vmem:[#allocation2 + $0x1ac] ss:$0 sps:$4 sm:$0x11]  }
 0x16d   :  { %v2054_v19 = vshll.u32 %v11553_v51, 16 }
 0x16e   :  { %v2123_v24 = vpop.permute.xlu1 %2122 }
 0x16f   :  { %v2406_v10 = vpop.permute.xlu0 %2405  ;;  %v2485_v52 = vsel %vm2419_vm10, %v17820_v46, %v2123_v24  ;;  %v17822_v24 = vld [vmem:[#allocation22_spill] sm:$0xff] }
 0x170   :  { %v13056_v45 = vsel %vm2492_vm13, %v2479_v18, %v2406_v10  ;;  %v1336_v18 = vld [vmem:[#allocation2 + $0x1a4] sm:$0xe] }
 0x171   :  { %10679 = vmatprep.mubr.msk.bf16.mxu0 %vm2575_vm14, %v13056_v45  ;;  %v9905_v10 = vcombine.low %v1336_v18, %v1264_v43 }
 0x172   :  { %10680 = vmatmul.mubr.msk.bf16.gmra.mrb[52].mxu0 %vm2575_vm14, %v13059_v61  ;;  %v2412_v21 = vpop.permute.xlu1 %2411 }
 0x173   :  { %v13073_v50 = vsel %vm2492_vm13, %v2485_v52, %v2412_v21  ;;  %v2344_v46 = vrot.slane %v9905_v10, 1  ;;  %v2345_v52 = vrot.slane %v11553_v51, 1 }
 0x177   :  { %v2121_v39 = vpop.permute.xlu0 %2120 }
 0x178   :  { %v2483_v12 = vsel %vm2419_vm10, %v17821_v28, %v2121_v39  ;;  %v2346_v28 = vsel %vm2238_vm8, %v2344_v46, %v2345_v52 }
 0x179   :  { %2417 = vrot.lane.b32.xlu1 %v2346_v28, %s11713_s27 }
 0x17b   :  { %v2410_v53 = vpop.permute.xlu0 %2409 }
 0x17c   :  { %v13070_v23 = vsel %vm2492_vm13, %v2483_v12, %v2410_v53 }
 0x17d   :  { %10683 = vmatprep.mubr.msk.bf16.mxu0 %vm2575_vm14, %v13070_v23 }
 0x17e   :  { %10684 = vmatmul.mubr.msk.bf16.gmra.mrb[56].mxu0 %vm2575_vm14, %v13073_v50 }
 0x185   :  { %v2127_v6 = vpop.permute.xlu1 %2126 }
 0x186   :  { %v2489_v15 = vsel %vm2419_vm10, %v12819_v30, %v2127_v6  ;;  %v1263_v30 = vld [vmem:[#allocation2 + $0x1a4] sm:$0xf] }
 0x187   :  { %v13095_v40 = vcombine.low %v1263_v30, %v1264_v43 }
 0x189   :  { %v2125_v2 = vpop.permute.xlu0 %2124  ;;  %v2416_v1 = vpop.permute.xlu1 %2415  ;;  %v2049_v48 = vshll.u32 %v13095_v40, 16  ;;  %v2047_v38 = vshrl.u32 %v13095_v40, 16 }
 0x18a   :  { %v2487_v49 = vsel %vm2419_vm10, %v12845_v60, %v2125_v2  ;;  %v13087_v7 = vsel %vm2492_vm13, %v2489_v15, %v2416_v1 }
 0x18b   :  { %v2051_v4 = vrot.slane %v2049_v48, 1 }
 0x18d   :  { %v2414_v56 = vpop.permute.xlu0 %2413  ;;  %v2348_v22 = vpop.permute.xlu1 %2347  ;;  %v2052_v39 = vor.u32 %v2051_v4, %v2047_v38 }
 0x18e   :  { %v13084_v36 = vsel %vm2492_vm13, %v2487_v49, %v2414_v56 }
 0x18f   :  { %10687 = vmatprep.mubr.msk.bf16.mxu0 %vm2575_vm14, %v13084_v36 }
 0x190   :  { %10688 = vmatmul.mubr.msk.bf16.gmra.mrb[60].mxu0 %vm2575_vm14, %v13087_v7 }
 0x191   :  { %v2059_v13 = vpop.permute.xlu0 %2058  ;;  %v2384_v53 = vpop.permute.xlu1 %2383 }
 0x192   :  { %v2421_v60 = vsel %vm2419_vm10, %v12821_v55, %v2059_v13  ;;  %v2056_v55 = vrot.slane %v2054_v19, 1 }
 0x193   :  { %v2494_v57 = vsel %vm2492_vm13, %v2421_v60, %v2348_v22 }
 0x194   :  { %10693 = vmatprep.mubr.msk.bf16.mxu0 %vm2575_vm14, %v2494_v57  ;;  %v2057_v21 = vsel %vm1625_vm9, %v2052_v39, %v2056_v55 }
 0x195   :  { %2128 = vrot.lane.b32.xlu0 %v2057_v21, %s11714_s30 }
 0x198   :  { %10694 = vmatmul.mubr.msk.bf16.vlgmr.msra.gmra.mrb[0].mxu0 %vm2575_vm14, %v17822_v24 }
 0x199   :  { %10758 = vmatpush3.bf16.msra.mxu0 %v12887_v59  ;;  %10697 = vmatprep.mubr.msk.bf16.mxu0 %vm2575_vm14, %v12783_v63  ;;  %v2095_v59 = vpop.permute.xlu0 %2094 }
 0x19a   :  { %v2457_v12 = vsel %vm2419_vm10, %v12854_v25, %v2095_v59  ;;  %v17823_v25 = vmov 0  }
 0x19b   :  { %v2530_v6 = vsel %vm2492_vm13, %v2457_v12, %v2384_v53  ;;  %153 = vst.msk [vmem:[#allocation3 + $0x18] sm:$0xf] %vm145_vm15, %v17823_v25  ;;  %146 = vst.msk [vmem:[#allocation3] sm:$0xf] %vm145_vm15, %v17823_v25 }
 0x19c   :  { %147 = vst.msk [vmem:[#allocation3 + $0x4] sm:$0xf] %vm145_vm15, %v17823_v25  ;;  %150 = vst.msk [vmem:[#allocation3 + $0xc] sm:$0xf] %vm145_vm15, %v17823_v25 }
 0x19d   :  { %151 = vst.msk [vmem:[#allocation3 + $0x10] sm:$0xf] %vm145_vm15, %v17823_v25  ;;  %154 = vst.msk [vmem:[#allocation3 + $0x1c] sm:$0xf] %vm145_vm15, %v17823_v25 }
 0x19e   :  { %156 = vst.msk [vmem:[#allocation3 + $0x24] sm:$0xf] %vm145_vm15, %v17823_v25  ;;  %157 = vst.msk [vmem:[#allocation3 + $0x28] sm:$0xf] %vm145_vm15, %v17823_v25 }
 0x19f   :  { %159 = vst.msk [vmem:[#allocation3 + $0x30] sm:$0xf] %vm145_vm15, %v17823_v25  ;;  %160 = vst.msk [vmem:[#allocation3 + $0x34] sm:$0xf] %vm145_vm15, %v17823_v25 }
 0x1a0   :  { %10698 = vmatmul.mubr.msk.bf16.gmra.mrb[4].mxu0 %vm2575_vm14, %v12799_v27  ;;  %162 = vst.msk [vmem:[#allocation3 + $0x3c] sm:$0xf] %vm145_vm15, %v17823_v25  ;;  %163 = vst.msk [vmem:[#allocation3 + $0x40] sm:$0xf] %vm145_vm15, %v17823_v25 }
 0x1a1   :  { %10701 = vmatprep.mubr.msk.bf16.mxu0 %vm2575_vm14, %v12831_v26  ;;  %165 = vst.msk [vmem:[#allocation3 + $0x48] sm:$0xf] %vm145_vm15, %v17823_v25  ;;  %166 = vst.msk [vmem:[#allocation3 + $0x4c] sm:$0xf] %vm145_vm15, %v17823_v25 }
 0x1a2   :  { %168 = vst.msk [vmem:[#allocation3 + $0x54] sm:$0xf] %vm145_vm15, %v17823_v25  ;;  %169 = vst.msk [vmem:[#allocation3 + $0x58] sm:$0xf] %vm145_vm15, %v17823_v25  ;;  %v4656_v48 = vld [vmem:[#allocation3 + $0x18] sm:$0xf] }
 0x1a3   :  { %171 = vst.msk [vmem:[#allocation3 + $0x60] sm:$0xf] %vm145_vm15, %v17823_v25  ;;  %172 = vst.msk [vmem:[#allocation3 + $0x64] sm:$0xf] %vm145_vm15, %v17823_v25  ;;  %v4646_v39 = vld [vmem:[#allocation3 + $0xc] sm:$0xf] }
 0x1a4   :  { %174 = vst.msk [vmem:[#allocation3 + $0x6c] sm:$0xf] %vm145_vm15, %v17823_v25  ;;  %175 = vst.msk [vmem:[#allocation3 + $0x70] sm:$0xf] %vm145_vm15, %v17823_v25 }
 0x1a5   :  { %177 = vst.msk [vmem:[#allocation3 + $0x78] sm:$0xf] %vm145_vm15, %v17823_v25  ;;  %178 = vst.msk [vmem:[#allocation3 + $0x7c] sm:$0xf] %vm145_vm15, %v17823_v25 }
 0x1a6   :  { %180 = vst.msk [vmem:[#allocation3 + $0x84] sm:$0xf] %vm145_vm15, %v17823_v25  ;;  %181 = vst.msk [vmem:[#allocation3 + $0x88] sm:$0xf] %vm145_vm15, %v17823_v25 }
 0x1a7   :  { %183 = vst.msk [vmem:[#allocation3 + $0x90] sm:$0xf] %vm145_vm15, %v17823_v25  ;;  %184 = vst.msk [vmem:[#allocation3 + $0x94] sm:$0xf] %vm145_vm15, %v17823_v25 }
 0x1a8   :  { %10702 = vmatmul.mubr.msk.bf16.gmra.mrb[8].mxu0 %vm2575_vm14, %v12827_v0  ;;  %186 = vst.msk [vmem:[#allocation3 + $0x9c] sm:$0xf] %vm145_vm15, %v17823_v25  ;;  %187 = vst.msk [vmem:[#allocation3 + $0xa0] sm:$0xf] %vm145_vm15, %v17823_v25 }
 0x1a9   :  { %10705 = vmatprep.mubr.msk.bf16.mxu0 %vm2575_vm14, %v12860_v44  ;;  %189 = vst.msk [vmem:[#allocation3 + $0xa8] sm:$0xf] %vm145_vm15, %v17823_v25  ;;  %190 = vst.msk [vmem:[#allocation3 + $0xac] sm:$0xf] %vm145_vm15, %v17823_v25 }
 0x1aa   :  { %192 = vst.msk [vmem:[#allocation3 + $0xb4] sm:$0xf] %vm145_vm15, %v17823_v25  ;;  %193 = vst.msk [vmem:[#allocation3 + $0xb8] sm:$0xf] %vm145_vm15, %v17823_v25 }
 0x1ab   :  { %195 = vst.msk [vmem:[#allocation3 + $0xc0] sm:$0xf] %vm145_vm15, %v17823_v25  ;;  %196 = vst.msk [vmem:[#allocation3 + $0xc4] sm:$0xf] %vm145_vm15, %v17823_v25 }
 0x1ac   :  { %198 = vst.msk [vmem:[#allocation3 + $0xcc] sm:$0xf] %vm145_vm15, %v17823_v25  ;;  %199 = vst.msk [vmem:[#allocation3 + $0xd0] sm:$0xf] %vm145_vm15, %v17823_v25 }
 0x1ad   :  { %201 = vst.msk [vmem:[#allocation3 + $0xd8] sm:$0xf] %vm145_vm15, %v17823_v25  ;;  %202 = vst.msk [vmem:[#allocation3 + $0xdc] sm:$0xf] %vm145_vm15, %v17823_v25 }
 0x1ae   :  { %204 = vst.msk [vmem:[#allocation3 + $0xe4] sm:$0xf] %vm145_vm15, %v17823_v25  ;;  %205 = vst.msk [vmem:[#allocation3 + $0xe8] sm:$0xf] %vm145_vm15, %v17823_v25 }
 0x1af   :  { %207 = vst.msk [vmem:[#allocation3 + $0xf0] sm:$0xf] %vm145_vm15, %v17823_v25  ;;  %208 = vst.msk [vmem:[#allocation3 + $0xf4] sm:$0xf] %vm145_vm15, %v17823_v25 }
 0x1b0   :  { %10706 = vmatmul.mubr.msk.bf16.gmra.mrb[12].mxu0 %vm2575_vm14, %v12868_v17  ;;  %210 = vst.msk [vmem:[#allocation3 + $0xfc] sm:$0xf] %vm145_vm15, %v17823_v25  ;;  %211 = vst.msk [vmem:[#allocation3 + $0x100] sm:$0xf] %vm145_vm15, %v17823_v25 }
 0x1b1   :  { %10709 = vmatprep.mubr.msk.bf16.mxu0 %vm2575_vm14, %v12906_v20  ;;  %213 = vst.msk [vmem:[#allocation3 + $0x108] sm:$0xf] %vm145_vm15, %v17823_v25  ;;  %214 = vst.msk [vmem:[#allocation3 + $0x10c] sm:$0xf] %vm145_vm15, %v17823_v25 }
 0x1b2   :  { %216 = vst.msk [vmem:[#allocation3 + $0x114] sm:$0xf] %vm145_vm15, %v17823_v25  ;;  %217 = vst.msk [vmem:[#allocation3 + $0x118] sm:$0xf] %vm145_vm15, %v17823_v25 }
 0x1b3   :  { %219 = vst.msk [vmem:[#allocation3 + $0x120] sm:$0xf] %vm145_vm15, %v17823_v25  ;;  %220 = vst.msk [vmem:[#allocation3 + $0x124] sm:$0xf] %vm145_vm15, %v17823_v25 }
 0x1b4   :  { %222 = vst.msk [vmem:[#allocation3 + $0x12c] sm:$0xf] %vm145_vm15, %v17823_v25  ;;  %223 = vst.msk [vmem:[#allocation3 + $0x130] sm:$0xf] %vm145_vm15, %v17823_v25 }
 0x1b5   :  { %225 = vst.msk [vmem:[#allocation3 + $0x138] sm:$0xf] %vm145_vm15, %v17823_v25  ;;  %226 = vst.msk [vmem:[#allocation3 + $0x13c] sm:$0xf] %vm145_vm15, %v17823_v25 }
 0x1b6   :  { %228 = vst.msk [vmem:[#allocation3 + $0x144] sm:$0xf] %vm145_vm15, %v17823_v25  ;;  %229 = vst.msk [vmem:[#allocation3 + $0x148] sm:$0xf] %vm145_vm15, %v17823_v25 }
 0x1b7   :  { %231 = vst.msk [vmem:[#allocation3 + $0x150] sm:$0xf] %vm145_vm15, %v17823_v25  ;;  %232 = vst.msk [vmem:[#allocation3 + $0x154] sm:$0xf] %vm145_vm15, %v17823_v25 }
 0x1b8   :  { %10710 = vmatmul.mubr.msk.bf16.gmra.mrb[16].mxu0 %vm2575_vm14, %v12900_v41  ;;  %234 = vst.msk [vmem:[#allocation3 + $0x15c] sm:$0xf] %vm145_vm15, %v17823_v25  ;;  %235 = vst.msk [vmem:[#allocation3 + $0x160] sm:$0xf] %vm145_vm15, %v17823_v25 }
 0x1b9   :  { %10713 = vmatprep.mubr.msk.bf16.mxu0 %vm2575_vm14, %v12929_v37  ;;  %237 = vst.msk [vmem:[#allocation3 + $0x168] sm:$0xf] %vm145_vm15, %v17823_v25  ;;  %238 = vst.msk [vmem:[#allocation3 + $0x16c] sm:$0xf] %vm145_vm15, %v17823_v25 }
 0x1ba   :  { %240 = vst.msk [vmem:[#allocation3 + $0x174] sm:$0xf] %vm145_vm15, %v17823_v25  ;;  %241 = vst.msk [vmem:[#allocation3 + $0x178] sm:$0xf] %vm145_vm15, %v17823_v25 }
 0x1bb   :  { %243 = vst.msk [vmem:[#allocation3 + $0x180] sm:$0xf] %vm145_vm15, %v17823_v25  ;;  %244 = vst.msk [vmem:[#allocation3 + $0x184] sm:$0xf] %vm145_vm15, %v17823_v25 }
 0x1bc   :  { %246 = vst.msk [vmem:[#allocation3 + $0x18c] sm:$0xf] %vm145_vm15, %v17823_v25  ;;  %247 = vst.msk [vmem:[#allocation3 + $0x190] sm:$0xf] %vm145_vm15, %v17823_v25 }
 0x1bd   :  { %249 = vst.msk [vmem:[#allocation3 + $0x198] sm:$0xf] %vm145_vm15, %v17823_v25  ;;  %250 = vst.msk [vmem:[#allocation3 + $0x19c] sm:$0xf] %vm145_vm15, %v17823_v25 }
 0x1be   :  { %252 = vst.msk [vmem:[#allocation3 + $0x1a4] sm:$0xf] %vm145_vm15, %v17823_v25  ;;  %253 = vst.msk [vmem:[#allocation3 + $0x1a8] sm:$0xf] %vm145_vm15, %v17823_v25 }
 0x1bf   :  { %155 = vst.msk [vmem:[#allocation3 + $0x20] sm:$0x1] %vm148_vm0, %v17823_v25  ;;  %149 = vst.msk [vmem:[#allocation3 + $0x8] sm:$0x1] %vm148_vm0, %v17823_v25 }
 0x1c0   :  { %10714 = vmatmul.mubr.msk.bf16.gmra.mrb[20].mxu0 %vm2575_vm14, %v12925_v47  ;;  %152 = vst.msk [vmem:[#allocation3 + $0x14] sm:$0x1] %vm148_vm0, %v17823_v25  ;;  %158 = vst.msk [vmem:[#allocation3 + $0x2c] sm:$0x1] %vm148_vm0, %v17823_v25 }
 0x1c1   :  { %10717 = vmatprep.mubr.msk.bf16.mxu0 %vm2575_vm14, %v12946_v42  ;;  %161 = vst.msk [vmem:[#allocation3 + $0x38] sm:$0x1] %vm148_vm0, %v17823_v25  ;;  %164 = vst.msk [vmem:[#allocation3 + $0x44] sm:$0x1] %vm148_vm0, %v17823_v25 }
 0x1c2   :  { %167 = vst.msk [vmem:[#allocation3 + $0x50] sm:$0x1] %vm148_vm0, %v17823_v25  ;;  %170 = vst.msk [vmem:[#allocation3 + $0x5c] sm:$0x1] %vm148_vm0, %v17823_v25 }
 0x1c3   :  { %173 = vst.msk [vmem:[#allocation3 + $0x68] sm:$0x1] %vm148_vm0, %v17823_v25  ;;  %176 = vst.msk [vmem:[#allocation3 + $0x74] sm:$0x1] %vm148_vm0, %v17823_v25 }
 0x1c4   :  { %179 = vst.msk [vmem:[#allocation3 + $0x80] sm:$0x1] %vm148_vm0, %v17823_v25  ;;  %182 = vst.msk [vmem:[#allocation3 + $0x8c] sm:$0x1] %vm148_vm0, %v17823_v25 }
 0x1c5   :  { %185 = vst.msk [vmem:[#allocation3 + $0x98] sm:$0x1] %vm148_vm0, %v17823_v25  ;;  %188 = vst.msk [vmem:[#allocation3 + $0xa4] sm:$0x1] %vm148_vm0, %v17823_v25 }
 0x1c6   :  { %191 = vst.msk [vmem:[#allocation3 + $0xb0] sm:$0x1] %vm148_vm0, %v17823_v25  ;;  %194 = vst.msk [vmem:[#allocation3 + $0xbc] sm:$0x1] %vm148_vm0, %v17823_v25  ;;  %v4660_v59 = vld [vmem:[#allocation3 + $0x20] sm:$0x1] }
 0x1c7   :  { %197 = vst.msk [vmem:[#allocation3 + $0xc8] sm:$0x1] %vm148_vm0, %v17823_v25  ;;  %200 = vst.msk [vmem:[#allocation3 + $0xd4] sm:$0x1] %vm148_vm0, %v17823_v25 }
 0x1c8   :  { %10718 = vmatmul.mubr.msk.bf16.gmra.mrb[24].mxu0 %vm2575_vm14, %v12942_v32  ;;  %203 = vst.msk [vmem:[#allocation3 + $0xe0] sm:$0x1] %vm148_vm0, %v17823_v25  ;;  %206 = vst.msk [vmem:[#allocation3 + $0xec] sm:$0x1] %vm148_vm0, %v17823_v25 }
 0x1c9   :  { %10721 = vmatprep.mubr.msk.bf16.mxu0 %vm2575_vm14, %v12960_v31  ;;  %209 = vst.msk [vmem:[#allocation3 + $0xf8] sm:$0x1] %vm148_vm0, %v17823_v25  ;;  %212 = vst.msk [vmem:[#allocation3 + $0x104] sm:$0x1] %vm148_vm0, %v17823_v25 }
 0x1ca   :  { %215 = vst.msk [vmem:[#allocation3 + $0x110] sm:$0x1] %vm148_vm0, %v17823_v25  ;;  %218 = vst.msk [vmem:[#allocation3 + $0x11c] sm:$0x1] %vm148_vm0, %v17823_v25 }
 0x1cb   :  { %221 = vst.msk [vmem:[#allocation3 + $0x128] sm:$0x1] %vm148_vm0, %v17823_v25  ;;  %224 = vst.msk [vmem:[#allocation3 + $0x134] sm:$0x1] %vm148_vm0, %v17823_v25 }
 0x1cc   :  { %227 = vst.msk [vmem:[#allocation3 + $0x140] sm:$0x1] %vm148_vm0, %v17823_v25  ;;  %230 = vst.msk [vmem:[#allocation3 + $0x14c] sm:$0x1] %vm148_vm0, %v17823_v25 }
 0x1cd   :  { %233 = vst.msk [vmem:[#allocation3 + $0x158] sm:$0x1] %vm148_vm0, %v17823_v25  ;;  %236 = vst.msk [vmem:[#allocation3 + $0x164] sm:$0x1] %vm148_vm0, %v17823_v25 }
 0x1ce   :  { %239 = vst.msk [vmem:[#allocation3 + $0x170] sm:$0x1] %vm148_vm0, %v17823_v25  ;;  %242 = vst.msk [vmem:[#allocation3 + $0x17c] sm:$0x1] %vm148_vm0, %v17823_v25 }
 0x1cf   :  { %245 = vst.msk [vmem:[#allocation3 + $0x188] sm:$0x1] %vm148_vm0, %v17823_v25  ;;  %248 = vst.msk [vmem:[#allocation3 + $0x194] sm:$0x1] %vm148_vm0, %v17823_v25 }
 0x1d0   :  { %10722 = vmatmul.mubr.msk.bf16.gmra.mrb[28].mxu0 %vm2575_vm14, %v12957_v14  ;;  %251 = vst.msk [vmem:[#allocation3 + $0x1a0] sm:$0x1] %vm148_vm0, %v17823_v25  ;;  %254 = vst.msk [vmem:[#allocation3 + $0x1ac] sm:$0x1] %vm148_vm0, %v17823_v25  ;;  %vm8678_vm0 = vcmask 457728  }
 0x1d1   :  { %10725 = vmatprep.mubr.msk.bf16.mxu0 %vm2575_vm14, %v2530_v6 }
 0x1d8   :  { %10726 = vmatmul.mubr.msk.bf16.gmra.mrb[32].mxu0 %vm2575_vm14, %v12971_v11 }
 0x1d9   :  { %10729 = vmatprep.mubr.msk.bf16.mxu0 %vm2575_vm14, %v12988_v9 }
 0x1e0   :  { %10730 = vmatmul.mubr.msk.bf16.gmra.mrb[36].mxu0 %vm2575_vm14, %v12985_v16 }
 0x1e1   :  { %10733 = vmatprep.mubr.msk.bf16.mxu0 %vm2575_vm14, %v13002_v35 }
 0x1e8   :  { %10734 = vmatmul.mubr.msk.bf16.gmra.mrb[40].mxu0 %vm2575_vm14, %v12999_v34 }
 0x1e9   :  { %10737 = vmatprep.mubr.msk.bf16.mxu0 %vm2575_vm14, %v13015_v29 }
 0x1f0   :  { %10738 = vmatmul.mubr.msk.bf16.gmra.mrb[44].mxu0 %vm2575_vm14, %v13018_v54 }
 0x1f1   :  { %10741 = vmatprep.mubr.msk.bf16.mxu0 %vm2575_vm14, %v13030_v5 }
 0x1f8   :  { %10742 = vmatmul.mubr.msk.bf16.gmra.mrb[48].mxu0 %vm2575_vm14, %v13042_v33 }
 0x1f9   :  { %10745 = vmatprep.mubr.msk.bf16.mxu0 %vm2575_vm14, %v13045_v58 }
 0x200   :  { %10746 = vmatmul.mubr.msk.bf16.gmra.mrb[52].mxu0 %vm2575_vm14, %v13056_v45 }
 0x201   :  { %10749 = vmatprep.mubr.msk.bf16.mxu0 %vm2575_vm14, %v13059_v61 }
 0x208   :  { %10750 = vmatmul.mubr.msk.bf16.gmra.mrb[56].mxu0 %vm2575_vm14, %v13070_v23 }
 0x209   :  { %10753 = vmatprep.mubr.msk.bf16.mxu0 %vm2575_vm14, %v13073_v50 }
 0x210   :  { %10754 = vmatmul.mubr.msk.bf16.gmra.mrb[60].mxu0 %vm2575_vm14, %v13084_v36 }
 0x211   :  { %10759 = vmatprep.mubr.msk.bf16.mxu0 %vm2575_vm14, %v12783_v63  ;;  %v2093_v63 = vpop.permute.xlu0 %2092 }
 0x218   :  { %10760 = vmatmul.mubr.msk.bf16.vlgmr.msra.gmra.mrb[0].mxu0 %vm2575_vm14, %v12799_v27  ;;  %v2455_v27 = vsel %vm2419_vm10, %v13012_v3, %v2093_v63 }
 0x219   :  { %10763 = vmatprep.mubr.msk.bf16.mxu0 %vm2575_vm14, %v12831_v26 }
 0x220   :  { %10764 = vmatmul.mubr.msk.bf16.gmra.mrb[4].mxu0 %vm2575_vm14, %v12827_v0  ;;  %v2382_v0 = vpop.permute.xlu1 %2381 }
 0x221   :  { %10767 = vmatprep.mubr.msk.bf16.mxu0 %vm2575_vm14, %v12860_v44  ;;  %v2528_v26 = vsel %vm2492_vm13, %v2455_v27, %v2382_v0  ;;  %v2129_v44 = vpop.permute.xlu0 %2128  ;;  %v4653_v27 = vld [vmem:[#allocation3 + $0x14] sm:$0x1] }
 0x228   :  { %10768 = vmatmul.mubr.msk.bf16.gmra.mrb[8].mxu0 %vm2575_vm14, %v12868_v17  ;;  %v2491_v17 = vsel %vm2419_vm10, %v13095_v40, %v2129_v44  ;;  %vm7545_vm10 = vcmask 1045509  }
 0x229   :  { %10771 = vmatprep.mubr.msk.bf16.mxu0 %vm2575_vm14, %v12906_v20 }
 0x230   :  { %10772 = vmatmul.mubr.msk.bf16.gmra.mrb[12].mxu0 %vm2575_vm14, %v12900_v41  ;;  %v2418_v41 = vpop.permute.xlu1 %2417 }
 0x231   :  { %10775 = vmatprep.mubr.msk.bf16.mxu0 %vm2575_vm14, %v12929_v37  ;;  %v2564_v20 = vsel %vm2492_vm13, %v2491_v17, %v2418_v41  ;;  %vm8663_vm13 = vcmask 261120  }
 0x238   :  { %10776 = vmatmul.mubr.msk.bf16.gmra.mrb[16].mxu0 %vm2575_vm14, %v12925_v47  ;;  %v13457_v47 = vld [vmem:[%s17596_s2] ss:$0 sm:$0xff] }
 0x239   :  { %10779 = vmatprep.mubr.msk.bf16.mxu0 %vm2575_vm14, %v12946_v42 }
 0x240   :  { %10780 = vmatmul.mubr.msk.bf16.gmra.mrb[20].mxu0 %vm2575_vm14, %v12942_v32  ;;  %v13462_v32 = vld [vmem:[%s17597_s3] ss:$0 sm:$0xff] }
 0x241   :  { %10783 = vmatprep.mubr.msk.bf16.mxu0 %vm2575_vm14, %v12960_v31 }
 0x248   :  { %10784 = vmatmul.mubr.msk.bf16.gmra.mrb[24].mxu0 %vm2575_vm14, %v12957_v14 }
 0x249   :  { %10787 = vmatprep.mubr.msk.bf16.mxu0 %vm2575_vm14, %v12974_v62 }
 0x250   :  { %10788 = vmatmul.mubr.msk.bf16.gmra.mrb[28].mxu0 %vm2575_vm14, %v2528_v26 }
 0x251   :  { %10791 = vmatprep.mubr.msk.bf16.mxu0 %vm2575_vm14, %v12988_v9 }
 0x258   :  { %10792 = vmatmul.mubr.msk.bf16.gmra.mrb[32].mxu0 %vm2575_vm14, %v12985_v16 }
 0x259   :  { %10795 = vmatprep.mubr.msk.bf16.mxu0 %vm2575_vm14, %v13002_v35 }
 0x260   :  { %10796 = vmatmul.mubr.msk.bf16.gmra.mrb[36].mxu0 %vm2575_vm14, %v12999_v34 }
 0x261   :  { %10799 = vmatprep.mubr.msk.bf16.mxu0 %vm2575_vm14, %v13015_v29 }
 0x268   :  { %10800 = vmatmul.mubr.msk.bf16.gmra.mrb[40].mxu0 %vm2575_vm14, %v13018_v54 }
 0x269   :  { %10803 = vmatprep.mubr.msk.bf16.mxu0 %vm2575_vm14, %v13030_v5 }
 0x270   :  { %10804 = vmatmul.mubr.msk.bf16.gmra.mrb[44].mxu0 %vm2575_vm14, %v13042_v33 }
 0x271   :  { %10807 = vmatprep.mubr.msk.bf16.mxu0 %vm2575_vm14, %v13045_v58 }
 0x278   :  { %10808 = vmatmul.mubr.msk.bf16.gmra.mrb[48].mxu0 %vm2575_vm14, %v13056_v45 }
 0x279   :  { %10811 = vmatprep.mubr.msk.bf16.mxu0 %vm2575_vm14, %v13059_v61 }
 0x280   :  { %10812 = vmatmul.mubr.msk.bf16.gmra.mrb[52].mxu0 %vm2575_vm14, %v13070_v23 }
 0x281   :  { %10815 = vmatprep.mubr.msk.bf16.mxu0 %vm2575_vm14, %v13073_v50 }
 0x288   :  { %10816 = vmatmul.mubr.msk.bf16.gmra.mrb[56].mxu0 %vm2575_vm14, %v13084_v36 }
 0x289   :  { %10819 = vmatprep.mubr.msk.bf16.mxu0 %vm2575_vm14, %v13087_v7 }
 0x290   :  { %10820 = vmatmul.mubr.msk.bf16.gmra.mrb[60].mxu0 %vm2575_vm14, %v2564_v20  ;;  %vm8668_vm14 = vcmask 326656  }
 0x2eb   :  { %v10761_v37 = vpop.f32.mrb[0].mxu0 }
 0x2ec   :  { %v3614_v42 = vmul.f32 %v10761_v37, %v13457_v47  ;;  %v3286_v14 = vpop.f32.mrb[1].mxu0 }
 0x2ed   :  { %v3612_v31 = vmul.f32 %v13457_v47, %v3286_v14  ;;  %v10762_v11 = vpop.f32.mrb[2].mxu0 }
 0x2ee   :  { %v3685_v62 = vadd.f32 %v13462_v32, %v3614_v42  ;;  %v3615_v16 = vmul.f32 %v10762_v11, %v13457_v47  ;;  %v3289_v9 = vpop.f32.mrb[3].mxu0 }
 0x2ef   :  { %v3683_v34 = vadd.f32 %v13462_v32, %v3612_v31  ;;  %v3613_v35 = vmul.f32 %v13457_v47, %v3289_v9 }
 0x2f0   :  { %v3749_v3 = vmax.f32 %v3685_v62, 0.0  ;;  %v3686_v29 = vadd.f32 %v13462_v32, %v3615_v16 }
 0x2f1   :  { %v3747_v54 = vmax.f32 %v3683_v34, 0.0  ;;  %v3684_v5 = vadd.f32 %v13462_v32, %v3613_v35 }
 0x2f2   :  { %v10331_v33 = vpack.c.bf16 %v3749_v3, %v3749_v3  ;;  %v3750_v58 = vmax.f32 %v3686_v29, 0.0 }
 0x2f3   :  { %v10329_v45 = vpack.c.bf16 %v3747_v54, %v3747_v54  ;;  %v3748_v61 = vmax.f32 %v3684_v5, 0.0  ;;  %v10765_v23 = vpop.f32.mrb[4].mxu0 }
 0x2f4   :  { %v4021_v50 = vshrl.u32 %v10331_v33, 16  ;;  %v4024_v2 = vshll.u32 %v10331_v33, 16  ;;  %v10332_v15 = vpack.c.bf16 %v3750_v58, %v3750_v58  ;;  %v3618_v1 = vmul.f32 %v10765_v23, %v13457_v47  ;;  %v3302_v49 = vpop.f32.mrb[5].mxu0  ;;  %v4670_v58 = vld [vmem:[#allocation3 + $0x30] sm:$0xf] }
 0x2f5   :  { %v4004_v56 = vshrl.u32 %v10329_v45, 16  ;;  %v4007_v36 = vshll.u32 %v10329_v45, 16  ;;  %v10330_v7 = vpack.c.bf16 %v3748_v61, %v3748_v61  ;;  %v3616_v22 = vmul.f32 %v13457_v47, %v3302_v49  ;;  %v10766_v13 = vpop.f32.mrb[6].mxu0 }
 0x2f6   :  { %v4023_v30 = vrot.slane %v4021_v50, 7  ;;  %v4029_v43 = vshrl.u32 %v10332_v15, 16  ;;  %v4032_v60 = vshll.u32 %v10332_v15, 16  ;;  %v3689_v40 = vadd.f32 %v13462_v32, %v3618_v1  ;;  %v3305_v57 = vpop.f32.mrb[7].mxu0  ;;  %v4663_v1 = vld [vmem:[#allocation3 + $0x24] sm:$0xf] }
 0x2f7   :  { %v4006_v38 = vrot.slane %v4004_v56, 7  ;;  %v4012_v4 = vshrl.u32 %v10330_v7, 16  ;;  %v4015_v19 = vshll.u32 %v10330_v7, 16  ;;  %v3687_v18 = vadd.f32 %v13462_v32, %v3616_v22 }
 0x2f8   :  { %v4026_v10 = vor.u32 %v4024_v2, %v4023_v30  ;;  %v4027_v24 = vrot.slane %v4023_v30, 4  ;;  %v4031_v55 = vrot.slane %v4029_v43, 7  ;;  %v3753_v46 = vmax.f32 %v3689_v40, 0.0 }
 0x2f9   :  { %v4009_v52 = vor.u32 %v4007_v36, %v4006_v38  ;;  %v4010_v21 = vrot.slane %v4006_v38, 4  ;;  %v4014_v12 = vrot.slane %v4012_v4, 7  ;;  %v3751_v53 = vmax.f32 %v3687_v18, 0.0 }
 0x2fa   :  { %v4657_v6 = vsel %vm13477_vm1, %v4026_v10, %v4656_v48  ;;  %v4034_v25 = vor.u32 %v4032_v60, %v4031_v55  ;;  %v4036_v63 = vrot.slane %v4031_v55, 4  ;;  %v10335_v0 = vpack.c.bf16 %v3753_v46, %v3753_v46 }
 0x2fb   :  { %4658 = vst [vmem:[#allocation3 + $0x18] sm:$0xf] %v4657_v6  ;;  %v4647_v26 = vsel %vm13477_vm1, %v4009_v52, %v4646_v39  ;;  %v4017_v44 = vor.u32 %v4015_v19, %v4014_v12  ;;  %v4019_v17 = vrot.slane %v4014_v12, 4  ;;  %v10333_v41 = vpack.c.bf16 %v3751_v53, %v3751_v53  ;;  %v10769_v20 = vpop.f32.mrb[8].mxu0 }
 0x2fc   :  { %4648 = vst [vmem:[#allocation3 + $0xc] sm:$0xf] %v4647_v26  ;;  %v4035_v37 = vsel %vm12015_vm5, %v4027_v24, %v4034_v25  ;;  %v4661_v42 = vsel %vm13484_vm3, %v4036_v63, %v4660_v59  ;;  %v4055_v14 = vshrl.u32 %v10335_v0, 16  ;;  %v4058_v31 = vshll.u32 %v10335_v0, 16  ;;  %v3318_v11 = vpop.f32.mrb[9].mxu0 }
 0x2fd   :  { %4659 = vst.msk [vmem:[#allocation3 + $0x1c] sm:$0xf] %vm145_vm15, %v4035_v37  ;;  %4662 = vst [vmem:[#allocation3 + $0x20] sm:$0x1] %v4661_v42  ;;  %v4018_v62 = vsel %vm12015_vm5, %v4010_v21, %v4017_v44  ;;  %v4654_v16 = vsel %vm13484_vm3, %v4019_v17, %v4653_v27  ;;  %v4038_v9 = vshrl.u32 %v10333_v41, 16  ;;  %v4041_v34 = vshll.u32 %v10333_v41, 16 }
 0x2fe   :  { %v10770_v35 = vpop.f32.mrb[10].mxu0  ;;  %4650 = vst.msk [vmem:[#allocation3 + $0x10] sm:$0xf] %vm145_vm15, %v4018_v62  ;;  %4655 = vst [vmem:[#allocation3 + $0x14] sm:$0x1] %v4654_v16  ;;  %v13502_v3 = vrot.slane %v4055_v14, 7  ;;  %v3619_v29 = vmul.f32 %v10766_v13, %v13457_v47  ;;  %v3617_v54 = vmul.f32 %v13457_v47, %v3305_v57  ;;  %v3622_v5 = vmul.f32 %v10769_v20, %v13457_v47 }
 0x2ff   :  { %v3321_v33 = vpop.f32.mrb[11].mxu0  ;;  %v13507_v45 = vrot.slane %v4038_v9, 7  ;;  %v3620_v61 = vmul.f32 %v13457_v47, %v3318_v11  ;;  %v3623_v23 = vmul.f32 %v10770_v35, %v13457_v47  ;;  %v4674_v14 = vld [vmem:[#allocation3 + $0x38] sm:$0x1] }
 0x300   :  { %v3621_v50 = vmul.f32 %v13457_v47, %v3321_v33  ;;  %v4060_v2 = vor.u32 %v4058_v31, %v13502_v3  ;;  %v4061_v15 = vrot.slane %v13502_v3, 4  ;;  %v3690_v49 = vadd.f32 %v13462_v32, %v3619_v29  ;;  %v4667_v31 = vld [vmem:[#allocation3 + $0x2c] sm:$0x1] }
 0x301   :  { %v3688_v56 = vadd.f32 %v13462_v32, %v3617_v54  ;;  %v4043_v36 = vor.u32 %v4041_v34, %v13507_v45  ;;  %v4044_v7 = vrot.slane %v13507_v45, 4  ;;  %v3693_v22 = vadd.f32 %v13462_v32, %v3622_v5  ;;  %v4684_v54 = vld [vmem:[#allocation3 + $0x48] sm:$0xf]  ;;  %v4677_v5 = vld [vmem:[#allocation3 + $0x3c] sm:$0xf] }
 0x302   :  { %v3691_v13 = vadd.f32 %v13462_v32, %v3620_v61  ;;  %v4671_v30 = vsel %vm13477_vm1, %v4060_v2, %v4670_v58  ;;  %v3754_v43 = vmax.f32 %v3690_v49, 0.0  ;;  %v3694_v40 = vadd.f32 %v13462_v32, %v3623_v23 }
 0x303   :  { %v3752_v60 = vmax.f32 %v3688_v56, 0.0  ;;  %4672 = vst [vmem:[#allocation3 + $0x30] sm:$0xf] %v4671_v30  ;;  %v4664_v57 = vsel %vm13477_vm1, %v4043_v36, %v4663_v1  ;;  %v3757_v48 = vmax.f32 %v3693_v22, 0.0  ;;  %v3692_v4 = vadd.f32 %v13462_v32, %v3621_v50  ;;  %v10773_v19 = vpop.f32.mrb[12].mxu0 }
 0x304   :  { %v3755_v38 = vmax.f32 %v3691_v13, 0.0  ;;  %4665 = vst [vmem:[#allocation3 + $0x24] sm:$0xf] %v4664_v57  ;;  %v10336_v18 = vpack.c.bf16 %v3754_v43, %v3754_v43  ;;  %v3758_v24 = vmax.f32 %v3694_v40, 0.0  ;;  %v3626_v39 = vmul.f32 %v10773_v19, %v13457_v47  ;;  %v3334_v55 = vpop.f32.mrb[13].mxu0 }
 0x305   :  { %v10334_v10 = vpack.c.bf16 %v3752_v60, %v3752_v60  ;;  %v10339_v46 = vpack.c.bf16 %v3757_v48, %v3757_v48  ;;  %v3756_v21 = vmax.f32 %v3692_v4, 0.0  ;;  %v3624_v59 = vmul.f32 %v13457_v47, %v3334_v55  ;;  %v10774_v12 = vpop.f32.mrb[14].mxu0 }
 0x306   :  { %v10337_v52 = vpack.c.bf16 %v3755_v38, %v3755_v38  ;;  %v4063_v53 = vshrl.u32 %v10336_v18, 16  ;;  %v4066_v6 = vshll.u32 %v10336_v18, 16  ;;  %v3337_v27 = vpop.f32.mrb[15].mxu0  ;;  %v10340_v37 = vpack.c.bf16 %v3758_v24, %v3758_v24  ;;  %v4688_v18 = vld [vmem:[#allocation3 + $0x50] sm:$0x1] }
 0x307   :  { %v4046_v25 = vshrl.u32 %v10334_v10, 16  ;;  %v4049_v63 = vshll.u32 %v10334_v10, 16  ;;  %v4089_v0 = vshrl.u32 %v10339_v46, 16  ;;  %v4092_v26 = vshll.u32 %v10339_v46, 16 }
 0x308   :  { %v4072_v44 = vshrl.u32 %v10337_v52, 16  ;;  %v4075_v17 = vshll.u32 %v10337_v52, 16  ;;  %v4065_v41 = vrot.slane %v4063_v53, 7  ;;  %v10338_v42 = vpack.c.bf16 %v3756_v21, %v3756_v21  ;;  %v4681_v21 = vld [vmem:[#allocation3 + $0x44] sm:$0x1] }
 0x309   :  { %v4048_v20 = vrot.slane %v4046_v25, 7  ;;  %v4091_v11 = vrot.slane %v4089_v0, 7  ;;  %v3697_v16 = vadd.f32 %v13462_v32, %v3626_v39  ;;  %v3695_v9 = vadd.f32 %v13462_v32, %v3624_v59 }
 0x30a   :  { %v13528_v62 = vrot.slane %v4072_v44, 7  ;;  %v4068_v34 = vor.u32 %v4066_v6, %v4065_v41  ;;  %v4070_v35 = vrot.slane %v4065_v41, 4  ;;  %v4097_v22 = vshrl.u32 %v10340_v37, 16 }
 0x30b   :  { %v4051_v3 = vor.u32 %v4049_v63, %v4048_v20  ;;  %v4053_v29 = vrot.slane %v4048_v20, 4  ;;  %v4094_v33 = vor.u32 %v4092_v26, %v4091_v11  ;;  %v4095_v58 = vrot.slane %v4091_v11, 4  ;;  %v10777_v23 = vpop.f32.mrb[16].mxu0  ;;  %v4698_v26 = vld [vmem:[#allocation3 + $0x60] sm:$0xf] }
 0x30c   :  { %v4077_v45 = vor.u32 %v4075_v17, %v13528_v62  ;;  %v4078_v61 = vrot.slane %v13528_v62, 4  ;;  %v4069_v50 = vsel %vm12015_vm5, %v4061_v15, %v4068_v34  ;;  %v4675_v2 = vsel %vm13484_vm3, %v4070_v35, %v4674_v14  ;;  %v3350_v56 = vpop.f32.mrb[17].mxu0  ;;  %v4691_v14 = vld [vmem:[#allocation3 + $0x54] sm:$0xf] }
 0x30d   :  { %v4052_v1 = vsel %vm12015_vm5, %v4044_v7, %v4051_v3  ;;  %v4668_v49 = vsel %vm13484_vm3, %v4053_v29, %v4667_v31  ;;  %4673 = vst.msk [vmem:[#allocation3 + $0x34] sm:$0xf] %vm145_vm15, %v4069_v50  ;;  %4676 = vst [vmem:[#allocation3 + $0x38] sm:$0x1] %v4675_v2  ;;  %v4685_v36 = vsel %vm13477_vm1, %v4094_v33, %v4684_v54  ;;  %v4100_v13 = vshll.u32 %v10340_v37, 16  ;;  %v10778_v30 = vpop.f32.mrb[18].mxu0 }
 0x30e   :  { %4666 = vst.msk [vmem:[#allocation3 + $0x28] sm:$0xf] %vm145_vm15, %v4052_v1  ;;  %4669 = vst [vmem:[#allocation3 + $0x2c] sm:$0x1] %v4668_v49  ;;  %v4678_v15 = vsel %vm13477_vm1, %v4077_v45, %v4677_v5  ;;  %v4080_v7 = vshrl.u32 %v10338_v42, 16  ;;  %v4083_v43 = vshll.u32 %v10338_v42, 16  ;;  %v3627_v38 = vmul.f32 %v10774_v12, %v13457_v47 }
 0x30f   :  { %4686 = vst [vmem:[#allocation3 + $0x48] sm:$0xf] %v4685_v36  ;;  %4679 = vst [vmem:[#allocation3 + $0x3c] sm:$0xf] %v4678_v15  ;;  %v3761_v60 = vmax.f32 %v3697_v16, 0.0  ;;  %v3759_v40 = vmax.f32 %v3695_v9, 0.0  ;;  %v3625_v4 = vmul.f32 %v13457_v47, %v3337_v27  ;;  %v3630_v19 = vmul.f32 %v10777_v23, %v13457_v47 }
 0x310   :  { %v13548_v57 = vpop.f32.mrb[19].mxu0  ;;  %v4099_v48 = vrot.slane %v4097_v22, 7  ;;  %v4082_v10 = vrot.slane %v4080_v7, 7  ;;  %v3628_v55 = vmul.f32 %v13457_v47, %v3350_v56  ;;  %v3698_v59 = vadd.f32 %v13462_v32, %v3627_v38  ;;  %v13575_v33 = vld [vmem:[#allocation3 + $0x20] ss:$0 sps:$4 sm:$0x11]  }
 0x311   :  { %v10343_v24 = vpack.c.bf16 %v3761_v60, %v3761_v60  ;;  %v10341_v39 = vpack.c.bf16 %v3759_v40, %v3759_v40  ;;  %v3696_v53 = vadd.f32 %v13462_v32, %v3625_v4  ;;  %v3701_v9 = vadd.f32 %v13462_v32, %v3630_v19  ;;  %v13579_v2 = vld [vmem:[#allocation3 + $0x1c] sm:$0xf]  ;;  %v4877_v7 = vld [vmem:[#allocation3 + $0x18] sm:$0xf]  ;;  %v4702_v60 = vld [vmem:[#allocation3 + $0x68] sm:$0x1] }
 0x312   :  { %v4102_v46 = vor.u32 %v4100_v13, %v4099_v48  ;;  %v4104_v52 = vrot.slane %v4099_v48, 4  ;;  %v4085_v6 = vor.u32 %v4083_v43, %v4082_v10  ;;  %v4087_v25 = vrot.slane %v4082_v10, 4  ;;  %v4695_v40 = vld [vmem:[#allocation3 + $0x5c] sm:$0x1] }
 0x313   :  { %v4123_v12 = vshrl.u32 %v10343_v24, 16  ;;  %v4126_v63 = vshll.u32 %v10343_v24, 16  ;;  %v4106_v44 = vshrl.u32 %v10341_v39, 16  ;;  %v4109_v17 = vshll.u32 %v10341_v39, 16  ;;  %v13560_v41 = vpop.f32.mrb[20].mxu0 }
 0x314   :  { %v4103_v27 = vsel %vm12015_vm5, %v4095_v58, %v4102_v46  ;;  %v4689_v0 = vsel %vm13484_vm3, %v4104_v52, %v4688_v18  ;;  %v4086_v20 = vsel %vm12015_vm5, %v4078_v61, %v4085_v6  ;;  %v4682_v37 = vsel %vm13484_vm3, %v4087_v25, %v4681_v21  ;;  %v13567_v11 = vpop.f32.mrb[21].mxu0  ;;  %v4712_v52 = vld [vmem:[#allocation3 + $0x78] sm:$0xf] }
 0x315   :  { %4687 = vst.msk [vmem:[#allocation3 + $0x4c] sm:$0xf] %vm145_vm15, %v4103_v27  ;;  %4690 = vst [vmem:[#allocation3 + $0x50] sm:$0x1] %v4689_v0  ;;  %v4125_v42 = vrot.slane %v4123_v12, 7  ;;  %v3762_v31 = vmax.f32 %v3698_v59, 0.0  ;;  %v3699_v34 = vadd.f32 %v13462_v32, %v3628_v55  ;;  %v3631_v5 = vmul.f32 %v10778_v30, %v13457_v47 }
 0x316   :  { %4680 = vst.msk [vmem:[#allocation3 + $0x40] sm:$0xf] %vm145_vm15, %v4086_v20  ;;  %4683 = vst [vmem:[#allocation3 + $0x44] sm:$0x1] %v4682_v37  ;;  %v4108_v62 = vrot.slane %v4106_v44, 7  ;;  %v3760_v16 = vmax.f32 %v3696_v53, 0.0  ;;  %v13587_v4 = vcombine.low %v4877_v7, %v13579_v2 }
 0x317   :  { %v13572_v35 = vpop.f32.mrb[22].mxu0  ;;  %v4128_v3 = vor.u32 %v4126_v63, %v4125_v42  ;;  %v4129_v29 = vrot.slane %v4125_v42, 4  ;;  %v10344_v54 = vpack.c.bf16 %v3762_v31, %v3762_v31  ;;  %v3765_v50 = vmax.f32 %v3701_v9, 0.0  ;;  %v4705_v63 = vld [vmem:[#allocation3 + $0x6c] sm:$0xf] }
 0x318   :  { %v13577_v58 = vpop.f32.mrb[23].mxu0  ;;  %v4111_v45 = vor.u32 %v4109_v17, %v4108_v62  ;;  %v4112_v61 = vrot.slane %v4108_v62, 4  ;;  %v10342_v23 = vpack.c.bf16 %v3760_v16, %v3760_v16  ;;  %v3763_v36 = vmax.f32 %v3699_v34, 0.0  ;;  %17828 = vst [vmem:[#allocation10_spill] sm:$0xff] %v13587_v4  ;;  %v4876_v37 = vld [vmem:[#allocation3 + $0x10] sm:$0xf] }
 0x319   :  { %v4699_v1 = vsel %vm13477_vm1, %v4128_v3, %v4698_v26  ;;  %v4131_v49 = vshrl.u32 %v10344_v54, 16  ;;  %v4134_v56 = vshll.u32 %v10344_v54, 16  ;;  %v10347_v30 = vpack.c.bf16 %v3765_v50, %v3765_v50  ;;  %v11558_v9 = vld [vmem:[#allocation3 + $0x14] ss:$0 sps:$4 sm:$0x11]  }
 0x31a   :  { %4700 = vst [vmem:[#allocation3 + $0x60] sm:$0xf] %v4699_v1  ;;  %v4692_v15 = vsel %vm13477_vm1, %v4111_v45, %v4691_v14  ;;  %v4114_v22 = vshrl.u32 %v10342_v23, 16  ;;  %v4117_v13 = vshll.u32 %v10342_v23, 16  ;;  %v10345_v48 = vpack.c.bf16 %v3763_v36, %v3763_v36  ;;  %v4983_v7 = vld [vmem:[#allocation3 + $0x18] sm:$0xe] }
 0x31b   :  { %4693 = vst [vmem:[#allocation3 + $0x54] sm:$0xf] %v4692_v15  ;;  %v4133_v43 = vrot.slane %v4131_v49, 7  ;;  %v3702_v38 = vadd.f32 %v13462_v32, %v3631_v5  ;;  %v4157_v18 = vshrl.u32 %v10347_v30, 16  ;;  %v4160_v10 = vshll.u32 %v10347_v30, 16  ;;  %v13590_v39 = vpop.f32.mrb[24].mxu0 }
 0x31c   :  { %v4116_v19 = vrot.slane %v4114_v22, 7  ;;  %v5337_v24 = vshll.u32 %v13575_v33, 16  ;;  %v4140_v21 = vshrl.u32 %v10345_v48, 16  ;;  %v4143_v59 = vshll.u32 %v10345_v48, 16  ;;  %v13592_v53 = vpop.f32.mrb[25].mxu0 }
 0x31d   :  { %v4136_v55 = vor.u32 %v4134_v56, %v4133_v43  ;;  %v4138_v46 = vrot.slane %v4133_v43, 4  ;;  %v13594_v12 = vrot.slane %v4157_v18, 7  ;;  %v3766_v27 = vmax.f32 %v3702_v38, 0.0  ;;  %v13596_v0 = vpop.f32.mrb[26].mxu0  ;;  %v4875_v5 = vld [vmem:[#allocation3 + $0xc] sm:$0xf] }
 0x31e   :  { %v4119_v6 = vor.u32 %v4117_v13, %v4116_v19  ;;  %v4121_v25 = vrot.slane %v4116_v19, 4  ;;  %v13602_v17 = vrot.slane %v4140_v21, 7  ;;  %v5330_v20 = vshrl.u32 %v13587_v4, 16  ;;  %v13605_v42 = vpop.f32.mrb[27].mxu0  ;;  %v4982_v38 = vld [vmem:[#allocation3 + $0xc] sm:$0xe] }
 0x31f   :  { %v4137_v26 = vsel %vm12015_vm5, %v4129_v29, %v4136_v55  ;;  %v4703_v44 = vsel %vm13484_vm3, %v4138_v46, %v4702_v60  ;;  %v4162_v62 = vor.u32 %v4160_v10, %v13594_v12  ;;  %v4163_v16 = vrot.slane %v13594_v12, 4  ;;  %v4716_v18 = vld [vmem:[#allocation3 + $0x80] sm:$0x1]  ;;  %v13638_v12 = vld [vmem:[#allocation3 + $0x34] sm:$0xf] }
 0x320   :  { %4701 = vst.msk [vmem:[#allocation3 + $0x64] sm:$0xf] %vm145_vm15, %v4137_v26  ;;  %4704 = vst [vmem:[#allocation3 + $0x68] sm:$0x1] %v4703_v44  ;;  %v4120_v14 = vsel %vm12015_vm5, %v4112_v61, %v4119_v6  ;;  %v4696_v31 = vsel %vm13484_vm3, %v4121_v25, %v4695_v40  ;;  %v4145_v34 = vor.u32 %v4143_v59, %v13602_v17  ;;  %v4146_v3 = vrot.slane %v13602_v17, 4 }
 0x321   :  { %4694 = vst.msk [vmem:[#allocation3 + $0x58] sm:$0xf] %vm145_vm15, %v4120_v14  ;;  %4697 = vst [vmem:[#allocation3 + $0x5c] sm:$0x1] %v4696_v31  ;;  %v10348_v29 = vpack.c.bf16 %v3766_v27, %v3766_v27  ;;  %v5332_v54 = vshll.u32 %v13587_v4, 16  ;;  %v4713_v45 = vsel %vm13477_vm1, %v4162_v62, %v4712_v52  ;;  %v5339_v61 = vrot.slane %v5337_v24, 1 }
 0x322   :  { %v3629_v23 = vmul.f32 %v13457_v47, %v13548_v57  ;;  %v13622_v50 = vcombine.low %v4875_v5, %v4876_v37  ;;  %4714 = vst [vmem:[#allocation3 + $0x78] sm:$0xf] %v4713_v45  ;;  %v4706_v1 = vsel %vm13477_vm1, %v4145_v34, %v4705_v63  ;;  %v5325_v30 = vshll.u32 %v11558_v9, 16  ;;  %v13641_v26 = vld [vmem:[#allocation3 + $0x38] ss:$0 sps:$4 sm:$0x11]  }
 0x323   :  { %v4165_v49 = vshrl.u32 %v10348_v29, 16  ;;  %v4168_v56 = vshll.u32 %v10348_v29, 16  ;;  %v5334_v36 = vrot.slane %v5332_v54, 1  ;;  %4707 = vst [vmem:[#allocation3 + $0x6c] sm:$0xf] %v4706_v1  ;;  %v13629_v43 = vpop.f32.mrb[28].mxu0  ;;  %v10149_v40 = vcombine.low %v4983_v7, %v13579_v2 }
 0x324   :  { %17829 = vst [vmem:[#allocation12_spill] sm:$0xff] %v13622_v50  ;;  %v3700_v15 = vadd.f32 %v13462_v32, %v3629_v23  ;;  %v5318_v22 = vshrl.u32 %v13622_v50, 16  ;;  %v5320_v13 = vshll.u32 %v13622_v50, 16  ;;  %v5924_v48 = vrot.slane %v13575_v33, 1  ;;  %v13633_v19 = vpop.f32.mrb[29].mxu0 }
 0x325   :  { %v4167_v57 = vrot.slane %v4165_v49, 7  ;;  %v5335_v60 = vor.u32 %v5334_v36, %v5330_v20  ;;  %v5327_v55 = vrot.slane %v5325_v30, 1  ;;  %v10148_v46 = vcombine.low %v4982_v38, %v4876_v37  ;;  %v13635_v52 = vpop.f32.mrb[30].mxu0  ;;  %v13652_v62 = vld [vmem:[#allocation3 + $0x28] sm:$0xf] }
 0x326   :  { %v3764_v10 = vmax.f32 %v3700_v15, 0.0  ;;  %v5322_v24 = vrot.slane %v5320_v13, 1  ;;  %v5923_v25 = vrot.slane %v10149_v40, 1  ;;  %v5921_v27 = vrot.slane %v11558_v9, 1  ;;  %v13643_v44 = vpop.f32.mrb[31].mxu0 }
 0x327   :  { %v4170_v21 = vor.u32 %v4168_v56, %v4167_v57  ;;  %v4172_v59 = vrot.slane %v4167_v57, 4  ;;  %v5340_v6 = vsel %vm1625_vm9, %v5335_v60, %v5339_v61  ;;  %v5920_v63 = vrot.slane %v10148_v46, 1  ;;  %v4879_v23 = vld [vmem:[#allocation3 + $0x24] sm:$0xf]  ;;  %v4709_v49 = vld [vmem:[#allocation3 + $0x74] sm:$0x1] }
 0x328   :  { %5741 = vrot.lane.b32.xlu1 %v5340_v6, %s11716_s19  ;;  %v10346_v33 = vpack.c.bf16 %v3764_v10, %v3764_v10  ;;  %v5323_v2 = vor.u32 %v5322_v24, %v5318_v22  ;;  %v5925_v14 = vsel %vm2238_vm8, %v5923_v25, %v5924_v48  ;;  %v3634_v31 = vmul.f32 %v13560_v41, %v13457_v47  ;;  %v13678_v7 = vld [vmem:[#allocation3 + $0x2c] ss:$0 sps:$4 sm:$0x11]  }
 0x329   :  { %v4171_v20 = vsel %vm12015_vm5, %v4163_v16, %v4170_v21  ;;  %v4717_v37 = vsel %vm13484_vm3, %v4172_v59, %v4716_v18  ;;  %v5922_v54 = vsel %vm2238_vm8, %v5920_v63, %v5921_v27  ;;  %v4881_v16 = vld [vmem:[#allocation3 + $0x30] sm:$0xf]  ;;  %v3632_v45 = vmul.f32 %v13457_v47, %v13567_v11 }
 0x32a   :  { %4715 = vst.msk [vmem:[#allocation3 + $0x7c] sm:$0xf] %vm145_vm15, %v4171_v20  ;;  %4718 = vst [vmem:[#allocation3 + $0x80] sm:$0x1] %v4717_v37  ;;  %v4148_v9 = vshrl.u32 %v10346_v33, 16  ;;  %v4151_v34 = vshll.u32 %v10346_v33, 16  ;;  %v5328_v29 = vsel %vm1625_vm9, %v5323_v2, %v5327_v55  ;;  %v3705_v5 = vadd.f32 %v13462_v32, %v3634_v31 }
 0x32b   :  { %5739 = vrot.lane.b32.xlu0 %v5328_v29, %s11716_s19  ;;  %v3635_v41 = vmul.f32 %v13572_v35, %v13457_v47  ;;  %v13664_v61 = vcombine.low %v4881_v16, %v13638_v12  ;;  %v5361_v56 = vshll.u32 %v13641_v26, 16  ;;  %v3633_v36 = vmul.f32 %v13457_v47, %v13577_v58  ;;  %v13673_v11 = vpop.f32.mrb[32].mxu0  ;;  %v4726_v29 = vld [vmem:[#allocation3 + $0x90] sm:$0xf] }
 0x32c   :  { %v4150_v1 = vrot.slane %v4148_v9, 7  ;;  %6029 = vrot.lane.b32.xlu1 %v5925_v14, %s11717_s20  ;;  %v13671_v15 = vcombine.low %v4879_v23, %v13652_v62  ;;  %v3769_v35 = vmax.f32 %v3705_v5, 0.0  ;;  %v3703_v22 = vadd.f32 %v13462_v32, %v3632_v45  ;;  %v13680_v57 = vpop.f32.mrb[33].mxu0 }
 0x32d   :  { %17830 = vst [vmem:[#allocation11_spill] sm:$0xff] %v13664_v61  ;;  %v3706_v13 = vadd.f32 %v13462_v32, %v3635_v41  ;;  %v5354_v30 = vshrl.u32 %v13664_v61, 16  ;;  %v5356_v58 = vshll.u32 %v13664_v61, 16  ;;  %v5363_v48 = vrot.slane %v5361_v56, 1  ;;  %v13683_v38 = vpop.f32.mrb[34].mxu0 }
 0x32e   :  { %17831 = vst [vmem:[#allocation14_spill] sm:$0xff] %v13671_v15  ;;  %v4153_v60 = vor.u32 %v4151_v34, %v4150_v1  ;;  %v4155_v40 = vrot.slane %v4150_v1, 4  ;;  %v10351_v18 = vpack.c.bf16 %v3769_v35, %v3769_v35  ;;  %v3767_v10 = vmax.f32 %v3703_v22, 0.0  ;;  %v13687_v46 = vpop.f32.mrb[35].mxu0  ;;  %v4719_v35 = vld [vmem:[#allocation3 + $0x84] sm:$0xf] }
 0x32f   :  { %6027 = vrot.lane.b32.xlu0 %v5922_v54, %s11717_s20  ;;  %v3770_v24 = vmax.f32 %v3706_v13, 0.0  ;;  %v3704_v55 = vadd.f32 %v13462_v32, %v3633_v36  ;;  %v5358_v6 = vrot.slane %v5356_v58, 1  ;;  %v5342_v25 = vshrl.u32 %v13671_v15, 16 }
 0x330   :  { %v4154_v21 = vsel %vm12015_vm5, %v4146_v3, %v4153_v60  ;;  %v4710_v59 = vsel %vm13484_vm3, %v4155_v40, %v4709_v49  ;;  %v4191_v33 = vshrl.u32 %v10351_v18, 16  ;;  %v4194_v2 = vshll.u32 %v10351_v18, 16 }
 0x331   :  { %4708 = vst.msk [vmem:[#allocation3 + $0x70] sm:$0xf] %vm145_vm15, %v4154_v21  ;;  %4711 = vst [vmem:[#allocation3 + $0x74] sm:$0x1] %v4710_v59  ;;  %v10349_v63 = vpack.c.bf16 %v3767_v10, %v3767_v10  ;;  %v10352_v27 = vpack.c.bf16 %v3770_v24, %v3770_v24  ;;  %v5359_v20 = vor.u32 %v5358_v6, %v5354_v30  ;;  %v3768_v37 = vmax.f32 %v3704_v55, 0.0 }
 0x332   :  { %v5344_v17 = vshll.u32 %v13671_v15, 16  ;;  %v5349_v14 = vshll.u32 %v13678_v7, 16  ;;  %v4193_v3 = vrot.slane %v4191_v33, 7  ;;  %v4730_v24 = vld [vmem:[#allocation3 + $0x98] sm:$0x1] }
 0x333   :  { %v4174_v31 = vshrl.u32 %v10349_v63, 16  ;;  %v4177_v9 = vshll.u32 %v10349_v63, 16  ;;  %v4199_v34 = vshrl.u32 %v10352_v27, 16  ;;  %v4202_v54 = vshll.u32 %v10352_v27, 16  ;;  %v13700_v41 = vpop.f32.mrb[36].mxu0 }
 0x334   :  { %v5364_v16 = vsel %vm1625_vm9, %v5359_v20, %v5363_v48  ;;  %v10350_v5 = vpack.c.bf16 %v3768_v37, %v3768_v37  ;;  %v5346_v45 = vrot.slane %v5344_v17, 1  ;;  %v4196_v23 = vor.u32 %v4194_v2, %v4193_v3  ;;  %v13703_v36 = vpop.f32.mrb[37].mxu0  ;;  %v4985_v55 = vld [vmem:[#allocation3 + $0x30] sm:$0xe]  ;;  %v4984_v2 = vld [vmem:[#allocation3 + $0x24] sm:$0xe] }
 0x335   :  { %v4197_v1 = vrot.slane %v4193_v3, 4  ;;  %v4176_v49 = vrot.slane %v4174_v31, 7  ;;  %v4201_v56 = vrot.slane %v4199_v34, 7  ;;  %5745 = vrot.lane.b32.xlu1 %v5364_v16, %s11716_s19  ;;  %v5351_v60 = vrot.slane %v5349_v14, 1  ;;  %v13705_v40 = vpop.f32.mrb[38].mxu0 }
 0x336   :  { %v4182_v22 = vshrl.u32 %v10350_v5, 16  ;;  %v4185_v13 = vshll.u32 %v10350_v5, 16  ;;  %v5347_v30 = vor.u32 %v5346_v45, %v5342_v25  ;;  %v4727_v58 = vsel %vm13477_vm1, %v4196_v23, %v4726_v29  ;;  %v13709_v21 = vpop.f32.mrb[39].mxu0  ;;  %v4723_v20 = vld [vmem:[#allocation3 + $0x8c] sm:$0x1] }
 0x337   :  { %v4179_v48 = vor.u32 %v4177_v9, %v4176_v49  ;;  %v4180_v18 = vrot.slane %v4176_v49, 4  ;;  %v4204_v10 = vor.u32 %v4202_v54, %v4201_v56  ;;  %4728 = vst [vmem:[#allocation3 + $0x90] sm:$0xf] %v4727_v58  ;;  %v4206_v59 = vrot.slane %v4201_v56, 4  ;;  %v13720_v14 = vld [vmem:[#allocation3 + $0x4c] sm:$0xf] }
 0x338   :  { %v4184_v6 = vrot.slane %v4182_v22, 7  ;;  %v5352_v33 = vsel %vm1625_vm9, %v5347_v30, %v5351_v60  ;;  %v10151_v25 = vcombine.low %v4985_v55, %v13638_v12  ;;  %v5930_v37 = vrot.slane %v13641_v26, 1  ;;  %v13725_v34 = vld [vmem:[#allocation3 + $0x50] ss:$0 sps:$4 sm:$0x11]  }
 0x339   :  { %v4720_v63 = vsel %vm13477_vm1, %v4179_v48, %v4719_v35  ;;  %v4205_v27 = vsel %vm12015_vm5, %v4197_v1, %v4204_v10  ;;  %5743 = vrot.lane.b32.xlu0 %v5352_v33, %s11716_s19  ;;  %v10150_v17 = vcombine.low %v4984_v2, %v13652_v62  ;;  %v4731_v12 = vsel %vm13484_vm3, %v4206_v59, %v4730_v24  ;;  %v13732_v16 = vld [vmem:[#allocation3 + $0x40] sm:$0xf]  ;;  %v4883_v22 = vld [vmem:[#allocation3 + $0x3c] sm:$0xf] }
 0x33a   :  { %4721 = vst [vmem:[#allocation3 + $0x84] sm:$0xf] %v4720_v63  ;;  %4729 = vst.msk [vmem:[#allocation3 + $0x94] sm:$0xf] %vm145_vm15, %v4205_v27  ;;  %v4187_v3 = vor.u32 %v4185_v13, %v4184_v6  ;;  %v4189_v31 = vrot.slane %v4184_v6, 4  ;;  %v5929_v9 = vrot.slane %v10151_v25, 1  ;;  %v3638_v26 = vmul.f32 %v13590_v39, %v13457_v47 }
 0x33b   :  { %4732 = vst [vmem:[#allocation3 + $0x98] sm:$0x1] %v4731_v12  ;;  %v5926_v29 = vrot.slane %v10150_v17, 1  ;;  %v5927_v54 = vrot.slane %v13678_v7, 1  ;;  %v3636_v62 = vmul.f32 %v13457_v47, %v13592_v53  ;;  %v3639_v1 = vmul.f32 %v13596_v0, %v13457_v47  ;;  %v4885_v7 = vld [vmem:[#allocation3 + $0x48] sm:$0xf] }
 0x33c   :  { %v4188_v5 = vsel %vm12015_vm5, %v4180_v18, %v4187_v3  ;;  %v4724_v45 = vsel %vm13484_vm3, %v4189_v31, %v4723_v20  ;;  %v5931_v23 = vsel %vm2238_vm8, %v5929_v9, %v5930_v37  ;;  %v13741_v49 = vpop.f32.mrb[40].mxu0  ;;  %v3709_v53 = vadd.f32 %v13462_v32, %v3638_v26  ;;  %v13761_v48 = vld [vmem:[#allocation3 + $0x44] ss:$0 sps:$4 sm:$0x11]   ;;  %v4987_v37 = vld [vmem:[#allocation3 + $0x48] sm:$0xe] }
 0x33d   :  { %4722 = vst.msk [vmem:[#allocation3 + $0x88] sm:$0xf] %vm145_vm15, %v4188_v5  ;;  %4725 = vst [vmem:[#allocation3 + $0x8c] sm:$0x1] %v4724_v45  ;;  %6033 = vrot.lane.b32.xlu1 %v5931_v23, %s11717_s20  ;;  %v5928_v39 = vsel %vm2238_vm8, %v5926_v29, %v5927_v54  ;;  %v3707_v56 = vadd.f32 %v13462_v32, %v3636_v62  ;;  %v13749_v35 = vcombine.low %v4885_v7, %v13720_v14  ;;  %v13751_v13 = vpop.f32.mrb[41].mxu0 }
 0x33e   :  { %6031 = vrot.lane.b32.xlu0 %v5928_v39, %s11717_s20  ;;  %v3710_v0 = vadd.f32 %v13462_v32, %v3639_v1  ;;  %v5385_v30 = vshll.u32 %v13725_v34, 16  ;;  %v3637_v60 = vmul.f32 %v13457_v47, %v13605_v42  ;;  %v13759_v58 = vcombine.low %v4883_v22, %v13732_v16  ;;  %v13763_v18 = vpop.f32.mrb[42].mxu0  ;;  %v4740_v26 = vld [vmem:[#allocation3 + $0xa8] sm:$0xf] }
 0x33f   :  { %17832 = vst [vmem:[#allocation13_spill] sm:$0xff] %v13749_v35  ;;  %v3773_v10 = vmax.f32 %v3709_v53, 0.0  ;;  %v3771_v24 = vmax.f32 %v3707_v56, 0.0  ;;  %v5378_v55 = vshrl.u32 %v13749_v35, 16  ;;  %v5380_v59 = vshll.u32 %v13749_v35, 16  ;;  %v13769_v47 = vpop.f32.mrb[43].mxu0 }
 0x340   :  { %17833 = vst [vmem:[#allocation16_spill] sm:$0xff] %v13759_v58  ;;  %v3774_v6 = vmax.f32 %v3710_v0, 0.0  ;;  %v5387_v33 = vrot.slane %v5385_v30, 1  ;;  %v3708_v25 = vadd.f32 %v13462_v32, %v3637_v60  ;;  %v5366_v2 = vshrl.u32 %v13759_v58, 16  ;;  %v4733_v53 = vld [vmem:[#allocation3 + $0x9c] sm:$0xf] }
 0x341   :  { %v10355_v42 = vpack.c.bf16 %v3773_v10, %v3773_v10  ;;  %v10353_v63 = vpack.c.bf16 %v3771_v24, %v3771_v24  ;;  %v5382_v27 = vrot.slane %v5380_v59, 1  ;;  %v5368_v20 = vshll.u32 %v13759_v58, 16  ;;  %v4747_v35 = vld [vmem:[#allocation3 + $0xb4] sm:$0xf] }
 0x342   :  { %v10356_v17 = vpack.c.bf16 %v3774_v6, %v3774_v6  ;;  %v3772_v12 = vmax.f32 %v3708_v25, 0.0  ;;  %v5373_v3 = vshll.u32 %v13761_v48, 16  ;;  %v10153_v31 = vcombine.low %v4987_v37, %v13720_v14 }
 0x343   :  { %v4225_v9 = vshrl.u32 %v10355_v42, 16  ;;  %v4228_v29 = vshll.u32 %v10355_v42, 16  ;;  %v4208_v54 = vshrl.u32 %v10353_v63, 16  ;;  %v4211_v32 = vshll.u32 %v10353_v63, 16  ;;  %v13774_v1 = vpop.f32.mrb[44].mxu0 }
 0x344   :  { %v4233_v62 = vshrl.u32 %v10356_v17, 16  ;;  %v4236_v5 = vshll.u32 %v10356_v17, 16  ;;  %v5383_v45 = vor.u32 %v5382_v27, %v5378_v55  ;;  %v10354_v23 = vpack.c.bf16 %v3772_v12, %v3772_v12  ;;  %v13777_v10 = vpop.f32.mrb[45].mxu0  ;;  %v4744_v55 = vld [vmem:[#allocation3 + $0xb0] sm:$0x1] }
 0x345   :  { %v4227_v7 = vrot.slane %v4225_v9, 7  ;;  %v4210_v39 = vrot.slane %v4208_v54, 7  ;;  %v5370_v56 = vrot.slane %v5368_v20, 1  ;;  %v5375_v22 = vrot.slane %v5373_v3, 1  ;;  %v13780_v42 = vpop.f32.mrb[46].mxu0 }
 0x346   :  { %v4235_v0 = vrot.slane %v4233_v62, 7  ;;  %v5388_v30 = vsel %vm1625_vm9, %v5383_v45, %v5387_v33  ;;  %v4216_v14 = vshrl.u32 %v10354_v23, 16  ;;  %v4219_v60 = vshll.u32 %v10354_v23, 16  ;;  %v13782_v17 = vld [vmem:[#allocation3 + $0x68] ss:$0 sps:$4 sm:$0x11]  }
 0x347   :  { %v4230_v24 = vor.u32 %v4228_v29, %v4227_v7  ;;  %v4231_v59 = vrot.slane %v4227_v7, 4  ;;  %v4213_v6 = vor.u32 %v4211_v32, %v4210_v39  ;;  %v4214_v25 = vrot.slane %v4210_v39, 4  ;;  %5749 = vrot.lane.b32.xlu1 %v5388_v30, %s11716_s19  ;;  %v13784_v33 = vpop.f32.mrb[47].mxu0  ;;  %v4737_v9 = vld [vmem:[#allocation3 + $0xa4] sm:$0x1] }
 0x348   :  { %v4238_v63 = vor.u32 %v4236_v5, %v4235_v0  ;;  %v4240_v27 = vrot.slane %v4235_v0, 4  ;;  %v4218_v20 = vrot.slane %v4216_v14, 7  ;;  %v5371_v37 = vor.u32 %v5370_v56, %v5366_v2  ;;  %v4986_v45 = vld [vmem:[#allocation3 + $0x3c] sm:$0xe]  ;;  %v13795_v23 = vld [vmem:[#allocation3 + $0x64] sm:$0xf] }
 0x349   :  { %v4741_v12 = vsel %vm13477_vm1, %v4230_v24, %v4740_v26  ;;  %v4734_v3 = vsel %vm13477_vm1, %v4213_v6, %v4733_v53  ;;  %v5935_v29 = vrot.slane %v10153_v31, 1  ;;  %v5936_v54 = vrot.slane %v13725_v34, 1  ;;  %v13802_v39 = vld [vmem:[#allocation3 + $0x58] sm:$0xf]  ;;  %v4887_v30 = vld [vmem:[#allocation3 + $0x54] sm:$0xf] }
 0x34a   :  { %4742 = vst [vmem:[#allocation3 + $0xa8] sm:$0xf] %v4741_v12  ;;  %4735 = vst [vmem:[#allocation3 + $0x9c] sm:$0xf] %v4734_v3  ;;  %v4239_v32 = vsel %vm12015_vm5, %v4231_v59, %v4238_v63  ;;  %v4745_v2 = vsel %vm13484_vm3, %v4240_v27, %v4744_v55  ;;  %v4221_v62 = vor.u32 %v4219_v60, %v4218_v20  ;;  %v4223_v5 = vrot.slane %v4218_v20, 4 }
 0x34b   :  { %4743 = vst.msk [vmem:[#allocation3 + $0xac] sm:$0xf] %vm145_vm15, %v4239_v32  ;;  %4746 = vst [vmem:[#allocation3 + $0xb0] sm:$0x1] %v4745_v2  ;;  %v5376_v31 = vsel %vm1625_vm9, %v5371_v37, %v5375_v22  ;;  %v5937_v34 = vsel %vm2238_vm8, %v5935_v29, %v5936_v54  ;;  %v10152_v26 = vcombine.low %v4986_v45, %v13732_v16  ;;  %v5933_v7 = vrot.slane %v13761_v48, 1  ;;  %v13818_v14 = vpop.f32.mrb[48].mxu0 }
 0x34c   :  { %v4222_v53 = vsel %vm12015_vm5, %v4214_v25, %v4221_v62  ;;  %v4738_v56 = vsel %vm13484_vm3, %v4223_v5, %v4737_v9  ;;  %5747 = vrot.lane.b32.xlu0 %v5376_v31, %s11716_s19  ;;  %6037 = vrot.lane.b32.xlu1 %v5937_v34, %s11717_s20  ;;  %v13813_v22 = vld [vmem:[%s17596_s2] ss:$0 sm:$0xff]  ;;  %v4889_v48 = vld [vmem:[#allocation3 + $0x60] sm:$0xf]  ;;  %v5409_v0 = vshll.u32 %v13782_v17, 16  ;;  %v13830_v25 = vpop.f32.mrb[49].mxu0 }
 0x34d   :  { %v3642_v16 = vmul.f32 %v13813_v22, %v13629_v43  ;;  %4736 = vst.msk [vmem:[#allocation3 + $0xa0] sm:$0xf] %vm145_vm15, %v4222_v53  ;;  %4739 = vst [vmem:[#allocation3 + $0xa4] sm:$0x1] %v4738_v56  ;;  %v5932_v60 = vrot.slane %v10152_v26, 1  ;;  %v3640_v24 = vmul.f32 %v13813_v22, %v13633_v19  ;;  %v3643_v59 = vmul.f32 %v13813_v22, %v13635_v52  ;;  %v13843_v20 = vpop.f32.mrb[50].mxu0 }
 0x34e   :  { %v13826_v6 = vcombine.low %v4889_v48, %v13795_v23  ;;  %v13828_v43 = vld [vmem:[#allocation3 + $0x5c] ss:$0 sps:$4 sm:$0x11]   ;;  %v13835_v55 = vld [vmem:[%s17597_s3] ss:$0 sm:$0xff]  ;;  %v5411_v27 = vrot.slane %v5409_v0, 1  ;;  %v3641_v19 = vmul.f32 %v13813_v22, %v13643_v44  ;;  %v13841_v52 = vcombine.low %v4887_v30, %v13802_v39 }
 0x34f   :  { %v3713_v63 = vadd.f32 %v13835_v55, %v3642_v16  ;;  %v5934_v37 = vsel %vm2238_vm8, %v5932_v60, %v5933_v7  ;;  %v3711_v12 = vadd.f32 %v13835_v55, %v3640_v24  ;;  %v3714_v3 = vadd.f32 %v13835_v55, %v3643_v59  ;;  %v13849_v29 = vpop.f32.mrb[51].mxu0  ;;  %v4989_v34 = vld [vmem:[#allocation3 + $0x60] sm:$0xe] }
 0x350   :  { %17834 = vst [vmem:[#allocation15_spill] sm:$0xff] %v13826_v6  ;;  %17835 = vst [vmem:[#allocation17_spill] sm:$0xff] %v13841_v52  ;;  %v5402_v9 = vshrl.u32 %v13826_v6, 16  ;;  %6035 = vrot.lane.b32.xlu0 %v5934_v37, %s11717_s20  ;;  %v5404_v44 = vshll.u32 %v13826_v6, 16  ;;  %v3712_v32 = vadd.f32 %v13835_v55, %v3641_v19  ;;  %v5390_v2 = vshrl.u32 %v13841_v52, 16 }
 0x351   :  { %v3777_v54 = vmax.f32 %v3713_v63, 0.0  ;;  %v3775_v62 = vmax.f32 %v3711_v12, 0.0  ;;  %v3778_v5 = vmax.f32 %v3714_v3, 0.0  ;;  %v5392_v45 = vshll.u32 %v13841_v52, 16  ;;  %v4754_v19 = vld [vmem:[#allocation3 + $0xc0] sm:$0xf] }
 0x352   :  { %v5397_v31 = vshll.u32 %v13828_v43, 16  ;;  %v5406_v7 = vrot.slane %v5404_v44, 1  ;;  %v3776_v53 = vmax.f32 %v3712_v32, 0.0  ;;  %v10155_v56 = vcombine.low %v4989_v34, %v13795_v23 }
 0x353   :  { %v10359_v26 = vpack.c.bf16 %v3777_v54, %v3777_v54  ;;  %v10357_v16 = vpack.c.bf16 %v3775_v62, %v3775_v62  ;;  %v10360_v48 = vpack.c.bf16 %v3778_v5, %v3778_v5  ;;  %v5394_v0 = vrot.slane %v5392_v45, 1  ;;  %v4758_v5 = vld [vmem:[#allocation3 + $0xc8] sm:$0x1] }
 0x354   :  { %v5399_v30 = vrot.slane %v5397_v31, 1  ;;  %v5407_v59 = vor.u32 %v5406_v7, %v5402_v9  ;;  %v10358_v63 = vpack.c.bf16 %v3776_v53, %v3776_v53  ;;  %v5941_v31 = vrot.slane %v10155_v56, 1  ;;  %v13860_v9 = vpop.f32.mrb[52].mxu0  ;;  %v4751_v53 = vld [vmem:[#allocation3 + $0xbc] sm:$0x1] }
 0x355   :  { %v4259_v60 = vshrl.u32 %v10359_v26, 16  ;;  %v4262_v24 = vshll.u32 %v10359_v26, 16  ;;  %v4242_v37 = vshrl.u32 %v10357_v16, 16  ;;  %v4245_v12 = vshll.u32 %v10357_v16, 16 }
 0x356   :  { %v4267_v3 = vshrl.u32 %v10360_v48, 16  ;;  %v4270_v6 = vshll.u32 %v10360_v48, 16  ;;  %v5412_v54 = vsel %vm1625_vm9, %v5407_v59, %v5411_v27  ;;  %v4250_v44 = vshrl.u32 %v10358_v63, 16  ;;  %v13863_v48 = vpop.f32.mrb[53].mxu0 }
 0x357   :  { %v4261_v52 = vrot.slane %v4259_v60, 7  ;;  %v4253_v32 = vshll.u32 %v10358_v63, 16  ;;  %v4244_v23 = vrot.slane %v4242_v37, 7  ;;  %5753 = vrot.lane.b32.xlu1 %v5412_v54, %s11716_s19  ;;  %v5395_v45 = vor.u32 %v5394_v0, %v5390_v2  ;;  %v13865_v37 = vld [vmem:[#allocation3 + $0x7c] sm:$0xf] }
 0x358   :  { %v4269_v62 = vrot.slane %v4267_v3, 7  ;;  %v4252_v7 = vrot.slane %v4250_v44, 7  ;;  %v5942_v16 = vrot.slane %v13782_v17, 1  ;;  %v13867_v3 = vpop.f32.mrb[54].mxu0  ;;  %v4988_v44 = vld [vmem:[#allocation3 + $0x54] sm:$0xe] }
 0x359   :  { %v4264_v34 = vor.u32 %v4262_v24, %v4261_v52  ;;  %v4265_v26 = vrot.slane %v4261_v52, 4  ;;  %v4247_v27 = vor.u32 %v4245_v12, %v4244_v23  ;;  %v4248_v60 = vrot.slane %v4244_v23, 4  ;;  %v13872_v24 = vld [vmem:[#allocation3 + $0x80] ss:$0 sps:$4 sm:$0x11]   ;;  %v13874_v17 = vpop.f32.mrb[55].mxu0 }
 0x35a   :  { %v4272_v59 = vor.u32 %v4270_v6, %v4269_v62  ;;  %v4274_v63 = vrot.slane %v4269_v62, 4  ;;  %v4255_v56 = vor.u32 %v4253_v32, %v4252_v7  ;;  %v4257_v0 = vrot.slane %v4252_v7, 4 }
 0x35b   :  { %v4755_v2 = vsel %vm13477_vm1, %v4264_v34, %v4754_v19  ;;  %v5400_v52 = vsel %vm1625_vm9, %v5395_v45, %v5399_v30  ;;  %v4748_v6 = vsel %vm13477_vm1, %v4247_v27, %v4747_v35  ;;  %v5943_v19 = vsel %vm2238_vm8, %v5941_v31, %v5942_v16  ;;  %v13884_v30 = vld [vmem:[#allocation3 + $0x70] sm:$0xf]  ;;  %v13894_v45 = vpop.f32.mrb[56].mxu0 }
 0x35c   :  { %4756 = vst [vmem:[#allocation3 + $0xc0] sm:$0xf] %v4755_v2  ;;  %v4273_v12 = vsel %vm12015_vm5, %v4265_v26, %v4272_v59  ;;  %v4759_v54 = vsel %vm13484_vm3, %v4274_v63, %v4758_v5  ;;  %5751 = vrot.lane.b32.xlu0 %v5400_v52, %s11716_s19  ;;  %4749 = vst [vmem:[#allocation3 + $0xb4] sm:$0xf] %v4748_v6  ;;  %v4256_v35 = vsel %vm12015_vm5, %v4248_v60, %v4255_v56  ;;  %v4893_v5 = vld [vmem:[#allocation3 + $0x78] sm:$0xf] }
 0x35d   :  { %4757 = vst.msk [vmem:[#allocation3 + $0xc4] sm:$0xf] %vm145_vm15, %v4273_v12  ;;  %4760 = vst [vmem:[#allocation3 + $0xc8] sm:$0x1] %v4759_v54  ;;  %v4752_v32 = vsel %vm13484_vm3, %v4257_v0, %v4751_v53  ;;  %6041 = vrot.lane.b32.xlu1 %v5943_v19, %s11717_s20  ;;  %v10154_v23 = vcombine.low %v4988_v44, %v13802_v39  ;;  %v5939_v62 = vrot.slane %v13828_v43, 1  ;;  %v13906_v43 = vpop.f32.mrb[57].mxu0 }
 0x35e   :  { %4750 = vst.msk [vmem:[#allocation3 + $0xb8] sm:$0xf] %vm145_vm15, %v4256_v35  ;;  %4753 = vst [vmem:[#allocation3 + $0xbc] sm:$0x1] %v4752_v32  ;;  %v3646_v31 = vmul.f32 %v13813_v22, %v13673_v11  ;;  %v3644_v34 = vmul.f32 %v13813_v22, %v13680_v57  ;;  %v3647_v26 = vmul.f32 %v13813_v22, %v13683_v38  ;;  %v4891_v39 = vld [vmem:[#allocation3 + $0x6c] sm:$0xf] }
 0x35f   :  { %v13904_v7 = vcombine.low %v4893_v5, %v13865_v37  ;;  %v5938_v53 = vrot.slane %v10154_v23, 1  ;;  %v5433_v16 = vshll.u32 %v13872_v24, 16  ;;  %v3645_v27 = vmul.f32 %v13813_v22, %v13687_v46  ;;  %v13914_v60 = vld [vmem:[#allocation3 + $0x74] ss:$0 sps:$4 sm:$0x11]   ;;  %v13916_v57 = vpop.f32.mrb[58].mxu0 }
 0x360   :  { %v13912_v11 = vcombine.low %v4891_v39, %v13884_v30  ;;  %v3717_v38 = vadd.f32 %v13835_v55, %v3646_v31  ;;  %v3715_v59 = vadd.f32 %v13835_v55, %v3644_v34  ;;  %v3718_v63 = vadd.f32 %v13835_v55, %v3647_v26  ;;  %v13922_v56 = vpop.f32.mrb[59].mxu0  ;;  %v4991_v31 = vld [vmem:[#allocation3 + $0x78] sm:$0xe] }
 0x361   :  { %17836 = vst [vmem:[#allocation18_spill] sm:$0xff] %v13904_v7  ;;  %v5426_v2 = vshrl.u32 %v13904_v7, 16  ;;  %v5940_v0 = vsel %vm2238_vm8, %v5938_v53, %v5939_v62  ;;  %v5428_v46 = vshll.u32 %v13904_v7, 16  ;;  %v5435_v52 = vrot.slane %v5433_v16, 1  ;;  %v4768_v7 = vld [vmem:[#allocation3 + $0xf0] sm:$0xf] }
 0x362   :  { %17837 = vst [vmem:[#allocation19_spill] sm:$0xff] %v13912_v11  ;;  %v3716_v6 = vadd.f32 %v13835_v55, %v3645_v27  ;;  %6039 = vrot.lane.b32.xlu0 %v5940_v0, %s11717_s20  ;;  %v3781_v12 = vmax.f32 %v3717_v38, 0.0  ;;  %v3779_v54 = vmax.f32 %v3715_v59, 0.0  ;;  %v3782_v19 = vmax.f32 %v3718_v63, 0.0 }
 0x363   :  { %v5414_v44 = vshrl.u32 %v13912_v11, 16  ;;  %v5430_v35 = vrot.slane %v5428_v46, 1  ;;  %v5416_v23 = vshll.u32 %v13912_v11, 16  ;;  %v5421_v5 = vshll.u32 %v13914_v60, 16  ;;  %v13932_v59 = vpop.f32.mrb[60].mxu0 }
 0x364   :  { %v3780_v32 = vmax.f32 %v3716_v6, 0.0  ;;  %v10363_v62 = vpack.c.bf16 %v3781_v12, %v3781_v12  ;;  %v10361_v34 = vpack.c.bf16 %v3779_v54, %v3779_v54  ;;  %v10364_v26 = vpack.c.bf16 %v3782_v19, %v3782_v19  ;;  %17838 = vst [vmem:[#allocation20_spill] sm:$0xff] %v13932_v59  ;;  %v13935_v54 = vpop.f32.mrb[61].mxu0 }
 0x365   :  { %v10157_v39 = vcombine.low %v4991_v31, %v13865_v37  ;;  %v5431_v53 = vor.u32 %v5430_v35, %v5426_v2  ;;  %v5418_v27 = vrot.slane %v5416_v23, 1  ;;  %v5423_v38 = vrot.slane %v5421_v5, 1  ;;  %17839 = vst [vmem:[#allocation21_spill] sm:$0xff] %v13935_v54  ;;  %v4761_v2 = vld [vmem:[#allocation3 + $0xe4] sm:$0xf]  ;;  %v13939_v4 = vpop.f32.mrb[62].mxu0 }
 0x366   :  { %v10362_v16 = vpack.c.bf16 %v3780_v32, %v3780_v32  ;;  %v4293_v63 = vshrl.u32 %v10363_v62, 16  ;;  %v4296_v0 = vshll.u32 %v10363_v62, 16  ;;  %v4276_v46 = vshrl.u32 %v10361_v34, 16  ;;  %v4772_v5 = vld [vmem:[#allocation3 + $0xf8] sm:$0x1] }
 0x367   :  { %v4279_v6 = vshll.u32 %v10361_v34, 16  ;;  %v4301_v11 = vshrl.u32 %v10364_v26, 16  ;;  %v4304_v58 = vshll.u32 %v10364_v26, 16  ;;  %v5436_v61 = vsel %vm1625_vm9, %v5431_v53, %v5435_v52  ;;  %v4765_v53 = vld [vmem:[#allocation3 + $0xec] sm:$0x1] }
 0x368   :  { %v4284_v12 = vshrl.u32 %v10362_v16, 16  ;;  %v4295_v19 = vrot.slane %v4293_v63, 7  ;;  %v4278_v37 = vrot.slane %v4276_v46, 7  ;;  %5757 = vrot.lane.b32.xlu1 %v5436_v61, %s11716_s19  ;;  %v4287_v35 = vshll.u32 %v10362_v16, 16 }
 0x369   :  { %v5419_v32 = vor.u32 %v5418_v27, %v5414_v44  ;;  %v4303_v23 = vrot.slane %v4301_v11, 7  ;;  %v5947_v62 = vrot.slane %v10157_v39, 1  ;;  %v5948_v34 = vrot.slane %v13872_v24, 1  ;;  %v13941_v61 = vld [vmem:[#allocation3 + $0x98] ss:$0 sps:$4 sm:$0x11]  }
 0x36a   :  { %v4286_v31 = vrot.slane %v4284_v12, 7  ;;  %v4298_v15 = vor.u32 %v4296_v0, %v4295_v19  ;;  %v4299_v26 = vrot.slane %v4295_v19, 4  ;;  %v4281_v50 = vor.u32 %v4279_v6, %v4278_v37  ;;  %v13943_v44 = vpop.f32.mrb[63].mxu0  ;;  %v13951_v27 = vld [vmem:[#allocation3 + $0x94] sm:$0xf] }
 0x36b   :  { %v4282_v52 = vrot.slane %v4278_v37, 4  ;;  %v4306_v63 = vor.u32 %v4304_v58, %v4303_v23  ;;  %v4308_v46 = vrot.slane %v4303_v23, 4  ;;  %v5424_v39 = vsel %vm1625_vm9, %v5419_v32, %v5423_v38  ;;  %v13962_v38 = vld [vmem:[#allocation3 + $0x88] sm:$0xf]  ;;  %v4897_v19 = vld [vmem:[#allocation3 + $0x90] sm:$0xf] }
 0x36c   :  { %v4289_v54 = vor.u32 %v4287_v35, %v4286_v31  ;;  %v4291_v59 = vrot.slane %v4286_v31, 4  ;;  %v4769_v11 = vsel %vm13477_vm1, %v4298_v15, %v4768_v7  ;;  %v4762_v24 = vsel %vm13477_vm1, %v4281_v50, %v4761_v2  ;;  %5755 = vrot.lane.b32.xlu0 %v5424_v39, %s11716_s19  ;;  %v4990_v7 = vld [vmem:[#allocation3 + $0x6c] sm:$0xe]  ;;  %v4895_v32 = vld [vmem:[#allocation3 + $0x84] sm:$0xf] }
 0x36d   :  { %v5949_v16 = vsel %vm2238_vm8, %v5947_v62, %v5948_v34  ;;  %4770 = vst [vmem:[#allocation3 + $0xf0] sm:$0xf] %v4769_v11  ;;  %4763 = vst [vmem:[#allocation3 + $0xe4] sm:$0xf] %v4762_v24  ;;  %v4307_v58 = vsel %vm12015_vm5, %v4299_v26, %v4306_v63  ;;  %v4773_v0 = vsel %vm13484_vm3, %v4308_v46, %v4772_v5  ;;  %v5945_v12 = vrot.slane %v13914_v60, 1 }
 0x36e   :  { %v4290_v15 = vsel %vm12015_vm5, %v4282_v52, %v4289_v54  ;;  %v4766_v50 = vsel %vm13484_vm3, %v4291_v59, %v4765_v53  ;;  %4771 = vst.msk [vmem:[#allocation3 + $0xf4] sm:$0xf] %vm145_vm15, %v4307_v58  ;;  %4774 = vst [vmem:[#allocation3 + $0xf8] sm:$0x1] %v4773_v0  ;;  %6045 = vrot.lane.b32.xlu1 %v5949_v16, %s11717_s20  ;;  %v10156_v6 = vcombine.low %v4990_v7, %v13884_v30 }
 0x36f   :  { %4764 = vst.msk [vmem:[#allocation3 + $0xe8] sm:$0xf] %vm145_vm15, %v4290_v15  ;;  %4767 = vst [vmem:[#allocation3 + $0xec] sm:$0x1] %v4766_v50  ;;  %v3650_v59 = vmul.f32 %v13813_v22, %v13700_v41  ;;  %v3648_v54 = vmul.f32 %v13813_v22, %v13703_v36  ;;  %v3651_v37 = vmul.f32 %v13813_v22, %v13705_v40  ;;  %v5457_v35 = vshll.u32 %v13941_v61, 16 }
 0x370   :  { %v13976_v2 = vcombine.low %v4897_v19, %v13951_v27  ;;  %v3649_v30 = vmul.f32 %v13813_v22, %v13709_v21  ;;  %v5944_v60 = vrot.slane %v10156_v6, 1  ;;  %v13984_v36 = vcombine.low %v4895_v32, %v13962_v38  ;;  %v13986_v5 = vld [vmem:[#allocation3 + $0x8c] ss:$0 sps:$4 sm:$0x11]   ;;  %v4993_v15 = vld [vmem:[#allocation3 + $0x90] sm:$0xe] }
 0x371   :  { %v3721_v23 = vadd.f32 %v13835_v55, %v3650_v59  ;;  %v3719_v41 = vadd.f32 %v13835_v55, %v3648_v54  ;;  %v3722_v40 = vadd.f32 %v13835_v55, %v3651_v37  ;;  %v5459_v34 = vrot.slane %v5457_v35, 1  ;;  %v4782_v35 = vld [vmem:[#allocation3 + $0x108] sm:$0xf] }
 0x372   :  { %v5450_v31 = vshrl.u32 %v13976_v2, 16  ;;  %v5452_v62 = vshll.u32 %v13976_v2, 16  ;;  %v5946_v21 = vsel %vm2238_vm8, %v5944_v60, %v5945_v12  ;;  %v3720_v53 = vadd.f32 %v13835_v55, %v3649_v30 }
 0x373   :  { %v3785_v26 = vmax.f32 %v3721_v23, 0.0  ;;  %v3783_v52 = vmax.f32 %v3719_v41, 0.0  ;;  %6043 = vrot.lane.b32.xlu0 %v5946_v21, %s11717_s20  ;;  %v3786_v63 = vmax.f32 %v3722_v40, 0.0  ;;  %v5438_v11 = vshrl.u32 %v13984_v36, 16 }
 0x374   :  { %v5454_v46 = vrot.slane %v5452_v62, 1  ;;  %v5440_v24 = vshll.u32 %v13984_v36, 16  ;;  %v3784_v58 = vmax.f32 %v3720_v53, 0.0  ;;  %v5445_v0 = vshll.u32 %v13986_v5, 16 }
 0x375   :  { %v10367_v39 = vpack.c.bf16 %v3785_v26, %v3785_v26  ;;  %v10365_v16 = vpack.c.bf16 %v3783_v52, %v3783_v52  ;;  %v10368_v50 = vpack.c.bf16 %v3786_v63, %v3786_v63  ;;  %v10159_v12 = vcombine.low %v4993_v15, %v13951_v27 }
 0x376   :  { %v5455_v7 = vor.u32 %v5454_v46, %v5450_v31  ;;  %v5442_v6 = vrot.slane %v5440_v24, 1  ;;  %v10366_v23 = vpack.c.bf16 %v3784_v58, %v3784_v58  ;;  %v5447_v21 = vrot.slane %v5445_v0, 1  ;;  %v4775_v31 = vld [vmem:[#allocation3 + $0xfc] sm:$0xf]  ;;  %v4992_v0 = vld [vmem:[#allocation3 + $0x84] sm:$0xe] }
 0x377   :  { %v4327_v59 = vshrl.u32 %v10367_v39, 16  ;;  %v4330_v54 = vshll.u32 %v10367_v39, 16  ;;  %v4310_v19 = vshrl.u32 %v10365_v16, 16  ;;  %v4313_v37 = vshll.u32 %v10365_v16, 16  ;;  %v4786_v16 = vld [vmem:[#allocation3 + $0x110] sm:$0x1] }
 0x378   :  { %v4335_v30 = vshrl.u32 %v10368_v50, 16  ;;  %v4338_v32 = vshll.u32 %v10368_v50, 16  ;;  %v5460_v60 = vsel %vm1625_vm9, %v5455_v7, %v5459_v34  ;;  %v5443_v62 = vor.u32 %v5442_v6, %v5438_v11  ;;  %v11629_v34 = vld [vmem:[%s17598_s4 + $0xc] sm:$0xff]  }
 0x379   :  { %v4329_v41 = vrot.slane %v4327_v59, 7  ;;  %v4312_v40 = vrot.slane %v4310_v19, 7  ;;  %5761 = vrot.lane.b32.xlu1 %v5460_v60, %s11716_s19  ;;  %v4318_v52 = vshrl.u32 %v10366_v23, 16  ;;  %v4321_v27 = vshll.u32 %v10366_v23, 16  ;;  %10823 = vmatprep.subr.bf16.mxu1 %v11629_v34  ;;  %v14017_v60 = vld [vmem:[#allocation3 + $0xac] sm:$0xf] }
 0x37a   :  { %v4337_v26 = vrot.slane %v4335_v30, 7  ;;  %v5953_v53 = vrot.slane %v10159_v12, 1  ;;  %v5448_v11 = vsel %vm1625_vm9, %v5443_v62, %v5447_v21  ;;  %v4779_v12 = vld [vmem:[#allocation3 + $0x104] sm:$0x1]  ;;  %v5954_v59 = vrot.slane %v13941_v61, 1  ;;  %10824 = vmatpush3.bf16.msra.mxu1 %v11629_v34 }
 0x37b   :  { %v4332_v63 = vor.u32 %v4330_v54, %v4329_v41  ;;  %v4333_v46 = vrot.slane %v4329_v41, 4  ;;  %v4315_v24 = vor.u32 %v4313_v37, %v4312_v40  ;;  %v4316_v39 = vrot.slane %v4312_v40, 4  ;;  %5759 = vrot.lane.b32.xlu0 %v5448_v11, %s11716_s19  ;;  %v14011_v19 = vld [vmem:[#allocation3 + $0xb0] ss:$0 sps:$4 sm:$0x11]  }
 0x37c   :  { %v4340_v58 = vor.u32 %v4338_v32, %v4337_v26  ;;  %v4342_v15 = vrot.slane %v4337_v26, 4  ;;  %v4320_v50 = vrot.slane %v4318_v52, 7  ;;  %v10158_v54 = vcombine.low %v4992_v0, %v13962_v38  ;;  %v14024_v40 = vld [vmem:[#allocation3 + $0xa0] sm:$0xf]  ;;  %v11633_v62 = vld [vmem:[%s17598_s4 + $0x14] ss:$0 sps:$4 sm:$0xff]  }
 0x37d   :  { %v4783_v7 = vsel %vm13477_vm1, %v4332_v63, %v4782_v35  ;;  %v4776_v6 = vsel %vm13477_vm1, %v4315_v24, %v4775_v31  ;;  %v5955_v61 = vsel %vm2238_vm8, %v5953_v53, %v5954_v59  ;;  %v5951_v23 = vrot.slane %v13986_v5, 1  ;;  %v4901_v26 = vld [vmem:[#allocation3 + $0xa8] sm:$0xf]  ;;  %v14045_v24 = vld [vmem:[#allocation3 + $0xa4] ss:$0 sps:$4 sm:$0x11]   ;;  %11283 = vmatprep.subr.msk.bf16.mxu1 %vm2640_vm11, %v11633_v62 }
 0x37e   :  { %4784 = vst [vmem:[#allocation3 + $0x108] sm:$0xf] %v4783_v7  ;;  %4777 = vst [vmem:[#allocation3 + $0xfc] sm:$0xf] %v4776_v6  ;;  %v4341_v37 = vsel %vm12015_vm5, %v4333_v46, %v4340_v58  ;;  %v4787_v35 = vsel %vm13484_vm3, %v4342_v15, %v4786_v16  ;;  %v4323_v30 = vor.u32 %v4321_v27, %v4320_v50  ;;  %v4325_v32 = vrot.slane %v4320_v50, 4 }
 0x37f   :  { %4785 = vst.msk [vmem:[#allocation3 + $0x10c] sm:$0xf] %vm145_vm15, %v4341_v37  ;;  %4788 = vst [vmem:[#allocation3 + $0x110] sm:$0x1] %v4787_v35  ;;  %v5950_v38 = vrot.slane %v10158_v54, 1  ;;  %v3654_v41 = vmul.f32 %v13813_v22, %v13741_v49  ;;  %6049 = vrot.lane.b32.xlu1 %v5955_v61, %s11717_s20  ;;  %v3652_v5 = vmul.f32 %v13813_v22, %v13751_v13  ;;  %v5481_v63 = vshll.u32 %v14011_v19, 16 }
 0x380   :  { %v4324_v21 = vsel %vm12015_vm5, %v4316_v39, %v4323_v30  ;;  %v4780_v31 = vsel %vm13484_vm3, %v4325_v32, %v4779_v12  ;;  %v3655_v49 = vmul.f32 %v13813_v22, %v13763_v18  ;;  %v14042_v53 = vcombine.low %v4901_v26, %v14017_v60  ;;  %v4899_v46 = vld [vmem:[#allocation3 + $0x9c] sm:$0xf]  ;;  %v4995_v37 = vld [vmem:[#allocation3 + $0xa8] sm:$0xe] }
 0x381   :  { %4778 = vst.msk [vmem:[#allocation3 + $0x100] sm:$0xf] %vm145_vm15, %v4324_v21  ;;  %4781 = vst [vmem:[#allocation3 + $0x104] sm:$0x1] %v4780_v31  ;;  %v5952_v52 = vsel %vm2238_vm8, %v5950_v38, %v5951_v23  ;;  %v3725_v27 = vadd.f32 %v13835_v55, %v3654_v41  ;;  %v3723_v13 = vadd.f32 %v13835_v55, %v3652_v5  ;;  %v5483_v50 = vrot.slane %v5481_v63, 1 }
 0x382   :  { %6047 = vrot.lane.b32.xlu0 %v5952_v52, %s11717_s20  ;;  %v3726_v18 = vadd.f32 %v13835_v55, %v3655_v49  ;;  %v3653_v39 = vmul.f32 %v13813_v22, %v13769_v47  ;;  %v14054_v16 = vcombine.low %v4899_v46, %v14024_v40  ;;  %v5474_v58 = vshrl.u32 %v14042_v53, 16  ;;  %v4796_v52 = vld [vmem:[#allocation3 + $0x120] sm:$0xf] }
 0x383   :  { %v3789_v34 = vmax.f32 %v3725_v27, 0.0  ;;  %v5476_v15 = vshll.u32 %v14042_v53, 16  ;;  %v3787_v11 = vmax.f32 %v3723_v13, 0.0  ;;  %v5469_v47 = vshll.u32 %v14045_v24, 16 }
 0x384   :  { %v3790_v0 = vmax.f32 %v3726_v18, 0.0  ;;  %v3724_v7 = vadd.f32 %v13835_v55, %v3653_v39  ;;  %v5462_v6 = vshrl.u32 %v14054_v16, 16  ;;  %v5464_v54 = vshll.u32 %v14054_v16, 16  ;;  %v4789_v18 = vld [vmem:[#allocation3 + $0x114] sm:$0xf] }
 0x385   :  { %v10371_v12 = vpack.c.bf16 %v3789_v34, %v3789_v34  ;;  %v5478_v59 = vrot.slane %v5476_v15, 1  ;;  %v10369_v35 = vpack.c.bf16 %v3787_v11, %v3787_v11  ;;  %v10161_v61 = vcombine.low %v4995_v37, %v14017_v60  ;;  %v4800_v11 = vld [vmem:[#allocation3 + $0x128] sm:$0x1] }
 0x386   :  { %v10372_v30 = vpack.c.bf16 %v3790_v0, %v3790_v0  ;;  %v3788_v32 = vmax.f32 %v3724_v7, 0.0  ;;  %v5466_v62 = vrot.slane %v5464_v54, 1  ;;  %v5471_v60 = vrot.slane %v5469_v47, 1  ;;  %v14069_v47 = vld [vmem:[#allocation3 + $0xc8] ss:$0 sps:$4 sm:$0x11]  }
 0x387   :  { %v4361_v38 = vshrl.u32 %v10371_v12, 16  ;;  %v4364_v23 = vshll.u32 %v10371_v12, 16  ;;  %v5479_v41 = vor.u32 %v5478_v59, %v5474_v58  ;;  %v4344_v21 = vshrl.u32 %v10369_v35, 16 }
 0x388   :  { %v4347_v31 = vshll.u32 %v10369_v35, 16  ;;  %v4369_v5 = vshrl.u32 %v10372_v30, 16  ;;  %v4372_v49 = vshll.u32 %v10372_v30, 16  ;;  %v10370_v63 = vpack.c.bf16 %v3788_v32, %v3788_v32  ;;  %v4994_v35 = vld [vmem:[#allocation3 + $0x9c] sm:$0xe] }
 0x389   :  { %v4363_v26 = vrot.slane %v4361_v38, 7  ;;  %v5484_v27 = vsel %vm1625_vm9, %v5479_v41, %v5483_v50  ;;  %v5467_v46 = vor.u32 %v5466_v62, %v5462_v6  ;;  %v4346_v13 = vrot.slane %v4344_v21, 7  ;;  %v4793_v41 = vld [vmem:[#allocation3 + $0x11c] sm:$0x1]  ;;  %v4906_v21 = vld [vmem:[#allocation3 + $0xc4] sm:$0xf] }
 0x38a   :  { %v4371_v39 = vrot.slane %v4369_v5, 7  ;;  %5765 = vrot.lane.b32.xlu1 %v5484_v27, %s11716_s19  ;;  %v5959_v34 = vrot.slane %v10161_v61, 1  ;;  %v4352_v0 = vshrl.u32 %v10370_v63, 16  ;;  %v4355_v7 = vshll.u32 %v10370_v63, 16  ;;  %v4905_v63 = vld [vmem:[#allocation3 + $0xc0] sm:$0xf] }
 0x38b   :  { %v4366_v15 = vor.u32 %v4364_v23, %v4363_v26  ;;  %v4367_v58 = vrot.slane %v4363_v26, 4  ;;  %v4349_v12 = vor.u32 %v4347_v31, %v4346_v13  ;;  %v4350_v59 = vrot.slane %v4346_v13, 4 }
 0x38c   :  { %v4374_v54 = vor.u32 %v4372_v49, %v4371_v39  ;;  %v4376_v37 = vrot.slane %v4371_v39, 4  ;;  %v4354_v6 = vrot.slane %v4352_v0, 7  ;;  %v5472_v30 = vsel %vm1625_vm9, %v5467_v46, %v5471_v60  ;;  %v14096_v39 = vld [vmem:[#allocation3 + $0xb8] sm:$0xf] }
 0x38d   :  { %v4797_v50 = vsel %vm13477_vm1, %v4366_v15, %v4796_v52  ;;  %v5960_v32 = vrot.slane %v14011_v19, 1  ;;  %v4790_v61 = vsel %vm13477_vm1, %v4349_v12, %v4789_v18  ;;  %5763 = vrot.lane.b32.xlu0 %v5472_v30, %s11716_s19  ;;  %v10160_v62 = vcombine.low %v4994_v35, %v14024_v40  ;;  %v4997_v35 = vld [vmem:[#allocation3 + $0xc0] sm:$0xe] }
 0x38e   :  { %4798 = vst [vmem:[#allocation3 + $0x120] sm:$0xf] %v4797_v50  ;;  %v4375_v38 = vsel %vm12015_vm5, %v4367_v58, %v4374_v54  ;;  %v4801_v23 = vsel %vm13484_vm3, %v4376_v37, %v4800_v11  ;;  %4791 = vst [vmem:[#allocation3 + $0x114] sm:$0xf] %v4790_v61  ;;  %v4357_v19 = vor.u32 %v4355_v7, %v4354_v6  ;;  %v4359_v31 = vrot.slane %v4354_v6, 4 }
 0x38f   :  { %4799 = vst.msk [vmem:[#allocation3 + $0x124] sm:$0xf] %vm145_vm15, %v4375_v38  ;;  %4802 = vst [vmem:[#allocation3 + $0x128] sm:$0x1] %v4801_v23  ;;  %v5961_v5 = vsel %vm2238_vm8, %v5959_v34, %v5960_v32  ;;  %v5957_v49 = vrot.slane %v14045_v24, 1  ;;  %v5956_v26 = vrot.slane %v10160_v62, 1  ;;  %v3658_v52 = vmul.f32 %v13813_v22, %v13774_v1 }
 0x390   :  { %6053 = vrot.lane.b32.xlu1 %v5961_v5, %s11717_s20  ;;  %v3656_v40 = vmul.f32 %v13813_v22, %v13777_v10  ;;  %v3659_v27 = vmul.f32 %v13813_v22, %v13780_v42  ;;  %v4358_v46 = vsel %vm12015_vm5, %v4350_v59, %v4357_v19  ;;  %v4794_v13 = vsel %vm13484_vm3, %v4359_v31, %v4793_v41  ;;  %v14098_v1 = vld [vmem:[#allocation3 + $0xbc] ss:$0 sps:$4 sm:$0x11]   ;;  %v4903_v7 = vld [vmem:[#allocation3 + $0xb4] sm:$0xf] }
 0x391   :  { %v14093_v24 = vcombine.low %v4905_v63, %v4906_v21  ;;  %v5505_v18 = vshll.u32 %v14069_v47, 16  ;;  %4792 = vst.msk [vmem:[#allocation3 + $0x118] sm:$0xf] %vm145_vm15, %v4358_v46  ;;  %4795 = vst [vmem:[#allocation3 + $0x11c] sm:$0x1] %v4794_v13  ;;  %v5958_v10 = vsel %vm2238_vm8, %v5956_v26, %v5957_v49  ;;  %v3729_v42 = vadd.f32 %v13835_v55, %v3658_v52 }
 0x392   :  { %v3727_v60 = vadd.f32 %v13835_v55, %v3656_v40  ;;  %v3730_v34 = vadd.f32 %v13835_v55, %v3659_v27  ;;  %6051 = vrot.lane.b32.xlu0 %v5958_v10, %s11717_s20  ;;  %v3657_v0 = vmul.f32 %v13813_v22, %v13784_v33  ;;  %v14111_v37 = vcombine.low %v4903_v7, %v14096_v39  ;;  %v4810_v13 = vld [vmem:[#allocation3 + $0x138] sm:$0xf] }
 0x393   :  { %v5498_v15 = vshrl.u32 %v14093_v24, 16  ;;  %v5500_v58 = vshll.u32 %v14093_v24, 16  ;;  %v5507_v11 = vrot.slane %v5505_v18, 1  ;;  %v3793_v12 = vmax.f32 %v3729_v42, 0.0 }
 0x394   :  { %v3791_v59 = vmax.f32 %v3727_v60, 0.0  ;;  %v3794_v54 = vmax.f32 %v3730_v34, 0.0  ;;  %v3728_v6 = vadd.f32 %v13835_v55, %v3657_v0  ;;  %v5493_v30 = vshll.u32 %v14098_v1, 16  ;;  %v4803_v60 = vld [vmem:[#allocation3 + $0x12c] sm:$0xf] }
 0x395   :  { %v5502_v50 = vrot.slane %v5500_v58, 1  ;;  %v10163_v32 = vcombine.low %v4997_v35, %v4906_v21  ;;  %v10375_v61 = vpack.c.bf16 %v3793_v12, %v3793_v12  ;;  %v5486_v41 = vshrl.u32 %v14111_v37, 16  ;;  %v4814_v35 = vld [vmem:[#allocation3 + $0x140] sm:$0x1] }
 0x396   :  { %v10373_v38 = vpack.c.bf16 %v3791_v59, %v3791_v59  ;;  %v10376_v23 = vpack.c.bf16 %v3794_v54, %v3794_v54  ;;  %v3792_v62 = vmax.f32 %v3728_v6, 0.0  ;;  %v5488_v19 = vshll.u32 %v14111_v37, 16 }
 0x397   :  { %v5503_v33 = vor.u32 %v5502_v50, %v5498_v15  ;;  %v5495_v31 = vrot.slane %v5493_v30, 1  ;;  %v4395_v5 = vshrl.u32 %v10375_v61, 16  ;;  %v4398_v49 = vshll.u32 %v10375_v61, 16  ;;  %v4996_v61 = vld [vmem:[#allocation3 + $0xb4] sm:$0xe] }
 0x398   :  { %v4378_v26 = vshrl.u32 %v10373_v38, 16  ;;  %v4381_v52 = vshll.u32 %v10373_v38, 16  ;;  %v4403_v40 = vshrl.u32 %v10376_v23, 16  ;;  %v4406_v27 = vshll.u32 %v10376_v23, 16  ;;  %v4807_v23 = vld [vmem:[#allocation3 + $0x134] sm:$0x1] }
 0x399   :  { %v5508_v63 = vsel %vm1625_vm9, %v5503_v33, %v5507_v11  ;;  %v10374_v46 = vpack.c.bf16 %v3792_v62, %v3792_v62  ;;  %v4397_v21 = vrot.slane %v4395_v5, 7  ;;  %v5490_v10 = vrot.slane %v5488_v19, 1  ;;  %v14126_v62 = vld [vmem:[#allocation3 + $0xf8] ss:$0 sps:$4 sm:$0x11]  }
 0x39a   :  { %v4380_v18 = vrot.slane %v4378_v26, 7  ;;  %5769 = vrot.lane.b32.xlu1 %v5508_v63, %s11716_s19  ;;  %v5965_v42 = vrot.slane %v10163_v32, 1  ;;  %v4405_v34 = vrot.slane %v4403_v40, 7  ;;  %v5966_v0 = vrot.slane %v14069_v47, 1  ;;  %v4914_v26 = vld [vmem:[#allocation3 + $0xf4] sm:$0xf] }
 0x39b   :  { %v4386_v15 = vshrl.u32 %v10374_v46, 16  ;;  %v4389_v58 = vshll.u32 %v10374_v46, 16  ;;  %v4400_v7 = vor.u32 %v4398_v49, %v4397_v21  ;;  %v4401_v12 = vrot.slane %v4397_v21, 4  ;;  %v14138_v63 = vld [vmem:[#allocation3 + $0xe8] sm:$0xf] }
 0x39c   :  { %v4383_v59 = vor.u32 %v4381_v52, %v4380_v18  ;;  %v4384_v54 = vrot.slane %v4380_v18, 4  ;;  %v4408_v11 = vor.u32 %v4406_v27, %v4405_v34  ;;  %v4410_v50 = vrot.slane %v4405_v34, 4  ;;  %v14155_v34 = vld [vmem:[#allocation3 + $0xec] ss:$0 sps:$4 sm:$0x11]  }
 0x39d   :  { %v4388_v6 = vrot.slane %v4386_v15, 7  ;;  %v5491_v30 = vor.u32 %v5490_v10, %v5486_v41  ;;  %v4811_v38 = vsel %vm13477_vm1, %v4400_v7, %v4810_v13  ;;  %v5967_v33 = vsel %vm2238_vm8, %v5965_v42, %v5966_v0 }
 0x39e   :  { %v4804_v32 = vsel %vm13477_vm1, %v4383_v59, %v4803_v60  ;;  %v10162_v47 = vcombine.low %v4996_v61, %v14096_v39  ;;  %4812 = vst [vmem:[#allocation3 + $0x138] sm:$0xf] %v4811_v38  ;;  %v4409_v19 = vsel %vm12015_vm5, %v4401_v12, %v4408_v11  ;;  %v4815_v41 = vsel %vm13484_vm3, %v4410_v50, %v4814_v35  ;;  %v4911_v60 = vld [vmem:[#allocation3 + $0xe4] sm:$0xf]  ;;  %v5001_v61 = vld [vmem:[#allocation3 + $0xf0] sm:$0xe] }
 0x39f   :  { %4805 = vst [vmem:[#allocation3 + $0x12c] sm:$0xf] %v4804_v32  ;;  %v4391_v5 = vor.u32 %v4389_v58, %v4388_v6  ;;  %v4393_v49 = vrot.slane %v4388_v6, 4  ;;  %6057 = vrot.lane.b32.xlu1 %v5967_v33, %s11717_s20  ;;  %4813 = vst.msk [vmem:[#allocation3 + $0x13c] sm:$0xf] %vm145_vm15, %v4409_v19  ;;  %v5496_v39 = vsel %vm1625_vm9, %v5491_v30, %v5495_v31  ;;  %v5963_v40 = vrot.slane %v14098_v1, 1 }
 0x3a0   :  { %4816 = vst [vmem:[#allocation3 + $0x140] sm:$0x1] %v4815_v41  ;;  %v5962_v52 = vrot.slane %v10162_v47, 1  ;;  %v3662_v27 = vmul.f32 %v13813_v22, %v13818_v14  ;;  %5767 = vrot.lane.b32.xlu0 %v5496_v39, %s11716_s19  ;;  %v3660_v13 = vmul.f32 %v13813_v22, %v13830_v25  ;;  %v3663_v31 = vmul.f32 %v13813_v22, %v13843_v20  ;;  %v4913_v1 = vld [vmem:[#allocation3 + $0xf0] sm:$0xf] }
 0x3a1   :  { %v4392_v46 = vsel %vm12015_vm5, %v4384_v54, %v4391_v5  ;;  %v4808_v21 = vsel %vm13484_vm3, %v4393_v49, %v4807_v23  ;;  %v14152_v10 = vcombine.low %v4913_v1, %v4914_v26  ;;  %v5553_v42 = vshll.u32 %v14126_v62, 16  ;;  %v4817_v1 = vld [vmem:[#allocation3 + $0x144] sm:$0xf] }
 0x3a2   :  { %4806 = vst.msk [vmem:[#allocation3 + $0x130] sm:$0xf] %vm145_vm15, %v4392_v46  ;;  %4809 = vst [vmem:[#allocation3 + $0x134] sm:$0x1] %v4808_v21  ;;  %v5964_v14 = vsel %vm2238_vm8, %v5962_v52, %v5963_v40  ;;  %v3733_v18 = vadd.f32 %v13835_v55, %v3662_v27  ;;  %v3731_v25 = vadd.f32 %v13835_v55, %v3660_v13  ;;  %v4824_v27 = vld [vmem:[#allocation3 + $0x150] sm:$0xf] }
 0x3a3   :  { %v3734_v15 = vadd.f32 %v13835_v55, %v3663_v31  ;;  %v3661_v20 = vmul.f32 %v13813_v22, %v13849_v29  ;;  %v14162_v58 = vcombine.low %v4911_v60, %v14138_v63  ;;  %v5546_v7 = vshrl.u32 %v14152_v10, 16 }
 0x3a4   :  { %v3797_v0 = vmax.f32 %v3733_v18, 0.0  ;;  %v5548_v12 = vshll.u32 %v14152_v10, 16  ;;  %v5555_v59 = vrot.slane %v5553_v42, 1  ;;  %6055 = vrot.lane.b32.xlu0 %v5964_v14, %s11717_s20  ;;  %v3795_v54 = vmax.f32 %v3731_v25, 0.0  ;;  %v4828_v25 = vld [vmem:[#allocation3 + $0x158] sm:$0x1] }
 0x3a5   :  { %v3798_v35 = vmax.f32 %v3734_v15, 0.0  ;;  %v3732_v11 = vadd.f32 %v13835_v55, %v3661_v20  ;;  %v5534_v50 = vshrl.u32 %v14162_v58, 16  ;;  %v5536_v22 = vshll.u32 %v14162_v58, 16 }
 0x3a6   :  { %v10379_v6 = vpack.c.bf16 %v3797_v0, %v3797_v0  ;;  %v5550_v30 = vrot.slane %v5548_v12, 1  ;;  %v5541_v29 = vshll.u32 %v14155_v34, 16  ;;  %v10377_v38 = vpack.c.bf16 %v3795_v54, %v3795_v54 }
 0x3a7   :  { %v10380_v32 = vpack.c.bf16 %v3798_v35, %v3798_v35  ;;  %v3796_v23 = vmax.f32 %v3732_v11, 0.0  ;;  %v10167_v33 = vcombine.low %v5001_v61, %v4914_v26  ;;  %v5538_v5 = vrot.slane %v5536_v22, 1  ;;  %v5000_v35 = vld [vmem:[#allocation3 + $0xe4] sm:$0xe] }
 0x3a8   :  { %v4429_v47 = vshrl.u32 %v10379_v6, 16  ;;  %v4432_v19 = vshll.u32 %v10379_v6, 16  ;;  %v5551_v41 = vor.u32 %v5550_v30, %v5546_v7  ;;  %v4412_v49 = vshrl.u32 %v10377_v38, 16  ;;  %v14177_v30 = vld [vmem:[#allocation3 + $0x110] ss:$0 sps:$4 sm:$0x11]  }
 0x3a9   :  { %v4415_v39 = vshll.u32 %v10377_v38, 16  ;;  %v4437_v55 = vshrl.u32 %v10380_v32, 16  ;;  %v4440_v52 = vshll.u32 %v10380_v32, 16  ;;  %v10378_v21 = vpack.c.bf16 %v3796_v23, %v3796_v23  ;;  %v4821_v38 = vld [vmem:[#allocation3 + $0x14c] sm:$0x1] }
 0x3aa   :  { %v4431_v40 = vrot.slane %v4429_v47, 7  ;;  %v5556_v46 = vsel %vm1625_vm9, %v5551_v41, %v5555_v59  ;;  %v5539_v13 = vor.u32 %v5538_v5, %v5534_v50  ;;  %v4414_v31 = vrot.slane %v4412_v49, 7  ;;  %v14187_v23 = vld [vmem:[#allocation3 + $0x10c] sm:$0xf]  ;;  %v14196_v5 = vld [vmem:[%s17596_s2] ss:$0 sm:$0xff] }
 0x3ab   :  { %v4439_v14 = vrot.slane %v4437_v55, 7  ;;  %5777 = vrot.lane.b32.xlu1 %v5556_v46, %s11716_s19  ;;  %v5543_v26 = vrot.slane %v5541_v29, 1  ;;  %v5977_v18 = vrot.slane %v10167_v33, 1  ;;  %v4420_v15 = vshrl.u32 %v10378_v21, 16  ;;  %v4917_v55 = vld [vmem:[#allocation3 + $0x108] sm:$0xf] }
 0x3ac   :  { %v4434_v42 = vor.u32 %v4432_v19, %v4431_v40  ;;  %v4435_v60 = vrot.slane %v4431_v40, 4  ;;  %v4423_v20 = vshll.u32 %v10378_v21, 16  ;;  %v4417_v0 = vor.u32 %v4415_v39, %v4414_v31  ;;  %v14212_v46 = vld [vmem:[#allocation3 + $0x100] sm:$0xf]  ;;  %s11725_s2 = smov 80  }
 0x3ad   :  { %v4418_v7 = vrot.slane %v4414_v31, 4  ;;  %v4442_v12 = vor.u32 %v4440_v52, %v4439_v14  ;;  %v4444_v54 = vrot.slane %v4439_v14, 4  ;;  %v4422_v11 = vrot.slane %v4420_v15, 7 }
 0x3ae   :  { %v4825_v59 = vsel %vm13477_vm1, %v4434_v42, %v4824_v27  ;;  %v5544_v50 = vsel %vm1625_vm9, %v5539_v13, %v5543_v26  ;;  %v5978_v6 = vrot.slane %v14126_v62, 1  ;;  %v4818_v22 = vsel %vm13477_vm1, %v4417_v0, %v4817_v1  ;;  %v4915_v42 = vld [vmem:[#allocation3 + $0xfc] sm:$0xf]  ;;  %v5003_v0 = vld [vmem:[#allocation3 + $0x108] sm:$0xe] }
 0x3af   :  { %4826 = vst [vmem:[#allocation3 + $0x150] sm:$0xf] %v4825_v59  ;;  %v4443_v29 = vsel %vm12015_vm5, %v4435_v60, %v4442_v12  ;;  %v4829_v61 = vsel %vm13484_vm3, %v4444_v54, %v4828_v25  ;;  %5775 = vrot.lane.b32.xlu0 %v5544_v50, %s11716_s19  ;;  %v10166_v32 = vcombine.low %v5000_v35, %v14138_v63  ;;  %4819 = vst [vmem:[#allocation3 + $0x144] sm:$0xf] %v4818_v22 }
 0x3b0   :  { %4827 = vst.msk [vmem:[#allocation3 + $0x154] sm:$0xf] %vm145_vm15, %v4443_v29  ;;  %4830 = vst [vmem:[#allocation3 + $0x158] sm:$0x1] %v4829_v61  ;;  %v4425_v62 = vor.u32 %v4423_v20, %v4422_v11  ;;  %v4427_v33 = vrot.slane %v4422_v11, 4  ;;  %v5979_v47 = vsel %vm2238_vm8, %v5977_v18, %v5978_v6  ;;  %v5975_v19 = vrot.slane %v14155_v34, 1 }
 0x3b1   :  { %6065 = vrot.lane.b32.xlu1 %v5979_v47, %s11717_s20  ;;  %v5974_v41 = vrot.slane %v10166_v32, 1  ;;  %v3666_v63 = vmul.f32 %v14196_v5, %v13860_v9  ;;  %v3664_v49 = vmul.f32 %v14196_v5, %v13863_v48  ;;  %v3667_v39 = vmul.f32 %v14196_v5, %v13867_v3  ;;  %v14214_v9 = vld [vmem:[#allocation3 + $0x104] ss:$0 sps:$4 sm:$0x11]   ;;  %v14221_v3 = vld [vmem:[%s17597_s3] ss:$0 sm:$0xff] }
 0x3b2   :  { %v4426_v34 = vsel %vm12015_vm5, %v4418_v7, %v4425_v62  ;;  %v4822_v52 = vsel %vm13484_vm3, %v4427_v33, %v4821_v38  ;;  %v14209_v40 = vcombine.low %v4917_v55, %v14187_v23  ;;  %v5577_v27 = vshll.u32 %v14177_v30, 16  ;;  %s11727_s3 = smov 96  }
 0x3b3   :  { %4820 = vst.msk [vmem:[#allocation3 + $0x148] sm:$0xf] %vm145_vm15, %v4426_v34  ;;  %4823 = vst [vmem:[#allocation3 + $0x14c] sm:$0x1] %v4822_v52  ;;  %v5976_v48 = vsel %vm2238_vm8, %v5974_v41, %v5975_v19  ;;  %v3737_v21 = vadd.f32 %v14221_v3, %v3666_v63  ;;  %v3735_v13 = vadd.f32 %v14221_v3, %v3664_v49  ;;  %v5565_v54 = vshll.u32 %v14214_v9, 16 }
 0x3b4   :  { %v3738_v31 = vadd.f32 %v14221_v3, %v3667_v39  ;;  %6063 = vrot.lane.b32.xlu0 %v5976_v48, %s11717_s20  ;;  %v5570_v1 = vshrl.u32 %v14209_v40, 16  ;;  %v5572_v14 = vshll.u32 %v14209_v40, 16  ;;  %v5579_v26 = vrot.slane %v5577_v27, 1  ;;  %v4838_v49 = vld [vmem:[#allocation3 + $0x168] sm:$0xf] }
 0x3b5   :  { %v3665_v18 = vmul.f32 %v14196_v5, %v13874_v17  ;;  %v3801_v60 = vmax.f32 %v3737_v21, 0.0  ;;  %v3799_v25 = vmax.f32 %v3735_v13, 0.0  ;;  %v14232_v20 = vcombine.low %v4915_v42, %v14212_v46  ;;  %v4831_v52 = vld [vmem:[#allocation3 + $0x15c] sm:$0xf]  ;;  %v4842_v42 = vld [vmem:[#allocation3 + $0x170] sm:$0x1] }
 0x3b6   :  { %v3802_v15 = vmax.f32 %v3738_v31, 0.0  ;;  %v5574_v7 = vrot.slane %v5572_v14, 1  ;;  %v10169_v35 = vcombine.low %v5003_v0, %v14187_v23  ;;  %v5567_v61 = vrot.slane %v5565_v54, 1  ;;  %v5002_v0 = vld [vmem:[#allocation3 + $0xfc] sm:$0xe] }
 0x3b7   :  { %v3736_v12 = vadd.f32 %v14221_v3, %v3665_v18  ;;  %v10383_v59 = vpack.c.bf16 %v3801_v60, %v3801_v60  ;;  %v10381_v11 = vpack.c.bf16 %v3799_v25, %v3799_v25  ;;  %v5558_v17 = vshrl.u32 %v14232_v20, 16  ;;  %v4835_v54 = vld [vmem:[#allocation3 + $0x164] sm:$0x1] }
 0x3b8   :  { %v10384_v50 = vpack.c.bf16 %v3802_v15, %v3802_v15  ;;  %v5575_v6 = vor.u32 %v5574_v7, %v5570_v1  ;;  %v5560_v29 = vshll.u32 %v14232_v20, 16  ;;  %v5983_v34 = vrot.slane %v10169_v35, 1 }
 0x3b9   :  { %v3800_v22 = vmax.f32 %v3736_v12, 0.0  ;;  %v4463_v38 = vshrl.u32 %v10383_v59, 16  ;;  %v4466_v32 = vshll.u32 %v10383_v59, 16  ;;  %v4446_v62 = vshrl.u32 %v10381_v11, 16 }
 0x3ba   :  { %v4449_v33 = vshll.u32 %v10381_v11, 16  ;;  %v4471_v47 = vshrl.u32 %v10384_v50, 16  ;;  %v4474_v19 = vshll.u32 %v10384_v50, 16  ;;  %v5580_v41 = vsel %vm1625_vm9, %v5575_v6, %v5579_v26  ;;  %v14248_v59 = vld [vmem:[#allocation3 + $0x128] ss:$0 sps:$4 sm:$0x11]  }
 0x3bb   :  { %v10382_v63 = vpack.c.bf16 %v3800_v22, %v3800_v22  ;;  %v4465_v23 = vrot.slane %v4463_v38, 7  ;;  %v4448_v39 = vrot.slane %v4446_v62, 7  ;;  %5781 = vrot.lane.b32.xlu1 %v5580_v41, %s11716_s19  ;;  %v5562_v55 = vrot.slane %v5560_v29, 1  ;;  %v14255_v22 = vld [vmem:[#allocation3 + $0x124] sm:$0xf] }
 0x3bc   :  { %v4473_v27 = vrot.slane %v4471_v47, 7  ;;  %v5984_v13 = vrot.slane %v14177_v30, 1  ;;  %v10168_v30 = vcombine.low %v5002_v0, %v14212_v46  ;;  %v5981_v38 = vrot.slane %v14214_v9, 1  ;;  %v14262_v62 = vld [vmem:[#allocation3 + $0x118] sm:$0xf] }
 0x3bd   :  { %v4454_v48 = vshrl.u32 %v10382_v63, 16  ;;  %v4457_v21 = vshll.u32 %v10382_v63, 16  ;;  %v4468_v31 = vor.u32 %v4466_v32, %v4465_v23  ;;  %v4469_v1 = vrot.slane %v4465_v23, 4  ;;  %v4921_v9 = vld [vmem:[#allocation3 + $0x120] sm:$0xf] }
 0x3be   :  { %v4451_v14 = vor.u32 %v4449_v33, %v4448_v39  ;;  %v4452_v18 = vrot.slane %v4448_v39, 4  ;;  %v4476_v26 = vor.u32 %v4474_v19, %v4473_v27  ;;  %v4478_v60 = vrot.slane %v4473_v27, 4  ;;  %v14280_v39 = vld [vmem:[#allocation3 + $0x11c] ss:$0 sps:$4 sm:$0x11]  }
 0x3bf   :  { %v4456_v25 = vrot.slane %v4454_v48, 7  ;;  %v5563_v15 = vor.u32 %v5562_v55, %v5558_v17  ;;  %v4839_v7 = vsel %vm13477_vm1, %v4468_v31, %v4838_v49  ;;  %v5985_v35 = vsel %vm2238_vm8, %v5983_v34, %v5984_v13  ;;  %v4919_v49 = vld [vmem:[#allocation3 + $0x114] sm:$0xf] }
 0x3c0   :  { %v4832_v12 = vsel %vm13477_vm1, %v4451_v14, %v4831_v52  ;;  %4840 = vst [vmem:[#allocation3 + $0x168] sm:$0xf] %v4839_v7  ;;  %v4477_v11 = vsel %vm12015_vm5, %v4469_v1, %v4476_v26  ;;  %v4843_v50 = vsel %vm13484_vm3, %v4478_v60, %v4842_v42  ;;  %6069 = vrot.lane.b32.xlu1 %v5985_v35, %s11717_s20  ;;  %v5980_v29 = vrot.slane %v10168_v30, 1  ;;  %v5005_v60 = vld [vmem:[#allocation3 + $0x120] sm:$0xe] }
 0x3c1   :  { %4833 = vst [vmem:[#allocation3 + $0x15c] sm:$0xf] %v4832_v12  ;;  %v4459_v17 = vor.u32 %v4457_v21, %v4456_v25  ;;  %v4461_v6 = vrot.slane %v4456_v25, 4  ;;  %4841 = vst.msk [vmem:[#allocation3 + $0x16c] sm:$0xf] %vm145_vm15, %v4477_v11  ;;  %v5568_v46 = vsel %vm1625_vm9, %v5563_v15, %v5567_v61  ;;  %v3670_v32 = vmul.f32 %v14196_v5, %v13894_v45  ;;  %v14296_v25 = vpop.permute.xlu0 %5739 }
 0x3c2   :  { %4844 = vst [vmem:[#allocation3 + $0x170] sm:$0x1] %v4843_v50  ;;  %5779 = vrot.lane.b32.xlu0 %v5568_v46, %s11716_s19  ;;  %v3668_v19 = vmul.f32 %v14196_v5, %v13906_v43  ;;  %v3671_v61 = vmul.f32 %v14196_v5, %v13916_v57  ;;  %v5982_v45 = vsel %vm2238_vm8, %v5980_v29, %v5981_v38  ;;  %v5601_v23 = vshll.u32 %v14248_v59, 16 }
 0x3c3   :  { %v4460_v33 = vsel %vm12015_vm5, %v4452_v18, %v4459_v17  ;;  %v4836_v47 = vsel %vm13484_vm3, %v4461_v6, %v4835_v54  ;;  %v3741_v41 = vadd.f32 %v14221_v3, %v3670_v32  ;;  %v14277_v63 = vcombine.low %v4921_v9, %v14255_v22  ;;  %v14299_v54 = vpop.permute.xlu1 %5741  ;;  %v4852_v32 = vld [vmem:[#allocation3 + $0x180] sm:$0xf]  ;;  %v4845_v9 = vld [vmem:[#allocation3 + $0x174] sm:$0xf] }
 0x3c4   :  { %4834 = vst.msk [vmem:[#allocation3 + $0x160] sm:$0xf] %vm145_vm15, %v4460_v33  ;;  %4837 = vst [vmem:[#allocation3 + $0x164] sm:$0x1] %v4836_v47  ;;  %v3739_v43 = vadd.f32 %v14221_v3, %v3668_v19  ;;  %v3742_v57 = vadd.f32 %v14221_v3, %v3671_v61  ;;  %v3669_v55 = vmul.f32 %v14196_v5, %v13922_v56  ;;  %v5603_v21 = vrot.slane %v5601_v23, 1 }
 0x3c5   :  { %v14287_v34 = vcombine.low %v4919_v49, %v14262_v62  ;;  %v3805_v52 = vmax.f32 %v3741_v41, 0.0  ;;  %v5594_v27 = vshrl.u32 %v14277_v63, 16  ;;  %v5596_v48 = vshll.u32 %v14277_v63, 16 }
 0x3c6   :  { %6067 = vrot.lane.b32.xlu0 %v5982_v45, %s11717_s20  ;;  %v3803_v13 = vmax.f32 %v3739_v43, 0.0  ;;  %v3806_v31 = vmax.f32 %v3742_v57, 0.0  ;;  %v3740_v1 = vadd.f32 %v14221_v3, %v3669_v55  ;;  %v5589_v26 = vshll.u32 %v14280_v39, 16  ;;  %v4856_v43 = vld [vmem:[#allocation3 + $0x188] sm:$0x1] }
 0x3c7   :  { %v5582_v14 = vshrl.u32 %v14287_v34, 16  ;;  %v10387_v18 = vpack.c.bf16 %v3805_v52, %v3805_v52  ;;  %v5598_v42 = vrot.slane %v5596_v48, 1  ;;  %v5584_v56 = vshll.u32 %v14287_v34, 16  ;;  %v14303_v52 = vpop.permute.xlu0 %6027 }
 0x3c8   :  { %v10385_v15 = vpack.c.bf16 %v3803_v13, %v3803_v13  ;;  %v10388_v0 = vpack.c.bf16 %v3806_v31, %v3806_v31  ;;  %v3804_v7 = vmax.f32 %v3740_v1, 0.0  ;;  %v10171_v12 = vcombine.low %v5005_v60, %v14255_v22  ;;  %v5004_v31 = vld [vmem:[#allocation3 + $0x114] sm:$0xe]  ;;  %v14305_v1 = vpop.permute.xlu1 %6029  ;;  %v14412_v8 = vld [vmem:[#allocation3 + $0x16c] sm:$0xf] }
 0x3c9   :  { %v4497_v35 = vshrl.u32 %v10387_v18, 16  ;;  %v4500_v30 = vshll.u32 %v10387_v18, 16  ;;  %v5599_v11 = vor.u32 %v5598_v42, %v5594_v27  ;;  %v5586_v50 = vrot.slane %v5584_v56, 1 }
 0x3ca   :  { %v4480_v17 = vshrl.u32 %v10385_v15, 16  ;;  %v4483_v6 = vshll.u32 %v10385_v15, 16  ;;  %v4505_v46 = vshrl.u32 %v10388_v0, 16  ;;  %v4508_v29 = vshll.u32 %v10388_v0, 16 }
 0x3cb   :  { %v4499_v38 = vrot.slane %v4497_v35, 7  ;;  %v5604_v33 = vsel %vm1625_vm9, %v5599_v11, %v5603_v21  ;;  %v10386_v47 = vpack.c.bf16 %v3804_v7, %v3804_v7  ;;  %v5587_v19 = vor.u32 %v5586_v50, %v5582_v14  ;;  %v4849_v7 = vld [vmem:[#allocation3 + $0x17c] sm:$0x1] }
 0x3cc   :  { %v4482_v61 = vrot.slane %v4480_v17, 7  ;;  %v4507_v45 = vrot.slane %v4505_v46, 7  ;;  %5785 = vrot.lane.b32.xlu1 %v5604_v33, %s11716_s19  ;;  %v5591_v22 = vrot.slane %v5589_v26, 1  ;;  %v5989_v41 = vrot.slane %v10171_v12, 1  ;;  %v14321_v35 = vld [vmem:[#allocation3 + $0x13c] sm:$0xf] }
 0x3cd   :  { %v4502_v23 = vor.u32 %v4500_v30, %v4499_v38  ;;  %v4503_v49 = vrot.slane %v4499_v38, 4  ;;  %v4488_v57 = vshrl.u32 %v10386_v47, 16  ;;  %v4491_v55 = vshll.u32 %v10386_v47, 16  ;;  %v14311_v26 = vld [vmem:[#allocation3 + $0x140] ss:$0 sps:$4 sm:$0x11]  }
 0x3ce   :  { %v4485_v27 = vor.u32 %v4483_v6, %v4482_v61  ;;  %v4486_v48 = vrot.slane %v4482_v61, 4  ;;  %v4510_v13 = vor.u32 %v4508_v29, %v4507_v45  ;;  %v4512_v21 = vrot.slane %v4507_v45, 4  ;;  %v17840_v6 = vld [vmem:[#allocation20_spill] sm:$0xff]  ;;  %v17841_v29 = vld [vmem:[#allocation21_spill] sm:$0xff]  ;;  %v14341_v61 = vld [vmem:[#allocation3 + $0x130] sm:$0xf]  ;;  %v14345_v45 = vpop.permute.xlu0 %5743 }
 0x3cf   :  { %v4853_v14 = vsel %vm13477_vm1, %v4502_v23, %v4852_v32  ;;  %v4490_v18 = vrot.slane %v4488_v57, 7  ;;  %v5592_v42 = vsel %vm1625_vm9, %v5587_v19, %v5591_v22  ;;  %v5990_v56 = vrot.slane %v14248_v59, 1  ;;  %v4925_v32 = vld [vmem:[#allocation3 + $0x138] sm:$0xf] }
 0x3d0   :  { %4854 = vst [vmem:[#allocation3 + $0x180] sm:$0xf] %v4853_v14  ;;  %v4846_v60 = vsel %vm13477_vm1, %v4485_v27, %v4845_v9  ;;  %v4511_v15 = vsel %vm12015_vm5, %v4503_v49, %v4510_v13  ;;  %v4857_v0 = vsel %vm13484_vm3, %v4512_v21, %v4856_v43  ;;  %5783 = vrot.lane.b32.xlu0 %v5592_v42, %s11716_s19  ;;  %v5987_v50 = vrot.slane %v14280_v39, 1  ;;  %v14343_v9 = vld [vmem:[#allocation3 + $0x134] ss:$0 sps:$4 sm:$0x11]   ;;  %v14352_v49 = vpop.permute.xlu1 %5745 }
 0x3d1   :  { %v10170_v12 = vcombine.low %v5004_v31, %v14262_v62  ;;  %4847 = vst [vmem:[#allocation3 + $0x174] sm:$0xf] %v4846_v60  ;;  %4855 = vst.msk [vmem:[#allocation3 + $0x184] sm:$0xf] %vm145_vm15, %v4511_v15  ;;  %v4493_v59 = vor.u32 %v4491_v55, %v4490_v18  ;;  %v4495_v30 = vrot.slane %v4490_v18, 4  ;;  %v5991_v11 = vsel %vm2238_vm8, %v5989_v41, %v5990_v56 }
 0x3d2   :  { %4858 = vst [vmem:[#allocation3 + $0x188] sm:$0x1] %v4857_v0  ;;  %6073 = vrot.lane.b32.xlu1 %v5991_v11, %s11717_s20  ;;  %v3674_v46 = vmul.f32 %v14196_v5, %v17840_v6  ;;  %v3672_v62 = vmul.f32 %v14196_v5, %v17841_v29  ;;  %v3675_v38 = vmul.f32 %v14196_v5, %v13939_v4  ;;  %v5625_v19 = vshll.u32 %v14311_v26, 16  ;;  %v5007_v18 = vld [vmem:[#allocation3 + $0x138] sm:$0xe] }
 0x3d3   :  { %v5986_v17 = vrot.slane %v10170_v12, 1  ;;  %v4494_v33 = vsel %vm12015_vm5, %v4486_v48, %v4493_v59  ;;  %v4850_v47 = vsel %vm13484_vm3, %v4495_v30, %v4849_v7  ;;  %v14338_v39 = vcombine.low %v4925_v32, %v14321_v35  ;;  %v4923_v48 = vld [vmem:[#allocation3 + $0x12c] sm:$0xf] }
 0x3d4   :  { %4848 = vst.msk [vmem:[#allocation3 + $0x178] sm:$0xf] %vm145_vm15, %v4494_v33  ;;  %4851 = vst [vmem:[#allocation3 + $0x17c] sm:$0x1] %v4850_v47  ;;  %v3745_v22 = vadd.f32 %v14221_v3, %v3674_v46  ;;  %v3743_v41 = vadd.f32 %v14221_v3, %v3672_v62  ;;  %v3746_v23 = vadd.f32 %v14221_v3, %v3675_v38  ;;  %v5627_v55 = vrot.slane %v5625_v19, 1  ;;  %v14369_v29 = vpop.permute.xlu1 %6033 }
 0x3d5   :  { %v5988_v4 = vsel %vm2238_vm8, %v5986_v17, %v5987_v50  ;;  %v5618_v43 = vshrl.u32 %v14338_v39, 16  ;;  %v5620_v57 = vshll.u32 %v14338_v39, 16  ;;  %v3673_v27 = vmul.f32 %v14196_v5, %v13943_v44  ;;  %v14367_v50 = vpop.permute.xlu0 %6031  ;;  %v4866_v62 = vld [vmem:[#allocation3 + $0x198] sm:$0xf] }
 0x3d6   :  { %6071 = vrot.lane.b32.xlu0 %v5988_v4, %s11717_s20  ;;  %v3809_v13 = vmax.f32 %v3745_v22, 0.0  ;;  %v3807_v21 = vmax.f32 %v3743_v41, 0.0  ;;  %v3810_v31 = vmax.f32 %v3746_v23, 0.0  ;;  %v14360_v14 = vcombine.low %v4923_v48, %v14341_v61  ;;  %v4859_v4 = vld [vmem:[#allocation3 + $0x18c] sm:$0xf] }
 0x3d7   :  { %v5622_v42 = vrot.slane %v5620_v57, 1  ;;  %v3744_v56 = vadd.f32 %v14221_v3, %v3673_v27  ;;  %v5613_v60 = vshll.u32 %v14343_v9, 16  ;;  %v10173_v15 = vcombine.low %v5007_v18, %v14321_v35 }
 0x3d8   :  { %v10391_v0 = vpack.c.bf16 %v3809_v13, %v3809_v13  ;;  %v10389_v7 = vpack.c.bf16 %v3807_v21, %v3807_v21  ;;  %v10392_v12 = vpack.c.bf16 %v3810_v31, %v3810_v31  ;;  %v5606_v44 = vshrl.u32 %v14360_v14, 16 }
 0x3d9   :  { %v5623_v5 = vor.u32 %v5622_v42, %v5618_v43  ;;  %v3808_v59 = vmax.f32 %v3744_v56, 0.0  ;;  %v5608_v30 = vshll.u32 %v14360_v14, 16  ;;  %v5615_v11 = vrot.slane %v5613_v60, 1  ;;  %v4870_v43 = vld [vmem:[#allocation3 + $0x1a0] sm:$0x1] }
 0x3da   :  { %v4531_v17 = vshrl.u32 %v10391_v0, 16  ;;  %v4534_v6 = vshll.u32 %v10391_v0, 16  ;;  %v4514_v46 = vshrl.u32 %v10389_v7, 16  ;;  %v4517_v3 = vshll.u32 %v10389_v7, 16  ;;  %v4863_v42 = vld [vmem:[#allocation3 + $0x194] sm:$0x1] }
 0x3db   :  { %v4539_v35 = vshrl.u32 %v10392_v12, 16  ;;  %v4542_v38 = vshll.u32 %v10392_v12, 16  ;;  %v5628_v32 = vsel %vm1625_vm9, %v5623_v5, %v5627_v55  ;;  %v10390_v33 = vpack.c.bf16 %v3808_v59, %v3808_v59  ;;  %v5006_v55 = vld [vmem:[#allocation3 + $0x12c] sm:$0xe]  ;;  %v14374_v56 = vld [vmem:[#allocation3 + $0x154] sm:$0xf] }
 0x3dc   :  { %v4533_v47 = vrot.slane %v4531_v17, 7  ;;  %v4516_v19 = vrot.slane %v4514_v46, 7  ;;  %5789 = vrot.lane.b32.xlu1 %v5628_v32, %s11716_s19  ;;  %v5610_v22 = vrot.slane %v5608_v30, 1  ;;  %v5995_v41 = vrot.slane %v10173_v15, 1  ;;  %v14378_v15 = vpop.permute.xlu0 %5747 }
 0x3dd   :  { %v4541_v23 = vrot.slane %v4539_v35, 7  ;;  %v4522_v57 = vshrl.u32 %v10390_v33, 16  ;;  %v4525_v27 = vshll.u32 %v10390_v33, 16  ;;  %v5996_v48 = vrot.slane %v14311_v26, 1 }
 0x3de   :  { %v4536_v13 = vor.u32 %v4534_v6, %v4533_v47  ;;  %v4537_v21 = vrot.slane %v4533_v47, 4  ;;  %v4519_v31 = vor.u32 %v4517_v3, %v4516_v19  ;;  %v4520_v18 = vrot.slane %v4516_v19, 4  ;;  %v14376_v5 = vld [vmem:[#allocation3 + $0x158] ss:$0 sps:$4 sm:$0x11]   ;;  %v14388_v3 = vpop.permute.xlu1 %5749 }
 0x3df   :  { %v4544_v60 = vor.u32 %v4542_v38, %v4541_v23  ;;  %v4546_v0 = vrot.slane %v4541_v23, 4  ;;  %v4524_v7 = vrot.slane %v4522_v57, 7  ;;  %v5611_v12 = vor.u32 %v5610_v22, %v5606_v44  ;;  %v4928_v6 = vld [vmem:[#allocation3 + $0x148] sm:$0xf]  ;;  %v4929_v38 = vld [vmem:[#allocation3 + $0x150] sm:$0xf] }
 0x3e0   :  { %v4867_v59 = vsel %vm13477_vm1, %v4536_v13, %v4866_v62  ;;  %v4860_v26 = vsel %vm13477_vm1, %v4519_v31, %v4859_v4  ;;  %v5997_v30 = vsel %vm2238_vm8, %v5995_v41, %v5996_v48  ;;  %v10172_v17 = vcombine.low %v5006_v55, %v14341_v61  ;;  %v14386_v46 = vld [vmem:[#allocation3 + $0x14c] ss:$0 sps:$4 sm:$0x11]   ;;  %v4927_v19 = vld [vmem:[#allocation3 + $0x144] sm:$0xf] }
 0x3e1   :  { %4868 = vst [vmem:[#allocation3 + $0x198] sm:$0xf] %v4867_v59  ;;  %4861 = vst [vmem:[#allocation3 + $0x18c] sm:$0xf] %v4860_v26  ;;  %v4545_v44 = vsel %vm12015_vm5, %v4537_v21, %v4544_v60  ;;  %v4871_v62 = vsel %vm13484_vm3, %v4546_v0, %v4870_v43  ;;  %v4527_v35 = vor.u32 %v4525_v27, %v4524_v7  ;;  %v4529_v51 = vrot.slane %v4524_v7, 4  ;;  %v14418_v21 = vpop.permute.xlu0 %6035 }
 0x3e2   :  { %6077 = vrot.lane.b32.xlu1 %v5997_v30, %s11717_s20  ;;  %4869 = vst.msk [vmem:[#allocation3 + $0x19c] sm:$0xf] %vm145_vm15, %v4545_v44  ;;  %4872 = vst [vmem:[#allocation3 + $0x1a0] sm:$0x1] %v4871_v62  ;;  %v5616_v61 = vsel %vm1625_vm9, %v5611_v12, %v5615_v11  ;;  %v5992_v32 = vrot.slane %v10172_v17, 1  ;;  %v5993_v33 = vrot.slane %v14343_v9, 1  ;;  %v14399_v47 = vcombine.low %v4929_v38, %v14374_v56  ;;  %v14422_v7 = vpop.permute.xlu1 %6037 }
 0x3e3   :  { %v4528_v4 = vsel %vm12015_vm5, %v4520_v18, %v4527_v35  ;;  %v4864_v22 = vsel %vm13484_vm3, %v4529_v51, %v4863_v42  ;;  %5787 = vrot.lane.b32.xlu0 %v5616_v61, %s11716_s19  ;;  %v5649_v41 = vshll.u32 %v14376_v5, 16  ;;  %v14407_v23 = vcombine.low %v4927_v19, %v4928_v6  ;;  %v5009_v11 = vld [vmem:[#allocation3 + $0x150] sm:$0xe]  ;;  %v5008_v57 = vld [vmem:[#allocation3 + $0x144] sm:$0xe] }
 0x3e4   :  { %4862 = vst.msk [vmem:[#allocation3 + $0x190] sm:$0xf] %vm145_vm15, %v4528_v4  ;;  %4865 = vst [vmem:[#allocation3 + $0x194] sm:$0x1] %v4864_v22  ;;  %v5644_v9 = vshll.u32 %v14399_v47, 16  ;;  %v5637_v43 = vshll.u32 %v14386_v46, 16  ;;  %v10175_v27 = vcombine.low %v5009_v11, %v14374_v56  ;;  %v5994_v31 = vsel %vm2238_vm8, %v5992_v32, %v5993_v33 }
 0x3e5   :  { %v5632_v28 = vshll.u32 %v14407_v23, 16  ;;  %v14416_v48 = vld [vmem:[#allocation3 + $0x170] ss:$0 sps:$4 sm:$0x11]   ;;  %v4932_v13 = vld [vmem:[#allocation3 + $0x160] sm:$0xf]  ;;  %v10174_v55 = vcombine.low %v5008_v57, %v4928_v6 }
 0x3e6   :  { %v5642_v18 = vshrl.u32 %v14399_v47, 16  ;;  %v5646_v42 = vrot.slane %v5644_v9, 1  ;;  %v4933_v60 = vld [vmem:[#allocation3 + $0x168] sm:$0xf]  ;;  %v4931_v0 = vld [vmem:[#allocation3 + $0x15c] sm:$0xf] }
 0x3e7   :  { %6075 = vrot.lane.b32.xlu0 %v5994_v31, %s11717_s20  ;;  %v5651_v12 = vrot.slane %v5649_v41, 1  ;;  %v5630_v56 = vshrl.u32 %v14407_v23, 16  ;;  %v5634_v59 = vrot.slane %v5632_v28, 1  ;;  %v14427_v26 = vcombine.low %v4933_v60, %v14412_v8  ;;  %v14429_v30 = vld [vmem:[#allocation3 + $0x164] ss:$0 sps:$4 sm:$0x11]  }
 0x3e8   :  { %v5647_v17 = vor.u32 %v5646_v42, %v5642_v18  ;;  %v5639_v44 = vrot.slane %v5637_v43, 1  ;;  %v6002_v62 = vrot.slane %v14376_v5, 1  ;;  %v14432_v6 = vcombine.low %v4931_v0, %v4932_v13  ;;  %v5011_v32 = vld [vmem:[#allocation3 + $0x168] sm:$0xe]  ;;  %v5010_v33 = vld [vmem:[#allocation3 + $0x15c] sm:$0xe] }
 0x3e9   :  { %v5635_v35 = vor.u32 %v5634_v59, %v5630_v56  ;;  %v6001_v51 = vrot.slane %v10175_v27, 1  ;;  %v5999_v38 = vrot.slane %v14386_v46, 1  ;;  %v5668_v61 = vshll.u32 %v14427_v26, 16  ;;  %v4937_v11 = vld [vmem:[#allocation3 + $0x180] sm:$0xf]  ;;  %v14447_v27 = vpop.permute.xlu0 %5751 }
 0x3ea   :  { %v5652_v19 = vsel %vm1625_vm9, %v5647_v17, %v5651_v12  ;;  %v5998_v4 = vrot.slane %v10174_v55, 1  ;;  %v5666_v22 = vshrl.u32 %v14427_v26, 16  ;;  %v5673_v41 = vshll.u32 %v14416_v48, 16  ;;  %v14439_v9 = vld [vmem:[#allocation3 + $0x184] sm:$0xf]  ;;  %v14453_v55 = vpop.permute.xlu1 %5753 }
 0x3eb   :  { %5793 = vrot.lane.b32.xlu1 %v5652_v19, %s11716_s19  ;;  %v5640_v5 = vsel %vm1625_vm9, %v5635_v35, %v5639_v44  ;;  %v5670_v43 = vrot.slane %v5668_v61, 1  ;;  %v5656_v46 = vshll.u32 %v14432_v6, 16  ;;  %v5661_v57 = vshll.u32 %v14429_v30, 16  ;;  %v14445_v28 = vld [vmem:[#allocation3 + $0x178] sm:$0xf] }
 0x3ec   :  { %5791 = vrot.lane.b32.xlu0 %v5640_v5, %s11716_s19  ;;  %v10177_v31 = vcombine.low %v5011_v32, %v14412_v8  ;;  %v10176_v18 = vcombine.low %v5010_v33, %v4932_v13  ;;  %v14451_v42 = vld [vmem:[#allocation3 + $0x188] ss:$0 sps:$4 sm:$0x11]   ;;  %v5654_v0 = vshrl.u32 %v14432_v6, 16  ;;  %v14457_v56 = vcombine.low %v4937_v11, %v14439_v9  ;;  %v4935_v59 = vld [vmem:[#allocation3 + $0x174] sm:$0xf] }
 0x3ed   :  { %v5671_v60 = vor.u32 %v5670_v43, %v5666_v22  ;;  %v5658_v12 = vrot.slane %v5656_v46, 1  ;;  %v6003_v17 = vsel %vm2238_vm8, %v6001_v51, %v6002_v62  ;;  %v6000_v44 = vsel %vm2238_vm8, %v5998_v4, %v5999_v38  ;;  %v14464_v13 = vld [vmem:[#allocation3 + $0x17c] ss:$0 sps:$4 sm:$0x11]   ;;  %v14474_v5 = vpop.permute.xlu0 %6039 }
 0x3ee   :  { %v5675_v35 = vrot.slane %v5673_v41, 1  ;;  %v14462_v8 = vcombine.low %v4935_v59, %v14445_v28  ;;  %v5663_v32 = vrot.slane %v5661_v57, 1  ;;  %v6008_v33 = vrot.slane %v14416_v48, 1  ;;  %v5013_v57 = vld [vmem:[#allocation3 + $0x180] sm:$0xe] }
 0x3ef   :  { %6081 = vrot.lane.b32.xlu1 %v6003_v17, %s11717_s20  ;;  %v5659_v61 = vor.u32 %v5658_v12, %v5654_v0  ;;  %v5692_v19 = vshll.u32 %v14457_v56, 16  ;;  %v6007_v51 = vrot.slane %v10177_v31, 1  ;;  %v6004_v38 = vrot.slane %v10176_v18, 1  ;;  %v14479_v0 = vpop.permute.xlu1 %6041  ;;  %v11637_v12 = vld [vmem:[%s17598_s4] sm:$0xff]  }
 0x3f0   :  { %6079 = vrot.lane.b32.xlu0 %v6000_v44, %s11717_s20  ;;  %v5676_v62 = vsel %vm1625_vm9, %v5671_v60, %v5675_v35  ;;  %v6005_v4 = vrot.slane %v14429_v30, 1  ;;  %v5680_v11 = vshll.u32 %v14462_v8, 16  ;;  %v5690_v43 = vshrl.u32 %v14457_v56, 16  ;;  %v14484_v60 = vld [vmem:[#allocation3 + $0x19c] sm:$0xf] }
 0x3f1   :  { %v5664_v22 = vsel %vm1625_vm9, %v5659_v61, %v5663_v32  ;;  %v5694_v41 = vrot.slane %v5692_v19, 1  ;;  %v5697_v48 = vshll.u32 %v14451_v42, 16  ;;  %v5685_v46 = vshll.u32 %v14464_v13, 16  ;;  %v5012_v35 = vld [vmem:[#allocation3 + $0x174] sm:$0xe] }
 0x3f2   :  { %v5678_v30 = vshrl.u32 %v14462_v8, 16  ;;  %v5682_v31 = vrot.slane %v5680_v11, 1  ;;  %v10179_v18 = vcombine.low %v5013_v57, %v14439_v9  ;;  %v6009_v59 = vsel %vm2238_vm8, %v6007_v51, %v6008_v33  ;;  %v14492_v61 = vld [vmem:[#allocation3 + $0x190] sm:$0xf]  ;;  %v11661_v19 = vld [vmem:[%s17598_s4 + $0x14] ss:$0 sps:$4 sm:$0xff]  }
 0x3f3   :  { %5797 = vrot.lane.b32.xlu1 %v5676_v62, %s11716_s19  ;;  %v6006_v17 = vsel %vm2238_vm8, %v6004_v38, %v6005_v4  ;;  %v5695_v44 = vor.u32 %v5694_v41, %v5690_v43  ;;  %v10178_v9 = vcombine.low %v5012_v35, %v14445_v28  ;;  %v6325_v62 = vsel %vm2640_vm11, %v11661_v19, 0  ;;  %v4939_v11 = vld [vmem:[#allocation3 + $0x18c] sm:$0xf]  ;;  %v14503_v41 = vld [vmem:[#allocation3 + $0x1a0] ss:$0 sps:$4 sm:$0x11]  }
 0x3f4   :  { %5795 = vrot.lane.b32.xlu0 %v5664_v22, %s11716_s19  ;;  %v5683_v32 = vor.u32 %v5682_v31, %v5678_v30  ;;  %v4941_v22 = vld [vmem:[#allocation3 + $0x198] sm:$0xf]  ;;  %v5699_v33 = vrot.slane %v5697_v48, 1  ;;  %v5687_v51 = vrot.slane %v5685_v46, 1  ;;  %v6014_v38 = vrot.slane %v14451_v42, 1  ;;  %10826 = vmatpush3.bf16.msra.mxu1 %v6325_v62  ;;  %v17842_v28 = vld [vmem:[#allocation10_spill] sm:$0xff]  ;;  %v14517_v31 = vpop.permute.xlu0 %5755 }
 0x3f5   :  { %v14501_v4 = vcombine.low %v4941_v22, %v14484_v60  ;;  %v6103_v43 = vsel %vm6097_vm2, %v17842_v28, %v14299_v54  ;;  %v17843_v57 = vld [vmem:[#allocation12_spill] sm:$0xff]  ;;  %v6013_v48 = vrot.slane %v10179_v18, 1  ;;  %10891 = vmatprep.subr.bf16.mxu1 %v11637_v12  ;;  %v14513_v42 = vcombine.low %v4939_v11, %v14492_v61  ;;  %v14515_v46 = vld [vmem:[#allocation3 + $0x194] ss:$0 sps:$4 sm:$0x11]   ;;  %v17846_v28 = vld [vmem:[#allocation14_spill] sm:$0xff] }
 0x3f6   :  { %v6101_v30 = vsel %vm6097_vm2, %v17843_v57, %v14296_v25  ;;  %vm6259_vm5 = vcmask 195584   ;;  %v14526_v25 = vpop.permute.xlu1 %5757  ;;  %v11645_v18 = vld [vmem:[%s17598_s4 + $0x8] ss:$0 sps:$4 sm:$0xff]   ;;  %v5688_v19 = vsel %vm1625_vm9, %v5683_v32, %v5687_v51  ;;  %v6010_v62 = vrot.slane %v10178_v9, 1  ;;  %v4873_v32 = vld [vmem:[#allocation3] sm:$0xf] }
 0x3f7   :  { %6085 = vrot.lane.b32.xlu1 %v6009_v59, %s11717_s20  ;;  %v5700_v59 = vsel %vm1625_vm9, %v5695_v44, %v5699_v33  ;;  %v5716_v35 = vshll.u32 %v14501_v4, 16  ;;  %v14524_v54 = vsel %vm6170_vm4, %v6101_v30, %v14303_v52  ;;  %v5704_v44 = vshll.u32 %v14513_v42, 16 }
 0x3f8   :  { %6083 = vrot.lane.b32.xlu0 %v6006_v17, %s11717_s20  ;;  %17844 = vst [vmem:[#allocation23_spill] sm:$0xff] %v14524_v54  ;;  %v14534_v17 = vsel %vm6170_vm4, %v6103_v43, %v14305_v1  ;;  %10827 = vmatprep.mubr.msk.bf16.mxu1 %vm6259_vm5, %v14524_v54  ;;  %v6011_v52 = vrot.slane %v14464_v13, 1  ;;  %v5714_v22 = vshrl.u32 %v14501_v4, 16  ;;  %v5721_v33 = vshll.u32 %v14503_v41, 16  ;;  %v4874_v43 = vld [vmem:[#allocation3 + $0x4] sm:$0xf] }
 0x3f9   :  { %17845 = vst [vmem:[#allocation22_spill] sm:$0xff] %v14534_v17  ;;  %v5718_v11 = vrot.slane %v5716_v35, 1  ;;  %10828 = vmatmul.mubr.msk.bf16.vlgmr.msra.gmra.mrb[0].mxu1 %vm6259_vm5, %v14534_v17  ;;  %v5702_v1 = vshrl.u32 %v14513_v42, 16  ;;  %v5706_v9 = vrot.slane %v5704_v44, 1  ;;  %v5709_v51 = vshll.u32 %v14515_v46, 16 }
 0x3fa   :  { %10892 = vmatpush3.bf16.msra.mxu1 %v11637_v12  ;;  %v6105_v13 = vsel %vm6097_vm2, %v17846_v28, %v14345_v45  ;;  %v4981_v35 = vld [vmem:[#allocation3] sm:$0xe]  ;;  %v5015_v17 = vld [vmem:[#allocation3 + $0x198] sm:$0xe]  ;;  %v14559_v45 = vpop.permute.xlu0 %6043  ;;  %v5723_v28 = vrot.slane %v5721_v33, 1  ;;  %v14567_v54 = vpop.permute.xlu1 %6045  ;;  %vm17781_vm15 = vcmask 392192  }
 0x3fb   :  { %5801 = vrot.lane.b32.xlu1 %v5700_v59, %s11716_s19  ;;  %v5719_v57 = vor.u32 %v5718_v11, %v5714_v22  ;;  %v14553_v30 = vsel %vm6170_vm4, %v6105_v13, %v14367_v50  ;;  %11284 = vmatprep.subr.msk.bf16.mxu1 %vm2640_vm11, %v11645_v18  ;;  %v6015_v59 = vsel %vm2238_vm8, %v6013_v48, %v6014_v38  ;;  %v11643_v12 = vld [vmem:[#allocation3 + $0x8] ss:$0 sps:$4 sm:$0x11]   ;;  %v5014_v11 = vld [vmem:[#allocation3 + $0x18c] sm:$0xe]  ;;  %v5711_v48 = vrot.slane %v5709_v51, 1 }
 0x3fc   :  { %5799 = vrot.lane.b32.xlu0 %v5688_v19, %s11716_s19  ;;  %v5707_v44 = vor.u32 %v5706_v9, %v5702_v1  ;;  %10831 = vmatprep.mubr.msk.bf16.mxu1 %vm6259_vm5, %v14553_v30  ;;  %v17847_v19 = vld [vmem:[#allocation11_spill] sm:$0xff]  ;;  %v10181_v50 = vcombine.low %v5015_v17, %v14484_v60  ;;  %v14565_v13 = vcombine.low %v4873_v32, %v4874_v43  ;;  %v17848_v60 = vld [vmem:[#allocation16_spill] sm:$0xff]  ;;  %vm8683_vm1 = vcmask 523264  }
 0x3fd   :  { %v6107_v22 = vsel %vm6097_vm2, %v17847_v19, %v14352_v49  ;;  %v6012_v38 = vsel %vm2238_vm8, %v6010_v62, %v6011_v52  ;;  %v10180_v1 = vcombine.low %v5014_v11, %v14492_v61  ;;  %v5724_v49 = vsel %vm1625_vm9, %v5719_v57, %v5723_v28  ;;  %v4909_v51 = vld [vmem:[#allocation3 + $0xd8] sm:$0xf]  ;;  %v4910_v28 = vld [vmem:[#allocation3 + $0xdc] sm:$0xf] }
 0x3fe   :  { %v14574_v33 = vsel %vm6170_vm4, %v6107_v22, %v14369_v29  ;;  %v6109_v17 = vsel %vm6097_vm2, %v17848_v60, %v14378_v15  ;;  %v5308_v32 = vshll.u32 %v14565_v13, 16  ;;  %v10147_v9 = vcombine.low %v4981_v35, %v4874_v43  ;;  %v14594_v43 = vld [vmem:[%s17598_s4 + $0x18] sm:$0xff]   ;;  %v11647_v19 = vld [vmem:[#allocation3 + $0xe0] ss:$0 sps:$4 sm:$0x11]   ;;  %v5762_v11 = vpop.permute.xlu1 %5761 }
 0x3ff   :  { %6089 = vrot.lane.b32.xlu1 %v6015_v59, %s11717_s20  ;;  %v5712_v62 = vsel %vm1625_vm9, %v5707_v44, %v5711_v48  ;;  %v5306_v52 = vshrl.u32 %v14565_v13, 16  ;;  %v5313_v61 = vshll.u32 %v11643_v12, 16  ;;  %v14586_v29 = vsel %vm6170_vm4, %v6109_v17, %v14418_v21  ;;  %v5760_v44 = vpop.permute.xlu0 %5759  ;;  %v17850_v17 = vld [vmem:[#allocation17_spill] sm:$0xff] }
 0x400   :  { %6087 = vrot.lane.b32.xlu0 %v6012_v38, %s11717_s20  ;;  %v6019_v59 = vrot.slane %v10181_v50, 1  ;;  %v6020_v57 = vrot.slane %v14503_v41, 1  ;;  %v5310_v15 = vrot.slane %v5308_v32, 1  ;;  %v6016_v35 = vrot.slane %v10180_v1, 1  ;;  %v4999_v38 = vld [vmem:[#allocation3 + $0xd8] sm:$0xe] }
 0x401   :  { %10832 = vmatmul.mubr.msk.bf16.gmra.mrb[4].mxu1 %vm6259_vm5, %v14574_v33  ;;  %v6017_v21 = vrot.slane %v14515_v46, 1  ;;  %v6630_v41 = vsel %vm2640_vm11, %v11645_v18, 0  ;;  %v5917_v22 = vrot.slane %v10147_v9, 1  ;;  %v5918_v50 = vrot.slane %v11643_v12, 1  ;;  %v17849_v46 = vld [vmem:[#allocation13_spill] sm:$0xff] }
 0x402   :  { %10835 = vmatprep.mubr.msk.bf16.mxu1 %vm6259_vm5, %v14586_v29  ;;  %v5311_v48 = vor.u32 %v5310_v15, %v5306_v52  ;;  %v5315_v60 = vrot.slane %v5313_v61, 1  ;;  %10894 = vmatpush3.bf16.msra.mxu1 %v6630_v41  ;;  %v6021_v1 = vsel %vm2238_vm8, %v6019_v59, %v6020_v57  ;;  %v6113_v18 = vsel %vm6097_vm2, %v17850_v17, %v14447_v27 }
 0x403   :  { %5805 = vrot.lane.b32.xlu1 %v5724_v49, %s11716_s19  ;;  %v6111_v49 = vsel %vm6097_vm2, %v17849_v46, %v14388_v3  ;;  %v14609_v32 = vcombine.low %v4909_v51, %v4910_v28  ;;  %10959 = vmatprep.subr.bf16.mxu1 %v14594_v43  ;;  %v6018_v12 = vsel %vm2238_vm8, %v6016_v35, %v6017_v21  ;;  %v5972_v51 = vrot.slane %v11647_v19, 1  ;;  %v6048_v15 = vpop.permute.xlu0 %6047 }
 0x404   :  { %5803 = vrot.lane.b32.xlu0 %v5712_v62, %s11716_s19  ;;  %v14616_v9 = vsel %vm6170_vm4, %v6113_v18, %v14474_v5  ;;  %v5529_v62 = vshll.u32 %v11647_v19, 16  ;;  %v10165_v52 = vcombine.low %v4999_v38, %v4910_v28  ;;  %v5919_v3 = vsel %vm2238_vm8, %v5917_v22, %v5918_v50  ;;  %v6050_v28 = vpop.permute.xlu1 %6049  ;;  %v17851_v22 = vld [vmem:[#allocation19_spill] sm:$0xff] }
 0x405   :  { %v5522_v27 = vshrl.u32 %v14609_v32, 16  ;;  %v5524_v61 = vshll.u32 %v14609_v32, 16  ;;  %v5316_v59 = vsel %vm1625_vm9, %v5311_v48, %v5315_v60  ;;  %v14625_v57 = vsel %vm6170_vm4, %v6111_v49, %v14422_v7  ;;  %v17852_v48 = vld [vmem:[#allocation15_spill] sm:$0xff] }
 0x406   :  { %v5971_v5 = vrot.slane %v10165_v52, 1  ;;  %v5531_v21 = vrot.slane %v5529_v62, 1  ;;  %v6117_v50 = vsel %vm6097_vm2, %v17851_v22, %v14517_v31  ;;  %v6115_v60 = vsel %vm6097_vm2, %v17852_v48, %v14453_v55 }
 0x407   :  { %6093 = vrot.lane.b32.xlu1 %v6021_v1, %s11717_s20  ;;  %v5526_v35 = vrot.slane %v5524_v61, 1  ;;  %v5764_v38 = vpop.permute.xlu0 %5763  ;;  %v14644_v1 = vsel %vm6170_vm4, %v6117_v50, %v14559_v45  ;;  %v14649_v49 = vsel %vm6170_vm4, %v6115_v60, %v14479_v0  ;;  %v6121_v55 = vsel %vm6097_vm2, %v13984_v36, %v5760_v44  ;;  %v17853_v45 = vld [vmem:[#allocation18_spill] sm:$0xff] }
 0x408   :  { %6091 = vrot.lane.b32.xlu0 %v6018_v12, %s11717_s20  ;;  %v5973_v19 = vsel %vm2238_vm8, %v5971_v5, %v5972_v51  ;;  %v5766_v46 = vpop.permute.xlu1 %5765  ;;  %v6119_v18 = vsel %vm6097_vm2, %v17853_v45, %v14526_v25  ;;  %v14661_v12 = vsel %vm6170_vm4, %v6121_v55, %v6048_v15  ;;  %v6125_v36 = vsel %vm6097_vm2, %v14054_v16, %v5764_v38  ;;  %v4907_v60 = vld [vmem:[#allocation3 + $0xcc] sm:$0xf]  ;;  %v11652_v55 = vld [vmem:[#allocation3 + $0xd4] ss:$0 sps:$4 sm:$0x11]  }
 0x409   :  { %10836 = vmatmul.mubr.msk.bf16.gmra.mrb[8].mxu1 %vm6259_vm5, %v14625_v57  ;;  %v5527_v41 = vor.u32 %v5526_v35, %v5522_v27  ;;  %v14665_v0 = vsel %vm6170_vm4, %v6119_v18, %v14567_v54  ;;  %v6123_v25 = vsel %vm6097_vm2, %v13976_v2, %v5762_v11  ;;  %v6127_v2 = vsel %vm6097_vm2, %v14042_v53, %v5766_v46  ;;  %v4908_v46 = vld [vmem:[#allocation3 + $0xd0] sm:$0xf]  ;;  %v4998_v45 = vld [vmem:[#allocation3 + $0xcc] sm:$0xe] }
 0x40a   :  { %10839 = vmatprep.mubr.msk.bf16.mxu1 %vm6259_vm5, %v14616_v9  ;;  %v14679_v54 = vsel %vm6170_vm4, %v6123_v25, %v6050_v28  ;;  %vm8688_vm3 = vcmask 588800  }
 0x40b   :  { %6025 = vrot.lane.b32.xlu1 %v5919_v3, %s11717_s20  ;;  %v5532_v7 = vsel %vm1625_vm9, %v5527_v41, %v5531_v21  ;;  %v6052_v31 = vpop.permute.xlu0 %6051 }
 0x40c   :  { %5737 = vrot.lane.b32.xlu0 %v5316_v59, %s11716_s19  ;;  %v6054_v17 = vpop.permute.xlu1 %6053  ;;  %v14676_v44 = vsel %vm6170_vm4, %v6125_v36, %v6052_v31  ;;  %v14734_v31 = vcombine.low %v4907_v60, %v4908_v46  ;;  %v10164_v36 = vcombine.low %v4998_v45, %v4908_v46 }
 0x40d   :  { %v14693_v59 = vsel %vm6170_vm4, %v6127_v2, %v6054_v17 }
 0x40e   :  { %v5968_v2 = vrot.slane %v10164_v36, 1 }
 0x40f   :  { %6061 = vrot.lane.b32.xlu1 %v5973_v19, %s11717_s20 }
 0x410   :  { %5773 = vrot.lane.b32.xlu0 %v5532_v7, %s11716_s19  ;;  %v5770_v52 = vpop.permute.xlu1 %5769 }
 0x411   :  { %10840 = vmatmul.mubr.msk.bf16.gmra.mrb[12].mxu1 %vm6259_vm5, %v14649_v49  ;;  %v6131_v53 = vsel %vm6097_vm2, %v14093_v24, %v5770_v52  ;;  %v5512_v52 = vshll.u32 %v14734_v31, 16 }
 0x412   :  { %10843 = vmatprep.mubr.msk.bf16.mxu1 %vm6259_vm5, %v14644_v1  ;;  %v5768_v62 = vpop.permute.xlu0 %5767 }
 0x413   :  { %v6129_v16 = vsel %vm6097_vm2, %v14111_v37, %v5768_v62 }
 0x414   :  { %v6058_v27 = vpop.permute.xlu1 %6057 }
 0x415   :  { %v14707_v35 = vsel %vm6170_vm4, %v6131_v53, %v6058_v27  ;;  %v5517_v27 = vshll.u32 %v11652_v55, 16 }
 0x416   :  { %v6056_v3 = vpop.permute.xlu0 %6055 }
 0x417   :  { %v14690_v11 = vsel %vm6170_vm4, %v6129_v16, %v6056_v3  ;;  %v5969_v16 = vrot.slane %v11652_v55, 1 }
 0x419   :  { %10844 = vmatmul.mubr.msk.bf16.gmra.mrb[16].mxu1 %vm6259_vm5, %v14665_v0 }
 0x41a   :  { %10847 = vmatprep.mubr.msk.bf16.mxu1 %vm6259_vm5, %v14661_v12 }
 0x41d   :  { %v5778_v51 = vpop.permute.xlu1 %5777 }
 0x421   :  { %10848 = vmatmul.mubr.msk.bf16.gmra.mrb[20].mxu1 %vm6259_vm5, %v14679_v54  ;;  %v5776_v61 = vpop.permute.xlu0 %5775 }
 0x422   :  { %10851 = vmatprep.mubr.msk.bf16.mxu1 %vm6259_vm5, %v14676_v44  ;;  %v6137_v37 = vsel %vm6097_vm2, %v14162_v58, %v5776_v61  ;;  %v6139_v58 = vsel %vm6097_vm2, %v14152_v10, %v5778_v51  ;;  %v5519_v51 = vrot.slane %v5517_v27, 1 }
 0x423   :  { %v6066_v5 = vpop.permute.xlu1 %6065 }
 0x424   :  { %v14718_v7 = vsel %vm6170_vm4, %v6139_v58, %v6066_v5 }
 0x426   :  { %v6064_v15 = vpop.permute.xlu0 %6063 }
 0x427   :  { %v14704_v28 = vsel %vm6170_vm4, %v6137_v37, %v6064_v15 }
 0x429   :  { %10852 = vmatmul.mubr.msk.bf16.gmra.mrb[24].mxu1 %vm6259_vm5, %v14693_v59 }
 0x42a   :  { %10855 = vmatprep.mubr.msk.bf16.mxu1 %vm6259_vm5, %v14690_v11 }
 0x42d   :  { %v5782_v21 = vpop.permute.xlu1 %5781 }
 0x42e   :  { %v6143_v10 = vsel %vm6097_vm2, %v14209_v40, %v5782_v21  ;;  %v5510_v40 = vshrl.u32 %v14734_v31, 16 }
 0x431   :  { %10856 = vmatmul.mubr.msk.bf16.gmra.mrb[28].mxu1 %vm6259_vm5, %v14707_v35 }
 0x432   :  { %10859 = vmatprep.mubr.msk.bf16.mxu1 %vm6259_vm5, %v14704_v28  ;;  %v6070_v50 = vpop.permute.xlu1 %6069 }
 0x434   :  { %v5780_v41 = vpop.permute.xlu0 %5779 }
 0x435   :  { %v6141_v24 = vsel %vm6097_vm2, %v14232_v20, %v5780_v41  ;;  %v14730_v20 = vsel %vm6170_vm4, %v6143_v10, %v6070_v50 }
 0x438   :  { %v6068_v19 = vpop.permute.xlu0 %6067 }
 0x439   :  { %v14721_v22 = vsel %vm6170_vm4, %v6141_v24, %v6068_v19  ;;  %10860 = vmatmul.mubr.msk.bf16.gmra.mrb[32].mxu1 %vm6259_vm5, %v14718_v7 }
 0x43a   :  { %10863 = vmatprep.mubr.msk.bf16.mxu1 %vm6259_vm5, %v14721_v22 }
 0x43e   :  { %v5786_v38 = vpop.permute.xlu1 %5785 }
 0x43f   :  { %v6147_v25 = vsel %vm6097_vm2, %v14277_v63, %v5786_v38  ;;  %v5970_v63 = vsel %vm2238_vm8, %v5968_v2, %v5969_v16 }
 0x440   :  { %6059 = vrot.lane.b32.xlu1 %v5970_v63, %s11717_s20 }
 0x441   :  { %10864 = vmatmul.mubr.msk.bf16.gmra.mrb[36].mxu1 %vm6259_vm5, %v14730_v20 }
 0x442   :  { %v5784_v48 = vpop.permute.xlu0 %5783 }
 0x443   :  { %v6145_v18 = vsel %vm6097_vm2, %v14287_v34, %v5784_v48  ;;  %v5514_v34 = vrot.slane %v5512_v52, 1 }
 0x444   :  { %v6074_v17 = vpop.permute.xlu1 %6073 }
 0x445   :  { %v14746_v61 = vsel %vm6170_vm4, %v6147_v25, %v6074_v17  ;;  %v5515_v15 = vor.u32 %v5514_v34, %v5510_v40 }
 0x447   :  { %v5520_v5 = vsel %vm1625_vm9, %v5515_v15, %v5519_v51 }
 0x448   :  { %v6072_v62 = vpop.permute.xlu0 %6071  ;;  %5771 = vrot.lane.b32.xlu0 %v5520_v5, %s11716_s19 }
 0x449   :  { %v14743_v3 = vsel %vm6170_vm4, %v6145_v18, %v6072_v62 }
 0x44a   :  { %10867 = vmatprep.mubr.msk.bf16.mxu1 %vm6259_vm5, %v14743_v3 }
 0x44b   :  { %10868 = vmatmul.mubr.msk.bf16.gmra.mrb[40].mxu1 %vm6259_vm5, %v14746_v61 }
 0x44e   :  { %v5790_v37 = vpop.permute.xlu1 %5789 }
 0x44f   :  { %v6151_v24 = vsel %vm6097_vm2, %v14338_v39, %v5790_v37 }
 0x454   :  { %v6078_v21 = vpop.permute.xlu1 %6077 }
 0x455   :  { %v5788_v53 = vpop.permute.xlu0 %5787  ;;  %v14764_v50 = vsel %vm6170_vm4, %v6151_v24, %v6078_v21  ;;  %v4943_v24 = vld [vmem:[#allocation3 + $0x1a4] sm:$0xf] }
 0x456   :  { %v6149_v41 = vsel %vm6097_vm2, %v14360_v14, %v5788_v53 }
 0x459   :  { %v6076_v58 = vpop.permute.xlu0 %6075 }
 0x45a   :  { %v14761_v19 = vsel %vm6170_vm4, %v6149_v41, %v6076_v58 }
 0x45b   :  { %10871 = vmatprep.mubr.msk.bf16.mxu1 %vm6259_vm5, %v14761_v19 }
 0x45c   :  { %10872 = vmatmul.mubr.msk.bf16.gmra.mrb[44].mxu1 %vm6259_vm5, %v14764_v50 }
 0x45d   :  { %v5794_v10 = vpop.permute.xlu1 %5793 }
 0x45e   :  { %v5792_v38 = vpop.permute.xlu0 %5791  ;;  %v6155_v39 = vsel %vm6097_vm2, %v14399_v47, %v5794_v10  ;;  %v4944_v10 = vld [vmem:[#allocation3 + $0x1a8] sm:$0xf] }
 0x45f   :  { %v6153_v14 = vsel %vm6097_vm2, %v14407_v23, %v5792_v38  ;;  %v17854_v38 = vld [vmem:[#allocation23_spill] sm:$0xff] }
 0x461   :  { %v6082_v48 = vpop.permute.xlu1 %6081 }
 0x462   :  { %v6080_v60 = vpop.permute.xlu0 %6079  ;;  %v14778_v17 = vsel %vm6170_vm4, %v6155_v39, %v6082_v48  ;;  %v14835_v48 = vcombine.low %v4943_v24, %v4944_v10 }
 0x463   :  { %v14775_v46 = vsel %vm6170_vm4, %v6153_v14, %v6080_v60  ;;  %v17855_v14 = vld [vmem:[#allocation22_spill] sm:$0xff]  ;;  %v5016_v60 = vld [vmem:[#allocation3 + $0x1a4] sm:$0xe] }
 0x464   :  { %10875 = vmatprep.mubr.msk.bf16.mxu1 %vm6259_vm5, %v14775_v46 }
 0x465   :  { %v5798_v55 = vpop.permute.xlu1 %5797  ;;  %10876 = vmatmul.mubr.msk.bf16.gmra.mrb[48].mxu1 %vm6259_vm5, %v14778_v17 }
 0x466   :  { %v5796_v45 = vpop.permute.xlu0 %5795  ;;  %v6159_v47 = vsel %vm6097_vm2, %v14427_v26, %v5798_v55  ;;  %v5726_v55 = vshrl.u32 %v14835_v48, 16 }
 0x467   :  { %v6157_v23 = vsel %vm6097_vm2, %v14432_v6, %v5796_v45  ;;  %v5728_v45 = vshll.u32 %v14835_v48, 16 }
 0x469   :  { %v6086_v18 = vpop.permute.xlu1 %6085 }
 0x46a   :  { %v6084_v62 = vpop.permute.xlu0 %6083  ;;  %v14792_v52 = vsel %vm6170_vm4, %v6159_v47, %v6086_v18  ;;  %v10182_v18 = vcombine.low %v5016_v60, %v4944_v10  ;;  %v5730_v47 = vrot.slane %v5728_v45, 1 }
 0x46b   :  { %v14789_v40 = vsel %vm6170_vm4, %v6157_v23, %v6084_v62 }
 0x46c   :  { %10879 = vmatprep.mubr.msk.bf16.mxu1 %vm6259_vm5, %v14789_v40 }
 0x46d   :  { %v5802_v36 = vpop.permute.xlu1 %5801  ;;  %10880 = vmatmul.mubr.msk.bf16.gmra.mrb[52].mxu1 %vm6259_vm5, %v14792_v52 }
 0x46e   :  { %v5800_v25 = vpop.permute.xlu0 %5799  ;;  %v6163_v26 = vsel %vm6097_vm2, %v14457_v56, %v5802_v36  ;;  %v6022_v36 = vrot.slane %v10182_v18, 1 }
 0x46f   :  { %v6161_v6 = vsel %vm6097_vm2, %v14462_v8, %v5800_v25  ;;  %v5731_v25 = vor.u32 %v5730_v47, %v5726_v55 }
 0x471   :  { %v6090_v27 = vpop.permute.xlu1 %6089 }
 0x472   :  { %v6088_v16 = vpop.permute.xlu0 %6087  ;;  %v14806_v2 = vsel %vm6170_vm4, %v6163_v26, %v6090_v27 }
 0x473   :  { %v14803_v34 = vsel %vm6170_vm4, %v6161_v6, %v6088_v16 }
 0x474   :  { %10883 = vmatprep.mubr.msk.bf16.mxu1 %vm6259_vm5, %v14803_v34 }
 0x475   :  { %v5806_v51 = vpop.permute.xlu1 %5805  ;;  %10884 = vmatmul.mubr.msk.bf16.gmra.mrb[56].mxu1 %vm6259_vm5, %v14806_v2 }
 0x476   :  { %v5804_v15 = vpop.permute.xlu0 %5803  ;;  %v6167_v56 = vsel %vm6097_vm2, %v14501_v4, %v5806_v51  ;;  %v11650_v4 = vld [vmem:[%s17598_s4 + $0x20] ss:$0 sps:$4 sm:$0xff]  }
 0x477   :  { %v6165_v8 = vsel %vm6097_vm2, %v14513_v42, %v5804_v15  ;;  %v6939_v39 = vsel %vm2640_vm11, %v11650_v4, 0 }
 0x479   :  { %v6094_v63 = vpop.permute.xlu1 %6093 }
 0x47a   :  { %v6092_v5 = vpop.permute.xlu0 %6091  ;;  %v14820_v53 = vsel %vm6170_vm4, %v6167_v56, %v6094_v63 }
 0x47b   :  { %v14817_v37 = vsel %vm6170_vm4, %v6165_v8, %v6092_v5 }
 0x47c   :  { %10887 = vmatprep.mubr.msk.bf16.mxu1 %vm6259_vm5, %v14817_v37 }
 0x47d   :  { %10888 = vmatmul.mubr.msk.bf16.gmra.mrb[60].mxu1 %vm6259_vm5, %v14820_v53  ;;  %v6026_v21 = vpop.permute.xlu1 %6025 }
 0x47e   :  { %v5738_v41 = vpop.permute.xlu0 %5737 }
 0x47f   :  { %v6099_v42 = vsel %vm6097_vm2, %v14565_v13, %v5738_v41  ;;  %v11655_v13 = vld [vmem:[#allocation3 + $0x1ac] ss:$0 sps:$4 sm:$0x11]  }
 0x480   :  { %v6172_v58 = vsel %vm6170_vm4, %v6099_v42, %v6026_v21  ;;  %v5733_v23 = vshll.u32 %v11655_v13, 16  ;;  %v6023_v62 = vrot.slane %v11655_v13, 1 }
 0x481   :  { %10895 = vmatprep.mubr.msk.bf16.mxu1 %vm6259_vm5, %v6172_v58  ;;  %v6062_v51 = vpop.permute.xlu1 %6061 }
 0x482   :  { %v6024_v27 = vsel %vm2238_vm8, %v6022_v36, %v6023_v62  ;;  %v5774_v16 = vpop.permute.xlu0 %5773  ;;  %vm17785_vm8 = vcmask 1043459  }
 0x483   :  { %6095 = vrot.lane.b32.xlu1 %v6024_v27, %s11717_s20  ;;  %v6135_v26 = vsel %vm6097_vm2, %v14609_v32, %v5774_v16 }
 0x484   :  { %v6208_v15 = vsel %vm6170_vm4, %v6135_v26, %v6062_v51 }
 0x485   :  { %10896 = vmatmul.mubr.msk.bf16.vlgmr.msra.gmra.mrb[0].mxu1 %vm6259_vm5, %v17854_v38 }
 0x486   :  { %10960 = vmatpush3.bf16.msra.mxu1 %v14594_v43  ;;  %10899 = vmatprep.mubr.msk.bf16.mxu1 %vm6259_vm5, %v17855_v14  ;;  %v5735_v43 = vrot.slane %v5733_v23, 1 }
 0x487   :  { %11285 = vmatprep.subr.msk.bf16.mxu1 %vm2640_vm11, %v11650_v4  ;;  %vm17784_vm11 = vcmask 1046534  }
 0x488   :  { %v5736_v6 = vsel %vm1625_vm9, %v5731_v25, %v5735_v43  ;;  %vm7542_vm9 = vcmask 1044484  }
 0x489   :  { %5807 = vrot.lane.b32.xlu0 %v5736_v6, %s11716_s19 }
 0x48a   :  { %10962 = vmatpush3.bf16.msra.mxu1 %v6939_v39 }
 0x48d   :  { %10900 = vmatmul.mubr.msk.bf16.gmra.mrb[4].mxu1 %vm6259_vm5, %v14553_v30 }
 0x48e   :  { %10903 = vmatprep.mubr.msk.bf16.mxu1 %vm6259_vm5, %v14574_v33 }
 0x495   :  { %10904 = vmatmul.mubr.msk.bf16.gmra.mrb[8].mxu1 %vm6259_vm5, %v14586_v29 }
 0x496   :  { %10907 = vmatprep.mubr.msk.bf16.mxu1 %vm6259_vm5, %v14625_v57 }
 0x49d   :  { %10908 = vmatmul.mubr.msk.bf16.gmra.mrb[12].mxu1 %vm6259_vm5, %v14616_v9 }
 0x49e   :  { %10911 = vmatprep.mubr.msk.bf16.mxu1 %vm6259_vm5, %v14649_v49 }
 0x4a5   :  { %10912 = vmatmul.mubr.msk.bf16.gmra.mrb[16].mxu1 %vm6259_vm5, %v14644_v1 }
 0x4a6   :  { %10915 = vmatprep.mubr.msk.bf16.mxu1 %vm6259_vm5, %v14665_v0 }
 0x4ad   :  { %10916 = vmatmul.mubr.msk.bf16.gmra.mrb[20].mxu1 %vm6259_vm5, %v14661_v12 }
 0x4ae   :  { %10919 = vmatprep.mubr.msk.bf16.mxu1 %vm6259_vm5, %v14679_v54 }
 0x4b5   :  { %10920 = vmatmul.mubr.msk.bf16.gmra.mrb[24].mxu1 %vm6259_vm5, %v14676_v44 }
 0x4b6   :  { %10923 = vmatprep.mubr.msk.bf16.mxu1 %vm6259_vm5, %v14693_v59 }
 0x4bd   :  { %10924 = vmatmul.mubr.msk.bf16.gmra.mrb[28].mxu1 %vm6259_vm5, %v14690_v11 }
 0x4be   :  { %10927 = vmatprep.mubr.msk.bf16.mxu1 %vm6259_vm5, %v6208_v15 }
 0x4c5   :  { %10928 = vmatmul.mubr.msk.bf16.gmra.mrb[32].mxu1 %vm6259_vm5, %v14704_v28 }
 0x4c6   :  { %10931 = vmatprep.mubr.msk.bf16.mxu1 %vm6259_vm5, %v14718_v7 }
 0x4cd   :  { %10932 = vmatmul.mubr.msk.bf16.gmra.mrb[36].mxu1 %vm6259_vm5, %v14721_v22 }
 0x4ce   :  { %10935 = vmatprep.mubr.msk.bf16.mxu1 %vm6259_vm5, %v14730_v20 }
 0x4d5   :  { %10936 = vmatmul.mubr.msk.bf16.gmra.mrb[40].mxu1 %vm6259_vm5, %v14743_v3 }
 0x4d6   :  { %10939 = vmatprep.mubr.msk.bf16.mxu1 %vm6259_vm5, %v14746_v61 }
 0x4dd   :  { %10940 = vmatmul.mubr.msk.bf16.gmra.mrb[44].mxu1 %vm6259_vm5, %v14761_v19 }
 0x4de   :  { %10943 = vmatprep.mubr.msk.bf16.mxu1 %vm6259_vm5, %v14764_v50 }
 0x4e5   :  { %10944 = vmatmul.mubr.msk.bf16.gmra.mrb[48].mxu1 %vm6259_vm5, %v14775_v46 }
 0x4e6   :  { %10947 = vmatprep.mubr.msk.bf16.mxu1 %vm6259_vm5, %v14778_v17 }
 0x4ed   :  { %10948 = vmatmul.mubr.msk.bf16.gmra.mrb[52].mxu1 %vm6259_vm5, %v14789_v40 }
 0x4ee   :  { %10951 = vmatprep.mubr.msk.bf16.mxu1 %vm6259_vm5, %v14792_v52 }
 0x4f5   :  { %10952 = vmatmul.mubr.msk.bf16.gmra.mrb[56].mxu1 %vm6259_vm5, %v14803_v34 }
 0x4f6   :  { %10955 = vmatprep.mubr.msk.bf16.mxu1 %vm6259_vm5, %v14806_v2 }
 0x4fd   :  { %10956 = vmatmul.mubr.msk.bf16.gmra.mrb[60].mxu1 %vm6259_vm5, %v14817_v37 }
 0x4fe   :  { %10963 = vmatprep.mubr.msk.bf16.mxu1 %vm6259_vm5, %v17855_v14 }
 0x505   :  { %10964 = vmatmul.mubr.msk.bf16.vlgmr.msra.gmra.mrb[0].mxu1 %vm6259_vm5, %v14553_v30  ;;  %v5772_v30 = vpop.permute.xlu0 %5771 }
 0x506   :  { %10967 = vmatprep.mubr.msk.bf16.mxu1 %vm6259_vm5, %v14574_v33  ;;  %v6133_v33 = vsel %vm6097_vm2, %v14734_v31, %v5772_v30 }
 0x50d   :  { %10968 = vmatmul.mubr.msk.bf16.gmra.mrb[4].mxu1 %vm6259_vm5, %v14586_v29  ;;  %v6060_v29 = vpop.permute.xlu1 %6059 }
 0x50e   :  { %10971 = vmatprep.mubr.msk.bf16.mxu1 %vm6259_vm5, %v14625_v57  ;;  %v6206_v32 = vsel %vm6170_vm4, %v6133_v33, %v6060_v29 }
 0x515   :  { %10972 = vmatmul.mubr.msk.bf16.gmra.mrb[8].mxu1 %vm6259_vm5, %v14616_v9  ;;  %v5808_v9 = vpop.permute.xlu0 %5807 }
 0x516   :  { %10975 = vmatprep.mubr.msk.bf16.mxu1 %vm6259_vm5, %v14649_v49  ;;  %v6169_v57 = vsel %vm6097_vm2, %v14835_v48, %v5808_v9 }
 0x51d   :  { %10976 = vmatmul.mubr.msk.bf16.gmra.mrb[12].mxu1 %vm6259_vm5, %v14644_v1  ;;  %v6096_v1 = vpop.permute.xlu1 %6095 }
 0x51e   :  { %10979 = vmatprep.mubr.msk.bf16.mxu1 %vm6259_vm5, %v14665_v0  ;;  %v6242_v49 = vsel %vm6170_vm4, %v6169_v57, %v6096_v1 }
 0x525   :  { %10980 = vmatmul.mubr.msk.bf16.gmra.mrb[16].mxu1 %vm6259_vm5, %v14661_v12  ;;  %v14979_v12 = vld [vmem:[%s17599_s5] ss:$0 sm:$0xff] }
 0x526   :  { %10983 = vmatprep.mubr.msk.bf16.mxu1 %vm6259_vm5, %v14679_v54 }
 0x52d   :  { %10984 = vmatmul.mubr.msk.bf16.gmra.mrb[20].mxu1 %vm6259_vm5, %v14676_v44  ;;  %v14984_v44 = vld [vmem:[%s17600_s6] ss:$0 sm:$0xff] }
 0x52e   :  { %10987 = vmatprep.mubr.msk.bf16.mxu1 %vm6259_vm5, %v14693_v59 }
 0x535   :  { %10988 = vmatmul.mubr.msk.bf16.gmra.mrb[24].mxu1 %vm6259_vm5, %v14690_v11 }
 0x536   :  { %10991 = vmatprep.mubr.msk.bf16.mxu1 %vm6259_vm5, %v14707_v35 }
 0x53d   :  { %10992 = vmatmul.mubr.msk.bf16.gmra.mrb[28].mxu1 %vm6259_vm5, %v6206_v32 }
 0x53e   :  { %10995 = vmatprep.mubr.msk.bf16.mxu1 %vm6259_vm5, %v14718_v7 }
 0x545   :  { %10996 = vmatmul.mubr.msk.bf16.gmra.mrb[32].mxu1 %vm6259_vm5, %v14721_v22 }
 0x546   :  { %10999 = vmatprep.mubr.msk.bf16.mxu1 %vm6259_vm5, %v14730_v20 }
 0x54d   :  { %11000 = vmatmul.mubr.msk.bf16.gmra.mrb[36].mxu1 %vm6259_vm5, %v14743_v3 }
 0x54e   :  { %11003 = vmatprep.mubr.msk.bf16.mxu1 %vm6259_vm5, %v14746_v61 }
 0x555   :  { %11004 = vmatmul.mubr.msk.bf16.gmra.mrb[40].mxu1 %vm6259_vm5, %v14761_v19 }
 0x556   :  { %11007 = vmatprep.mubr.msk.bf16.mxu1 %vm6259_vm5, %v14764_v50 }
 0x55d   :  { %11008 = vmatmul.mubr.msk.bf16.gmra.mrb[44].mxu1 %vm6259_vm5, %v14775_v46 }
 0x55e   :  { %11011 = vmatprep.mubr.msk.bf16.mxu1 %vm6259_vm5, %v14778_v17 }
 0x565   :  { %11012 = vmatmul.mubr.msk.bf16.gmra.mrb[48].mxu1 %vm6259_vm5, %v14789_v40 }
 0x566   :  { %11015 = vmatprep.mubr.msk.bf16.mxu1 %vm6259_vm5, %v14792_v52 }
 0x56d   :  { %11016 = vmatmul.mubr.msk.bf16.gmra.mrb[52].mxu1 %vm6259_vm5, %v14803_v34 }
 0x56e   :  { %11019 = vmatprep.mubr.msk.bf16.mxu1 %vm6259_vm5, %v14806_v2 }
 0x575   :  { %11020 = vmatmul.mubr.msk.bf16.gmra.mrb[56].mxu1 %vm6259_vm5, %v14817_v37 }
 0x576   :  { %11023 = vmatprep.mubr.msk.bf16.mxu1 %vm6259_vm5, %v14820_v53 }
 0x57d   :  { %11024 = vmatmul.mubr.msk.bf16.gmra.mrb[60].mxu1 %vm6259_vm5, %v6242_v49 }
 0x5d8   :  { %v10965_v0 = vpop.f32.mrb[0].mxu1 }
 0x5d9   :  { %v7303_v54 = vmul.f32 %v10965_v0, %v14979_v12  ;;  %v6975_v11 = vpop.f32.mrb[1].mxu1 }
 0x5da   :  { %v7301_v59 = vmul.f32 %v14979_v12, %v6975_v11  ;;  %v10966_v28 = vpop.f32.mrb[2].mxu1 }
 0x5db   :  { %v7374_v35 = vadd.f32 %v14984_v44, %v7303_v54  ;;  %v7304_v7 = vmul.f32 %v10966_v28, %v14979_v12  ;;  %v6978_v22 = vpop.f32.mrb[3].mxu1 }
 0x5dc   :  { %v7372_v20 = vadd.f32 %v14984_v44, %v7301_v59  ;;  %v7302_v31 = vmul.f32 %v14979_v12, %v6978_v22 }
 0x5dd   :  { %v14992_v3 = vmax.f32 %v7374_v35, 0.0  ;;  %v7375_v61 = vadd.f32 %v14984_v44, %v7304_v7 }
 0x5de   :  { %v14995_v19 = vmax.f32 %v7372_v20, 0.0  ;;  %v7373_v50 = vadd.f32 %v14984_v44, %v7302_v31 }
 0x5df   :  { %17856 = vst [vmem:[#allocation20_spill] sm:$0xff] %v14992_v3  ;;  %v17645_v46 = vrot.slane %v14992_v3, 1  ;;  %v14999_v17 = vmax.f32 %v7375_v61, 0.0  ;;  %v7940_v5 = vrot.slane %v14992_v3, 5 }
 0x5e0   :  { %17857 = vst [vmem:[#allocation21_spill] sm:$0xff] %v14995_v19  ;;  %v15001_v40 = vmax.f32 %v7373_v50, 0.0  ;;  %v10969_v52 = vpop.f32.mrb[4].mxu1  ;;  %v17646_v34 = vrot.slane %v14995_v19, 1  ;;  %v7939_v42 = vrot.slane %v14995_v19, 6 }
 0x5e1   :  { %v7307_v2 = vmul.f32 %v10969_v52, %v14979_v12  ;;  %v6991_v63 = vpop.f32.mrb[5].mxu1  ;;  %v15008_v8 = vmax.f32 %v14992_v3, %v17645_v46  ;;  %v17635_v47 = vrot.slane %v14999_v17, 1 }
 0x5e2   :  { %v7305_v37 = vmul.f32 %v14979_v12, %v6991_v63  ;;  %v10970_v53 = vpop.f32.mrb[6].mxu1  ;;  %v15016_v21 = vmax.f32 %v14995_v19, %v17646_v34  ;;  %v17637_v41 = vrot.slane %v15001_v40, 1  ;;  %v15051_v30 = vsel %vm17783_vm6, %v7940_v5, %v7939_v42 }
 0x5e3   :  { %17858 = vst [vmem:[#allocation10_spill] sm:$0xff] %v15008_v8  ;;  %v7378_v58 = vadd.f32 %v14984_v44, %v7307_v2  ;;  %v7308_v4 = vmul.f32 %v10970_v53, %v14979_v12  ;;  %v6994_v24 = vpop.f32.mrb[7].mxu1  ;;  %v9100_v10 = vrot.slane %v15008_v8, 5  ;;  %v8964_v38 = vrot.slane %v15008_v8, 1 }
 0x5e4   :  { %17859 = vst [vmem:[#allocation12_spill] sm:$0xff] %v15016_v21  ;;  %v7376_v48 = vadd.f32 %v14984_v44, %v7305_v37  ;;  %v7306_v14 = vmul.f32 %v14979_v12, %v6994_v24  ;;  %v9099_v13 = vrot.slane %v15016_v21, 6  ;;  %v8963_v60 = vrot.slane %v15016_v21, 2 }
 0x5e5   :  { %v15028_v39 = vmax.f32 %v7378_v58, 0.0  ;;  %v7379_v55 = vadd.f32 %v14984_v44, %v7308_v4  ;;  %v9031_v45 = vrot.slane %v15016_v21, 4  ;;  %v9032_v18 = vrot.slane %v15008_v8, 3 }
 0x5e6   :  { %v15033_v23 = vmax.f32 %v7376_v48, 0.0  ;;  %v7377_v62 = vadd.f32 %v14984_v44, %v7306_v14  ;;  %v15044_v27 = vmax.f32 %v15001_v40, %v17637_v41  ;;  %v9101_v51 = vsel %vm17783_vm6, %v9100_v10, %v9099_v13 }
 0x5e7   :  { %17860 = vst [vmem:[#allocation14_spill] sm:$0xff] %v15028_v39  ;;  %v15038_v43 = vmax.f32 %v7379_v55, 0.0  ;;  %v17641_v25 = vrot.slane %v15028_v39, 1  ;;  %v8965_v15 = vsel %vm17783_vm6, %v8964_v38, %v8963_v60  ;;  %v9033_v57 = vsel %vm17783_vm6, %v9032_v18, %v9031_v45 }
 0x5e8   :  { %17861 = vst [vmem:[#allocation11_spill] sm:$0xff] %v15033_v23  ;;  %v10973_v16 = vpop.f32.mrb[8].mxu1  ;;  %v17643_v26 = vrot.slane %v15033_v23, 1  ;;  %v15053_v33 = vmax.f32 %v7377_v62, 0.0  ;;  %v15071_v54 = vmax.f32 %v14999_v17, %v17635_v47  ;;  %v7942_v11 = vrot.slane %v15033_v23, 4 }
 0x5e9   :  { %v7311_v29 = vmul.f32 %v10973_v16, %v14979_v12  ;;  %v7007_v32 = vpop.f32.mrb[9].mxu1  ;;  %v15059_v9 = vmax.f32 %v15028_v39, %v17641_v25  ;;  %v17632_v7 = vrot.slane %v15038_v43, 1  ;;  %v9403_v22 = vrot.slane %v15044_v27, 6 }
 0x5ea   :  { %v7309_v1 = vmul.f32 %v14979_v12, %v7007_v32  ;;  %v10974_v49 = vpop.f32.mrb[10].mxu1  ;;  %v15066_v0 = vmax.f32 %v15033_v23, %v17643_v26  ;;  %v17634_v58 = vrot.slane %v15053_v33, 1  ;;  %v9404_v55 = vrot.slane %v15071_v54, 5 }
 0x5eb   :  { %17862 = vst [vmem:[#allocation16_spill] sm:$0xff] %v15059_v9  ;;  %v7382_v59 = vadd.f32 %v14984_v44, %v7311_v29  ;;  %v7312_v28 = vmul.f32 %v10974_v49, %v14979_v12  ;;  %v7010_v35 = vpop.f32.mrb[11].mxu1  ;;  %v8967_v50 = vrot.slane %v15059_v9, 7  ;;  %v9104_v10 = vrot.slane %v15059_v9, 3 }
 0x5ec   :  { %17863 = vst [vmem:[#allocation13_spill] sm:$0xff] %v15066_v0  ;;  %v7380_v20 = vadd.f32 %v14984_v44, %v7309_v1  ;;  %v7310_v31 = vmul.f32 %v14979_v12, %v7010_v35  ;;  %v9102_v61 = vrot.slane %v15066_v0, 4  ;;  %v8966_v63 = vsel %vm17782_vm7, %v15066_v0, %v8965_v15 }
 0x5ed   :  { %v15082_v52 = vmax.f32 %v7382_v59, 0.0  ;;  %v7383_v2 = vadd.f32 %v14984_v44, %v7312_v28  ;;  %v9034_v5 = vrot.slane %v15066_v0, 2  ;;  %v8968_v13 = vsel %vm17785_vm8, %v8967_v50, %v8966_v63 }
 0x5ee   :  { %v15088_v37 = vmax.f32 %v7380_v20, 0.0  ;;  %v7381_v53 = vadd.f32 %v14984_v44, %v7310_v31  ;;  %v9103_v42 = vsel %vm17782_vm7, %v9102_v61, %v9101_v51  ;;  %v9036_v60 = vrot.slane %v15059_v9, 1 }
 0x5ef   :  { %17864 = vst [vmem:[#allocation17_spill] sm:$0xff] %v15082_v52  ;;  %v15093_v4 = vmax.f32 %v7383_v2, 0.0  ;;  %v17647_v24 = vrot.slane %v15082_v52, 1  ;;  %v9035_v38 = vsel %vm17782_vm7, %v9034_v5, %v9033_v57  ;;  %v9105_v51 = vsel %vm17785_vm8, %v9104_v10, %v9103_v42 }
 0x5f0   :  { %17865 = vst [vmem:[#allocation19_spill] sm:$0xff] %v15088_v37  ;;  %v10977_v48 = vpop.f32.mrb[12].mxu1  ;;  %v17640_v14 = vrot.slane %v15088_v37, 1  ;;  %v15102_v45 = vmax.f32 %v7381_v53, 0.0  ;;  %v9037_v57 = vsel %vm17785_vm8, %v9036_v60, %v9035_v38  ;;  %v15121_v1 = vmax.f32 %v15053_v33, %v17634_v58 }
 0x5f1   :  { %v7315_v18 = vmul.f32 %v10977_v48, %v14979_v12  ;;  %v7023_v62 = vpop.f32.mrb[13].mxu1  ;;  %v15108_v16 = vmax.f32 %v15082_v52, %v17647_v24  ;;  %v17639_v35 = vrot.slane %v15093_v4, 1  ;;  %v15129_v20 = vmax.f32 %v15038_v43, %v17632_v7 }
 0x5f2   :  { %v7313_v15 = vmul.f32 %v14979_v12, %v7023_v62  ;;  %v10978_v29 = vpop.f32.mrb[14].mxu1  ;;  %v15115_v32 = vmax.f32 %v15088_v37, %v17640_v14  ;;  %v17894_v8 = vrot.slane %v14992_v3, 2 }
 0x5f3   :  { %17866 = vst [vmem:[#allocation15_spill] sm:$0xff] %v15108_v16  ;;  %v7386_v49 = vadd.f32 %v14984_v44, %v7315_v18  ;;  %v7316_v59 = vmul.f32 %v10978_v29, %v14979_v12  ;;  %v7026_v28 = vpop.f32.mrb[15].mxu1  ;;  %v9108_v53 = vrot.slane %v15108_v16, 1  ;;  %v9039_v42 = vrot.slane %v15108_v16, 7 }
 0x5f4   :  { %17867 = vst [vmem:[#allocation18_spill] sm:$0xff] %v15115_v32  ;;  %v7384_v31 = vadd.f32 %v14984_v44, %v7313_v15  ;;  %v7314_v61 = vmul.f32 %v14979_v12, %v7026_v28  ;;  %v9106_v50 = vrot.slane %v15115_v32, 2  ;;  %v8969_v2 = vrot.slane %v15115_v32, 6 }
 0x5f5   :  { %v15135_v63 = vmax.f32 %v7386_v49, 0.0  ;;  %v7387_v5 = vadd.f32 %v14984_v44, %v7316_v59  ;;  %v8971_v15 = vrot.slane %v15108_v16, 5  ;;  %v9038_v29 = vsel %vm7542_vm9, %v15115_v32, %v9037_v57 }
 0x5f6   :  { %v15140_v10 = vmax.f32 %v7384_v31, 0.0  ;;  %v7385_v38 = vadd.f32 %v14984_v44, %v7314_v61  ;;  %v9107_v48 = vsel %vm7542_vm9, %v9106_v50, %v9105_v51  ;;  %v8970_v60 = vsel %vm7542_vm9, %v8969_v2, %v8968_v13 }
 0x5f7   :  { %17868 = vst [vmem:[#allocation23_spill] sm:$0xff] %v15135_v63  ;;  %v15145_v18 = vmax.f32 %v7387_v5, 0.0  ;;  %v17633_v62 = vrot.slane %v15135_v63, 1  ;;  %v9109_v28 = vsel %vm7545_vm10, %v9108_v53, %v9107_v48  ;;  %v17636_v31 = vrot.slane %v15102_v45, 1 }
 0x5f8   :  { %17869 = vst [vmem:[#allocation22_spill] sm:$0xff] %v15140_v10  ;;  %v10981_v49 = vpop.f32.mrb[16].mxu1  ;;  %v17638_v59 = vrot.slane %v15140_v10, 1  ;;  %v9405_v51 = vsel %vm17783_vm6, %v9404_v55, %v9403_v22  ;;  %v15155_v61 = vmax.f32 %v7385_v38, 0.0  ;;  %v8972_v57 = vsel %vm7545_vm10, %v8971_v15, %v8970_v60 }
 0x5f9   :  { %v7319_v13 = vmul.f32 %v10981_v49, %v14979_v12  ;;  %v7039_v50 = vpop.f32.mrb[17].mxu1  ;;  %v15161_v2 = vmax.f32 %v15135_v63, %v17633_v62  ;;  %v9040_v22 = vsel %vm7545_vm10, %v9039_v42, %v9038_v29  ;;  %v17642_v55 = vrot.slane %v15145_v18, 1 }
 0x5fa   :  { %v7317_v5 = vmul.f32 %v14979_v12, %v7039_v50  ;;  %v10982_v7 = vpop.f32.mrb[18].mxu1  ;;  %v15168_v53 = vmax.f32 %v15140_v10, %v17638_v59  ;;  %v9406_v60 = vrot.slane %v15121_v1, 4  ;;  %v15187_v47 = vmax.f32 %v15102_v45, %v17636_v31 }
 0x5fb   :  { %17870 = vst [vmem:[#allocation24_spill] sm:$0xff] %v15161_v2  ;;  %v7390_v38 = vadd.f32 %v14984_v44, %v7319_v13  ;;  %v7320_v48 = vmul.f32 %v10982_v7, %v14979_v12  ;;  %v7042_v49 = vpop.f32.mrb[19].mxu1  ;;  %v9111_v62 = vrot.slane %v15161_v2, 7  ;;  %v9043_v41 = vrot.slane %v15161_v2, 5 }
 0x5fc   :  { %17871 = vst [vmem:[#allocation25_spill] sm:$0xff] %v15168_v53  ;;  %v7388_v15 = vadd.f32 %v14984_v44, %v7317_v5  ;;  %v7318_v50 = vmul.f32 %v14979_v12, %v7042_v49  ;;  %v9110_v58 = vsel %vm17784_vm11, %v15168_v53, %v9109_v28  ;;  %v8973_v42 = vrot.slane %v15168_v53, 4 }
 0x5fd   :  { %v7391_v29 = vadd.f32 %v14984_v44, %v7320_v48  ;;  %v9112_v13 = vsel %vm7551_vm12, %v9111_v62, %v9110_v58  ;;  %v9041_v7 = vrot.slane %v15168_v53, 6  ;;  %v8975_v28 = vrot.slane %v15161_v2, 3 }
 0x5fe   :  { %9155 = vrot.lane.b32.xlu0 %v9112_v13, %s11718_s22  ;;  %v8974_v5 = vsel %vm17784_vm11, %v8973_v42, %v8972_v57  ;;  %v17644_v49 = vrot.slane %v15155_v61, 1  ;;  %v15196_v58 = vmax.f32 %v15093_v4, %v17639_v35  ;;  %v15198_v62 = vmax.f32 %v7390_v38, 0.0 }
 0x5ff   :  { %v15200_v48 = vmax.f32 %v7388_v15, 0.0  ;;  %v7389_v31 = vadd.f32 %v14984_v44, %v7318_v50  ;;  %v15204_v13 = vmax.f32 %v7391_v29, 0.0  ;;  %v8976_v42 = vsel %vm7551_vm12, %v8975_v28, %v8974_v5 }
 0x600   :  { %17872 = vst [vmem:[#allocation26_spill] sm:$0xff] %v15198_v62  ;;  %v10985_v57 = vpop.f32.mrb[20].mxu1  ;;  %v15210_v59 = vmax.f32 %v15145_v18, %v17642_v55  ;;  %v9407_v35 = vsel %vm17782_vm7, %v9406_v60, %v9405_v51  ;;  %v9042_v14 = vsel %vm17784_vm11, %v9041_v7, %v9040_v22  ;;  %v9408_v50 = vrot.slane %v15129_v20, 3 }
 0x601   :  { %17873 = vst [vmem:[#allocation27_spill] sm:$0xff] %v15200_v48  ;;  %v7323_v38 = vmul.f32 %v10985_v57, %v14979_v12  ;;  %v7055_v15 = vpop.f32.mrb[21].mxu1  ;;  %v9410_v29 = vrot.slane %v15187_v47, 2  ;;  %v15222_v28 = vmax.f32 %v15155_v61, %v17644_v49  ;;  %v9199_v51 = vrot.slane %v15071_v54, 7 }
 0x602   :  { %v7321_v25 = vmul.f32 %v14979_v12, %v7055_v15  ;;  %9019 = vrot.lane.b32.xlu0 %v8976_v42, %s11716_s19  ;;  %v10986_v5 = vpop.f32.mrb[22].mxu1  ;;  %v9201_v60 = vrot.slane %v15121_v1, 6  ;;  %v9409_v55 = vsel %vm17785_vm8, %v9408_v50, %v9407_v35  ;;  %v9412_v15 = vrot.slane %v15196_v58, 1 }
 0x603   :  { %v7394_v22 = vadd.f32 %v14984_v44, %v7323_v38  ;;  %v7324_v7 = vmul.f32 %v10986_v5, %v14979_v12  ;;  %v7058_v57 = vpop.f32.mrb[23].mxu1  ;;  %v9411_v26 = vsel %vm7542_vm9, %v9410_v29, %v9409_v55  ;;  %v9415_v49 = vrot.slane %v15210_v59, 7 }
 0x604   :  { %v7322_v42 = vmul.f32 %v14979_v12, %v7058_v57  ;;  %v9200_v56 = vsel %vm17783_vm6, %v9199_v51, %v15044_v27  ;;  %v9044_v6 = vsel %vm7551_vm12, %v9043_v41, %v9042_v14  ;;  %v9413_v38 = vsel %vm7545_vm10, %v9412_v15, %v9411_v26 }
 0x605   :  { %v9202_v5 = vsel %vm17782_vm7, %v9201_v60, %v9200_v56  ;;  %v9203_v46 = vrot.slane %v15129_v20, 5  ;;  %v15239_v35 = vmax.f32 %v7389_v31, 0.0  ;;  %v15241_v50 = vmax.f32 %v7394_v22, 0.0 }
 0x606   :  { %v7392_v57 = vadd.f32 %v14984_v44, %v7321_v25  ;;  %9087 = vrot.lane.b32.xlu0 %v9044_v6, %s11717_s20  ;;  %v9414_v55 = vsel %vm17784_vm11, %v15222_v28, %v9413_v38  ;;  %v7395_v29 = vadd.f32 %v14984_v44, %v7324_v7  ;;  %v7393_v41 = vadd.f32 %v14984_v44, %v7322_v42 }
 0x607   :  { %17874 = vst [vmem:[#allocation28_spill] sm:$0xff] %v15241_v50  ;;  %v9204_v26 = vsel %vm17785_vm8, %v9203_v46, %v9202_v5  ;;  %v9205_v56 = vrot.slane %v15187_v47, 4  ;;  %v9416_v31 = vsel %vm7551_vm12, %v9415_v49, %v9414_v55  ;;  %v9207_v51 = vrot.slane %v15196_v58, 3 }
 0x608   :  { %v10989_v14 = vpop.f32.mrb[24].mxu1  ;;  %v9209_v25 = vrot.slane %v15222_v28, 2  ;;  %v9267_v6 = vrot.slane %v15044_v27, 2  ;;  %v9268_v15 = vrot.slane %v15071_v54, 1  ;;  %v9271_v46 = vrot.slane %v15129_v20, 7 }
 0x609   :  { %v7327_v60 = vmul.f32 %v10989_v14, %v14979_v12  ;;  %v7071_v22 = vpop.f32.mrb[25].mxu1  ;;  %v9206_v7 = vsel %vm7542_vm9, %v9205_v56, %v9204_v26  ;;  %v15259_v42 = vmax.f32 %v7392_v57, 0.0  ;;  %v9273_v55 = vrot.slane %v15187_v47, 6 }
 0x60a   :  { %v7325_v38 = vmul.f32 %v14979_v12, %v7071_v22  ;;  %9459 = vrot.lane.b32.xlu0 %v9416_v31, %s11719_s23  ;;  %v10990_v49 = vpop.f32.mrb[26].mxu1  ;;  %v9208_v5 = vsel %vm7545_vm10, %v9207_v51, %v9206_v7  ;;  %v9211_v56 = vrot.slane %v15210_v59, 1  ;;  %v9269_v57 = vsel %vm17783_vm6, %v9268_v15, %v9267_v6 }
 0x60b   :  { %17875 = vst [vmem:[#allocation29_spill] sm:$0xff] %v15259_v42  ;;  %v7398_v14 = vadd.f32 %v14984_v44, %v7327_v60  ;;  %v7074_v36 = vpop.f32.mrb[27].mxu1  ;;  %v9210_v26 = vsel %vm17784_vm11, %v9209_v25, %v9208_v5  ;;  %v15269_v34 = vmax.f32 %v7395_v29, 0.0  ;;  %v15271_v22 = vmax.f32 %v7393_v41, 0.0 }
 0x60c   :  { %v7328_v31 = vmul.f32 %v10990_v49, %v14979_v12  ;;  %v9270_v51 = vsel %vm17782_vm7, %v15121_v1, %v9269_v57  ;;  %v9212_v7 = vsel %vm7551_vm12, %v9211_v56, %v9210_v26  ;;  %v9275_v24 = vrot.slane %v15196_v58, 5 }
 0x60d   :  { %v9272_v60 = vsel %vm17785_vm8, %v9271_v46, %v9270_v51  ;;  %v9277_v25 = vrot.slane %v15222_v28, 4  ;;  %v15280_v5 = vmax.f32 %v7398_v14, 0.0  ;;  %v7396_v29 = vadd.f32 %v14984_v44, %v7325_v38 }
 0x60e   :  { %v7326_v41 = vmul.f32 %v14979_v12, %v7074_v36  ;;  %9255 = vrot.lane.b32.xlu0 %v9212_v7, %s11720_s24  ;;  %v9274_v6 = vsel %vm7542_vm9, %v9273_v55, %v9272_v60  ;;  %v9279_v49 = vrot.slane %v15210_v59, 3  ;;  %v9335_v46 = vrot.slane %v15044_v27, 4 }
 0x60f   :  { %17876 = vst [vmem:[#allocation30_spill] sm:$0xff] %v15280_v5  ;;  %v9276_v15 = vsel %vm7545_vm10, %v9275_v24, %v9274_v6  ;;  %v9336_v26 = vrot.slane %v15071_v54, 3  ;;  %v7399_v14 = vadd.f32 %v14984_v44, %v7328_v31  ;;  %v9338_v36 = vrot.slane %v15121_v1, 2 }
 0x610   :  { %v10993_v56 = vpop.f32.mrb[28].mxu1  ;;  %v9278_v38 = vsel %vm17784_vm11, %v9277_v25, %v9276_v15  ;;  %v9340_v57 = vrot.slane %v15129_v20, 1  ;;  %v9343_v27 = vrot.slane %v15196_v58, 7  ;;  %v15298_v60 = vmax.f32 %v7396_v29, 0.0 }
 0x611   :  { %v7331_v51 = vmul.f32 %v10993_v56, %v14979_v12  ;;  %v7087_v55 = vpop.f32.mrb[29].mxu1  ;;  %v9280_v24 = vsel %vm7551_vm12, %v9279_v49, %v9278_v38  ;;  %v9337_v7 = vsel %vm17783_vm6, %v9336_v26, %v9335_v46  ;;  %v9345_v20 = vrot.slane %v15222_v28, 6 }
 0x612   :  { %17877 = vst [vmem:[#allocation31_spill] sm:$0xff] %v15298_v60  ;;  %v7329_v54 = vmul.f32 %v14979_v12, %v7087_v55  ;;  %9323 = vrot.lane.b32.xlu0 %v9280_v24, %s11721_s25  ;;  %v10994_v31 = vpop.f32.mrb[30].mxu1  ;;  %v9339_v1 = vsel %vm17782_vm7, %v9338_v36, %v9337_v7  ;;  %v7943_v58 = vsel %vm17782_vm7, %v7942_v11, %v15051_v30  ;;  %v7944_v28 = vrot.slane %v15028_v39, 3 }
 0x613   :  { %v7402_v25 = vadd.f32 %v14984_v44, %v7331_v51  ;;  %v7332_v6 = vmul.f32 %v10994_v31, %v14979_v12  ;;  %v7090_v15 = vpop.f32.mrb[31].mxu1  ;;  %v9341_v49 = vsel %vm17785_vm8, %v9340_v57, %v9339_v1  ;;  %v7397_v56 = vadd.f32 %v14984_v44, %v7326_v41 }
 0x614   :  { %v7400_v29 = vadd.f32 %v14984_v44, %v7329_v54  ;;  %v7330_v46 = vmul.f32 %v14979_v12, %v7090_v15  ;;  %v9342_v26 = vsel %vm7542_vm9, %v15187_v47, %v9341_v49  ;;  %v9347_v36 = vrot.slane %v15210_v59, 5 }
 0x615   :  { %v9344_v38 = vsel %vm7545_vm10, %v9343_v27, %v9342_v26  ;;  %v7946_v57 = vrot.slane %v15088_v37, 2  ;;  %v15320_v51 = vmax.f32 %v7399_v14, 0.0  ;;  %v15322_v30 = vmax.f32 %v7402_v25, 0.0 }
 0x616   :  { %v9346_v11 = vsel %vm17784_vm11, %v9345_v20, %v9344_v38  ;;  %v7945_v55 = vsel %vm17785_vm8, %v7944_v28, %v7943_v58  ;;  %v15326_v24 = vmax.f32 %v7400_v29, 0.0  ;;  %v7403_v47 = vadd.f32 %v14984_v44, %v7332_v6 }
 0x617   :  { %17878 = vst [vmem:[#allocation32_spill] sm:$0xff] %v15322_v30  ;;  %v9348_v41 = vsel %vm7551_vm12, %v9347_v36, %v9346_v11  ;;  %v7947_v7 = vsel %vm7542_vm9, %v7946_v57, %v7945_v55  ;;  %v7401_v59 = vadd.f32 %v14984_v44, %v7330_v46  ;;  %v17880_v27 = vrot.slane %v15082_v52, 1 }
 0x618   :  { %17879 = vst [vmem:[#allocation33_spill] sm:$0xff] %v15326_v24  ;;  %9391 = vrot.lane.b32.xlu0 %v9348_v41, %s11722_s26  ;;  %v10997_v14 = vpop.f32.mrb[32].mxu1  ;;  %v7953_v31 = vrot.slane %v15200_v48, 6  ;;  %v7954_v1 = vrot.slane %v15198_v62, 5  ;;  %v7951_v15 = vrot.slane %v15135_v63, 7  ;;  %v7956_v49 = vrot.slane %v15259_v42, 4 }
 0x619   :  { %v7949_v54 = vsel %vm7545_vm10, %v17880_v27, %v7947_v7  ;;  %v7335_v20 = vmul.f32 %v10997_v14, %v14979_v12  ;;  %v7103_v25 = vpop.f32.mrb[33].mxu1  ;;  %v7958_v26 = vrot.slane %v15241_v50, 3  ;;  %v7960_v28 = vrot.slane %v15298_v60, 2 }
 0x61a   :  { %v7950_v6 = vsel %vm17784_vm11, %v15140_v10, %v7949_v54  ;;  %v7333_v58 = vmul.f32 %v14979_v12, %v7103_v25  ;;  %v10998_v29 = vpop.f32.mrb[34].mxu1  ;;  %v7955_v46 = vsel %vm17783_vm6, %v7954_v1, %v7953_v31  ;;  %v7962_v55 = vrot.slane %v15280_v5, 1 }
 0x61b   :  { %v7406_v38 = vadd.f32 %v14984_v44, %v7335_v20  ;;  %v7336_v36 = vmul.f32 %v10998_v29, %v14979_v12  ;;  %v7106_v57 = vpop.f32.mrb[35].mxu1  ;;  %v7957_v11 = vsel %vm17782_vm7, %v7956_v49, %v7955_v46  ;;  %v15351_v41 = vmax.f32 %v7397_v56, 0.0 }
 0x61c   :  { %v7334_v7 = vmul.f32 %v14979_v12, %v7106_v57  ;;  %v7959_v14 = vsel %vm17785_vm8, %v7958_v26, %v7957_v11  ;;  %v7965_v27 = vrot.slane %v15322_v30, 7  ;;  %v15356_v54 = vmax.f32 %v7403_v47, 0.0 }
 0x61d   :  { %v7404_v31 = vadd.f32 %v14984_v44, %v7333_v58  ;;  %v7407_v1 = vadd.f32 %v14984_v44, %v7336_v36  ;;  %v7961_v20 = vsel %vm7542_vm9, %v7960_v28, %v7959_v14  ;;  %v15361_v25 = vmax.f32 %v7401_v59, 0.0 }
 0x61e   :  { %v7405_v49 = vadd.f32 %v14984_v44, %v7334_v7  ;;  %v7952_v56 = vsel %vm7551_vm12, %v7951_v15, %v7950_v6  ;;  %v7963_v29 = vsel %vm7545_vm10, %v7962_v55, %v7961_v20  ;;  %v15366_v46 = vmax.f32 %v7406_v38, 0.0 }
 0x61f   :  { %v7964_v47 = vsel %vm17784_vm11, %v15326_v24, %v7963_v29  ;;  %v15371_v26 = vmax.f32 %v15280_v5, %v7962_v55  ;;  %v7601_v58 = vrot.slane %v15033_v23, 7  ;;  %v17883_v59 = vrot.slane %v14995_v19, 1 }
 0x620   :  { %17881 = vst [vmem:[#allocation34_spill] sm:$0xff] %v15366_v46  ;;  %v7966_v28 = vsel %vm7551_vm12, %v7965_v27, %v7964_v47  ;;  %v7603_v6 = vrot.slane %v15028_v39, 6  ;;  %v7605_v15 = vrot.slane %v15088_v37, 5  ;;  %v11001_v38 = vpop.f32.mrb[36].mxu1  ;;  %v15381_v57 = vmax.f32 %v7404_v31, 0.0 }
 0x621   :  { %17882 = vst [vmem:[#allocation35_spill] sm:$0xff] %v15371_v26  ;;  %v7600_v36 = vsel %vm17783_vm6, %v14992_v3, %v17883_v59  ;;  %v15383_v11 = vmax.f32 %v7407_v1, 0.0  ;;  %v11309_v55 = vpack.i.bf16 %v7966_v28, %v7952_v56  ;;  %v7119_v14 = vpop.f32.mrb[37].mxu1  ;;  %v15386_v20 = vmax.f32 %v7405_v49, 0.0 }
 0x622   :  { %17884 = vst [vmem:[#allocation36_spill] sm:$0xff] %v15381_v57  ;;  %v7602_v7 = vsel %vm17782_vm7, %v7601_v58, %v7600_v36  ;;  %v7613_v29 = vrot.slane %v15200_v48, 1  ;;  %v7615_v47 = vrot.slane %v15259_v42, 7  ;;  %v11002_v59 = vpop.f32.mrb[38].mxu1  ;;  %v7607_v1 = vrot.slane %v15082_v52, 4 }
 0x623   :  { %17885 = vst [vmem:[#allocation37_spill] sm:$0xff] %v15383_v11  ;;  %17886 = vst [vmem:[#allocation38_spill] sm:$0xff] %v15386_v20  ;;  %v7604_v27 = vsel %vm17785_vm8, %v7603_v6, %v7602_v7  ;;  %11310 = vrot.lane.b32.xlu0 %v11309_v55, %s11722_s26  ;;  %v7609_v56 = vrot.slane %v15140_v10, 3  ;;  %v7619_v58 = vrot.slane %v15298_v60, 5  ;;  %v7122_v28 = vpop.f32.mrb[39].mxu1  ;;  %v7611_v49 = vrot.slane %v15135_v63, 2 }
 0x624   :  { %v7606_v31 = vsel %vm7542_vm9, %v7605_v15, %v7604_v27  ;;  %v7614_v36 = vsel %vm17783_vm6, %v15198_v62, %v7613_v29  ;;  %v7617_v6 = vrot.slane %v15241_v50, 6  ;;  %v7621_v7 = vrot.slane %v15280_v5, 4 }
 0x625   :  { %v7616_v55 = vsel %vm17782_vm7, %v7615_v47, %v7614_v36  ;;  %v7623_v15 = vrot.slane %v15326_v24, 3  ;;  %v7339_v27 = vmul.f32 %v11001_v38, %v14979_v12  ;;  %v7337_v2 = vmul.f32 %v14979_v12, %v7119_v14 }
 0x626   :  { %v7608_v16 = vsel %vm7545_vm10, %v7607_v1, %v7606_v31  ;;  %v7618_v53 = vsel %vm17785_vm8, %v7617_v6, %v7616_v55  ;;  %v7340_v32 = vmul.f32 %v11002_v59, %v14979_v12  ;;  %v7338_v9 = vmul.f32 %v14979_v12, %v7122_v28 }
 0x627   :  { %v7610_v21 = vsel %vm17784_vm11, %v7609_v56, %v7608_v16  ;;  %v7620_v0 = vsel %vm7542_vm9, %v7619_v58, %v7618_v53  ;;  %v7410_v47 = vadd.f32 %v14984_v44, %v7339_v27  ;;  %v17887_v36 = vrot.slane %v14995_v19, 2 }
 0x628   :  { %v17888_v38 = vrot.slane %v14992_v3, 1  ;;  %v7622_v31 = vsel %vm7545_vm10, %v7621_v7, %v7620_v0  ;;  %v7625_v1 = vrot.slane %v15322_v30, 2  ;;  %v15420_v59 = vmax.f32 %v15200_v48, %v7613_v29  ;;  %v15424_v56 = vpop.f32.mrb[40].mxu1 }
 0x629   :  { %v7624_v53 = vsel %vm17784_vm11, %v7623_v15, %v7622_v31  ;;  %v7408_v58 = vadd.f32 %v14984_v44, %v7337_v2  ;;  %v7411_v28 = vadd.f32 %v14984_v44, %v7340_v32  ;;  %v7671_v6 = vrot.slane %v15028_v39, 7  ;;  %v15430_v55 = vpop.f32.mrb[41].mxu1 }
 0x62a   :  { %v7669_v14 = vsel %vm17783_vm6, %v17888_v38, %v17887_v36  ;;  %17889 = vst [vmem:[#allocation39_spill] sm:$0xff] %v15420_v59  ;;  %v7612_v0 = vsel %vm7551_vm12, %v7611_v49, %v7610_v21  ;;  %v7626_v29 = vsel %vm7551_vm12, %v7625_v1, %v7624_v53  ;;  %v15435_v7 = vadd.f32 %v14984_v44, %v7338_v9  ;;  %v11006_v36 = vpop.f32.mrb[42].mxu1 }
 0x62b   :  { %v7670_v16 = vsel %vm17782_vm7, %v15033_v23, %v7669_v14  ;;  %v7673_v27 = vrot.slane %v15088_v37, 6  ;;  %v11314_v38 = vpack.i.bf16 %v7626_v29, %v7612_v0  ;;  %v15438_v15 = vmax.f32 %v7410_v47, 0.0  ;;  %v7138_v14 = vpop.f32.mrb[43].mxu1 }
 0x62c   :  { %v7672_v2 = vsel %vm17785_vm8, %v7671_v6, %v7670_v16  ;;  %v7677_v32 = vrot.slane %v15140_v10, 4  ;;  %v7675_v21 = vrot.slane %v15082_v52, 5  ;;  %v7681_v49 = vrot.slane %v15200_v48, 2 }
 0x62d   :  { %17890 = vst [vmem:[#allocation40_spill] sm:$0xff] %v15438_v15  ;;  %v7674_v31 = vsel %vm7542_vm9, %v7673_v27, %v7672_v2  ;;  %v7682_v9 = vrot.slane %v15198_v62, 1  ;;  %11315 = vrot.lane.b32.xlu0 %v11314_v38, %s11716_s19  ;;  %v15447_v1 = vmax.f32 %v7408_v58, 0.0  ;;  %v15449_v53 = vmax.f32 %v7411_v28, 0.0 }
 0x62e   :  { %v7685_v47 = vrot.slane %v15241_v50, 7  ;;  %v7687_v16 = vrot.slane %v15298_v60, 6  ;;  %v7676_v6 = vsel %vm7545_vm10, %v7675_v21, %v7674_v31  ;;  %v7679_v0 = vrot.slane %v15135_v63, 3 }
 0x62f   :  { %17891 = vst [vmem:[#allocation41_spill] sm:$0xff] %v15447_v1  ;;  %17892 = vst [vmem:[#allocation42_spill] sm:$0xff] %v15449_v53  ;;  %v7683_v29 = vsel %vm17783_vm6, %v7682_v9, %v7681_v49  ;;  %v7689_v27 = vrot.slane %v15280_v5, 5  ;;  %v7678_v2 = vsel %vm17784_vm11, %v7677_v32, %v7676_v6  ;;  %v7691_v28 = vrot.slane %v15326_v24, 4 }
 0x630   :  { %v7684_v58 = vsel %vm17782_vm7, %v15259_v42, %v7683_v29  ;;  %v17893_v38 = vrot.slane %v14995_v19, 3  ;;  %v7693_v21 = vrot.slane %v15322_v30, 3  ;;  %v17895_v49 = vrot.slane %v15033_v23, 1  ;;  %v15472_v6 = vpop.f32.mrb[44].mxu1 }
 0x631   :  { %v7686_v31 = vsel %vm17785_vm8, %v7685_v47, %v7684_v58  ;;  %v7741_v32 = vrot.slane %v15088_v37, 7  ;;  %v7743_v26 = vrot.slane %v15082_v52, 6  ;;  %v15479_v47 = vpop.f32.mrb[45].mxu1  ;;  %v7755_v15 = vrot.slane %v15298_v60, 7 }
 0x632   :  { %v7737_v53 = vsel %vm17783_vm6, %v17894_v8, %v17893_v38  ;;  %v7688_v29 = vsel %vm7542_vm9, %v7687_v16, %v7686_v31  ;;  %v7745_v8 = vrot.slane %v15140_v10, 5  ;;  %v15485_v59 = vpop.f32.mrb[46].mxu1  ;;  %v7680_v16 = vsel %vm7551_vm12, %v7679_v0, %v7678_v2 }
 0x633   :  { %v7739_v11 = vsel %vm17782_vm7, %v17895_v49, %v7737_v53  ;;  %v7690_v58 = vsel %vm7545_vm10, %v7689_v27, %v7688_v29  ;;  %v7749_v53 = vrot.slane %v15200_v48, 3  ;;  %v7750_v49 = vrot.slane %v15198_v62, 2  ;;  %v15491_v1 = vpop.f32.mrb[47].mxu1 }
 0x634   :  { %v7740_v20 = vsel %vm17785_vm8, %v15028_v39, %v7739_v11  ;;  %v7692_v11 = vsel %vm17784_vm11, %v7691_v28, %v7690_v58  ;;  %v7752_v31 = vrot.slane %v15259_v42, 1  ;;  %v7759_v2 = vrot.slane %v15326_v24, 5 }
 0x635   :  { %v7742_v38 = vsel %vm7542_vm9, %v7741_v32, %v7740_v20  ;;  %v7694_v27 = vsel %vm7551_vm12, %v7693_v21, %v7692_v11  ;;  %v7747_v32 = vrot.slane %v15135_v63, 4  ;;  %v7751_v29 = vsel %vm17783_vm6, %v7750_v49, %v7749_v53 }
 0x636   :  { %v7744_v20 = vsel %vm7545_vm10, %v7743_v26, %v7742_v38  ;;  %v11319_v46 = vpack.i.bf16 %v7694_v27, %v7680_v16  ;;  %v7753_v0 = vsel %vm17782_vm7, %v7752_v31, %v7751_v29  ;;  %v7757_v58 = vrot.slane %v15280_v5, 6 }
 0x637   :  { %v7746_v57 = vsel %vm17784_vm11, %v7745_v8, %v7744_v20  ;;  %v7754_v28 = vsel %vm17785_vm8, %v15241_v50, %v7753_v0  ;;  %v7761_v21 = vrot.slane %v15322_v30, 4  ;;  %v7343_v26 = vmul.f32 %v15424_v56, %v14979_v12 }
 0x638   :  { %11320 = vrot.lane.b32.xlu0 %v11319_v46, %s11717_s20  ;;  %v7756_v38 = vsel %vm7542_vm9, %v7755_v15, %v7754_v28  ;;  %v7341_v8 = vmul.f32 %v14979_v12, %v15430_v55  ;;  %v7344_v53 = vmul.f32 %v11006_v36, %v14979_v12  ;;  %v7342_v49 = vmul.f32 %v14979_v12, %v7138_v14  ;;  %v15516_v56 = vpop.f32.mrb[48].mxu1 }
 0x639   :  { %v7758_v16 = vsel %vm7545_vm10, %v7757_v58, %v7756_v38  ;;  %v7414_v11 = vadd.f32 %v14984_v44, %v7343_v26  ;;  %v7803_v27 = vrot.slane %v14995_v19, 4  ;;  %v7804_v20 = vrot.slane %v14992_v3, 3  ;;  %v15526_v14 = vpop.f32.mrb[49].mxu1 }
 0x63a   :  { %v15519_v46 = vmax.f32 %v15435_v7, 0.0  ;;  %v15522_v15 = vmax.f32 %v15198_v62, %v7682_v9  ;;  %v7748_v55 = vsel %vm7551_vm12, %v7747_v32, %v7746_v57  ;;  %v7760_v36 = vsel %vm17784_vm11, %v7759_v2, %v7758_v16  ;;  %v15534_v7 = vpop.f32.mrb[50].mxu1 }
 0x63b   :  { %v7762_v29 = vsel %vm7551_vm12, %v7761_v21, %v7760_v36  ;;  %v15530_v0 = vmax.f32 %v15259_v42, %v7752_v31  ;;  %v7412_v28 = vadd.f32 %v14984_v44, %v7341_v8  ;;  %v7806_v58 = vrot.slane %v15033_v23, 2  ;;  %v15541_v2 = vpop.f32.mrb[51].mxu1 }
 0x63c   :  { %17896 = vst [vmem:[#allocation43_spill] sm:$0xff] %v15519_v46  ;;  %17897 = vst [vmem:[#allocation44_spill] sm:$0xff] %v15522_v15  ;;  %v11324_v26 = vpack.i.bf16 %v7762_v29, %v7748_v55  ;;  %v7415_v9 = vadd.f32 %v14984_v44, %v7344_v53  ;;  %v15538_v57 = vadd.f32 %v14984_v44, %v7342_v49  ;;  %v15543_v21 = vmax.f32 %v7414_v11, 0.0 }
 0x63d   :  { %17898 = vst [vmem:[#allocation45_spill] sm:$0xff] %v15530_v0  ;;  %v7805_v32 = vsel %vm17783_vm6, %v7804_v20, %v7803_v27  ;;  %v7811_v38 = vrot.slane %v15082_v52, 7  ;;  %v7813_v8 = vrot.slane %v15140_v10, 6  ;;  %v17900_v16 = vrot.slane %v15028_v39, 1 }
 0x63e   :  { %17899 = vst [vmem:[#allocation46_spill] sm:$0xff] %v15543_v21  ;;  %v7807_v31 = vsel %vm17782_vm7, %v7806_v58, %v7805_v32  ;;  %11325 = vrot.lane.b32.xlu0 %v11324_v26, %s11718_s22  ;;  %v7817_v44 = vrot.slane %v15200_v48, 4  ;;  %v7818_v49 = vrot.slane %v15198_v62, 3  ;;  %v7820_v27 = vrot.slane %v15259_v42, 2 }
 0x63f   :  { %v7809_v53 = vsel %vm17785_vm8, %v17900_v16, %v7807_v31  ;;  %v15555_v11 = vmax.f32 %v7412_v28, 0.0  ;;  %v7815_v55 = vrot.slane %v15135_v63, 5  ;;  %v7822_v36 = vrot.slane %v15241_v50, 1 }
 0x640   :  { %v7810_v20 = vsel %vm7542_vm9, %v15088_v37, %v7809_v53  ;;  %v7819_v58 = vsel %vm17783_vm6, %v7818_v49, %v7817_v44  ;;  %v7825_v26 = vrot.slane %v15280_v5, 7  ;;  %v7871_v32 = vrot.slane %v14995_v19, 5  ;;  %v15569_v46 = vpop.f32.mrb[52].mxu1 }
 0x641   :  { %17901 = vst [vmem:[#allocation47_spill] sm:$0xff] %v15555_v11  ;;  %v7812_v29 = vsel %vm7545_vm10, %v7811_v38, %v7810_v20  ;;  %v7821_v28 = vsel %vm17782_vm7, %v7820_v27, %v7819_v58  ;;  %v7827_v16 = vrot.slane %v15326_v24, 6  ;;  %v7872_v53 = vrot.slane %v14992_v3, 4  ;;  %17902 = vst [vmem:[#allocation48_spill] sm:$0xff] %v15569_v46  ;;  %v15575_v20 = vpop.f32.mrb[53].mxu1 }
 0x642   :  { %v7814_v31 = vsel %vm17784_vm11, %v7813_v8, %v7812_v29  ;;  %v7823_v38 = vsel %vm17785_vm8, %v7822_v36, %v7821_v28  ;;  %v7829_v44 = vrot.slane %v15322_v30, 5  ;;  %v7874_v49 = vrot.slane %v15033_v23, 3  ;;  %17903 = vst [vmem:[#allocation49_spill] sm:$0xff] %v15575_v20  ;;  %v15582_v15 = vpop.f32.mrb[54].mxu1 }
 0x643   :  { %v7816_v0 = vsel %vm7551_vm12, %v7815_v55, %v7814_v31  ;;  %v7824_v8 = vsel %vm7542_vm9, %v15298_v60, %v7823_v38  ;;  %v7873_v27 = vsel %vm17783_vm6, %v7872_v53, %v7871_v32  ;;  %v7876_v29 = vrot.slane %v15028_v39, 2  ;;  %17904 = vst [vmem:[#allocation50_spill] sm:$0xff] %v15582_v15  ;;  %v15588_v20 = vpop.f32.mrb[55].mxu1 }
 0x644   :  { %v7881_v58 = vrot.slane %v15140_v10, 7  ;;  %v7826_v55 = vsel %vm7545_vm10, %v7825_v26, %v7824_v8  ;;  %v7875_v31 = vsel %vm17782_vm7, %v7874_v49, %v7873_v27  ;;  %v7885_v28 = vrot.slane %v15200_v48, 5 }
 0x645   :  { %v7886_v46 = vrot.slane %v15198_v62, 4  ;;  %v7828_v38 = vsel %vm17784_vm11, %v7827_v16, %v7826_v55  ;;  %v7877_v32 = vsel %vm17785_vm8, %v7876_v29, %v7875_v31  ;;  %v7888_v53 = vrot.slane %v15259_v42, 3 }
 0x646   :  { %v7890_v21 = vrot.slane %v15241_v50, 2  ;;  %v7830_v15 = vsel %vm7551_vm12, %v7829_v44, %v7828_v38  ;;  %v17905_v26 = vrot.slane %v15088_v37, 1  ;;  %v7892_v27 = vrot.slane %v15298_v60, 1 }
 0x647   :  { %v7887_v8 = vsel %vm17783_vm6, %v7886_v46, %v7885_v28  ;;  %v11329_v11 = vpack.i.bf16 %v7830_v15, %v7816_v0  ;;  %v7895_v55 = vrot.slane %v15326_v24, 7  ;;  %v15604_v31 = vmax.f32 %v7415_v9, 0.0 }
 0x648   :  { %v7879_v49 = vsel %vm7542_vm9, %v17905_v26, %v7877_v32  ;;  %v7889_v29 = vsel %vm17782_vm7, %v7888_v53, %v7887_v8  ;;  %v7883_v38 = vrot.slane %v15135_v63, 6  ;;  %v7897_v15 = vrot.slane %v15322_v30, 6  ;;  %v15616_v9 = vpop.f32.mrb[56].mxu1 }
 0x649   :  { %v7880_v16 = vsel %vm7545_vm10, %v15082_v52, %v7879_v49  ;;  %17906 = vst [vmem:[#allocation51_spill] sm:$0xff] %v15604_v31  ;;  %v7891_v32 = vsel %vm17785_vm8, %v7890_v21, %v7889_v29  ;;  %11330 = vrot.lane.b32.xlu0 %v11329_v11, %s11720_s24  ;;  %v7347_v0 = vmul.f32 %v15472_v6, %v14979_v12  ;;  %v15623_v21 = vld [vmem:[%s17599_s5] ss:$0 sm:$0xff]  ;;  %v8007_v6 = vrot.slane %v14995_v19, 7  ;;  %v15630_v26 = vpop.f32.mrb[57].mxu1  ;;  %v17925_v19 = vld [vmem:[#allocation40_spill] sm:$0xff] }
 0x64a   :  { %v7882_v44 = vsel %vm17784_vm11, %v7881_v58, %v7880_v16  ;;  %v7893_v46 = vsel %vm7542_vm9, %v7892_v27, %v7891_v32  ;;  %v7345_v28 = vmul.f32 %v14979_v12, %v15479_v47  ;;  %v7348_v11 = vmul.f32 %v15623_v21, %v15485_v59  ;;  %v15640_v16 = vpop.f32.mrb[58].mxu1 }
 0x64b   :  { %v7894_v58 = vsel %vm7545_vm10, %v15280_v5, %v7893_v46  ;;  %v7346_v53 = vmul.f32 %v15623_v21, %v15491_v1  ;;  %v15633_v12 = vmax.f32 %v15538_v57, 0.0  ;;  %v15636_v47 = vmax.f32 %v15241_v50, %v7822_v36  ;;  %v15648_v57 = vpop.f32.mrb[59].mxu1  ;;  %v15653_v36 = vld [vmem:[%s17600_s6] ss:$0 sm:$0xff]  ;;  %s11723_s6 = smov 64  }
 0x64c   :  { %v7896_v49 = vsel %vm17784_vm11, %v7895_v55, %v7894_v58  ;;  %v8008_v8 = vrot.slane %v14992_v3, 6  ;;  %v7884_v59 = vsel %vm7551_vm12, %v7883_v38, %v7882_v44  ;;  %v15645_v29 = vmax.f32 %v15298_v60, %v7892_v27  ;;  %v17926_v3 = vld [vmem:[#allocation47_spill] sm:$0xff] }
 0x64d   :  { %17907 = vst [vmem:[#allocation52_spill] sm:$0xff] %v15633_v12  ;;  %17908 = vst [vmem:[#allocation53_spill] sm:$0xff] %v15636_v47  ;;  %v7898_v1 = vsel %vm7551_vm12, %v7897_v15, %v7896_v49  ;;  %v8010_v32 = vrot.slane %v15033_v23, 5  ;;  %v7418_v55 = vadd.f32 %v15653_v36, %v7347_v0  ;;  %v7416_v58 = vadd.f32 %v15653_v36, %v7345_v28 }
 0x64e   :  { %17909 = vst [vmem:[#allocation54_spill] sm:$0xff] %v15645_v29  ;;  %v11334_v46 = vpack.i.bf16 %v7898_v1, %v7884_v59  ;;  %v8009_v44 = vsel %vm17783_vm6, %v8008_v8, %v8007_v6  ;;  %v7419_v38 = vadd.f32 %v15653_v36, %v7348_v11  ;;  %v7417_v27 = vadd.f32 %v15653_v36, %v7346_v53 }
 0x64f   :  { %v8011_v15 = vsel %vm17782_vm7, %v8010_v32, %v8009_v44  ;;  %v8012_v49 = vrot.slane %v15028_v39, 4  ;;  %v8014_v59 = vrot.slane %v15088_v37, 3  ;;  %v8016_v1 = vrot.slane %v15082_v52, 2 }
 0x650   :  { %11335 = vrot.lane.b32.xlu0 %v11334_v46, %s11721_s25  ;;  %v8021_v0 = vrot.slane %v15200_v48, 7  ;;  %v8022_v28 = vrot.slane %v15198_v62, 6  ;;  %v8024_v11 = vrot.slane %v15259_v42, 5  ;;  %v8026_v53 = vrot.slane %v15241_v50, 4  ;;  %v15675_v37 = vpop.f32.mrb[60].mxu1 }
 0x651   :  { %v8013_v6 = vsel %vm17785_vm8, %v8012_v49, %v8011_v15  ;;  %v8028_v8 = vrot.slane %v15298_v60, 3  ;;  %v8030_v44 = vrot.slane %v15280_v5, 2  ;;  %v8107_v49 = vrot.slane %v14999_v17, 7  ;;  %v15681_v42 = vpop.f32.mrb[61].mxu1 }
 0x652   :  { %v8015_v32 = vsel %vm7542_vm9, %v8014_v59, %v8013_v6  ;;  %v8023_v46 = vsel %vm17783_vm6, %v8022_v28, %v8021_v0  ;;  %v8109_v50 = vrot.slane %v15053_v33, 6  ;;  %v17910_v59 = vrot.slane %v15140_v10, 1  ;;  %v15689_v5 = vpop.f32.mrb[62].mxu1 }
 0x653   :  { %v8017_v48 = vsel %vm7545_vm10, %v8016_v1, %v8015_v32  ;;  %v8025_v15 = vsel %vm17782_vm7, %v8024_v11, %v8023_v46  ;;  %v8111_v6 = vrot.slane %v15038_v43, 5  ;;  %v8113_v52 = vrot.slane %v15102_v45, 4  ;;  %17911 = vst [vmem:[#allocation55_spill] sm:$0xff] %v15689_v5  ;;  %v15697_v60 = vpop.f32.mrb[63].mxu1 }
 0x654   :  { %v8019_v0 = vsel %vm17784_vm11, %v17910_v59, %v8017_v48  ;;  %v8027_v28 = vsel %vm17785_vm8, %v8026_v53, %v8025_v15  ;;  %v8108_v32 = vsel %vm17783_vm6, %v8107_v49, %v15001_v40  ;;  %v8115_v46 = vrot.slane %v15093_v4, 3  ;;  %17912 = vst [vmem:[#allocation56_spill] sm:$0xff] %v15697_v60 }
 0x655   :  { %v8020_v1 = vsel %vm7551_vm12, %v15135_v63, %v8019_v0  ;;  %v8029_v11 = vsel %vm7542_vm9, %v8028_v8, %v8027_v28  ;;  %v8110_v53 = vsel %vm17782_vm7, %v8109_v50, %v8108_v32  ;;  %v8117_v15 = vrot.slane %v15155_v61, 2 }
 0x656   :  { %v8031_v48 = vsel %vm7545_vm10, %v8030_v44, %v8029_v11  ;;  %v8121_v59 = vrot.slane %v15204_v13, 7  ;;  %v17913_v62 = vrot.slane %v15326_v24, 1  ;;  %v8112_v8 = vsel %vm17785_vm8, %v8111_v6, %v8110_v53 }
 0x657   :  { %v8123_v49 = vrot.slane %v15271_v22, 6  ;;  %v8125_v28 = vrot.slane %v15269_v34, 5  ;;  %v8114_v44 = vsel %vm7542_vm9, %v8113_v52, %v8112_v8  ;;  %v8127_v11 = vrot.slane %v15351_v41, 4 }
 0x658   :  { %v8033_v0 = vsel %vm17784_vm11, %v17913_v62, %v8031_v48  ;;  %v8122_v50 = vsel %vm17783_vm6, %v8121_v59, %v15239_v35  ;;  %v15715_v32 = vmax.f32 %v7418_v55, 0.0  ;;  %v8116_v62 = vsel %vm7545_vm10, %v8115_v46, %v8114_v44 }
 0x659   :  { %v8034_v63 = vsel %vm7551_vm12, %v15322_v30, %v8033_v0  ;;  %v8124_v6 = vsel %vm17782_vm7, %v8123_v49, %v8122_v50  ;;  %v8129_v53 = vrot.slane %v15320_v51, 3  ;;  %v8131_v0 = vrot.slane %v15361_v25, 2 }
 0x65a   :  { %17914 = vst [vmem:[#allocation57_spill] sm:$0xff] %v15715_v32  ;;  %v11339_v10 = vpack.i.bf16 %v8034_v63, %v8020_v1  ;;  %v8126_v48 = vsel %vm17785_vm8, %v8125_v28, %v8124_v6  ;;  %v8133_v52 = vrot.slane %v15356_v54, 1  ;;  %v8118_v59 = vsel %vm17784_vm11, %v8117_v15, %v8116_v62 }
 0x65b   :  { %v8128_v55 = vsel %vm7542_vm9, %v8127_v11, %v8126_v48  ;;  %v7351_v63 = vmul.f32 %v15623_v21, %v15516_v56  ;;  %v7349_v1 = vmul.f32 %v15623_v21, %v15526_v14  ;;  %v15730_v46 = vmax.f32 %v7416_v58, 0.0 }
 0x65c   :  { %11340 = vrot.lane.b32.xlu0 %v11339_v10, %s11719_s23  ;;  %v8130_v8 = vsel %vm7545_vm10, %v8129_v53, %v8128_v55  ;;  %v7352_v49 = vmul.f32 %v15623_v21, %v15534_v7  ;;  %v7350_v10 = vmul.f32 %v15623_v21, %v15541_v2  ;;  %v15737_v28 = vmax.f32 %v7419_v38, 0.0 }
 0x65d   :  { %17915 = vst [vmem:[#allocation58_spill] sm:$0xff] %v15730_v46  ;;  %v15739_v15 = vmax.f32 %v7417_v27, 0.0  ;;  %v8132_v44 = vsel %vm17784_vm11, %v8131_v0, %v8130_v8  ;;  %v7422_v56 = vadd.f32 %v15653_v36, %v7351_v63  ;;  %v17918_v14 = vrot.slane %v15145_v18, 1 }
 0x65e   :  { %17916 = vst [vmem:[#allocation59_spill] sm:$0xff] %v15737_v28  ;;  %v8134_v50 = vsel %vm7551_vm12, %v8133_v52, %v8132_v44  ;;  %v15748_v11 = vmax.f32 %v15356_v54, %v8133_v52  ;;  %v8177_v7 = vrot.slane %v15053_v33, 7  ;;  %v15752_v38 = vadd.f32 %v15653_v36, %v7349_v1 }
 0x65f   :  { %17917 = vst [vmem:[#allocation60_spill] sm:$0xff] %v15739_v15  ;;  %v8120_v58 = vsel %vm7551_vm12, %v17918_v14, %v8118_v59  ;;  %v17920_v27 = vrot.slane %v15001_v40, 1  ;;  %v8179_v6 = vrot.slane %v15038_v43, 6  ;;  %v15760_v48 = vadd.f32 %v15653_v36, %v7352_v49 }
 0x660   :  { %17919 = vst [vmem:[#allocation61_spill] sm:$0xff] %v15748_v11  ;;  %v11344_v2 = vpack.i.bf16 %v8134_v50, %v8120_v58  ;;  %v15763_v53 = vadd.f32 %v15653_v36, %v7350_v10  ;;  %v8181_v52 = vrot.slane %v15102_v45, 5  ;;  %v15768_v59 = vmax.f32 %v7422_v56, 0.0  ;;  %v17927_v11 = vld [vmem:[#allocation46_spill] sm:$0xff] }
 0x661   :  { %v8176_v62 = vsel %vm17783_vm6, %v14999_v17, %v17920_v27  ;;  %v8183_v63 = vrot.slane %v15093_v4, 4  ;;  %v8185_v1 = vrot.slane %v15155_v61, 3  ;;  %v8187_v49 = vrot.slane %v15145_v18, 2 }
 0x662   :  { %v8178_v0 = vsel %vm17782_vm7, %v8177_v7, %v8176_v62  ;;  %11345 = vrot.lane.b32.xlu0 %v11344_v2, %s11723_s6  ;;  %17921 = vst [vmem:[#allocation62_spill] sm:$0xff] %v15768_v59  ;;  %v17685_v10 = vrot.slane %v15239_v35, 1  ;;  %v8191_v44 = vrot.slane %v15271_v22, 7  ;;  %v8193_v58 = vrot.slane %v15269_v34, 6 }
 0x663   :  { %v8180_v55 = vsel %vm17785_vm8, %v8179_v6, %v8178_v0  ;;  %v8195_v56 = vrot.slane %v15351_v41, 5  ;;  %v8197_v50 = vrot.slane %v15320_v51, 4  ;;  %v8199_v27 = vrot.slane %v15361_v25, 3 }
 0x664   :  { %v8182_v8 = vsel %vm7542_vm9, %v8181_v52, %v8180_v55  ;;  %v8190_v2 = vsel %vm17783_vm6, %v15204_v13, %v17685_v10  ;;  %v8201_v62 = vrot.slane %v15356_v54, 2  ;;  %v17922_v52 = vld [vmem:[#allocation36_spill] sm:$0xff]  ;;  %v17691_v23 = vrot.slane %v17925_v19, 1 }
 0x665   :  { %v8184_v14 = vsel %vm7545_vm10, %v8183_v63, %v8182_v8  ;;  %v8192_v6 = vsel %vm17782_vm7, %v8191_v44, %v8190_v2  ;;  %v17688_v55 = vrot.slane %v17922_v52, 1  ;;  %v17923_v63 = vld [vmem:[#allocation34_spill] sm:$0xff]  ;;  %v17692_v10 = vrot.slane %v17926_v3, 1 }
 0x666   :  { %v8186_v7 = vsel %vm17784_vm11, %v8185_v1, %v8184_v14  ;;  %v17690_v8 = vrot.slane %v17923_v63, 1  ;;  %v8194_v39 = vsel %vm17785_vm8, %v8193_v58, %v8192_v6  ;;  %v17924_v1 = vld [vmem:[#allocation41_spill] sm:$0xff]  ;;  %v17693_v60 = vrot.slane %v17927_v11, 1 }
 0x667   :  { %v17689_v14 = vrot.slane %v17924_v1, 1  ;;  %v8196_v59 = vsel %vm7542_vm9, %v8195_v56, %v8194_v39  ;;  %v17695_v44 = vrot.slane %v15730_v46, 1  ;;  %v15802_v2 = vmax.f32 %v17922_v52, %v17688_v55 }
 0x668   :  { %v8198_v0 = vsel %vm7545_vm10, %v8197_v50, %v8196_v59  ;;  %v15808_v58 = vmax.f32 %v17923_v63, %v17690_v8  ;;  %v15818_v56 = vmax.f32 %v17925_v19, %v17691_v23  ;;  %v8188_v6 = vsel %vm7551_vm12, %v8187_v49, %v8186_v7 }
 0x669   :  { %17928 = vst [vmem:[#allocation63_spill] sm:$0xff] %v15802_v2  ;;  %v15813_v39 = vmax.f32 %v17924_v1, %v17689_v14  ;;  %v8200_v55 = vsel %vm17784_vm11, %v8199_v27, %v8198_v0  ;;  %v15825_v59 = vmax.f32 %v17926_v3, %v17692_v10  ;;  %v15830_v50 = vmax.f32 %v17927_v11, %v17693_v60 }
 0x66a   :  { %17929 = vst [vmem:[#allocation64_spill] sm:$0xff] %v15808_v58  ;;  %17931 = vst [vmem:[#allocation66_spill] sm:$0xff] %v15818_v56  ;;  %v8202_v14 = vsel %vm7551_vm12, %v8201_v62, %v8200_v55  ;;  %v17934_v8 = vrot.slane %v15715_v32, 1  ;;  %v9127_v49 = vrot.slane %v15802_v2, 6  ;;  %v9128_v7 = vrot.slane %v15808_v58, 5 }
 0x66b   :  { %17930 = vst [vmem:[#allocation65_spill] sm:$0xff] %v15813_v39  ;;  %17932 = vst [vmem:[#allocation67_spill] sm:$0xff] %v15825_v59  ;;  %v11349_v27 = vpack.i.bf16 %v8202_v14, %v8188_v6  ;;  %v15843_v0 = vmax.f32 %v15730_v46, %v17695_v44  ;;  %v9130_v10 = vrot.slane %v15813_v39, 4  ;;  %v9134_v60 = vrot.slane %v15825_v59, 2 }
 0x66c   :  { %17933 = vst [vmem:[#allocation68_spill] sm:$0xff] %v15830_v50  ;;  %v15836_v23 = vmax.f32 %v15715_v32, %v17934_v8  ;;  %v9129_v62 = vsel %vm17783_vm6, %v9128_v7, %v9127_v49  ;;  %v9132_v55 = vrot.slane %v15818_v56, 3  ;;  %v9136_v8 = vrot.slane %v15830_v50, 1 }
 0x66d   :  { %17936 = vst [vmem:[#allocation70_spill] sm:$0xff] %v15843_v0  ;;  %v8243_v11 = vrot.slane %v15001_v40, 2  ;;  %11350 = vrot.lane.b32.xlu0 %v11349_v27, %s11724_s10  ;;  %v9131_v14 = vsel %vm17782_vm7, %v9130_v10, %v9129_v62  ;;  %v8247_v44 = vrot.slane %v15038_v43, 7  ;;  %v8249_v46 = vrot.slane %v15102_v45, 6 }
 0x66e   :  { %17935 = vst [vmem:[#allocation69_spill] sm:$0xff] %v15836_v23  ;;  %v9139_v6 = vrot.slane %v15836_v23, 7  ;;  %v9133_v32 = vsel %vm17785_vm8, %v9132_v55, %v9131_v14  ;;  %v17937_v49 = vrot.slane %v14999_v17, 1  ;;  %v8251_v19 = vrot.slane %v15093_v4, 5 }
 0x66f   :  { %v8253_v3 = vrot.slane %v15155_v61, 4  ;;  %v9135_v27 = vsel %vm7542_vm9, %v9134_v60, %v9133_v32  ;;  %v8257_v62 = vrot.slane %v15239_v35, 2  ;;  %v8258_v1 = vrot.slane %v15204_v13, 1 }
 0x670   :  { %v8245_v7 = vsel %vm17783_vm6, %v17937_v49, %v8243_v11  ;;  %v9137_v63 = vsel %vm7545_vm10, %v9136_v8, %v9135_v27  ;;  %v8261_v14 = vrot.slane %v15269_v34, 7  ;;  %v8263_v11 = vrot.slane %v15351_v41, 6 }
 0x671   :  { %v8246_v10 = vsel %vm17782_vm7, %v15053_v33, %v8245_v7  ;;  %v15872_v49 = vmax.f32 %v15752_v38, 0.0  ;;  %v9138_v60 = vsel %vm17784_vm11, %v15843_v0, %v9137_v63  ;;  %v8259_v7 = vsel %vm17783_vm6, %v8258_v1, %v8257_v62 }
 0x672   :  { %v8248_v55 = vsel %vm17785_vm8, %v8247_v44, %v8246_v10  ;;  %v9140_v52 = vsel %vm7551_vm12, %v9139_v6, %v9138_v60  ;;  %v8260_v44 = vsel %vm17782_vm7, %v15271_v22, %v8259_v7  ;;  %v8267_v27 = vrot.slane %v15361_v25, 4  ;;  %v17940_v60 = vld [vmem:[#allocation49_spill] sm:$0xff] }
 0x673   :  { %17938 = vst [vmem:[#allocation71_spill] sm:$0xff] %v15872_v49  ;;  %v8250_v32 = vsel %vm7542_vm9, %v8249_v46, %v8248_v55  ;;  %9159 = vrot.lane.b32.xlu1 %v9140_v52, %s11718_s22  ;;  %v8255_v10 = vrot.slane %v15145_v18, 3  ;;  %v8262_v63 = vsel %vm17785_vm8, %v8261_v14, %v8260_v44  ;;  %v8265_v46 = vrot.slane %v15320_v51, 5 }
 0x674   :  { %v8252_v8 = vsel %vm7545_vm10, %v8251_v19, %v8250_v32  ;;  %v8264_v62 = vsel %vm7542_vm9, %v8263_v11, %v8262_v63  ;;  %v8269_v6 = vrot.slane %v15356_v54, 3  ;;  %v17939_v19 = vld [vmem:[#allocation48_spill] sm:$0xff]  ;;  %v7353_v32 = vmul.f32 %v15623_v21, %v17940_v60 }
 0x675   :  { %v8254_v38 = vsel %vm17784_vm11, %v8253_v3, %v8252_v8  ;;  %v7355_v55 = vmul.f32 %v15623_v21, %v17939_v19  ;;  %v8266_v52 = vsel %vm7545_vm10, %v8265_v46, %v8264_v62  ;;  %v8991_v3 = vrot.slane %v15802_v2, 2 }
 0x676   :  { %v8992_v7 = vrot.slane %v15808_v58, 1  ;;  %v8995_v14 = vrot.slane %v15818_v56, 7  ;;  %v15899_v8 = vmax.f32 %v15760_v48, 0.0  ;;  %v15902_v11 = vmax.f32 %v15763_v53, 0.0 }
 0x677   :  { %v8268_v44 = vsel %vm17784_vm11, %v8267_v27, %v8266_v52  ;;  %v8997_v63 = vrot.slane %v15825_v59, 6  ;;  %v8256_v19 = vsel %vm7551_vm12, %v8255_v10, %v8254_v38  ;;  %v7426_v62 = vadd.f32 %v15653_v36, %v7355_v55 }
 0x678   :  { %17941 = vst [vmem:[#allocation48_spill] sm:$0xff] %v15899_v8  ;;  %17942 = vst [vmem:[#allocation49_spill] sm:$0xff] %v15902_v11  ;;  %v8270_v46 = vsel %vm7551_vm12, %v8269_v6, %v8268_v44  ;;  %v8993_v60 = vsel %vm17783_vm6, %v8992_v7, %v8991_v3  ;;  %v7424_v5 = vadd.f32 %v15653_v36, %v7353_v32  ;;  %v9001_v53 = vrot.slane %v15843_v0, 4  ;;  %v17943_v11 = vld [vmem:[#allocation50_spill] sm:$0xff] }
 0x679   :  { %v11354_v49 = vpack.i.bf16 %v8270_v46, %v8256_v19  ;;  %v8994_v48 = vsel %vm17782_vm7, %v15813_v39, %v8993_v60  ;;  %v8999_v52 = vrot.slane %v15830_v50, 5  ;;  %v7356_v38 = vmul.f32 %v15623_v21, %v17943_v11 }
 0x67a   :  { %v8996_v27 = vsel %vm17785_vm8, %v8995_v14, %v8994_v48  ;;  %v7354_v10 = vmul.f32 %v15623_v21, %v15588_v20  ;;  %v15921_v6 = vmax.f32 %v15204_v13, %v8258_v1  ;;  %v8311_v32 = vrot.slane %v15001_v40, 3 }
 0x67b   :  { %11355 = vrot.lane.b32.xlu0 %v11354_v49, %s11725_s2  ;;  %v8998_v55 = vsel %vm7542_vm9, %v8997_v63, %v8996_v27  ;;  %v8312_v3 = vrot.slane %v14999_v17, 2  ;;  %v15927_v7 = vmax.f32 %v7426_v62, 0.0  ;;  %v9003_v11 = vrot.slane %v15836_v23, 3 }
 0x67c   :  { %v9000_v14 = vsel %vm7545_vm10, %v8999_v52, %v8998_v55  ;;  %v8317_v20 = vrot.slane %v15102_v45, 7  ;;  %v15932_v44 = vmax.f32 %v7424_v5, 0.0  ;;  %v7427_v49 = vadd.f32 %v15653_v36, %v7356_v38 }
 0x67d   :  { %17944 = vst [vmem:[#allocation50_spill] sm:$0xff] %v15927_v7  ;;  %v9002_v1 = vsel %vm17784_vm11, %v9001_v53, %v9000_v14  ;;  %v8313_v63 = vsel %vm17783_vm6, %v8312_v3, %v8311_v32  ;;  %v7425_v46 = vadd.f32 %v15653_v36, %v7354_v10  ;;  %v17946_v62 = vrot.slane %v15053_v33, 1 }
 0x67e   :  { %17945 = vst [vmem:[#allocation72_spill] sm:$0xff] %v15932_v44  ;;  %v9004_v19 = vsel %vm7551_vm12, %v9003_v11, %v9002_v1  ;;  %v8321_v48 = vrot.slane %v15155_v61, 5  ;;  %v8325_v53 = vrot.slane %v15239_v35, 3  ;;  %v8326_v27 = vrot.slane %v15204_v13, 2 }
 0x67f   :  { %v8315_v60 = vsel %vm17782_vm7, %v17946_v62, %v8313_v63  ;;  %9023 = vrot.lane.b32.xlu1 %v9004_v19, %s11716_s19  ;;  %v17707_v52 = vrot.slane %v15271_v22, 1  ;;  %v8319_v10 = vrot.slane %v15093_v4, 6  ;;  %v8323_v55 = vrot.slane %v15145_v18, 4 }
 0x680   :  { %v8316_v5 = vsel %vm17785_vm8, %v15038_v43, %v8315_v60  ;;  %v8331_v32 = vrot.slane %v15351_v41, 7  ;;  %v15953_v3 = vmax.f32 %v7427_v49, 0.0  ;;  %v8327_v14 = vsel %vm17783_vm6, %v8326_v27, %v8325_v53 }
 0x681   :  { %v8318_v38 = vsel %vm7542_vm9, %v8317_v20, %v8316_v5  ;;  %v8333_v11 = vrot.slane %v15320_v51, 6  ;;  %v8335_v1 = vrot.slane %v15361_v25, 5  ;;  %v8329_v20 = vsel %vm17782_vm7, %v17707_v52, %v8327_v14 }
 0x682   :  { %17947 = vst [vmem:[#allocation73_spill] sm:$0xff] %v15953_v3  ;;  %v8320_v63 = vsel %vm7545_vm10, %v8319_v10, %v8318_v38  ;;  %v9059_v19 = vrot.slane %v15802_v2, 4  ;;  %v9060_v62 = vrot.slane %v15808_v58, 3  ;;  %v8330_v49 = vsel %vm17785_vm8, %v15269_v34, %v8329_v20 }
 0x683   :  { %v8322_v60 = vsel %vm17784_vm11, %v8321_v48, %v8320_v63  ;;  %v8337_v5 = vrot.slane %v15356_v54, 4  ;;  %v9062_v53 = vrot.slane %v15813_v39, 2  ;;  %v8332_v27 = vsel %vm7542_vm9, %v8331_v32, %v8330_v49  ;;  %v17948_v49 = vld [vmem:[#allocation39_spill] sm:$0xff] }
 0x684   :  { %v9061_v38 = vsel %vm17783_vm6, %v9060_v62, %v9059_v19  ;;  %v9064_v10 = vrot.slane %v15818_v56, 1  ;;  %v9067_v14 = vrot.slane %v15830_v50, 7  ;;  %v8334_v52 = vsel %vm7545_vm10, %v8333_v11, %v8332_v27 }
 0x685   :  { %v9063_v2 = vsel %vm17782_vm7, %v9062_v53, %v9061_v38  ;;  %v9069_v48 = vrot.slane %v15843_v0, 6  ;;  %v17711_v63 = vrot.slane %v15322_v30, 1  ;;  %v8324_v20 = vsel %vm7551_vm12, %v8323_v55, %v8322_v60  ;;  %v17950_v53 = vld [vmem:[#allocation44_spill] sm:$0xff]  ;;  %v17959_v0 = vld [vmem:[#allocation42_spill] sm:$0xff] }
 0x686   :  { %v8336_v39 = vsel %vm17784_vm11, %v8335_v1, %v8334_v52  ;;  %v9065_v32 = vsel %vm17785_vm8, %v9064_v10, %v9063_v2  ;;  %v9113_v19 = vrot.slane %v17948_v49, 6  ;;  %v9114_v27 = vrot.slane %v17950_v53, 5  ;;  %v17951_v2 = vld [vmem:[#allocation45_spill] sm:$0xff] }
 0x687   :  { %v8338_v62 = vsel %vm7551_vm12, %v8337_v5, %v8336_v39  ;;  %v9066_v50 = vsel %vm7542_vm9, %v15825_v59, %v9065_v32  ;;  %v15987_v11 = vmax.f32 %v15322_v30, %v17711_v63  ;;  %v9071_v52 = vrot.slane %v15836_v23, 5  ;;  %v17957_v63 = vld [vmem:[#allocation37_spill] sm:$0xff] }
 0x688   :  { %v11359_v38 = vpack.i.bf16 %v8338_v62, %v8324_v20  ;;  %v9068_v55 = vsel %vm7545_vm10, %v9067_v14, %v9066_v50  ;;  %v9116_v1 = vrot.slane %v17951_v2, 4  ;;  %v9115_v39 = vsel %vm17783_vm6, %v9114_v27, %v9113_v19  ;;  %v17954_v62 = vld [vmem:[#allocation35_spill] sm:$0xff] }
 0x689   :  { %17949 = vst [vmem:[#allocation74_spill] sm:$0xff] %v15987_v11  ;;  %v9070_v60 = vsel %vm17784_vm11, %v9069_v48, %v9068_v55  ;;  %v9118_v5 = vrot.slane %v15636_v47, 3  ;;  %v9120_v10 = vrot.slane %v15645_v29, 2  ;;  %v17952_v20 = vrot.slane %v15326_v24, 1  ;;  %v17955_v55 = vld [vmem:[#allocation38_spill] sm:$0xff] }
 0x68a   :  { %11360 = vrot.lane.b32.xlu0 %v11359_v38, %s11726_s11  ;;  %v9072_v32 = vsel %vm7551_vm12, %v9071_v52, %v9070_v60  ;;  %v9117_v14 = vsel %vm17782_vm7, %v9116_v1, %v9115_v39  ;;  %v7359_v48 = vmul.f32 %v15623_v21, %v15616_v9  ;;  %v9122_v27 = vrot.slane %v17954_v62, 1  ;;  %v17958_v1 = vld [vmem:[#allocation43_spill] sm:$0xff] }
 0x68b   :  { %v16002_v50 = vmax.f32 %v15326_v24, %v17952_v20  ;;  %9091 = vrot.lane.b32.xlu1 %v9072_v32, %s11717_s20  ;;  %v9119_v19 = vsel %vm17785_vm8, %v9118_v5, %v9117_v14  ;;  %v9125_v38 = vrot.slane %v15987_v11, 7  ;;  %v17716_v52 = vrot.slane %v17955_v55, 1 }
 0x68c   :  { %v16012_v60 = vmax.f32 %v7425_v46, 0.0  ;;  %v9121_v20 = vsel %vm7542_vm9, %v9120_v10, %v9119_v19  ;;  %v17717_v23 = vrot.slane %v17957_v63, 1  ;;  %v17724_v32 = vrot.slane %v15737_v28, 1 }
 0x68d   :  { %17953 = vst [vmem:[#allocation75_spill] sm:$0xff] %v16002_v50  ;;  %v9123_v9 = vsel %vm7545_vm10, %v9122_v27, %v9121_v20  ;;  %v17718_v5 = vrot.slane %v17959_v0, 1  ;;  %v17720_v14 = vrot.slane %v15633_v12, 1  ;;  %v7430_v46 = vadd.f32 %v15653_v36, %v7359_v48 }
 0x68e   :  { %17956 = vst [vmem:[#allocation76_spill] sm:$0xff] %v16012_v60  ;;  %v9124_v59 = vsel %vm17784_vm11, %v16002_v50, %v9123_v9  ;;  %v7357_v10 = vmul.f32 %v15623_v21, %v15630_v26  ;;  %v17722_v19 = vrot.slane %v15604_v31, 1  ;;  %v16032_v20 = vmax.f32 %v17955_v55, %v17716_v52 }
 0x68f   :  { %v9126_v39 = vsel %vm7551_vm12, %v9125_v38, %v9124_v59  ;;  %v16037_v9 = vmax.f32 %v17957_v63, %v17717_v23  ;;  %v17960_v48 = vrot.slane %v15271_v22, 1  ;;  %v17961_v59 = vrot.slane %v17958_v1, 1 }
 0x690   :  { %9157 = vrot.lane.b32.xlu0 %v9126_v39, %s11718_s22  ;;  %v16053_v52 = vmax.f32 %v17959_v0, %v17718_v5  ;;  %v16058_v23 = vmax.f32 %v15633_v12, %v17720_v14  ;;  %v16068_v39 = vmax.f32 %v15737_v28, %v17724_v32  ;;  %v16072_v27 = vmax.f32 %v7430_v46, 0.0 }
 0x691   :  { %v16042_v26 = vmax.f32 %v15271_v22, %v17960_v48  ;;  %v16048_v38 = vmax.f32 %v17958_v1, %v17961_v59  ;;  %v16063_v48 = vmax.f32 %v15604_v31, %v17722_v19  ;;  %v9431_v59 = vrot.slane %v16032_v20, 6 }
 0x692   :  { %v9432_v5 = vrot.slane %v16037_v9, 5  ;;  %17962 = vst [vmem:[#allocation37_spill] sm:$0xff] %v16072_v27  ;;  %v7428_v56 = vadd.f32 %v15653_v36, %v7357_v10  ;;  %v9438_v58 = vrot.slane %v16058_v23, 2  ;;  %v17963_v19 = vrot.slane %v15739_v15, 1 }
 0x693   :  { %v9434_v14 = vrot.slane %v16048_v38, 4  ;;  %v9436_v24 = vrot.slane %v16053_v52, 3  ;;  %v7360_v28 = vmul.f32 %v15623_v21, %v15640_v16  ;;  %v8977_v10 = vrot.slane %v17948_v49, 2 }
 0x694   :  { %v16080_v30 = vmax.f32 %v15739_v15, %v17963_v19  ;;  %v9433_v32 = vsel %vm17783_vm6, %v9432_v5, %v9431_v59  ;;  %v8978_v3 = vrot.slane %v17950_v53, 1  ;;  %v8981_v60 = vrot.slane %v15636_v47, 7 }
 0x695   :  { %v9435_v46 = vsel %vm17782_vm7, %v9434_v14, %v9433_v32  ;;  %v9440_v19 = vrot.slane %v16063_v48, 1  ;;  %v9443_v31 = vrot.slane %v16068_v39, 7  ;;  %v8983_v5 = vrot.slane %v15645_v29, 6 }
 0x696   :  { %v9437_v8 = vsel %vm17785_vm8, %v9436_v24, %v9435_v46  ;;  %v16094_v59 = vmax.f32 %v7428_v56, 0.0  ;;  %v7358_v32 = vmul.f32 %v15623_v21, %v15648_v57  ;;  %v8979_v14 = vsel %vm17783_vm6, %v8978_v3, %v8977_v10 }
 0x697   :  { %v9439_v16 = vsel %vm7542_vm9, %v9438_v58, %v9437_v8  ;;  %v7431_v12 = vadd.f32 %v15653_v36, %v7360_v28  ;;  %v8980_v24 = vsel %vm17782_vm7, %v17951_v2, %v8979_v14  ;;  %v8987_v46 = vrot.slane %v16002_v50, 4 }
 0x698   :  { %17964 = vst [vmem:[#allocation43_spill] sm:$0xff] %v16094_v59  ;;  %v9441_v15 = vsel %vm7545_vm10, %v9440_v19, %v9439_v16  ;;  %v8982_v55 = vsel %vm17785_vm8, %v8981_v60, %v8980_v24  ;;  %v8985_v58 = vrot.slane %v17954_v62, 5  ;;  %v9227_v57 = vrot.slane %v16037_v9, 7 }
 0x699   :  { %v9442_v56 = vsel %vm17784_vm11, %v16080_v30, %v9441_v15  ;;  %v8984_v3 = vsel %vm7542_vm9, %v8983_v5, %v8982_v55  ;;  %v8989_v28 = vrot.slane %v15987_v11, 3  ;;  %v9229_v10 = vrot.slane %v16048_v38, 6 }
 0x69a   :  { %v9444_v8 = vsel %vm7551_vm12, %v9443_v31, %v9442_v56  ;;  %v8986_v19 = vsel %vm7545_vm10, %v8985_v58, %v8984_v3  ;;  %v9228_v15 = vsel %vm17783_vm6, %v9227_v57, %v16032_v20  ;;  %v9231_v60 = vrot.slane %v16053_v52, 5 }
 0x69b   :  { %9463 = vrot.lane.b32.xlu1 %v9444_v8, %s11719_s23  ;;  %v9233_v16 = vrot.slane %v16058_v23, 4  ;;  %v8988_v14 = vsel %vm17784_vm11, %v8987_v46, %v8986_v19  ;;  %v9230_v31 = vsel %vm17782_vm7, %v9229_v10, %v9228_v15  ;;  %v9235_v55 = vrot.slane %v16063_v48, 3 }
 0x69c   :  { %v9237_v5 = vrot.slane %v16080_v30, 2  ;;  %v8990_v24 = vsel %vm7551_vm12, %v8989_v28, %v8988_v14  ;;  %v9232_v56 = vsel %vm17785_vm8, %v9231_v60, %v9230_v31  ;;  %v9045_v58 = vrot.slane %v17948_v49, 4 }
 0x69d   :  { %v9046_v57 = vrot.slane %v17950_v53, 3  ;;  %9021 = vrot.lane.b32.xlu0 %v8990_v24, %s11716_s19  ;;  %v9234_v8 = vsel %vm7542_vm9, %v9233_v16, %v9232_v56  ;;  %v9239_v46 = vrot.slane %v16068_v39, 1  ;;  %v9048_v3 = vrot.slane %v17951_v2, 2  ;;  %v17980_v53 = vld [vmem:[#allocation57_spill] sm:$0xff] }
 0x69e   :  { %v9050_v10 = vrot.slane %v15636_v47, 1  ;;  %v9236_v19 = vsel %vm7545_vm10, %v9235_v55, %v9234_v8  ;;  %v9053_v15 = vrot.slane %v17954_v62, 7  ;;  %v9055_v60 = vrot.slane %v16002_v50, 6 }
 0x69f   :  { %v9047_v28 = vsel %vm17783_vm6, %v9046_v57, %v9045_v58  ;;  %v9238_v14 = vsel %vm17784_vm11, %v9237_v5, %v9236_v19  ;;  %v7363_v16 = vmul.f32 %v15623_v21, %v15675_v37  ;;  %v7361_v24 = vmul.f32 %v15623_v21, %v15681_v42 }
 0x6a0   :  { %v9049_v31 = vsel %vm17782_vm7, %v9048_v3, %v9047_v28  ;;  %v9240_v56 = vsel %vm7551_vm12, %v9239_v46, %v9238_v14  ;;  %v9295_v58 = vrot.slane %v16032_v20, 2  ;;  %v9296_v57 = vrot.slane %v16037_v9, 1 }
 0x6a1   :  { %v9051_v55 = vsel %vm17785_vm8, %v9050_v10, %v9049_v31  ;;  %v16147_v8 = vmax.f32 %v7431_v12, 0.0  ;;  %v7429_v5 = vadd.f32 %v15653_v36, %v7358_v32  ;;  %9259 = vrot.lane.b32.xlu1 %v9240_v56, %s11720_s24  ;;  %v9299_v3 = vrot.slane %v16053_v52, 7 }
 0x6a2   :  { %v9052_v37 = vsel %vm7542_vm9, %v15645_v29, %v9051_v55  ;;  %v9057_v46 = vrot.slane %v15987_v11, 5  ;;  %v9297_v10 = vsel %vm17783_vm6, %v9296_v57, %v9295_v58  ;;  %v9301_v19 = vrot.slane %v16058_v23, 6 }
 0x6a3   :  { %17965 = vst [vmem:[#allocation42_spill] sm:$0xff] %v16147_v8  ;;  %v9054_v42 = vsel %vm7545_vm10, %v9053_v15, %v9052_v37  ;;  %v7434_v28 = vadd.f32 %v15653_v36, %v7363_v16  ;;  %v7432_v32 = vadd.f32 %v15653_v36, %v7361_v24  ;;  %v9298_v14 = vsel %vm17782_vm7, %v16048_v38, %v9297_v10  ;;  %v17966_v16 = vld [vmem:[#allocation55_spill] sm:$0xff] }
 0x6a4   :  { %v9056_v12 = vsel %vm17784_vm11, %v9055_v60, %v9054_v42  ;;  %v9300_v56 = vsel %vm17785_vm8, %v9299_v3, %v9298_v14  ;;  %v9303_v15 = vrot.slane %v16063_v48, 5  ;;  %v9305_v55 = vrot.slane %v16080_v30, 4 }
 0x6a5   :  { %v9058_v31 = vsel %vm7551_vm12, %v9057_v46, %v9056_v12  ;;  %v9302_v58 = vsel %vm7542_vm9, %v9301_v19, %v9300_v56  ;;  %v9307_v60 = vrot.slane %v16068_v39, 3  ;;  %v7364_v24 = vmul.f32 %v15623_v21, %v17966_v16 }
 0x6a6   :  { %9089 = vrot.lane.b32.xlu0 %v9058_v31, %s11717_s20  ;;  %v17741_v57 = vrot.slane %v15269_v34, 1  ;;  %v9304_v37 = vsel %vm7545_vm10, %v9303_v15, %v9302_v58  ;;  %v17740_v42 = vrot.slane %v15351_v41, 1  ;;  %v17738_v3 = vrot.slane %v15320_v51, 1  ;;  %v17971_v58 = vld [vmem:[#allocation56_spill] sm:$0xff] }
 0x6a7   :  { %v17739_v46 = vrot.slane %v15361_v25, 1  ;;  %v16177_v10 = vmax.f32 %v7429_v5, 0.0  ;;  %v16179_v12 = vmax.f32 %v7434_v28, 0.0  ;;  %v9306_v19 = vsel %vm17784_vm11, %v9305_v55, %v9304_v37 }
 0x6a8   :  { %v17969_v14 = vrot.slane %v15239_v35, 1  ;;  %v9308_v56 = vsel %vm7551_vm12, %v9307_v60, %v9306_v19  ;;  %v16191_v15 = vmax.f32 %v15269_v34, %v17741_v57  ;;  %v16196_v5 = vmax.f32 %v15351_v41, %v17740_v42  ;;  %v17972_v57 = vld [vmem:[#allocation61_spill] sm:$0xff] }
 0x6a9   :  { %17967 = vst [vmem:[#allocation55_spill] sm:$0xff] %v16177_v10  ;;  %17968 = vst [vmem:[#allocation77_spill] sm:$0xff] %v16179_v12  ;;  %v16201_v28 = vmax.f32 %v15320_v51, %v17738_v3  ;;  %v16203_v55 = vmax.f32 %v7432_v32, 0.0  ;;  %9327 = vrot.lane.b32.xlu1 %v9308_v56, %s11721_s25  ;;  %v16208_v60 = vmul.f32 %v15623_v21, %v17971_v58  ;;  %v9213_v37 = vrot.slane %v15921_v6, 7  ;;  %v17983_v10 = vld [vmem:[#allocation58_spill] sm:$0xff] }
 0x6aa   :  { %v16185_v31 = vmax.f32 %v15239_v35, %v17969_v14  ;;  %v16213_v16 = vmax.f32 %v15361_v25, %v17739_v46  ;;  %v16217_v19 = vadd.f32 %v15653_v36, %v7364_v24  ;;  %v9215_v14 = vrot.slane %v16042_v26, 6 }
 0x6ab   :  { %17970 = vst [vmem:[#allocation78_spill] sm:$0xff] %v16203_v55  ;;  %v9217_v32 = vrot.slane %v16191_v15, 5  ;;  %v9219_v56 = vrot.slane %v16196_v5, 4  ;;  %v9221_v58 = vrot.slane %v16201_v28, 3  ;;  %v9363_v46 = vrot.slane %v16032_v20, 4 }
 0x6ac   :  { %v9214_v21 = vsel %vm17783_vm6, %v9213_v37, %v16185_v31  ;;  %v9223_v3 = vrot.slane %v16213_v16, 2  ;;  %v9225_v24 = vrot.slane %v17972_v57, 1  ;;  %v9364_v11 = vrot.slane %v16037_v9, 3 }
 0x6ad   :  { %v9216_v42 = vsel %vm17782_vm7, %v9215_v14, %v9214_v21  ;;  %v9366_v62 = vrot.slane %v16048_v38, 2  ;;  %v9368_v47 = vrot.slane %v16053_v52, 1  ;;  %v9371_v37 = vrot.slane %v16063_v48, 7 }
 0x6ae   :  { %v9218_v50 = vsel %vm17785_vm8, %v9217_v32, %v9216_v42  ;;  %v9373_v49 = vrot.slane %v16080_v30, 6  ;;  %v9365_v20 = vsel %vm17783_vm6, %v9364_v11, %v9363_v46  ;;  %v9281_v14 = vrot.slane %v16185_v31, 2 }
 0x6af   :  { %v9220_v29 = vsel %vm7542_vm9, %v9219_v56, %v9218_v50  ;;  %v9282_v21 = vrot.slane %v15921_v6, 1  ;;  %v9367_v38 = vsel %vm17782_vm7, %v9366_v62, %v9365_v20  ;;  %v9285_v42 = vrot.slane %v16191_v15, 7 }
 0x6b0   :  { %v9222_v9 = vsel %vm7545_vm10, %v9221_v58, %v9220_v29  ;;  %v9287_v52 = vrot.slane %v16196_v5, 6  ;;  %v9369_v30 = vsel %vm17785_vm8, %v9368_v47, %v9367_v38  ;;  %v9375_v50 = vrot.slane %v16068_v39, 5 }
 0x6b1   :  { %v9224_v48 = vsel %vm17784_vm11, %v9223_v3, %v9222_v9  ;;  %v9283_v11 = vsel %vm17783_vm6, %v9282_v21, %v9281_v14  ;;  %v9370_v32 = vsel %vm7542_vm9, %v16058_v23, %v9369_v30  ;;  %v9291_v62 = vrot.slane %v16213_v16, 4 }
 0x6b2   :  { %v9226_v46 = vsel %vm7551_vm12, %v9225_v24, %v9224_v48  ;;  %v9284_v29 = vsel %vm17782_vm7, %v16042_v26, %v9283_v11  ;;  %v9372_v3 = vsel %vm7545_vm10, %v9371_v37, %v9370_v32  ;;  %v9289_v39 = vrot.slane %v16201_v28, 5 }
 0x6b3   :  { %9257 = vrot.lane.b32.xlu0 %v9226_v46, %s11720_s24  ;;  %v9286_v47 = vsel %vm17785_vm8, %v9285_v42, %v9284_v29  ;;  %v9349_v56 = vrot.slane %v16185_v31, 4  ;;  %v9374_v58 = vsel %vm17784_vm11, %v9373_v49, %v9372_v3  ;;  %v9350_v23 = vrot.slane %v15921_v6, 3  ;;  %v17974_v46 = vld [vmem:[#allocation34_spill] sm:$0xff]  ;;  %v17975_v3 = vld [vmem:[#allocation41_spill] sm:$0xff] }
 0x6b4   :  { %v9288_v24 = vsel %vm7542_vm9, %v9287_v52, %v9286_v47  ;;  %v9352_v20 = vrot.slane %v16042_v26, 2  ;;  %v9376_v14 = vsel %vm7551_vm12, %v9375_v50, %v9374_v58  ;;  %v9293_v37 = vrot.slane %v17972_v57, 3  ;;  %v17973_v50 = vld [vmem:[#allocation36_spill] sm:$0xff] }
 0x6b5   :  { %v9290_v21 = vsel %vm7545_vm10, %v9289_v39, %v9288_v24  ;;  %v9354_v9 = vrot.slane %v16191_v15, 1  ;;  %9395 = vrot.lane.b32.xlu1 %v9376_v14, %s11722_s26  ;;  %v9351_v49 = vsel %vm17783_vm6, %v9350_v23, %v9349_v56  ;;  %v9357_v42 = vrot.slane %v16201_v28, 7  ;;  %v17976_v39 = vld [vmem:[#allocation47_spill] sm:$0xff]  ;;  %v17977_v23 = vld [vmem:[#allocation40_spill] sm:$0xff] }
 0x6b6   :  { %v9292_v38 = vsel %vm17784_vm11, %v9291_v62, %v9290_v21  ;;  %v9359_v52 = vrot.slane %v16213_v16, 6  ;;  %v9353_v30 = vsel %vm17782_vm7, %v9352_v20, %v9351_v49  ;;  %v7967_v11 = vrot.slane %v17973_v50, 6  ;;  %v17978_v14 = vld [vmem:[#allocation71_spill] sm:$0xff] }
 0x6b7   :  { %v9294_v48 = vsel %vm7551_vm12, %v9293_v37, %v9292_v38  ;;  %v7968_v32 = vrot.slane %v17974_v46, 5  ;;  %v9355_v29 = vsel %vm17785_vm8, %v9354_v9, %v9353_v30  ;;  %v9361_v62 = vrot.slane %v17972_v57, 5  ;;  %v17979_v9 = vld [vmem:[#allocation62_spill] sm:$0xff] }
 0x6b8   :  { %9325 = vrot.lane.b32.xlu0 %v9294_v48, %s11721_s25  ;;  %v7970_v47 = vrot.slane %v17975_v3, 4  ;;  %v7974_v56 = vrot.slane %v17976_v39, 2  ;;  %v9356_v58 = vsel %vm7542_vm9, %v16196_v5, %v9355_v29  ;;  %v7972_v20 = vrot.slane %v17977_v23, 3 }
 0x6b9   :  { %v7969_v24 = vsel %vm17783_vm6, %v7968_v32, %v7967_v11  ;;  %v7981_v21 = vrot.slane %v17978_v14, 6  ;;  %v9358_v37 = vsel %vm7545_vm10, %v9357_v42, %v9356_v58  ;;  %v7982_v49 = vrot.slane %v17979_v9, 5  ;;  %v17981_v58 = vld [vmem:[#allocation46_spill] sm:$0xff] }
 0x6ba   :  { %v7971_v38 = vsel %vm17782_vm7, %v7970_v47, %v7969_v24  ;;  %v7984_v48 = vrot.slane %v15932_v44, 4  ;;  %v9360_v30 = vsel %vm17784_vm11, %v9359_v52, %v9358_v37  ;;  %v7979_v29 = vrot.slane %v17980_v53, 7 }
 0x6bb   :  { %v7973_v2 = vsel %vm17785_vm8, %v7972_v20, %v7971_v38  ;;  %v7988_v11 = vrot.slane %v16094_v59, 2  ;;  %v9362_v32 = vsel %vm7551_vm12, %v9361_v62, %v9360_v30  ;;  %v7983_v42 = vsel %vm17783_vm6, %v7982_v49, %v7981_v21 }
 0x6bc   :  { %v7975_v8 = vsel %vm7542_vm9, %v7974_v56, %v7973_v2  ;;  %v7986_v47 = vrot.slane %v15927_v7, 3  ;;  %9393 = vrot.lane.b32.xlu0 %v9362_v32, %s11722_s26  ;;  %v17982_v24 = vrot.slane %v17981_v58, 1  ;;  %v7985_v20 = vsel %vm17782_vm7, %v7984_v48, %v7983_v42 }
 0x6bd   :  { %v7990_v37 = vrot.slane %v16072_v27, 1  ;;  %v9417_v38 = vrot.slane %v16185_v31, 6  ;;  %v7993_v56 = vrot.slane %v16179_v12, 7  ;;  %v9418_v21 = vrot.slane %v15921_v6, 5 }
 0x6be   :  { %v7977_v52 = vsel %vm7545_vm10, %v17982_v24, %v7975_v8  ;;  %v7987_v2 = vsel %vm17785_vm8, %v7986_v47, %v7985_v20  ;;  %v7433_v49 = vadd.f32 %v15653_v36, %v16208_v60  ;;  %v9420_v30 = vrot.slane %v16042_v26, 4 }
 0x6bf   :  { %v7978_v62 = vsel %vm17784_vm11, %v17983_v10, %v7977_v52  ;;  %v7989_v48 = vsel %vm7542_vm9, %v7988_v11, %v7987_v2  ;;  %v9419_v32 = vsel %vm17783_vm6, %v9418_v21, %v9417_v38  ;;  %v9422_v42 = vrot.slane %v16191_v15, 3 }
 0x6c0   :  { %v7980_v8 = vsel %vm7551_vm12, %v7979_v29, %v7978_v62  ;;  %v7991_v31 = vsel %vm7545_vm10, %v7990_v37, %v7989_v48  ;;  %v9424_v47 = vrot.slane %v16196_v5, 2  ;;  %v9421_v36 = vsel %vm17782_vm7, %v9420_v30, %v9419_v32 }
 0x6c1   :  { %v7992_v6 = vsel %vm17784_vm11, %v16203_v55, %v7991_v31  ;;  %v9426_v60 = vrot.slane %v16201_v28, 1  ;;  %v9429_v29 = vrot.slane %v17972_v57, 7  ;;  %v9423_v11 = vsel %vm17785_vm8, %v9422_v42, %v9421_v36 }
 0x6c2   :  { %v7994_v26 = vsel %vm7551_vm12, %v7993_v56, %v7992_v6  ;;  %v17984_v24 = vrot.slane %v17973_v50, 1  ;;  %v7629_v5 = vrot.slane %v17975_v3, 7  ;;  %v9425_v20 = vsel %vm7542_vm9, %v9424_v47, %v9423_v11 }
 0x6c3   :  { %v11364_v52 = vpack.i.bf16 %v7994_v26, %v7980_v8  ;;  %v7631_v38 = vrot.slane %v17977_v23, 6  ;;  %v7633_v28 = vrot.slane %v17976_v39, 5  ;;  %v9427_v57 = vsel %vm7545_vm10, %v9426_v60, %v9425_v20 }
 0x6c4   :  { %v7628_v15 = vsel %vm17783_vm6, %v17974_v46, %v17984_v24  ;;  %v7635_v2 = vrot.slane %v17981_v58, 4  ;;  %v7637_v56 = vrot.slane %v17983_v10, 3  ;;  %v9428_v21 = vsel %vm17784_vm11, %v16213_v16, %v9427_v57 }
 0x6c5   :  { %v7630_v62 = vsel %vm17782_vm7, %v7629_v5, %v7628_v15  ;;  %11365 = vrot.lane.b32.xlu1 %v11364_v52, %s11722_s26  ;;  %v7641_v48 = vrot.slane %v17978_v14, 1  ;;  %v7643_v30 = vrot.slane %v15932_v44, 7  ;;  %v16346_v31 = vmax.f32 %v16217_v19, 0.0 }
 0x6c6   :  { %v7632_v8 = vsel %vm17785_vm8, %v7631_v38, %v7630_v62  ;;  %v9430_v32 = vsel %vm7551_vm12, %v9429_v29, %v9428_v21  ;;  %v7647_v47 = vrot.slane %v16094_v59, 5  ;;  %v16351_v6 = vmax.f32 %v7433_v49, 0.0 }
 0x6c7   :  { %v7634_v42 = vsel %vm7542_vm9, %v7633_v28, %v7632_v8  ;;  %9461 = vrot.lane.b32.xlu0 %v9430_v32, %s11719_s23  ;;  %v7642_v36 = vsel %vm17783_vm6, %v17979_v9, %v7641_v48  ;;  %v7645_v19 = vrot.slane %v15927_v7, 6  ;;  %v7639_v29 = vrot.slane %v17980_v53, 2 }
 0x6c8   :  { %v7636_v16 = vsel %vm7545_vm10, %v7635_v2, %v7634_v42  ;;  %v7644_v26 = vsel %vm17782_vm7, %v7643_v30, %v7642_v36  ;;  %v7651_v49 = vrot.slane %v16203_v55, 3  ;;  %v7649_v24 = vrot.slane %v16072_v27, 4 }
 0x6c9   :  { %v7638_v60 = vsel %vm17784_vm11, %v7637_v56, %v7636_v16  ;;  %v7646_v11 = vsel %vm17785_vm8, %v7645_v19, %v7644_v26  ;;  %v8379_v15 = vrot.slane %v15001_v40, 4  ;;  %v8380_v5 = vrot.slane %v14999_v17, 3 }
 0x6ca   :  { %v7640_v52 = vsel %vm7551_vm12, %v7639_v29, %v7638_v60  ;;  %v7648_v20 = vsel %vm7542_vm9, %v7647_v47, %v7646_v11  ;;  %v7653_v38 = vrot.slane %v16179_v12, 2  ;;  %v8382_v28 = vrot.slane %v15053_v33, 2 }
 0x6cb   :  { %v7650_v57 = vsel %vm7545_vm10, %v7649_v24, %v7648_v20  ;;  %v8381_v62 = vsel %vm17783_vm6, %v8380_v5, %v8379_v15  ;;  %v8387_v2 = vrot.slane %v15093_v4, 7  ;;  %v8393_v56 = vrot.slane %v15239_v35, 4 }
 0x6cc   :  { %v7652_v21 = vsel %vm17784_vm11, %v7651_v49, %v7650_v57  ;;  %v8383_v8 = vsel %vm17782_vm7, %v8382_v28, %v8381_v62  ;;  %v8394_v30 = vrot.slane %v15204_v13, 3  ;;  %v8396_v32 = vrot.slane %v15271_v22, 2 }
 0x6cd   :  { %v7654_v42 = vsel %vm7551_vm12, %v7653_v38, %v7652_v21  ;;  %v17985_v47 = vrot.slane %v15038_v43, 1  ;;  %v8389_v36 = vrot.slane %v15155_v61, 6  ;;  %v8391_v19 = vrot.slane %v15145_v18, 5 }
 0x6ce   :  { %v11369_v60 = vpack.i.bf16 %v7654_v42, %v7640_v52  ;;  %v8395_v26 = vsel %vm17783_vm6, %v8394_v30, %v8393_v56  ;;  %v8401_v49 = vrot.slane %v15320_v51, 7  ;;  %v8403_v24 = vrot.slane %v15361_v25, 6 }
 0x6cf   :  { %v8385_v16 = vsel %vm17785_vm8, %v17985_v47, %v8383_v8  ;;  %v8397_v11 = vsel %vm17782_vm7, %v8396_v32, %v8395_v26  ;;  %v7695_v15 = vrot.slane %v17973_v50, 2  ;;  %v7699_v5 = vrot.slane %v17977_v23, 7 }
 0x6d0   :  { %v8386_v29 = vsel %vm7542_vm9, %v15102_v45, %v8385_v16  ;;  %11370 = vrot.lane.b32.xlu1 %v11369_v60, %s11716_s19  ;;  %v17986_v52 = vrot.slane %v15269_v34, 1  ;;  %v8405_v28 = vrot.slane %v15356_v54, 5  ;;  %v7701_v57 = vrot.slane %v17976_v39, 6 }
 0x6d1   :  { %v8388_v20 = vsel %vm7545_vm10, %v8387_v2, %v8386_v29  ;;  %v17987_v21 = vrot.slane %v17974_v46, 1  ;;  %v7703_v30 = vrot.slane %v17981_v58, 5  ;;  %v7705_v42 = vrot.slane %v17983_v10, 4 }
 0x6d2   :  { %v8399_v38 = vsel %vm17785_vm8, %v17986_v52, %v8397_v11  ;;  %v8390_v62 = vsel %vm17784_vm11, %v8389_v36, %v8388_v20  ;;  %v7709_v47 = vrot.slane %v17978_v14, 2  ;;  %v7710_v60 = vrot.slane %v17979_v9, 1 }
 0x6d3   :  { %v8400_v56 = vsel %vm7542_vm9, %v15351_v41, %v8399_v38  ;;  %v7697_v8 = vsel %vm17783_vm6, %v17987_v21, %v7695_v15  ;;  %v7713_v29 = vrot.slane %v15927_v7, 7  ;;  %v8392_v26 = vsel %vm7551_vm12, %v8391_v19, %v8390_v62 }
 0x6d4   :  { %v8402_v2 = vsel %vm7545_vm10, %v8401_v49, %v8400_v56  ;;  %v7698_v32 = vsel %vm17782_vm7, %v17975_v3, %v7697_v8  ;;  %v7715_v15 = vrot.slane %v16094_v59, 6  ;;  %v16424_v20 = vmax.f32 %v16072_v27, %v7990_v37 }
 0x6d5   :  { %v8404_v16 = vsel %vm17784_vm11, %v8403_v24, %v8402_v2  ;;  %v7700_v36 = vsel %vm17785_vm8, %v7699_v5, %v7698_v32  ;;  %v7711_v52 = vsel %vm17783_vm6, %v7710_v60, %v7709_v47  ;;  %v7707_v38 = vrot.slane %v17980_v53, 3 }
 0x6d6   :  { %v8406_v11 = vsel %vm7551_vm12, %v8405_v28, %v8404_v16  ;;  %v7702_v49 = vsel %vm7542_vm9, %v7701_v57, %v7700_v36  ;;  %17988 = vst [vmem:[#allocation56_spill] sm:$0xff] %v16424_v20  ;;  %v7712_v28 = vsel %vm17782_vm7, %v15932_v44, %v7711_v52  ;;  %v7719_v57 = vrot.slane %v16203_v55, 4 }
 0x6d7   :  { %v11419_v24 = vpack.i.bf16 %v8406_v11, %v8392_v26  ;;  %v7704_v5 = vsel %vm7545_vm10, %v7703_v30, %v7702_v49  ;;  %v7714_v37 = vsel %vm17785_vm8, %v7713_v29, %v7712_v28  ;;  %v7717_v62 = vrot.slane %v16072_v27, 5 }
 0x6d8   :  { %v7706_v19 = vsel %vm17784_vm11, %v7705_v42, %v7704_v5  ;;  %v8447_v56 = vrot.slane %v15001_v40, 5  ;;  %v8448_v21 = vrot.slane %v14999_v17, 4  ;;  %v7716_v30 = vsel %vm7542_vm9, %v7715_v15, %v7714_v37 }
 0x6d9   :  { %11420 = vrot.lane.b32.xlu0 %v11419_v24, %s11727_s3  ;;  %v7708_v8 = vsel %vm7551_vm12, %v7707_v38, %v7706_v19  ;;  %v7721_v2 = vrot.slane %v16179_v12, 3  ;;  %v8450_v32 = vrot.slane %v15053_v33, 3  ;;  %v7718_v42 = vsel %vm7545_vm10, %v7717_v62, %v7716_v30 }
 0x6da   :  { %v8449_v47 = vsel %vm17783_vm6, %v8448_v21, %v8447_v56  ;;  %v8452_v16 = vrot.slane %v15038_v43, 2  ;;  %v8461_v36 = vrot.slane %v15239_v35, 5  ;;  %v7720_v29 = vsel %vm17784_vm11, %v7719_v57, %v7718_v42 }
 0x6db   :  { %v8451_v26 = vsel %vm17782_vm7, %v8450_v32, %v8449_v47  ;;  %v8462_v11 = vrot.slane %v15204_v13, 4  ;;  %v8464_v49 = vrot.slane %v15271_v22, 3  ;;  %v7722_v15 = vsel %vm7551_vm12, %v7721_v2, %v7720_v29 }
 0x6dc   :  { %v8453_v24 = vsel %vm17785_vm8, %v8452_v16, %v8451_v26  ;;  %v8457_v5 = vrot.slane %v15155_v61, 7  ;;  %v8459_v52 = vrot.slane %v15145_v18, 6  ;;  %v11374_v19 = vpack.i.bf16 %v7722_v15, %v7708_v8 }
 0x6dd   :  { %v17989_v38 = vrot.slane %v15102_v45, 1  ;;  %v8463_v57 = vsel %vm17783_vm6, %v8462_v11, %v8461_v36  ;;  %v8466_v37 = vrot.slane %v15269_v34, 2  ;;  %v8471_v56 = vrot.slane %v15361_v25, 7 }
 0x6de   :  { %v8465_v62 = vsel %vm17782_vm7, %v8464_v49, %v8463_v57  ;;  %v7763_v21 = vrot.slane %v17973_v50, 3  ;;  %v7764_v30 = vrot.slane %v17974_v46, 2  ;;  %11375 = vrot.lane.b32.xlu1 %v11374_v19, %s11717_s20  ;;  %v8473_v32 = vrot.slane %v15356_v54, 6 }
 0x6df   :  { %v8455_v28 = vsel %vm7542_vm9, %v17989_v38, %v8453_v24  ;;  %v8467_v2 = vsel %vm17785_vm8, %v8466_v37, %v8465_v62  ;;  %v7769_v42 = vrot.slane %v17976_v39, 7  ;;  %v17990_v16 = vrot.slane %v15351_v41, 1 }
 0x6e0   :  { %v8456_v8 = vsel %vm7545_vm10, %v15093_v4, %v8455_v28  ;;  %v7765_v29 = vsel %vm17783_vm6, %v7764_v30, %v7763_v21  ;;  %v7771_v26 = vrot.slane %v17981_v58, 6  ;;  %v17991_v49 = vrot.slane %v17975_v3, 1 }
 0x6e1   :  { %v8458_v47 = vsel %vm17784_vm11, %v8457_v5, %v8456_v8  ;;  %v8469_v36 = vsel %vm7542_vm9, %v17990_v16, %v8467_v2  ;;  %v7773_v24 = vrot.slane %v17983_v10, 5  ;;  %v7777_v19 = vrot.slane %v17978_v14, 3 }
 0x6e2   :  { %v8470_v11 = vsel %vm7545_vm10, %v15320_v51, %v8469_v36  ;;  %v7767_v15 = vsel %vm17782_vm7, %v17991_v49, %v7765_v29  ;;  %v7778_v28 = vrot.slane %v17979_v9, 2  ;;  %v7780_v57 = vrot.slane %v15932_v44, 1 }
 0x6e3   :  { %v8472_v5 = vsel %vm17784_vm11, %v8471_v56, %v8470_v11  ;;  %v7768_v38 = vsel %vm17785_vm8, %v17977_v23, %v7767_v15  ;;  %v8460_v37 = vsel %vm7551_vm12, %v8459_v52, %v8458_v47  ;;  %v7783_v30 = vrot.slane %v16094_v59, 7 }
 0x6e4   :  { %v8474_v62 = vsel %vm7551_vm12, %v8473_v32, %v8472_v5  ;;  %v7770_v21 = vsel %vm7542_vm9, %v7769_v42, %v7768_v38  ;;  %v16496_v8 = vmax.f32 %v17978_v14, %v7641_v48  ;;  %v7775_v2 = vrot.slane %v17980_v53, 4 }
 0x6e5   :  { %v11429_v56 = vpack.i.bf16 %v8474_v62, %v8460_v37  ;;  %v7779_v16 = vsel %vm17783_vm6, %v7778_v28, %v7777_v19  ;;  %v7772_v36 = vsel %vm7545_vm10, %v7771_v26, %v7770_v21  ;;  %v7785_v32 = vrot.slane %v16072_v27, 6 }
 0x6e6   :  { %17992 = vst [vmem:[#allocation61_spill] sm:$0xff] %v16496_v8  ;;  %v7781_v52 = vsel %vm17782_vm7, %v7780_v57, %v7779_v16  ;;  %v7787_v42 = vrot.slane %v16203_v55, 5  ;;  %v7774_v48 = vsel %vm17784_vm11, %v7773_v24, %v7772_v36  ;;  %v8515_v29 = vrot.slane %v15001_v40, 6 }
 0x6e7   :  { %11430 = vrot.lane.b32.xlu0 %v11429_v56, %s11728_s12  ;;  %v7782_v47 = vsel %vm17785_vm8, %v15927_v7, %v7781_v52  ;;  %v8516_v26 = vrot.slane %v14999_v17, 5  ;;  %v7789_v49 = vrot.slane %v16179_v12, 4  ;;  %v8518_v15 = vrot.slane %v15053_v33, 4 }
 0x6e8   :  { %v7784_v11 = vsel %vm7542_vm9, %v7783_v30, %v7782_v47  ;;  %v8522_v19 = vrot.slane %v15102_v45, 2  ;;  %v8520_v24 = vrot.slane %v15038_v43, 3  ;;  %v8529_v28 = vrot.slane %v15239_v35, 6 }
 0x6e9   :  { %v7786_v5 = vsel %vm7545_vm10, %v7785_v32, %v7784_v11  ;;  %v8517_v38 = vsel %vm17783_vm6, %v8516_v26, %v8515_v29  ;;  %v8530_v21 = vrot.slane %v15204_v13, 5  ;;  %v8532_v30 = vrot.slane %v15271_v22, 4 }
 0x6ea   :  { %v7788_v37 = vsel %vm17784_vm11, %v7787_v42, %v7786_v5  ;;  %v8519_v62 = vsel %vm17782_vm7, %v8518_v15, %v8517_v38  ;;  %v7776_v56 = vsel %vm7551_vm12, %v7775_v2, %v7774_v48  ;;  %v8536_v52 = vrot.slane %v15351_v41, 2 }
 0x6eb   :  { %v7790_v16 = vsel %vm7551_vm12, %v7789_v49, %v7788_v37  ;;  %v8521_v36 = vsel %vm17785_vm8, %v8520_v24, %v8519_v62  ;;  %v8531_v29 = vsel %vm17783_vm6, %v8530_v21, %v8529_v28  ;;  %v8534_v42 = vrot.slane %v15269_v34, 3 }
 0x6ec   :  { %v11379_v32 = vpack.i.bf16 %v7790_v16, %v7776_v56  ;;  %v8523_v47 = vsel %vm7542_vm9, %v8522_v19, %v8521_v36  ;;  %v8527_v26 = vrot.slane %v15145_v18, 7  ;;  %v8533_v11 = vsel %vm17782_vm7, %v8532_v30, %v8531_v29 }
 0x6ed   :  { %v7831_v15 = vrot.slane %v17973_v50, 4  ;;  %v7832_v2 = vrot.slane %v17974_v46, 3  ;;  %v17993_v48 = vrot.slane %v15093_v4, 1  ;;  %v8535_v19 = vsel %vm17785_vm8, %v8534_v42, %v8533_v11 }
 0x6ee   :  { %11380 = vrot.lane.b32.xlu1 %v11379_v32, %s11718_s22  ;;  %v8541_v5 = vrot.slane %v15356_v54, 7  ;;  %v7834_v38 = vrot.slane %v17975_v3, 2  ;;  %v8537_v28 = vsel %vm7542_vm9, %v8536_v52, %v8535_v19  ;;  %v7839_v62 = vrot.slane %v17981_v58, 7 }
 0x6ef   :  { %v8525_v49 = vsel %vm7545_vm10, %v17993_v48, %v8523_v47  ;;  %v7833_v37 = vsel %vm17783_vm6, %v7832_v2, %v7831_v15  ;;  %v17994_v21 = vrot.slane %v15320_v51, 1  ;;  %v7841_v16 = vrot.slane %v17983_v10, 6 }
 0x6f0   :  { %v8526_v24 = vsel %vm17784_vm11, %v15155_v61, %v8525_v49  ;;  %v7835_v56 = vsel %vm17782_vm7, %v7834_v38, %v7833_v37  ;;  %v7845_v36 = vrot.slane %v17978_v14, 4  ;;  %v17995_v47 = vrot.slane %v17977_v23, 1 }
 0x6f1   :  { %v8539_v30 = vsel %vm7545_vm10, %v17994_v21, %v8537_v28  ;;  %v7846_v29 = vrot.slane %v17979_v9, 3  ;;  %v7848_v42 = vrot.slane %v15932_v44, 2  ;;  %v8528_v11 = vsel %vm7551_vm12, %v8527_v26, %v8526_v24 }
 0x6f2   :  { %v8540_v32 = vsel %vm17784_vm11, %v15361_v25, %v8539_v30  ;;  %v7837_v52 = vsel %vm17785_vm8, %v17995_v47, %v7835_v56  ;;  %v7850_v48 = vrot.slane %v15927_v7, 1  ;;  %v7853_v28 = vrot.slane %v16072_v27, 7 }
 0x6f3   :  { %v8542_v15 = vsel %vm7551_vm12, %v8541_v5, %v8540_v32  ;;  %v7838_v2 = vsel %vm7542_vm9, %v17976_v39, %v7837_v52  ;;  %v7847_v38 = vsel %vm17783_vm6, %v7846_v29, %v7845_v36  ;;  %v7843_v21 = vrot.slane %v17980_v53, 5 }
 0x6f4   :  { %v11439_v49 = vpack.i.bf16 %v8542_v15, %v8528_v11  ;;  %v7840_v19 = vsel %vm7545_vm10, %v7839_v62, %v7838_v2  ;;  %v7849_v26 = vsel %vm17782_vm7, %v7848_v42, %v7847_v38  ;;  %v7855_v5 = vrot.slane %v16203_v55, 6 }
 0x6f5   :  { %v7842_v37 = vsel %vm17784_vm11, %v7841_v16, %v7840_v19  ;;  %v7851_v24 = vsel %vm17785_vm8, %v7850_v48, %v7849_v26  ;;  %v7857_v62 = vrot.slane %v16179_v12, 5  ;;  %v8583_v30 = vrot.slane %v15001_v40, 7 }
 0x6f6   :  { %11440 = vrot.lane.b32.xlu0 %v11439_v49, %s11729_s13  ;;  %v8584_v56 = vrot.slane %v14999_v17, 6  ;;  %v7844_v16 = vsel %vm7551_vm12, %v7843_v21, %v7842_v37  ;;  %v7852_v36 = vsel %vm7542_vm9, %v16094_v59, %v7851_v24  ;;  %v8586_v32 = vrot.slane %v15053_v33, 5 }
 0x6f7   :  { %v8590_v47 = vrot.slane %v15102_v45, 3  ;;  %v7854_v52 = vsel %vm7545_vm10, %v7853_v28, %v7852_v36  ;;  %v8588_v42 = vrot.slane %v15038_v43, 4  ;;  %v8597_v11 = vrot.slane %v15239_v35, 7 }
 0x6f8   :  { %v8585_v29 = vsel %vm17783_vm6, %v8584_v56, %v8583_v30  ;;  %v7856_v40 = vsel %vm17784_vm11, %v7855_v5, %v7854_v52  ;;  %v8598_v15 = vrot.slane %v15204_v13, 6  ;;  %v8600_v2 = vrot.slane %v15271_v22, 5  ;;  %v16618_v56 = vpop.permute.xlu0 %9155 }
 0x6f9   :  { %v8587_v17 = vsel %vm17782_vm7, %v8586_v32, %v8585_v29  ;;  %v7858_v33 = vsel %vm7551_vm12, %v7857_v62, %v7856_v40  ;;  %v8592_v49 = vrot.slane %v15093_v4, 2  ;;  %v8604_v19 = vrot.slane %v15351_v41, 3 }
 0x6fa   :  { %v8589_v45 = vsel %vm17785_vm8, %v8588_v42, %v8587_v17  ;;  %v11384_v38 = vpack.i.bf16 %v7858_v33, %v7844_v16  ;;  %v8599_v35 = vsel %vm17783_vm6, %v8598_v15, %v8597_v11  ;;  %v8602_v28 = vrot.slane %v15269_v34, 4 }
 0x6fb   :  { %v8591_v43 = vsel %vm7542_vm9, %v8590_v47, %v8589_v45  ;;  %v16602_v13 = vmax.f32 %v17979_v9, %v7710_v60  ;;  %v8601_v22 = vsel %vm17782_vm7, %v8600_v2, %v8599_v35  ;;  %v7899_v37 = vrot.slane %v17973_v50, 5 }
 0x6fc   :  { %v7900_v4 = vrot.slane %v17974_v46, 4  ;;  %11385 = vrot.lane.b32.xlu1 %v11384_v38, %s11720_s24  ;;  %v8593_v41 = vsel %vm7545_vm10, %v8592_v49, %v8591_v43  ;;  %v8603_v21 = vsel %vm17785_vm8, %v8602_v28, %v8601_v22  ;;  %v8606_v26 = vrot.slane %v15320_v51, 2 }
 0x6fd   :  { %17996 = vst [vmem:[#allocation36_spill] sm:$0xff] %v16602_v13  ;;  %v7902_v34 = vrot.slane %v17975_v3, 3  ;;  %v17997_v5 = vrot.slane %v15155_v61, 1  ;;  %v8605_v24 = vsel %vm7542_vm9, %v8604_v19, %v8603_v21  ;;  %v7904_v30 = vrot.slane %v17977_v23, 2 }
 0x6fe   :  { %v7901_v62 = vsel %vm17783_vm6, %v7900_v4, %v7899_v37  ;;  %v8607_v16 = vsel %vm7545_vm10, %v8606_v26, %v8605_v24  ;;  %v7909_v51 = vrot.slane %v17983_v10, 7  ;;  %v7913_v32 = vrot.slane %v17978_v14, 5  ;;  %v16651_v37 = vpop.permute.xlu0 %9019 }
 0x6ff   :  { %v8595_v60 = vsel %vm17784_vm11, %v17997_v5, %v8593_v41  ;;  %v7903_v36 = vsel %vm17782_vm7, %v7902_v34, %v7901_v62  ;;  %v17998_v61 = vrot.slane %v15361_v25, 1  ;;  %v7914_v29 = vrot.slane %v17979_v9, 4 }
 0x700   :  { %v7905_v52 = vsel %vm17785_vm8, %v7904_v30, %v7903_v36  ;;  %v7916_v42 = vrot.slane %v15932_v44, 3  ;;  %v8596_v11 = vsel %vm7551_vm12, %v15145_v18, %v8595_v60  ;;  %v17999_v17 = vrot.slane %v17976_v39, 1 }
 0x701   :  { %v8609_v47 = vsel %vm17784_vm11, %v17998_v61, %v8607_v16  ;;  %v7920_v25 = vrot.slane %v16094_v59, 1  ;;  %v7915_v45 = vsel %vm17783_vm6, %v7914_v29, %v7913_v32  ;;  %v7918_v49 = vrot.slane %v15927_v7, 2 }
 0x702   :  { %v8610_v40 = vsel %vm7551_vm12, %v15356_v54, %v8609_v47  ;;  %v7907_v15 = vsel %vm7542_vm9, %v17999_v17, %v7905_v52  ;;  %v7911_v18 = vrot.slane %v17980_v53, 6  ;;  %v7917_v54 = vsel %vm17782_vm7, %v7916_v42, %v7915_v45  ;;  %v16679_v45 = vpop.permute.xlu0 %9087 }
 0x703   :  { %v11449_v2 = vpack.i.bf16 %v8610_v40, %v8596_v11  ;;  %v7908_v33 = vsel %vm7545_vm10, %v17981_v58, %v7907_v15  ;;  %v7923_v38 = vrot.slane %v16203_v55, 7  ;;  %v7919_v43 = vsel %vm17785_vm8, %v7918_v49, %v7917_v54 }
 0x704   :  { %v7910_v19 = vsel %vm17784_vm11, %v7909_v51, %v7908_v33  ;;  %v7925_v35 = vrot.slane %v16179_v12, 6  ;;  %v8035_v28 = vrot.slane %v17973_v50, 7  ;;  %v8036_v22 = vrot.slane %v17974_v46, 6 }
 0x705   :  { %11450 = vrot.lane.b32.xlu0 %v11449_v2, %s11730_s14  ;;  %v7912_v4 = vsel %vm7551_vm12, %v7911_v18, %v7910_v19  ;;  %v7921_v41 = vsel %vm7542_vm9, %v7920_v25, %v7919_v43  ;;  %v8038_v21 = vrot.slane %v17975_v3, 5  ;;  %v8042_v26 = vrot.slane %v17976_v39, 3  ;;  %v18000_v2 = vld [vmem:[#allocation10_spill] sm:$0xff] }
 0x706   :  { %v7922_v34 = vsel %vm7545_vm10, %v16072_v27, %v7921_v41  ;;  %v8037_v5 = vsel %vm17783_vm6, %v8036_v22, %v8035_v28  ;;  %v8040_v60 = vrot.slane %v17977_v23, 4  ;;  %v8049_v24 = vrot.slane %v17978_v14, 7  ;;  %v18003_v28 = vld [vmem:[#allocation12_spill] sm:$0xff] }
 0x707   :  { %v7924_v62 = vsel %vm17784_vm11, %v7923_v38, %v7922_v34  ;;  %v8039_v30 = vsel %vm17782_vm7, %v8038_v21, %v8037_v5  ;;  %v8050_v16 = vrot.slane %v17979_v9, 6  ;;  %v8052_v36 = vrot.slane %v15932_v44, 5  ;;  %v18002_v38 = vld [vmem:[#allocation13_spill] sm:$0xff]  ;;  %v18005_v21 = vld [vmem:[#allocation18_spill] sm:$0xff] }
 0x708   :  { %v7926_v51 = vsel %vm7551_vm12, %v7925_v35, %v7924_v62  ;;  %v8041_v32 = vsel %vm17785_vm8, %v8040_v60, %v8039_v30  ;;  %v8044_v61 = vrot.slane %v17981_v58, 2  ;;  %v8056_v47 = vrot.slane %v16094_v59, 3 }
 0x709   :  { %v11389_v52 = vpack.i.bf16 %v7926_v51, %v7912_v4  ;;  %v8043_v29 = vsel %vm7542_vm9, %v8042_v26, %v8041_v32  ;;  %v8051_v42 = vsel %vm17783_vm6, %v8050_v16, %v8049_v24  ;;  %v8054_v11 = vrot.slane %v15927_v7, 4  ;;  %v18004_v4 = vld [vmem:[#allocation16_spill] sm:$0xff]  ;;  %v18006_v24 = vld [vmem:[#allocation25_spill] sm:$0xff] }
 0x70a   :  { %v8045_v40 = vsel %vm7545_vm10, %v8044_v61, %v8043_v29  ;;  %v8053_v17 = vsel %vm17782_vm7, %v8052_v36, %v8051_v42  ;;  %v8060_v15 = vrot.slane %v16203_v55, 1  ;;  %v8903_v33 = vrot.slane %v18000_v2, 7  ;;  %v18007_v36 = vld [vmem:[#allocation15_spill] sm:$0xff]  ;;  %v18009_v2 = vld [vmem:[#allocation52_spill] sm:$0xff] }
 0x70b   :  { %11390 = vrot.lane.b32.xlu1 %v11389_v52, %s11721_s25  ;;  %v18001_v49 = vrot.slane %v17983_v10, 1  ;;  %v8055_v18 = vsel %vm17785_vm8, %v8054_v11, %v8053_v17  ;;  %v8058_v54 = vrot.slane %v16072_v27, 2  ;;  %v8905_v43 = vrot.slane %v18002_v38, 6 }
 0x70c   :  { %v8057_v35 = vsel %vm7542_vm9, %v8056_v47, %v8055_v18  ;;  %v8904_v22 = vsel %vm17783_vm6, %v8903_v33, %v18003_v28  ;;  %v8907_v41 = vrot.slane %v18004_v4, 5  ;;  %v8909_v26 = vrot.slane %v18005_v21, 4  ;;  %v18010_v18 = vld [vmem:[#allocation24_spill] sm:$0xff] }
 0x70d   :  { %v8047_v19 = vsel %vm17784_vm11, %v18001_v49, %v8045_v40  ;;  %v8059_v5 = vsel %vm7545_vm10, %v8058_v54, %v8057_v35  ;;  %v8906_v60 = vsel %vm17782_vm7, %v8905_v43, %v8904_v22  ;;  %v8913_v62 = vrot.slane %v18006_v24, 2  ;;  %v18008_v40 = vld [vmem:[#allocation38_spill] sm:$0xff]  ;;  %v16713_v49 = vpop.permute.xlu0 %9459  ;;  %v18011_v43 = vld [vmem:[#allocation60_spill] sm:$0xff]  ;;  %v18012_v22 = vld [vmem:[#allocation51_spill] sm:$0xff] }
 0x70e   :  { %v8048_v34 = vsel %vm7551_vm12, %v17980_v53, %v8047_v19  ;;  %v8061_v30 = vsel %vm17784_vm11, %v8060_v15, %v8059_v5  ;;  %v8908_v16 = vsel %vm17785_vm8, %v8907_v41, %v8906_v60  ;;  %v8911_v51 = vrot.slane %v18007_v36, 3  ;;  %v18013_v41 = vld [vmem:[#allocation48_spill] sm:$0xff]  ;;  %v18042_v53 = vld [vmem:[#allocation17_spill] sm:$0xff] }
 0x70f   :  { %v8135_v32 = vrot.slane %v17957_v63, 7  ;;  %v8062_v61 = vsel %vm7551_vm12, %v16179_v12, %v8061_v30  ;;  %v8910_v47 = vsel %vm7542_vm9, %v8909_v26, %v8908_v16  ;;  %v8137_v52 = vrot.slane %v17958_v1, 6  ;;  %v18014_v26 = vld [vmem:[#allocation76_spill] sm:$0xff] }
 0x710   :  { %v8139_v29 = vrot.slane %v17959_v0, 5  ;;  %v11394_v42 = vpack.i.bf16 %v8062_v61, %v8048_v34  ;;  %v8912_v11 = vsel %vm7545_vm10, %v8911_v51, %v8910_v47  ;;  %v8141_v33 = vrot.slane %v18009_v2, 4  ;;  %v18018_v51 = vld [vmem:[#allocation49_spill] sm:$0xff] }
 0x711   :  { %v8136_v17 = vsel %vm17783_vm6, %v8135_v32, %v18008_v40  ;;  %v8914_v19 = vsel %vm17784_vm11, %v8913_v62, %v8912_v11  ;;  %v8915_v54 = vrot.slane %v18010_v18, 1  ;;  %v8145_v35 = vrot.slane %v18011_v43, 2  ;;  %v18017_v62 = vld [vmem:[#allocation55_spill] sm:$0xff]  ;;  %v18019_v61 = vld [vmem:[#allocation73_spill] sm:$0xff] }
 0x712   :  { %v8138_v38 = vsel %vm17782_vm7, %v8137_v52, %v8136_v17  ;;  %11395 = vrot.lane.b32.xlu1 %v11394_v42, %s11719_s23  ;;  %v8143_v4 = vrot.slane %v18012_v22, 3  ;;  %v8149_v21 = vrot.slane %v18013_v41, 7  ;;  %v8151_v34 = vrot.slane %v18014_v26, 6  ;;  %v18021_v11 = vld [vmem:[#allocation59_spill] sm:$0xff] }
 0x713   :  { %v8140_v28 = vsel %vm17785_vm8, %v8139_v29, %v8138_v38  ;;  %v16727_v5 = vmax.f32 %v15932_v44, %v7780_v57  ;;  %v16732_v60 = vmax.f32 %v15927_v7, %v7850_v48  ;;  %v8155_v30 = vrot.slane %v18017_v62, 4  ;;  %v18020_v29 = vld [vmem:[#allocation42_spill] sm:$0xff]  ;;  %v16751_v38 = vpop.permute.xlu0 %9255 }
 0x714   :  { %v8142_v24 = vsel %vm7542_vm9, %v8141_v33, %v8140_v28  ;;  %v8916_v16 = vsel %vm7551_vm12, %v8915_v54, %v8914_v19  ;;  %v8150_v32 = vsel %vm17783_vm6, %v8149_v21, %v18018_v51  ;;  %v8153_v47 = vrot.slane %v18019_v61, 5 }
 0x715   :  { %18015 = vst [vmem:[#allocation34_spill] sm:$0xff] %v16727_v5  ;;  %18016 = vst [vmem:[#allocation41_spill] sm:$0xff] %v16732_v60  ;;  %v8144_v36 = vsel %vm7545_vm10, %v8143_v4, %v8142_v24  ;;  %v8152_v52 = vsel %vm17782_vm7, %v8151_v34, %v8150_v32  ;;  %v8157_v48 = vrot.slane %v18020_v29, 3  ;;  %v8159_v42 = vrot.slane %v16351_v6, 2 }
 0x716   :  { %v8146_v57 = vsel %vm17784_vm11, %v8145_v35, %v8144_v36  ;;  %v18022_v17 = vrot.slane %v18021_v11, 1  ;;  %v8154_v19 = vsel %vm17785_vm8, %v8153_v47, %v8152_v52  ;;  %v17753_v18 = vrot.slane %v16346_v31, 1 }
 0x717   :  { %v8205_v54 = vrot.slane %v17958_v1, 7  ;;  %v8156_v35 = vsel %vm7542_vm9, %v8155_v30, %v8154_v19  ;;  %v18023_v28 = vrot.slane %v18008_v40, 1  ;;  %v8207_v21 = vrot.slane %v17959_v0, 6 }
 0x718   :  { %v8148_v33 = vsel %vm7551_vm12, %v18022_v17, %v8146_v57  ;;  %v8209_v34 = vrot.slane %v18009_v2, 5  ;;  %v8158_v24 = vsel %vm7545_vm10, %v8157_v48, %v8156_v35  ;;  %v8211_v32 = vrot.slane %v18012_v22, 4 }
 0x719   :  { %v8204_v4 = vsel %vm17783_vm6, %v17957_v63, %v18023_v28  ;;  %v8213_v47 = vrot.slane %v18011_v43, 3  ;;  %v8160_v57 = vsel %vm17784_vm11, %v8159_v42, %v8158_v24  ;;  %v8215_v52 = vrot.slane %v18021_v11, 2 }
 0x71a   :  { %v8206_v36 = vsel %vm17782_vm7, %v8205_v54, %v8204_v4  ;;  %v17752_v17 = vrot.slane %v18018_v51, 1  ;;  %v8162_v19 = vsel %vm7551_vm12, %v17753_v18, %v8160_v57  ;;  %v8219_v54 = vrot.slane %v18014_v26, 7 }
 0x71b   :  { %v8208_v30 = vsel %vm17785_vm8, %v8207_v21, %v8206_v36  ;;  %v8221_v35 = vrot.slane %v18019_v61, 6  ;;  %v11399_v28 = vpack.i.bf16 %v8162_v19, %v8148_v33  ;;  %v8223_v21 = vrot.slane %v18017_v62, 5 }
 0x71c   :  { %v8210_v48 = vsel %vm7542_vm9, %v8209_v34, %v8208_v30  ;;  %v8218_v42 = vsel %vm17783_vm6, %v18013_v41, %v17752_v17  ;;  %v9471_v24 = vsel %vm6097_vm2, %v8916_v16, %v16651_v37  ;;  %v8227_v57 = vrot.slane %v16351_v6, 3  ;;  %v16785_v30 = vpop.permute.xlu0 %9323 }
 0x71d   :  { %v8212_v4 = vsel %vm7545_vm10, %v8211_v32, %v8210_v48  ;;  %v8220_v34 = vsel %vm17782_vm7, %v8219_v54, %v8218_v42  ;;  %11400 = vrot.lane.b32.xlu1 %v11399_v28, %s11723_s6  ;;  %v8225_v19 = vrot.slane %v18020_v29, 4  ;;  %v8271_v48 = vrot.slane %v18008_v40, 2 }
 0x71e   :  { %v8214_v36 = vsel %vm17784_vm11, %v8213_v47, %v8212_v4  ;;  %v8222_v32 = vsel %vm17785_vm8, %v8221_v35, %v8220_v34  ;;  %v8229_v16 = vrot.slane %v16346_v31, 2  ;;  %v8275_v47 = vrot.slane %v17959_v0, 7 }
 0x71f   :  { %v8216_v33 = vsel %vm7551_vm12, %v8215_v52, %v8214_v36  ;;  %v8224_v37 = vsel %vm7542_vm9, %v8223_v21, %v8222_v32  ;;  %v8277_v54 = vrot.slane %v18009_v2, 6  ;;  %v18024_v28 = vrot.slane %v17957_v63, 1 }
 0x720   :  { %v8226_v4 = vsel %vm7545_vm10, %v8225_v19, %v8224_v37  ;;  %v8279_v35 = vrot.slane %v18012_v22, 5  ;;  %v8281_v42 = vrot.slane %v18011_v43, 4  ;;  %v8285_v34 = vrot.slane %v18018_v51, 2 }
 0x721   :  { %v8273_v52 = vsel %vm17783_vm6, %v18024_v28, %v8271_v48  ;;  %v8228_v36 = vsel %vm17784_vm11, %v8227_v57, %v8226_v4  ;;  %v17756_v32 = vrot.slane %v18013_v41, 1  ;;  %v8289_v37 = vrot.slane %v18019_v61, 7 }
 0x722   :  { %v8274_v21 = vsel %vm17782_vm7, %v17958_v1, %v8273_v52  ;;  %v8230_v17 = vsel %vm7551_vm12, %v8229_v16, %v8228_v36  ;;  %v8291_v48 = vrot.slane %v18017_v62, 6  ;;  %v9475_v28 = vsel %vm6170_vm4, %v9471_v24, %v16679_v45  ;;  %v16817_v52 = vpop.permute.xlu0 %9391 }
 0x723   :  { %v8276_v19 = vsel %vm17785_vm8, %v8275_v47, %v8274_v21  ;;  %v11404_v18 = vpack.i.bf16 %v8230_v17, %v8216_v33  ;;  %v8287_v4 = vsel %vm17783_vm6, %v17756_v32, %v8285_v34  ;;  %v8283_v47 = vrot.slane %v18021_v11, 3 }
 0x724   :  { %v8278_v57 = vsel %vm7542_vm9, %v8277_v54, %v8276_v19  ;;  %v8288_v36 = vsel %vm17782_vm7, %v18014_v26, %v8287_v4  ;;  %v8295_v21 = vrot.slane %v16351_v6, 4  ;;  %v8293_v24 = vrot.slane %v18020_v29, 5 }
 0x725   :  { %v8280_v16 = vsel %vm7545_vm10, %v8279_v35, %v8278_v57  ;;  %11405 = vrot.lane.b32.xlu1 %v11404_v18, %s11724_s10  ;;  %v8290_v17 = vsel %vm17785_vm8, %v8289_v37, %v8288_v36  ;;  %v16831_v33 = vmax.f32 %v16094_v59, %v7920_v25  ;;  %v8297_v35 = vrot.slane %v16346_v31, 3 }
 0x726   :  { %v8282_v45 = vsel %vm17784_vm11, %v8281_v42, %v8280_v16  ;;  %v8292_v54 = vsel %vm7542_vm9, %v8291_v48, %v8290_v17  ;;  %v8339_v34 = vrot.slane %v18008_v40, 3  ;;  %v9479_v19 = vsel %vm6259_vm5, %v9475_v28, %v16618_v56  ;;  %v16841_v57 = vpop.permute.xlu0 %11310 }
 0x727   :  { %18025 = vst [vmem:[#allocation47_spill] sm:$0xff] %v16831_v33  ;;  %v8284_v18 = vsel %vm7551_vm12, %v8283_v47, %v8282_v45  ;;  %v8294_v42 = vsel %vm7545_vm10, %v8293_v24, %v8292_v54  ;;  %v8340_v37 = vrot.slane %v17957_v63, 2  ;;  %v9483_v48 = vsel %vm8663_vm13, %v9479_v19, %v16751_v38 }
 0x728   :  { %v8296_v25 = vsel %vm17784_vm11, %v8295_v21, %v8294_v42  ;;  %v8345_v4 = vrot.slane %v18009_v2, 7  ;;  %v8349_v16 = vrot.slane %v18011_v43, 5  ;;  %v8353_v45 = vrot.slane %v18018_v51, 3 }
 0x729   :  { %v8298_v47 = vsel %vm7551_vm12, %v8297_v35, %v8296_v25  ;;  %v8341_v36 = vsel %vm17783_vm6, %v8340_v37, %v8339_v34  ;;  %v8354_v56 = vrot.slane %v18013_v41, 2  ;;  %v18026_v17 = vrot.slane %v17958_v1, 1 }
 0x72a   :  { %v11409_v28 = vpack.i.bf16 %v8298_v47, %v8284_v18  ;;  %v17755_v24 = vrot.slane %v18014_v26, 1  ;;  %v8359_v38 = vrot.slane %v18017_v62, 7  ;;  %v8347_v35 = vrot.slane %v18012_v22, 6 }
 0x72b   :  { %v8343_v21 = vsel %vm17782_vm7, %v18026_v17, %v8341_v36  ;;  %v8351_v34 = vrot.slane %v18021_v11, 4  ;;  %v8355_v42 = vsel %vm17783_vm6, %v8354_v56, %v8353_v45  ;;  %v8361_v37 = vrot.slane %v18020_v29, 6  ;;  %v16873_v56 = vpop.permute.xlu0 %11315 }
 0x72c   :  { %v8344_v54 = vsel %vm17785_vm8, %v17959_v0, %v8343_v21  ;;  %11410 = vrot.lane.b32.xlu1 %v11409_v28, %s11725_s2  ;;  %v8357_v19 = vsel %vm17782_vm7, %v17755_v24, %v8355_v42  ;;  %v8363_v25 = vrot.slane %v16351_v6, 5  ;;  %v17754_v45 = vrot.slane %v16179_v12, 1 }
 0x72d   :  { %v8346_v18 = vsel %vm7542_vm9, %v8345_v4, %v8344_v54  ;;  %v8358_v36 = vsel %vm17785_vm8, %v18019_v61, %v8357_v19  ;;  %v8365_v17 = vrot.slane %v16346_v31, 4  ;;  %v9487_v21 = vsel %vm8668_vm14, %v9483_v48, %v16785_v30 }
 0x72e   :  { %v8348_v47 = vsel %vm7545_vm10, %v8347_v35, %v8346_v18  ;;  %v8360_v28 = vsel %vm7542_vm9, %v8359_v38, %v8358_v36  ;;  %v16885_v42 = vmax.f32 %v16203_v55, %v8060_v15  ;;  %v9141_v18 = vrot.slane %v16496_v8, 6 }
 0x72f   :  { %v8350_v4 = vsel %vm17784_vm11, %v8349_v16, %v8348_v47  ;;  %v8362_v35 = vsel %vm7545_vm10, %v8361_v37, %v8360_v28  ;;  %v16892_v38 = vmax.f32 %v16179_v12, %v17754_v45  ;;  %v9142_v30 = vrot.slane %v16602_v13, 5 }
 0x730   :  { %v8352_v54 = vsel %vm7551_vm12, %v8351_v34, %v8350_v4  ;;  %18027 = vst [vmem:[#allocation62_spill] sm:$0xff] %v16885_v42  ;;  %v8364_v16 = vsel %vm17784_vm11, %v8363_v25, %v8362_v35  ;;  %v9144_v48 = vrot.slane %v16727_v5, 4  ;;  %v9146_v19 = vrot.slane %v16732_v60, 3  ;;  %v16904_v35 = vpop.permute.xlu0 %11320 }
 0x731   :  { %18028 = vst [vmem:[#allocation10_spill] sm:$0xff] %v16892_v38  ;;  %v8366_v34 = vsel %vm7551_vm12, %v8365_v17, %v8364_v16  ;;  %v9148_v15 = vrot.slane %v16831_v33, 2  ;;  %v9150_v37 = vrot.slane %v16424_v20, 1  ;;  %v9143_v25 = vsel %vm17783_vm6, %v9142_v30, %v9141_v18 }
 0x732   :  { %v11414_v47 = vpack.i.bf16 %v8366_v34, %v8352_v54  ;;  %v9145_v36 = vsel %vm17782_vm7, %v9144_v48, %v9143_v25  ;;  %v9507_v4 = vlaneseq  ;;  %v9491_v28 = vsel %vm17781_vm15, %v9487_v21, %v16817_v52 }
 0x733   :  { %v9147_v17 = vsel %vm17785_vm8, %v9146_v19, %v9145_v36  ;;  %v9153_v16 = vrot.slane %v16892_v38, 7  ;;  %v11731_v45 = vmov 1983009808   ;;  %v9005_v18 = vrot.slane %v16496_v8, 2 }
 0x734   :  { %11415 = vrot.lane.b32.xlu1 %v11414_v47, %s11726_s11  ;;  %v9505_v54 = vunpack.c.l.s4 %v11731_v45  ;;  %v9149_v30 = vsel %vm7542_vm9, %v9148_v15, %v9147_v17  ;;  %v9508_v34 = vshrl.u32 %v9507_v4, 7  ;;  %v9495_v48 = vsel %vm8678_vm0, %v9491_v28, %v16713_v49 }
 0x735   :  { %v9006_v52 = vrot.slane %v16602_v13, 1  ;;  %v9151_v21 = vsel %vm7545_vm10, %v9150_v37, %v9149_v30  ;;  %v9009_v47 = vrot.slane %v16732_v60, 7  ;;  %v9011_v19 = vrot.slane %v16831_v33, 6 }
 0x736   :  { %v9506_v25 = vunpack.c.0.s8 %v9505_v54  ;;  %v9152_v45 = vsel %vm17784_vm11, %v16885_v42, %v9151_v21  ;;  %v9503_v37 = vcombine.high %v9495_v48, %v9495_v48  ;;  %v9015_v17 = vrot.slane %v16885_v42, 4  ;;  %v16928_v54 = vpop.permute.xlu0 %11325 }
 0x737   :  { %v9007_v36 = vsel %vm17783_vm6, %v9006_v52, %v9005_v18  ;;  %v9154_v15 = vsel %vm7551_vm12, %v9153_v16, %v9152_v45  ;;  %v9013_v18 = vrot.slane %v16424_v20, 5  ;;  %v9073_v16 = vrot.slane %v16496_v8, 4 }
 0x738   :  { %v9008_v4 = vsel %vm17782_vm7, %v16727_v5, %v9007_v36  ;;  %9161 = vrot.lane.b32.xlu1 %v9154_v15, %s11718_s22  ;;  %v16924_v49 = vsub.s32 %v9506_v25, %v9508_v34  ;;  %v9074_v52 = vrot.slane %v16602_v13, 3  ;;  %v9076_v21 = vrot.slane %v16727_v5, 2  ;;  %v18036_v5 = vld [vmem:[#allocation21_spill] sm:$0xff]  ;;  %v18037_v13 = vld [vmem:[#allocation14_spill] sm:$0xff] }
 0x739   :  { %v9010_v28 = vsel %vm17785_vm8, %v9009_v47, %v9008_v4  ;;  %v9017_v45 = vrot.slane %v16892_v38, 3 }
 0x73a   :  { %18029 = vst [vmem:[#allocation13_spill] sm:$0xff] %v16924_v49  ;;  %v9012_v30 = vsel %vm7542_vm9, %v9011_v19, %v9010_v28  ;;  %v9510_v25 = vrot.slane %v9495_v48, %v16924_v49  ;;  %v9517_v36 = vrot.slane %v9503_v37, %v16924_v49  ;;  %v9075_v19 = vsel %vm17783_vm6, %v9074_v52, %v9073_v16  ;;  %v16943_v28 = vpop.permute.xlu0 %11330 }
 0x73b   :  { %v9014_v34 = vsel %vm7545_vm10, %v9013_v18, %v9012_v30  ;;  %v9077_v4 = vsel %vm17782_vm7, %v9076_v21, %v9075_v19  ;;  %v9078_v30 = vrot.slane %v16732_v60, 1  ;;  %v9081_v48 = vrot.slane %v16424_v20, 7 }
 0x73c   :  { %v9016_v47 = vsel %vm17784_vm11, %v9015_v17, %v9014_v34  ;;  %v9518_v18 = vcombine.high %v9510_v25, %v9510_v25  ;;  %v9083_v17 = vrot.slane %v16885_v42, 6  ;;  %v9519_v34 = vcombine.high %v9517_v36, %v9517_v36 }
 0x73d   :  { %v9018_v15 = vsel %vm7551_vm12, %v9017_v45, %v9016_v47  ;;  %v10297_v24 = vrot.slane %v9510_v25, 9  ;;  %v9079_v37 = vsel %vm17785_vm8, %v9078_v30, %v9077_v4  ;;  %v10299_v16 = vrot.slane %v9517_v36, 9  ;;  %v16959_v4 = vpop.permute.xlu1 %9159  ;;  %v18031_v30 = vld [vmem:[#allocation20_spill] sm:$0xff] }
 0x73e   :  { %9025 = vrot.lane.b32.xlu1 %v9018_v15, %s11716_s19  ;;  %v9080_v52 = vsel %vm7542_vm9, %v16831_v33, %v9079_v37  ;;  %v9085_v47 = vrot.slane %v16892_v38, 5  ;;  %v10298_v45 = vrot.slane %v9518_v18, 9  ;;  %v16955_v15 = vpop.permute.xlu0 %11335  ;;  %v10300_v32 = vrot.slane %v9519_v34, 9  ;;  %18030 = vst [vmem:[#allocation12_spill] sm:$0xff] %v16959_v4  ;;  %s11732_s19 = smov [#allocation6]  }
 0x73f   :  { %v9082_v21 = vsel %vm7545_vm10, %v9081_v48, %v9080_v52  ;;  %v9635_v20 = vmax.f32 %v9510_v25, %v10297_v24  ;;  %v9637_v60 = vmax.f32 %v9517_v36, %v10299_v16  ;;  %v7532_v37 = vrot.slane %v18031_v30, 7 }
 0x740   :  { %v9084_v19 = vsel %vm17784_vm11, %v9083_v17, %v9082_v21  ;;  %v18032_v48 = vrot.slane %v16346_v31, 1  ;;  %v18033_v17 = vrot.slane %v18013_v41, 1  ;;  %v18034_v24 = vrot.slane %v18014_v26, 1 }
 0x741   :  { %v9086_v42 = vsel %vm7551_vm12, %v9085_v47, %v9084_v19  ;;  %v9638_v36 = vmax.f32 %v9519_v34, %v10300_v32  ;;  %v10397_v16 = vpack.c.bf16 %v9635_v20, %v9635_v20  ;;  %v18035_v47 = vld [vmem:[#allocation11_spill] sm:$0xff]  ;;  %v17765_v30 = vrot.slane %v18019_v61, 1 }
 0x742   :  { %9093 = vrot.lane.b32.xlu1 %v9086_v42, %s11717_s20  ;;  %v16965_v52 = vmax.f32 %v16346_v31, %v18032_v48  ;;  %v16970_v21 = vmax.f32 %v18013_v41, %v18033_v17  ;;  %v16975_v25 = vmax.f32 %v18014_v26, %v18034_v24  ;;  %v9636_v42 = vmax.f32 %v9518_v18, %v10298_v45  ;;  %v16982_v8 = vpop.permute.xlu0 %11340  ;;  %v18039_v45 = vld [vmem:[#allocation19_spill] sm:$0xff]  ;;  %s9783_s20 = sshll.u32 %s11732_s19, 4  ;;  %s9784_s20 = int_to_ptr.vmem [resolvable:$true] %s9783_s20 }
 0x743   :  { %v7535_v19 = vrot.slane %v18035_v47, 6  ;;  %v10399_v38 = vpack.c.bf16 %v9637_v60, %v9637_v60  ;;  %v17766_v48 = vrot.slane %v18017_v62, 1  ;;  %v17768_v17 = vrot.slane %v16351_v6, 1  ;;  %s11664_s15 = scalar_lea.vmem %s9784_s20, 128  ;;  %p11669_p1 = scmp.lt.s32.totalorder %s9784_s20, %s9784_s20 }
 0x744   :  { %v7534_v24 = vsel %vm17783_vm6, %v7532_v37, %v18036_v5  ;;  %v7538_v18 = vrot.slane %v18037_v13, 5  ;;  %v18038_v20 = vrot.slane %v18018_v51, 1  ;;  %v16995_v60 = vmax.f32 %v18019_v61, %v17765_v30  ;;  %v17008_v5 = vpop.permute.xlu1 %9023  ;;  %p11665_p0 = scmp.ne.s32.totalorder %s9784_s20, %s11664_s15  ;;  %p11670_p2 = scmp.lt.s32.totalorder %s11664_s15, %s11664_s15 }
 0x745   :  { %v10398_v34 = vpack.c.bf16 %v9636_v42, %v9636_v42  ;;  %v7541_v47 = vrot.slane %v18039_v45, 4  ;;  %v17001_v33 = vmax.f32 %v18017_v62, %v17766_v48  ;;  %v17006_v13 = vmax.f32 %v16351_v6, %v17768_v17  ;;  %18040 = vst [vmem:[#allocation16_spill] sm:$0xff] %v17008_v5 }
 0x746   :  { %v16990_v32 = vmax.f32 %v18018_v51, %v18038_v20  ;;  %v10400_v37 = vpack.c.bf16 %v9638_v36, %v9638_v36  ;;  %v18041_v20 = vrot.slane %v18020_v29, 1  ;;  %v9241_v42 = vrot.slane %v16970_v21, 7  ;;  %p11671_p3 = por %p11670_p2, %p11669_p1 }
 0x747   :  { %v9243_v45 = vrot.slane %v16975_v25, 6  ;;  %v17017_v4 = vunpack.c.l.b16 %v10397_v16  ;;  %v17019_v48 = vunpack.c.l.b16 %v10399_v38  ;;  %v7537_v12 = vsel %vm17782_vm7, %v7535_v19, %v7534_v24  ;;  %v17032_v19 = vpop.permute.xlu0 %11345  ;;  %v18043_v24 = vld [vmem:[#allocation22_spill] sm:$0xff] }
 0x748   :  { %v17013_v30 = vmax.f32 %v18020_v29, %v18041_v20  ;;  %v9247_v17 = vrot.slane %v17001_v33, 4  ;;  %v7544_v5 = vrot.slane %v18042_v53, 3  ;;  %v9242_v36 = vsel %vm17783_vm6, %v9241_v42, %v16990_v32  ;;  %v17043_v14 = vpop.permute.xlu1 %9091  ;;  %p11672_p4 = pnand %p11671_p3, %p11665_p0 }
 0x749   :  { %v9245_v20 = vrot.slane %v16995_v60, 5  ;;  %v9309_v49 = vrot.slane %v16990_v32, 2  ;;  %v9244_v27 = vsel %vm17782_vm7, %v9243_v45, %v9242_v36  ;;  %v9251_v16 = vrot.slane %v17006_v13, 2 }
 0x74a   :  { %v9310_v38 = vrot.slane %v16970_v21, 1  ;;  %v9313_v55 = vrot.slane %v16995_v60, 7  ;;  %v9249_v42 = vrot.slane %v17013_v30, 3  ;;  %v9315_v59 = vrot.slane %v17001_v33, 6 }
 0x74b   :  { %v9246_v53 = vsel %vm17785_vm8, %v9245_v20, %v9244_v27  ;;  %v17038_v10 = vunpack.c.l.b16 %v10398_v34  ;;  %v9253_v36 = vrot.slane %v16965_v52, 1  ;;  %v9317_v27 = vrot.slane %v17013_v30, 5 }
 0x74c   :  { %v9248_v45 = vsel %vm7542_vm9, %v9247_v17, %v9246_v53  ;;  %v9311_v7 = vsel %vm17783_vm6, %v9310_v38, %v9309_v49  ;;  %v9319_v20 = vrot.slane %v17006_v13, 4  ;;  %v9377_v17 = vrot.slane %v16990_v32, 4 }
 0x74d   :  { %v9250_v23 = vsel %vm7545_vm10, %v9249_v42, %v9248_v45  ;;  %v9312_v58 = vsel %vm17782_vm7, %v16975_v25, %v9311_v7  ;;  %v9378_v53 = vrot.slane %v16970_v21, 3  ;;  %v17054_v49 = vunpack.c.l.b16 %v10400_v37 }
 0x74e   :  { %v9252_v34 = vsel %vm17784_vm11, %v9251_v16, %v9250_v23  ;;  %v9314_v44 = vsel %vm17785_vm8, %v9313_v55, %v9312_v58  ;;  %v7540_v38 = vsel %vm17785_vm8, %v7538_v18, %v7537_v12  ;;  %v9321_v55 = vrot.slane %v16965_v52, 3  ;;  %v17064_v16 = vpop.permute.xlu0 %11350 }
 0x74f   :  { %v9254_v42 = vsel %vm7551_vm12, %v9253_v36, %v9252_v34  ;;  %v9316_v7 = vsel %vm7542_vm9, %v9315_v59, %v9314_v44  ;;  %v7543_v45 = vsel %vm7542_vm9, %v7541_v47, %v7540_v38  ;;  %v9380_v58 = vrot.slane %v16975_v25, 2  ;;  %v18044_v59 = vld [vmem:[#allocation26_spill] sm:$0xff]  ;;  %v17074_v38 = vpop.permute.xlu1 %9463 }
 0x750   :  { %9261 = vrot.lane.b32.xlu1 %v9254_v42, %s11720_s24  ;;  %v9318_v23 = vsel %vm7545_vm10, %v9317_v27, %v9316_v7  ;;  %v9379_v12 = vsel %vm17783_vm6, %v9378_v53, %v9377_v17  ;;  %v9382_v18 = vrot.slane %v16995_v60, 1  ;;  %v9385_v44 = vrot.slane %v17013_v30, 7  ;;  %18045 = vst [vmem:[#allocation18_spill] sm:$0xff] %v17074_v38 }
 0x751   :  { %v9320_v37 = vsel %vm17784_vm11, %v9319_v20, %v9318_v23  ;;  %v7553_v47 = vrot.slane %v18044_v59, 7  ;;  %v9381_v27 = vsel %vm17782_vm7, %v9380_v58, %v9379_v12  ;;  %v9387_v34 = vrot.slane %v17006_v13, 6  ;;  %v18046_v23 = vld [vmem:[#allocation29_spill] sm:$0xff] }
 0x752   :  { %v9322_v36 = vsel %vm7551_vm12, %v9321_v55, %v9320_v37  ;;  %v9383_v42 = vsel %vm17785_vm8, %v9382_v18, %v9381_v27  ;;  %v9445_v20 = vrot.slane %v16990_v32, 6  ;;  %v9446_v17 = vrot.slane %v16970_v21, 5  ;;  %v17095_v27 = vpop.permute.xlu0 %11355 }
 0x753   :  { %v9448_v53 = vrot.slane %v16975_v25, 4  ;;  %v7546_v7 = vsel %vm7545_vm10, %v7544_v5, %v7543_v45  ;;  %v7555_v59 = vrot.slane %v18046_v23, 6  ;;  %v9384_v55 = vsel %vm7542_vm9, %v17001_v33, %v9383_v42  ;;  %v18047_v25 = vld [vmem:[#allocation27_spill] sm:$0xff] }
 0x754   :  { %9329 = vrot.lane.b32.xlu1 %v9322_v36, %s11721_s25  ;;  %v9389_v58 = vrot.slane %v16965_v52, 5  ;;  %v9386_v37 = vsel %vm7545_vm10, %v9385_v44, %v9384_v55  ;;  %v9447_v12 = vsel %vm17783_vm6, %v9446_v17, %v9445_v20  ;;  %v9450_v32 = vrot.slane %v16995_v60, 3 }
 0x755   :  { %v9452_v21 = vrot.slane %v17001_v33, 2  ;;  %v7554_v5 = vsel %vm17783_vm6, %v7553_v47, %v18047_v25  ;;  %v9388_v45 = vsel %vm17784_vm11, %v9387_v34, %v9386_v37  ;;  %v9449_v18 = vsel %vm17782_vm7, %v9448_v53, %v9447_v12  ;;  %v18048_v33 = vld [vmem:[#allocation31_spill] sm:$0xff]  ;;  %v17106_v53 = vpop.permute.xlu1 %9259 }
 0x756   :  { %v9454_v36 = vrot.slane %v17013_v30, 1  ;;  %v9390_v42 = vsel %vm7551_vm12, %v9389_v58, %v9388_v45  ;;  %v9451_v44 = vsel %vm17785_vm8, %v9450_v32, %v9449_v18  ;;  %v9457_v20 = vrot.slane %v16965_v52, 7  ;;  %v18050_v18 = vld [vmem:[#allocation28_spill] sm:$0xff] }
 0x757   :  { %v8407_v60 = vrot.slane %v18008_v40, 4  ;;  %v7559_v17 = vrot.slane %v18048_v33, 4  ;;  %v9453_v47 = vsel %vm7542_vm9, %v9452_v21, %v9451_v44  ;;  %v8408_v34 = vrot.slane %v17957_v63, 3  ;;  %v17130_v33 = vpop.permute.xlu0 %11360 }
 0x758   :  { %9397 = vrot.lane.b32.xlu1 %v9390_v42, %s11722_s26  ;;  %v8410_v30 = vrot.slane %v17958_v1, 2  ;;  %v18049_v23 = vrot.slane %v18043_v24, 2  ;;  %v7556_v52 = vsel %vm17782_vm7, %v7555_v59, %v7554_v5  ;;  %v9455_v58 = vsel %vm7545_vm10, %v9454_v36, %v9453_v47  ;;  %v18051_v42 = vld [vmem:[#allocation30_spill] sm:$0xff] }
 0x759   :  { %v8415_v37 = vrot.slane %v18012_v22, 7  ;;  %v9456_v12 = vsel %vm17784_vm11, %v17006_v13, %v9455_v58  ;;  %v8409_v32 = vsel %vm17783_vm6, %v8408_v34, %v8407_v60  ;;  %v8417_v21 = vrot.slane %v18011_v43, 6 }
 0x75a   :  { %v7549_v55 = vsel %vm17784_vm11, %v18049_v23, %v7546_v7  ;;  %v8421_v25 = vrot.slane %v18018_v51, 4  ;;  %v9458_v45 = vsel %vm7551_vm12, %v9457_v20, %v9456_v12  ;;  %v8411_v24 = vsel %vm17782_vm7, %v8410_v30, %v8409_v32  ;;  %v18053_v20 = vld [vmem:[#allocation23_spill] sm:$0xff] }
 0x75b   :  { %v8422_v7 = vrot.slane %v18013_v41, 3  ;;  %v8424_v59 = vrot.slane %v18014_v26, 2  ;;  %v7557_v36 = vrot.slane %v18050_v18, 5  ;;  %v7561_v13 = vrot.slane %v18051_v42, 3  ;;  %v17145_v18 = vpop.permute.xlu1 %9327 }
 0x75c   :  { %9465 = vrot.lane.b32.xlu1 %v9458_v45, %s11719_s23  ;;  %v18052_v44 = vrot.slane %v17959_v0, 1  ;;  %v18054_v47 = vrot.slane %v18053_v20, 1  ;;  %v8429_v58 = vrot.slane %v18020_v29, 7  ;;  %v8480_v20 = vrot.slane %v17959_v0, 2 }
 0x75d   :  { %v8423_v23 = vsel %vm17783_vm6, %v8422_v7, %v8421_v25  ;;  %v7558_v12 = vsel %vm17785_vm8, %v7557_v36, %v7556_v52  ;;  %v18055_v25 = vrot.slane %v18019_v61, 1  ;;  %v8476_v36 = vrot.slane %v17957_v63, 4 }
 0x75e   :  { %v8413_v60 = vsel %vm17785_vm8, %v18052_v44, %v8411_v24  ;;  %v17135_v34 = vsel %vm7551_vm12, %v18054_v47, %v7549_v55  ;;  %v8425_v45 = vsel %vm17782_vm7, %v8424_v59, %v8423_v23  ;;  %v8431_v24 = vrot.slane %v16351_v6, 6 }
 0x75f   :  { %v8414_v30 = vsel %vm7542_vm9, %v18009_v2, %v8413_v60  ;;  %v7560_v55 = vsel %vm7542_vm9, %v7559_v17, %v7558_v12  ;;  %v8419_v44 = vrot.slane %v18021_v11, 5  ;;  %v8427_v7 = vsel %vm17785_vm8, %v18055_v25, %v8425_v45  ;;  %v18056_v25 = vld [vmem:[#allocation33_spill] sm:$0xff] }
 0x760   :  { %v8416_v32 = vsel %vm7545_vm10, %v8415_v37, %v8414_v30  ;;  %v8428_v52 = vsel %vm7542_vm9, %v18017_v62, %v8427_v7  ;;  %v8433_v37 = vrot.slane %v16346_v31, 5  ;;  %v8475_v59 = vrot.slane %v18008_v40, 5 }
 0x761   :  { %v8418_v42 = vsel %vm17784_vm11, %v8417_v21, %v8416_v32  ;;  %v8430_v17 = vsel %vm7545_vm10, %v8429_v58, %v8428_v52  ;;  %v8478_v21 = vrot.slane %v17958_v1, 3  ;;  %v8485_v23 = vrot.slane %v18011_v43, 7  ;;  %v17166_v32 = vpop.permute.xlu0 %9157 }
 0x762   :  { %v8420_v60 = vsel %vm7551_vm12, %v8419_v44, %v8418_v42  ;;  %v8432_v47 = vsel %vm17784_vm11, %v8431_v24, %v8430_v17  ;;  %v8477_v30 = vsel %vm17783_vm6, %v8476_v36, %v8475_v59  ;;  %v8489_v12 = vrot.slane %v18018_v51, 5  ;;  %v17175_v36 = vpop.permute.xlu1 %9395 }
 0x763   :  { %v8434_v45 = vsel %vm7551_vm12, %v8433_v37, %v8432_v47  ;;  %v8479_v42 = vsel %vm17782_vm7, %v8478_v21, %v8477_v30  ;;  %v8490_v58 = vrot.slane %v18013_v41, 4  ;;  %v8492_v44 = vrot.slane %v18014_v26, 3  ;;  %18057 = vst [vmem:[#allocation25_spill] sm:$0xff] %v17175_v36 }
 0x764   :  { %v7563_v7 = vrot.slane %v18056_v25, 2  ;;  %v11318_v24 = vunpack.i.h.bf16 %v16873_v56  ;;  %v11424_v52 = vpack.i.bf16 %v8434_v45, %v8420_v60  ;;  %v8481_v59 = vsel %vm17785_vm8, %v8480_v20, %v8479_v42 }
 0x765   :  { %v7562_v17 = vsel %vm7545_vm10, %v7561_v13, %v7560_v55  ;;  %v18058_v5 = vrot.slane %v18009_v2, 1  ;;  %v8491_v21 = vsel %vm17783_vm6, %v8490_v58, %v8489_v12  ;;  %v8494_v47 = vrot.slane %v18019_v61, 2 }
 0x766   :  { %11425 = vrot.lane.b32.xlu1 %v11424_v52, %s11727_s3  ;;  %v8487_v60 = vrot.slane %v18021_v11, 6  ;;  %v8493_v20 = vsel %vm17782_vm7, %v8492_v44, %v8491_v21  ;;  %v8499_v45 = vrot.slane %v16351_v6, 7  ;;  %v8544_v12 = vrot.slane %v17957_v63, 5 }
 0x767   :  { %v8483_v37 = vsel %vm7542_vm9, %v18058_v5, %v8481_v59  ;;  %v8495_v55 = vsel %vm17785_vm8, %v8494_v47, %v8493_v20  ;;  %v8543_v5 = vrot.slane %v18008_v40, 6  ;;  %v7564_v42 = vsel %vm17784_vm11, %v7563_v7, %v7562_v17  ;;  %v17199_v59 = vpop.permute.xlu0 %9021 }
 0x768   :  { %v8484_v30 = vsel %vm7545_vm10, %v18012_v22, %v8483_v37  ;;  %v11317_v58 = vunpack.i.l.bf16 %v16873_v56  ;;  %v18059_v25 = vrot.slane %v18017_v62, 1  ;;  %v8501_v44 = vrot.slane %v16346_v31, 6  ;;  %v17201_v37 = vpop.permute.xlu1 %11365 }
 0x769   :  { %v8486_v13 = vsel %vm17784_vm11, %v8485_v23, %v8484_v30  ;;  %v8545_v47 = vsel %vm17783_vm6, %v8544_v12, %v8543_v5  ;;  %v8546_v7 = vrot.slane %v17958_v1, 4  ;;  %v8548_v17 = vrot.slane %v17959_v0, 3 }
 0x76a   :  { %v8497_v52 = vsel %vm7542_vm9, %v18059_v25, %v8495_v55  ;;  %v8488_v23 = vsel %vm7551_vm12, %v8487_v60, %v8486_v13  ;;  %v8550_v30 = vrot.slane %v18009_v2, 2  ;;  %v8557_v20 = vrot.slane %v18018_v51, 6 }
 0x76b   :  { %v8498_v21 = vsel %vm7545_vm10, %v18020_v29, %v8497_v52  ;;  %v8547_v25 = vsel %vm17782_vm7, %v8546_v7, %v8545_v47  ;;  %v8558_v60 = vrot.slane %v18013_v41, 5  ;;  %v8560_v13 = vrot.slane %v18014_v26, 4  ;;  %v18060_v7 = vld [vmem:[#allocation32_spill] sm:$0xff] }
 0x76c   :  { %v8500_v56 = vsel %vm17784_vm11, %v8499_v45, %v8498_v21  ;;  %v8651_v5 = vsel %vm6097_vm2, %v17135_v34, %v11317_v58  ;;  %v8549_v45 = vsel %vm17785_vm8, %v8548_v17, %v8547_v25  ;;  %v8564_v52 = vrot.slane %v18017_v62, 2 }
 0x76d   :  { %v8502_v55 = vsel %vm7551_vm12, %v8501_v44, %v8500_v56  ;;  %v8551_v21 = vsel %vm7542_vm9, %v8550_v30, %v8549_v45  ;;  %v8555_v38 = vrot.slane %v18021_v11, 7  ;;  %v8559_v44 = vsel %vm17783_vm6, %v8558_v60, %v8557_v20  ;;  %v17233_v30 = vpop.permute.xlu0 %9089 }
 0x76e   :  { %v11434_v12 = vpack.i.bf16 %v8502_v55, %v8488_v23  ;;  %v8562_v47 = vrot.slane %v18019_v61, 3  ;;  %v18061_v56 = vrot.slane %v18060_v7, 1  ;;  %v18062_v34 = vrot.slane %v18012_v22, 1  ;;  %v17235_v55 = vpop.permute.xlu1 %11370 }
 0x76f   :  { %v8561_v23 = vsel %vm17782_vm7, %v8560_v13, %v8559_v44  ;;  %v8569_v17 = vrot.slane %v16346_v31, 7  ;;  %v8612_v60 = vrot.slane %v17957_v63, 6  ;;  %v11323_v45 = vunpack.i.h.bf16 %v16904_v35 }
 0x770   :  { %v7566_v36 = vsel %vm7551_vm12, %v18061_v56, %v7564_v42  ;;  %11435 = vrot.lane.b32.xlu1 %v11434_v12, %s11728_s12  ;;  %v8553_v58 = vsel %vm7545_vm10, %v18062_v34, %v8551_v21  ;;  %v8563_v25 = vsel %vm17785_vm8, %v8562_v47, %v8561_v23  ;;  %v8611_v42 = vrot.slane %v18008_v40, 7 }
 0x771   :  { %v8554_v20 = vsel %vm17784_vm11, %v18011_v43, %v8553_v58  ;;  %v8652_v12 = vsel %vm6097_vm2, %v7566_v36, %v11318_v24  ;;  %v11322_v13 = vunpack.i.l.bf16 %v16904_v35  ;;  %v8565_v21 = vsel %vm7542_vm9, %v8564_v52, %v8563_v25 }
 0x772   :  { %v8556_v44 = vsel %vm7551_vm12, %v8555_v38, %v8554_v20  ;;  %v18063_v7 = vrot.slane %v18020_v29, 1  ;;  %v8613_v47 = vsel %vm17783_vm6, %v8612_v60, %v8611_v42  ;;  %v8614_v40 = vrot.slane %v17958_v1, 5 }
 0x773   :  { %v8616_v24 = vrot.slane %v17959_v0, 4  ;;  %v8618_v36 = vrot.slane %v18009_v2, 3  ;;  %v8625_v35 = vrot.slane %v18018_v51, 7  ;;  %v8626_v34 = vrot.slane %v18013_v41, 6  ;;  %v17264_v0 = vpop.permute.xlu0 %9257  ;;  %v17266_v2 = vpop.permute.xlu1 %11375 }
 0x774   :  { %v8567_v56 = vsel %vm7545_vm10, %v18063_v7, %v8565_v21  ;;  %v8615_v38 = vsel %vm17782_vm7, %v8614_v40, %v8613_v47  ;;  %v8628_v58 = vrot.slane %v18014_v26, 5  ;;  %v11327_v23 = vunpack.i.l.bf16 %v16928_v54 }
 0x775   :  { %v8568_v63 = vsel %vm17784_vm11, %v16351_v6, %v8567_v56  ;;  %v8617_v20 = vsel %vm17785_vm8, %v8616_v24, %v8615_v38  ;;  %v8632_v25 = vrot.slane %v18017_v62, 3  ;;  %v8627_v42 = vsel %vm17783_vm6, %v8626_v34, %v8625_v35 }
 0x776   :  { %v8570_v52 = vsel %vm7551_vm12, %v8569_v17, %v8568_v63  ;;  %v8619_v51 = vsel %vm7542_vm9, %v8618_v36, %v8617_v20  ;;  %v8620_v17 = vrot.slane %v18012_v22, 2  ;;  %v8630_v41 = vrot.slane %v18019_v61, 4 }
 0x777   :  { %v11444_v1 = vpack.i.bf16 %v8570_v52, %v8556_v44  ;;  %v11328_v26 = vunpack.i.h.bf16 %v16928_v54  ;;  %v11333_v60 = vunpack.i.h.bf16 %v16943_v28  ;;  %v11332_v21 = vunpack.i.l.bf16 %v16943_v28 }
 0x778   :  { %v8629_v62 = vsel %vm17782_vm7, %v8628_v58, %v8627_v42  ;;  %v11337_v44 = vunpack.i.l.bf16 %v16955_v15  ;;  %v8621_v7 = vsel %vm7545_vm10, %v8620_v17, %v8619_v51  ;;  %v8634_v56 = vrot.slane %v18020_v29, 2  ;;  %v18068_v17 = vld [vmem:[#allocation45_spill] sm:$0xff] }
 0x779   :  { %11445 = vrot.lane.b32.xlu1 %v11444_v1, %s11729_s13  ;;  %v8631_v22 = vsel %vm17785_vm8, %v8630_v41, %v8629_v62  ;;  %v8655_v61 = vsel %vm6170_vm4, %v8651_v5, %v11322_v13  ;;  %v11338_v54 = vunpack.i.h.bf16 %v16955_v15  ;;  %v18064_v47 = vrot.slane %v18011_v43, 1 }
 0x77a   :  { %v8633_v40 = vsel %vm7542_vm9, %v8632_v25, %v8631_v22  ;;  %v9733_v63 = vrot.slane %v17019_v48, 6  ;;  %v8656_v24 = vsel %vm6170_vm4, %v8652_v12, %v11323_v45  ;;  %v8659_v36 = vsel %vm6259_vm5, %v8655_v61, %v11327_v23  ;;  %v17300_v48 = vpop.permute.xlu0 %9325  ;;  %v17302_v12 = vpop.permute.xlu1 %11380  ;;  %v18067_v25 = vld [vmem:[#allocation44_spill] sm:$0xff]  ;;  %v18072_v61 = vld [vmem:[#allocation75_spill] sm:$0xff] }
 0x77b   :  { %v8623_v28 = vsel %vm17784_vm11, %v18064_v47, %v8621_v7  ;;  %v8635_v35 = vsel %vm7545_vm10, %v8634_v56, %v8633_v40  ;;  %v18065_v29 = vrot.slane %v17038_v10, 7  ;;  %v8660_v15 = vsel %vm6259_vm5, %v8656_v24, %v11328_v26 }
 0x77c   :  { %v8664_v43 = vsel %vm8663_vm13, %v8659_v36, %v11332_v21  ;;  %v18066_v13 = vrot.slane %v16351_v6, 1  ;;  %v8665_v45 = vsel %vm8663_vm13, %v8660_v15, %v11333_v60  ;;  %v8624_v10 = vsel %vm7551_vm12, %v18021_v11, %v8623_v28  ;;  %v18070_v21 = vld [vmem:[#allocation39_spill] sm:$0xff] }
 0x77d   :  { %v9732_v5 = vsel %vm17783_vm6, %v18065_v29, %v17017_v4  ;;  %v8669_v38 = vsel %vm8668_vm14, %v8664_v43, %v11337_v44  ;;  %v11313_v34 = vunpack.i.h.bf16 %v16841_v57  ;;  %v11312_v6 = vunpack.i.l.bf16 %v16841_v57  ;;  %v18069_v57 = vld [vmem:[#allocation54_spill] sm:$0xff]  ;;  %v18071_v44 = vld [vmem:[#allocation53_spill] sm:$0xff]  ;;  %v18073_v36 = vld [vmem:[#allocation35_spill] sm:$0xff] }
 0x77e   :  { %v8637_v52 = vsel %vm17784_vm11, %v18066_v13, %v8635_v35  ;;  %v8670_v58 = vsel %vm8668_vm14, %v8665_v45, %v11338_v54  ;;  %v17314_v1 = vsel %vm17782_vm7, %v9733_v63, %v9732_v5  ;;  %v9735_v20 = vrot.slane %v17054_v49, 5  ;;  %v17332_v47 = vpop.permute.xlu0 %9393  ;;  %v17334_v28 = vpop.permute.xlu1 %11385  ;;  %v18075_v13 = vld [vmem:[#allocation65_spill] sm:$0xff] }
 0x77f   :  { %v8638_v4 = vsel %vm7551_vm12, %v16346_v31, %v8637_v52  ;;  %v8917_v51 = vrot.slane %v18067_v25, 7  ;;  %v8919_v42 = vrot.slane %v18068_v17, 6  ;;  %v11343_v11 = vunpack.i.h.bf16 %v16982_v8 }
 0x780   :  { %v11454_v23 = vpack.i.bf16 %v8638_v4, %v8624_v10  ;;  %v11342_v31 = vunpack.i.l.bf16 %v16982_v8  ;;  %v8674_v41 = vsel %vm17781_vm15, %v8669_v38, %v11312_v6  ;;  %v8923_v26 = vrot.slane %v18069_v57, 4  ;;  %v18078_v57 = vld [vmem:[#allocation66_spill] sm:$0xff] }
 0x781   :  { %v8675_v60 = vsel %vm17781_vm15, %v8670_v58, %v11313_v34  ;;  %v8918_v62 = vsel %vm17783_vm6, %v8917_v51, %v18070_v21  ;;  %v8921_v7 = vrot.slane %v18071_v44, 5  ;;  %v11348_v22 = vunpack.i.h.bf16 %v17032_v19 }
 0x782   :  { %11455 = vrot.lane.b32.xlu1 %v11454_v23, %s11730_s14  ;;  %v11347_v56 = vunpack.i.l.bf16 %v17032_v19  ;;  %v8920_v8 = vsel %vm17782_vm7, %v8919_v42, %v8918_v62  ;;  %v8927_v54 = vrot.slane %v18072_v61, 2  ;;  %v11353_v40 = vunpack.i.h.bf16 %v17064_v16  ;;  %v18074_v19 = vld [vmem:[#allocation64_spill] sm:$0xff]  ;;  %v18076_v23 = vld [vmem:[#allocation74_spill] sm:$0xff] }
 0x783   :  { %v11352_v63 = vunpack.i.l.bf16 %v17064_v16  ;;  %v8922_v24 = vsel %vm17785_vm8, %v8921_v7, %v8920_v8  ;;  %v8925_v35 = vrot.slane %v18073_v36, 3  ;;  %v8679_v29 = vsel %vm8678_vm0, %v8674_v41, %v11342_v31  ;;  %v9462_v31 = vpop.permute.xlu0 %9461  ;;  %v17359_v41 = vpop.permute.xlu1 %11390  ;;  %v18081_v61 = vld [vmem:[#allocation40_spill] sm:$0xff] }
 0x784   :  { %v8931_v5 = vrot.slane %v18074_v19, 7  ;;  %v8924_v15 = vsel %vm7542_vm9, %v8923_v26, %v8922_v24  ;;  %v8680_v43 = vsel %vm8678_vm0, %v8675_v60, %v11343_v11  ;;  %v8933_v52 = vrot.slane %v18075_v13, 6  ;;  %v18083_v24 = vld [vmem:[#allocation68_spill] sm:$0xff] }
 0x785   :  { %v8926_v45 = vsel %vm7545_vm10, %v8925_v35, %v8924_v15  ;;  %v7567_v38 = vrot.slane %v17974_v46, 7  ;;  %v8684_v16 = vsel %vm8683_vm1, %v8679_v29, %v11347_v56  ;;  %v8685_v10 = vsel %vm8683_vm1, %v8680_v43, %v11348_v22  ;;  %v18077_v46 = vld [vmem:[#allocation63_spill] sm:$0xff]  ;;  %v18084_v29 = vld [vmem:[#allocation70_spill] sm:$0xff] }
 0x786   :  { %v8928_v4 = vsel %vm17784_vm11, %v8927_v54, %v8926_v45  ;;  %v7569_v34 = vrot.slane %v17975_v3, 6  ;;  %v8689_v6 = vsel %vm8688_vm3, %v8684_v16, %v11352_v63  ;;  %v8690_v58 = vsel %vm8688_vm3, %v8685_v10, %v11353_v40  ;;  %v18080_v22 = vld [vmem:[#allocation67_spill] sm:$0xff] }
 0x787   :  { %vm8693_vm15 = vcmask 654336   ;;  %v8929_v25 = vrot.slane %v18076_v23, 1  ;;  %v11358_v51 = vunpack.i.h.bf16 %v17095_v27  ;;  %v11357_v17 = vunpack.i.l.bf16 %v17095_v27  ;;  %v18082_v40 = vld [vmem:[#allocation71_spill] sm:$0xff]  ;;  %v17390_v10 = vpop.permute.xlu0 %11420 }
 0x788   :  { %v8932_v42 = vsel %vm17783_vm6, %v8931_v5, %v18077_v46  ;;  %v7581_v11 = vrot.slane %v17979_v9, 7  ;;  %v8935_v26 = vrot.slane %v18078_v57, 5  ;;  %v7568_v21 = vsel %vm17783_vm6, %v7567_v38, %v17973_v50  ;;  %v18079_v9 = vld [vmem:[#allocation72_spill] sm:$0xff]  ;;  %v18087_v38 = vld [vmem:[#allocation43_spill] sm:$0xff]  ;;  %v18089_v46 = vld [vmem:[#allocation78_spill] sm:$0xff] }
 0x789   :  { %v8934_v3 = vsel %vm17782_vm7, %v8933_v52, %v8932_v42  ;;  %v8930_v60 = vsel %vm7551_vm12, %v8929_v25, %v8928_v4  ;;  %v7570_v62 = vsel %vm17782_vm7, %v7569_v34, %v7568_v21  ;;  %v7573_v44 = vrot.slane %v17976_v39, 4  ;;  %v18086_v52 = vld [vmem:[#allocation58_spill] sm:$0xff]  ;;  %v17392_v4 = vpop.permute.xlu1 %11395  ;;  %v18091_v57 = vld [vmem:[#allocation37_spill] sm:$0xff] }
 0x78a   :  { %v9472_v27 = vsel %vm6097_vm2, %v8930_v60, %v17199_v59  ;;  %v7583_v7 = vrot.slane %v18079_v9, 6  ;;  %v8937_v56 = vrot.slane %v18080_v22, 4  ;;  %v7571_v54 = vrot.slane %v18081_v61, 5 }
 0x78b   :  { %v9476_v8 = vsel %vm6170_vm4, %v9472_v27, %v17233_v30  ;;  %v7582_v63 = vsel %vm17783_vm6, %v7581_v11, %v18082_v40  ;;  %v8694_v50 = vsel %vm8693_vm15, %v8689_v6, %v11357_v17  ;;  %v8695_v59 = vsel %vm8693_vm15, %v8690_v58, %v11358_v51  ;;  %v18085_v30 = vld [vmem:[#allocation50_spill] sm:$0xff]  ;;  %v18092_v27 = vld [vmem:[#allocation69_spill] sm:$0xff]  ;;  %v11431_v61 = vpop.permute.xlu0 %11430 }
 0x78c   :  { %v8939_v36 = vrot.slane %v18083_v24, 3  ;;  %v7584_v39 = vsel %vm17782_vm7, %v7583_v7, %v7582_v63  ;;  %v8936_v35 = vsel %vm17785_vm8, %v8935_v26, %v8934_v3  ;;  %v8941_v19 = vrot.slane %v18084_v29, 2  ;;  %v18088_v58 = vld [vmem:[#allocation46_spill] sm:$0xff]  ;;  %v18094_v63 = vld [vmem:[#allocation57_spill] sm:$0xff] }
 0x78d   :  { %v7572_v5 = vsel %vm17785_vm8, %v7571_v54, %v7570_v62  ;;  %v7585_v15 = vrot.slane %v18085_v30, 5  ;;  %v9480_v43 = vsel %vm6259_vm5, %v9476_v8, %v17166_v32  ;;  %v7577_v45 = vrot.slane %v18086_v52, 2 }
 0x78e   :  { %v7574_v13 = vsel %vm7542_vm9, %v7573_v44, %v7572_v5  ;;  %v7587_v16 = vrot.slane %v18087_v38, 4  ;;  %v8938_v34 = vsel %vm7542_vm9, %v8937_v56, %v8936_v35  ;;  %v9484_v6 = vsel %vm8663_vm13, %v9480_v43, %v17264_v0  ;;  %v18093_v56 = vld [vmem:[#allocation13_spill] sm:$0xff] }
 0x78f   :  { %v7575_v23 = vrot.slane %v18088_v58, 3  ;;  %v7586_v25 = vsel %vm17785_vm8, %v7585_v15, %v7584_v39  ;;  %v11363_v32 = vunpack.i.h.bf16 %v17130_v33  ;;  %v9488_v51 = vsel %vm8668_vm14, %v9484_v6, %v17300_v48  ;;  %v17421_v54 = vpop.permute.xlu1 %11400  ;;  %v18096_v15 = vld [vmem:[#allocation77_spill] sm:$0xff] }
 0x790   :  { %v7588_v17 = vsel %vm7542_vm9, %v7587_v16, %v7586_v25  ;;  %v7591_v42 = vrot.slane %v18089_v46, 2  ;;  %v11362_v11 = vunpack.i.l.bf16 %v17130_v33  ;;  %vm18090_vm7 = vcmask 392192  }
 0x791   :  { %v9492_v3 = vsel %vm18090_vm7, %v9488_v51, %v17332_v47  ;;  %v7576_v0 = vsel %vm7545_vm10, %v7575_v23, %v7574_v13  ;;  %v7589_v26 = vrot.slane %v18091_v57, 3  ;;  %v8940_v60 = vsel %vm7545_vm10, %v8939_v36, %v8938_v34 }
 0x792   :  { %vm8698_vm6 = vcmask 719872   ;;  %v7578_v21 = vsel %vm17784_vm11, %v7577_v45, %v7576_v0  ;;  %v9496_v48 = vsel %vm8678_vm0, %v9492_v3, %v9462_v31  ;;  %v8943_v62 = vrot.slane %v18092_v27, 1 }
 0x793   :  { %v17414_v44 = vsel %vm17784_vm11, %v8941_v19, %v8940_v60  ;;  %v7590_v33 = vsel %vm7545_vm10, %v7589_v26, %v7588_v17  ;;  %v11372_v47 = vunpack.i.l.bf16 %v17235_v55  ;;  %v11373_v9 = vunpack.i.h.bf16 %v17235_v55 }
 0x794   :  { %v7592_v7 = vsel %vm17784_vm11, %v7591_v42, %v7590_v33  ;;  %v9520_v22 = vcombine.high %v9496_v48, %v9496_v48  ;;  %v9527_v8 = vrot.slane %v9496_v48, %v18093_v56  ;;  %v8699_v31 = vsel %vm8698_vm6, %v8694_v50, %v11362_v11 }
 0x795   :  { %v8700_v40 = vsel %vm8698_vm6, %v8695_v59, %v11363_v32  ;;  %v18095_v24 = vrot.slane %v18094_v63, 1  ;;  %v11378_v39 = vunpack.i.h.bf16 %v17266_v2  ;;  %v11377_v19 = vunpack.i.l.bf16 %v17266_v2  ;;  %v11441_v32 = vpop.permute.xlu0 %11440 }
 0x796   :  { %v9534_v55 = vrot.slane %v9520_v22, %v18093_v56  ;;  %v9535_v35 = vcombine.high %v9527_v8, %v9527_v8  ;;  %v10301_v29 = vrot.slane %v9527_v8, 9  ;;  %v11368_v5 = vunpack.i.h.bf16 %v17201_v37 }
 0x797   :  { %v7580_v36 = vsel %vm7551_vm12, %v18095_v24, %v7578_v21  ;;  %v11367_v30 = vunpack.i.l.bf16 %v17201_v37  ;;  %v18097_v50 = vrot.slane %v18096_v15, 1  ;;  %vm17786_vm7 = vcmask 785408   ;;  %v17441_v51 = vpop.permute.xlu1 %11405 }
 0x798   :  { %v8653_v43 = vsel %vm6097_vm2, %v7580_v36, %v11372_v47  ;;  %v9536_v52 = vcombine.high %v9534_v55, %v9534_v55  ;;  %v10302_v45 = vrot.slane %v9535_v35, 9  ;;  %v10303_v38 = vrot.slane %v9534_v55, 9 }
 0x799   :  { %v7594_v59 = vsel %vm7551_vm12, %v18097_v50, %v7592_v7  ;;  %v9639_v16 = vmax.f32 %v9527_v8, %v10301_v29  ;;  %v8657_v34 = vsel %vm6170_vm4, %v8653_v43, %v11377_v19  ;;  %v11383_v25 = vunpack.i.h.bf16 %v17302_v12  ;;  %v11451_v49 = vpop.permute.xlu0 %11450 }
 0x79a   :  { %v8654_v13 = vsel %vm6097_vm2, %v7594_v59, %v11373_v9  ;;  %v10304_v6 = vrot.slane %v9536_v52, 9  ;;  %v9640_v58 = vmax.f32 %v9535_v35, %v10302_v45  ;;  %v9641_v23 = vmax.f32 %v9534_v55, %v10303_v38 }
 0x79b   :  { %v8658_v2 = vsel %vm6170_vm4, %v8654_v13, %v11378_v39  ;;  %v10401_v17 = vpack.c.bf16 %v9639_v16, %v9639_v16  ;;  %v11423_v46 = vunpack.i.h.bf16 %v17390_v10  ;;  %v11422_v42 = vunpack.i.l.bf16 %v17390_v10 }
 0x79c   :  { %v11382_v11 = vunpack.i.l.bf16 %v17302_v12  ;;  %v9642_v3 = vmax.f32 %v9536_v52, %v10304_v6  ;;  %v10402_v0 = vpack.c.bf16 %v9640_v58, %v9640_v58  ;;  %v10403_v57 = vpack.c.bf16 %v9641_v23, %v9641_v23 }
 0x79d   :  { %v8662_v26 = vsel %vm6259_vm5, %v8658_v2, %v11383_v25  ;;  %v9719_v60 = vunpack.c.l.b16 %v10401_v17  ;;  %vm17787_vm11 = vcmask 850944   ;;  %v11433_v48 = vunpack.i.h.bf16 %v11431_v61 }
 0x79e   :  { %v8661_v21 = vsel %vm6259_vm5, %v8657_v34, %v11382_v11  ;;  %v9736_v33 = vsel %vm17785_vm8, %v9735_v20, %v17314_v1  ;;  %v10404_v47 = vpack.c.bf16 %v9642_v3, %v9642_v3  ;;  %v17452_v9 = vunpack.c.l.b16 %v10402_v0  ;;  %v11411_v55 = vpop.permute.xlu1 %11410 }
 0x79f   :  { %v11432_v10 = vunpack.i.l.bf16 %v11431_v61  ;;  %v8704_v12 = vsel %vm17786_vm7, %v8699_v31, %v11422_v42  ;;  %v8705_v7 = vsel %vm17786_vm7, %v8700_v40, %v11423_v46  ;;  %v11388_v22 = vunpack.i.h.bf16 %v17334_v28 }
 0x7a0   :  { %v11387_v8 = vunpack.i.l.bf16 %v17334_v28  ;;  %v9721_v63 = vunpack.c.l.b16 %v10403_v57  ;;  %v9722_v24 = vunpack.c.l.b16 %v10404_v47  ;;  %v9737_v36 = vrot.slane %v9719_v60, 4  ;;  %v18100_v47 = vld [vmem:[#allocation16_spill] sm:$0xff] }
 0x7a1   :  { %v8710_v39 = vsel %vm17787_vm11, %v8705_v7, %v11433_v48  ;;  %v9739_v1 = vrot.slane %v17452_v9, 3  ;;  %v8667_v61 = vsel %vm8663_vm13, %v8662_v26, %v11388_v22  ;;  %vm17788_vm8 = vcmask 916480  }
 0x7a2   :  { %v8666_v20 = vsel %vm8663_vm13, %v8661_v21, %v11387_v8  ;;  %v8709_v31 = vsel %vm17787_vm11, %v8704_v12, %v11432_v10  ;;  %v11443_v40 = vunpack.i.h.bf16 %v11441_v32  ;;  %v11442_v35 = vunpack.i.l.bf16 %v11441_v32 }
 0x7a3   :  { %v11393_v28 = vunpack.i.h.bf16 %v17359_v41  ;;  %v11392_v29 = vunpack.i.l.bf16 %v17359_v41  ;;  %vm8718_vm7 = vcmask 982016   ;;  %v11453_v19 = vunpack.i.h.bf16 %v11451_v49 }
 0x7a4   :  { %v11452_v15 = vunpack.i.l.bf16 %v11451_v49  ;;  %v8714_v50 = vsel %vm17788_vm8, %v8709_v31, %v11442_v35  ;;  %v8715_v59 = vsel %vm17788_vm8, %v8710_v39, %v11443_v40  ;;  %v11398_v13 = vunpack.i.h.bf16 %v17392_v4  ;;  %v18105_v39 = vld [vmem:[#allocation18_spill] sm:$0xff] }
 0x7a5   :  { %v8672_v43 = vsel %vm8668_vm14, %v8667_v61, %v11393_v28  ;;  %v8671_v52 = vsel %vm8668_vm14, %v8666_v20, %v11392_v29  ;;  %v8720_v38 = vsel %vm8718_vm7, %v8715_v59, %v11453_v19  ;;  %v11397_v16 = vunpack.i.l.bf16 %v17392_v4  ;;  %v18107_v31 = vld [vmem:[#allocation34_spill] sm:$0xff]  ;;  %v18111_v19 = vld [vmem:[#allocation47_spill] sm:$0xff] }
 0x7a6   :  { %v8719_v45 = vsel %vm8718_vm7, %v8714_v50, %v11452_v15  ;;  %vm18098_vm11 = vcmask 392192   ;;  %v11403_v6 = vunpack.i.h.bf16 %v17421_v54  ;;  %v11416_v58 = vpop.permute.xlu1 %11415  ;;  %v11402_v32 = vunpack.i.l.bf16 %v17421_v54  ;;  %v18112_v50 = vld [vmem:[#allocation41_spill] sm:$0xff] }
 0x7a7   :  { %v10416_v41 = vpack.c.bf16 %v8720_v38, %v8719_v45  ;;  %v8676_v34 = vsel %vm18098_vm11, %v8671_v52, %v11367_v30  ;;  %vm18099_vm8 = vmmov %vm18098_vm11  ;;  %v11408_v4 = vunpack.i.h.bf16 %v17441_v51  ;;  %v11407_v30 = vunpack.i.l.bf16 %v17441_v51 }
 0x7a8   :  { %v8677_v2 = vsel %vm18099_vm8, %v8672_v43, %v11368_v5  ;;  %v8681_v23 = vsel %vm8678_vm0, %v8676_v34, %v11397_v16  ;;  %v11413_v46 = vunpack.i.h.bf16 %v11411_v55  ;;  %v11412_v37 = vunpack.i.l.bf16 %v11411_v55  ;;  %v18106_v55 = vld [vmem:[#allocation36_spill] sm:$0xff]  ;;  %v18114_v16 = vld [vmem:[#allocation62_spill] sm:$0xff] }
 0x7a9   :  { %v8682_v25 = vsel %vm8678_vm0, %v8677_v2, %v11398_v13  ;;  %10417 = vst [vmem:[#allocation4] sm:$0xff] %v10416_v41   ;;  %v8686_v5 = vsel %vm8683_vm1, %v8681_v23, %v11402_v32  ;;  %v11418_v11 = vunpack.i.h.bf16 %v11416_v58  ;;  %v11417_v3 = vunpack.i.l.bf16 %v11416_v58  ;;  %v18115_v34 = vld [vmem:[#allocation56_spill] sm:$0xff] }
 0x7aa   :  { %v8687_v17 = vsel %vm8683_vm1, %v8682_v25, %v11403_v6  ;;  %v9738_v0 = vsel %vm7542_vm9, %v9737_v36, %v9736_v33  ;;  %v9741_v57 = vrot.slane %v9721_v63, 2  ;;  %v8691_v54 = vsel %vm8688_vm3, %v8686_v5, %v11407_v30 }
 0x7ab   :  { %v8692_v42 = vsel %vm8688_vm3, %v8687_v17, %v11408_v4  ;;  %v8944_v51 = vsel %vm7551_vm12, %v8943_v62, %v17414_v44  ;;  %v9743_v60 = vrot.slane %v9722_v24, 1  ;;  %v8696_v21 = vsel %vm8693_vm15, %v8691_v54, %v11412_v37  ;;  %v18102_v44 = vld [vmem:[#allocation12_spill] sm:$0xff]  ;;  %v9162_v24 = vpop.permute.xlu1 %9161  ;;  %v18116_v17 = vld [vmem:[#allocation10_spill] sm:$0xff] }
 0x7ac   :  { %v8697_v26 = vsel %vm8693_vm15, %v8692_v42, %v11413_v46  ;;  %v9473_v9 = vsel %vm6097_vm2, %v8944_v51, %v18100_v47  ;;  %v17502_v33 = vsel %vm8698_vm6, %v8696_v21, %v11417_v3  ;;  %v9740_v12 = vsel %vm7545_vm10, %v9739_v1, %v9738_v0 }
 0x7ad   :  { %v17497_v48 = vsel %vm8698_vm6, %v8697_v26, %v11418_v11  ;;  %v9477_v10 = vsel %vm6170_vm4, %v9473_v9, %v17043_v14  ;;  %vm18101_vm8 = vcmask 1046534   ;;  %vm9763_vm11 = vcmask 519168   ;;  %v18103_v14 = vld [vmem:[#allocation25_spill] sm:$0xff] }
 0x7ae   :  { %v9742_v27 = vsel %vm18101_vm8, %v9741_v57, %v9740_v12  ;;  %v9481_v7 = vsel %vm6259_vm5, %v9477_v10, %v18102_v44  ;;  %vm18104_vm6 = vcmask 392192   ;;  %v8945_v1 = vrot.slane %v18106_v55, 7 }
 0x7af   :  { %v9744_v62 = vsel %vm7551_vm12, %v9743_v60, %v9742_v27  ;;  %v9485_v8 = vsel %vm8663_vm13, %v9481_v7, %v17106_v53  ;;  %v8947_v40 = vrot.slane %v18107_v31, 6  ;;  %v18108_v53 = vld [vmem:[#allocation61_spill] sm:$0xff]  ;;  %vm18109_vm15 = vcmask 1041409  }
 0x7b0   :  { %v9759_v22 = vpack.c.b16 %v9744_v62, %v9744_v62  ;;  %v9489_v63 = vsel %vm8668_vm14, %v9485_v8, %v17145_v18  ;;  %v9026_v20 = vpop.permute.xlu1 %9025  ;;  %v8946_v35 = vsel %vm18109_vm15, %v8945_v1, %v18108_v53  ;;  %vm18110_vm1 = vcmask 1042434  }
 0x7b1   :  { %v9493_v36 = vsel %vm18104_vm6, %v9489_v63, %v18103_v14  ;;  %v8948_v29 = vsel %vm18110_vm1, %v8947_v40, %v8946_v35  ;;  %v8951_v15 = vrot.slane %v18111_v19, 4  ;;  %v8949_v59 = vrot.slane %v18112_v50, 5 }
 0x7b2   :  { %9764 = vst.msk [vmem:[#allocation6] sm:$0xf] %vm9763_vm11, %v9759_v22  ;;  %v9497_v49 = vsel %vm8678_vm0, %v9493_v36, %v18105_v39  ;;  %vm18113_vm3 = vcmask 1043459   ;;  %v8955_v41 = vrot.slane %v18114_v16, 2  ;;  %v8953_v2 = vrot.slane %v18115_v34, 3 }
 0x7b3   :  { %v9544_v61 = vrot.slane %v9497_v49, %v18093_v56  ;;  %v9537_v18 = vcombine.high %v9497_v49, %v9497_v49  ;;  %v8950_v13 = vsel %vm18113_vm3, %v8949_v59, %v8948_v29  ;;  %v8957_v30 = vrot.slane %v18116_v17, 1 }
 0x7b4   :  { %v9094_v43 = vpop.permute.xlu1 %9093  ;;  %v8952_v38 = vsel %vm7542_vm9, %v8951_v15, %v8950_v13 }
 0x7b5   :  { %v9552_v28 = vcombine.high %v9544_v61, %v9544_v61  ;;  %v9551_v52 = vrot.slane %v9537_v18, %v18093_v56  ;;  %v8954_v6 = vsel %vm7545_vm10, %v8953_v2, %v8952_v38  ;;  %v10305_v46 = vrot.slane %v9544_v61, 9 }
 0x7b6   :  { %v8956_v4 = vsel %vm18101_vm8, %v8955_v41, %v8954_v6 }
 0x7b7   :  { %v10306_v45 = vrot.slane %v9552_v28, 9  ;;  %v9553_v23 = vcombine.high %v9551_v52, %v9551_v52  ;;  %v10307_v25 = vrot.slane %v9551_v52, 9  ;;  %v8958_v37 = vsel %vm7551_vm12, %v8957_v30, %v8956_v4 }
 0x7b8   :  { %v9474_v0 = vsel %vm6097_vm2, %v8958_v37, %v9026_v20  ;;  %v9643_v54 = vmax.f32 %v9544_v61, %v10305_v46  ;;  %vm18117_vm2 = vmmov %vm18109_vm15 }
 0x7b9   :  { %v9644_v32 = vmax.f32 %v9552_v28, %v10306_v45  ;;  %v10308_v42 = vrot.slane %v9553_v23, 9  ;;  %v9645_v11 = vmax.f32 %v9551_v52, %v10307_v25  ;;  %v9478_v57 = vsel %vm6170_vm4, %v9474_v0, %v9094_v43  ;;  %vm18118_vm4 = vmmov %vm18110_vm1 }
 0x7ba   :  { %v9482_v47 = vsel %vm6259_vm5, %v9478_v57, %v9162_v24  ;;  %v10405_v10 = vpack.c.bf16 %v9643_v54, %v9643_v54  ;;  %vm18119_vm5 = vmmov %vm18113_vm3 }
 0x7bb   :  { %v10406_v3 = vpack.c.bf16 %v9644_v32, %v9644_v32  ;;  %v9646_v51 = vmax.f32 %v9553_v23, %v10308_v42  ;;  %v10407_v60 = vpack.c.bf16 %v9645_v11, %v9645_v11 }
 0x7bc   :  { %v9723_v36 = vunpack.c.l.b16 %v10405_v10 }
 0x7bd   :  { %v9724_v21 = vunpack.c.l.b16 %v10406_v3  ;;  %v10408_v44 = vpack.c.bf16 %v9646_v51, %v9646_v51  ;;  %v9725_v7 = vunpack.c.l.b16 %v10407_v60 }
 0x7bf   :  { %v9745_v22 = vrot.slane %v9724_v21, 7  ;;  %v9726_v55 = vunpack.c.l.b16 %v10408_v44  ;;  %v9747_v20 = vrot.slane %v9725_v7, 6 }
 0x7c1   :  { %v9746_v1 = vsel %vm18117_vm2, %v9745_v22, %v9723_v36  ;;  %v9749_v15 = vrot.slane %v9726_v55, 5 }
 0x7c2   :  { %v9262_v58 = vpop.permute.xlu1 %9261  ;;  %v9748_v19 = vsel %vm18118_vm4, %v9747_v20, %v9746_v1 }
 0x7c3   :  { %v9486_v9 = vsel %vm8663_vm13, %v9482_v47, %v9262_v58  ;;  %v9750_v16 = vsel %vm18119_vm5, %v9749_v15, %v9748_v19  ;;  %vm18120_vm13 = vmmov %vm18101_vm8 }
 0x7c6   :  { %v9330_v5 = vpop.permute.xlu1 %9329 }
 0x7c7   :  { %v9490_v12 = vsel %vm8668_vm14, %v9486_v9, %v9330_v5 }
 0x7ca   :  { %v9398_v26 = vpop.permute.xlu1 %9397 }
 0x7cb   :  { %v9494_v27 = vsel %vm18104_vm6, %v9490_v12, %v9398_v26 }
 0x7ce   :  { %v9466_v62 = vpop.permute.xlu1 %9465 }
 0x7cf   :  { %v9498_v8 = vsel %vm8678_vm0, %v9494_v27, %v9466_v62 }
 0x7d0   :  { %v9554_v63 = vcombine.high %v9498_v8, %v9498_v8  ;;  %v9561_v14 = vrot.slane %v9498_v8, %v18093_v56 }
 0x7d2   :  { %v9568_v39 = vrot.slane %v9554_v63, %v18093_v56  ;;  %v9569_v24 = vcombine.high %v9561_v14, %v9561_v14  ;;  %v10309_v49 = vrot.slane %v9561_v14, 9 }
 0x7d4   :  { %v9570_v61 = vcombine.high %v9568_v39, %v9568_v39  ;;  %v10310_v31 = vrot.slane %v9569_v24, 9  ;;  %v10311_v40 = vrot.slane %v9568_v39, 9  ;;  %v9647_v53 = vmax.f32 %v9561_v14, %v10309_v49 }
 0x7d6   :  { %v10312_v35 = vrot.slane %v9570_v61, 9  ;;  %v9648_v18 = vmax.f32 %v9569_v24, %v10310_v31  ;;  %v9649_v28 = vmax.f32 %v9568_v39, %v10311_v40  ;;  %v10409_v29 = vpack.c.bf16 %v9647_v53, %v9647_v53 }
 0x7d8   :  { %v9650_v50 = vmax.f32 %v9570_v61, %v10312_v35  ;;  %v10410_v59 = vpack.c.bf16 %v9648_v18, %v9648_v18  ;;  %v10411_v56 = vpack.c.bf16 %v9649_v28, %v9649_v28  ;;  %v9727_v43 = vunpack.c.l.b16 %v10409_v29  ;;  %v11426_v23 = vpop.permute.xlu1 %11425 }
 0x7da   :  { %v10412_v13 = vpack.c.bf16 %v9650_v50, %v9650_v50  ;;  %v9728_v52 = vunpack.c.l.b16 %v10410_v59  ;;  %v9729_v45 = vunpack.c.l.b16 %v10411_v56  ;;  %v9751_v38 = vrot.slane %v9727_v43, 4 }
 0x7dc   :  { %v9730_v41 = vunpack.c.l.b16 %v10412_v13  ;;  %v9752_v34 = vsel %vm7542_vm9, %v9751_v38, %v9750_v16  ;;  %v9753_v2 = vrot.slane %v9728_v52, 3  ;;  %v9755_v6 = vrot.slane %v9729_v45, 2 }
 0x7de   :  { %v9757_v58 = vrot.slane %v9730_v41, 1  ;;  %v9754_v25 = vsel %vm7545_vm10, %v9753_v2, %v9752_v34 }
 0x7df   :  { %v9756_v32 = vsel %vm18120_vm13, %v9755_v6, %v9754_v25 }
 0x7e0   :  { %v9758_v4 = vsel %vm7551_vm12, %v9757_v58, %v9756_v32 }
 0x7e1   :  { %v9760_v17 = vpack.c.b16 %v9758_v4, %v9758_v4 }
 0x7e2   :  { %v11436_v30 = vpop.permute.xlu1 %11435 }
 0x7e3   :  { %9765 = vst.msk [vmem:[#allocation6 + $0x4] sm:$0xf] %vm9763_vm11, %v9760_v17 }
 0x7e4   :  { %11675 = shalt.err (!%p11672_p4)
}
 0x7e5   :  { %s11676_s17 = scalar_lea.hbm %s17602_s8, 128 }
 0x7e6   :  { %p11677_p5 = scmp.ne.s32.totalorder %s17602_s8, %s11676_s17  ;;  %p11680_p6 = scmp.lt.u32.totalorder %s11676_s17, %s17602_s8 }
 0x7e8   :  { %p11682_p7 = pnand %p11680_p6, %p11677_p5 }
 0x7ea   :  { %11685 = shalt.err (!%p11682_p7)
}
 0x7eb   :  { %s11733_s18 = smov 4   ;;  %v11446_v46 = vpop.permute.xlu1 %11445  ;;  %v11428_v37 = vunpack.i.h.bf16 %v11426_v23  ;;  %v11427_v5 = vunpack.i.l.bf16 %v11426_v23  ;;  %v11438_v42 = vunpack.i.h.bf16 %v11436_v30  ;;  %v11437_v11 = vunpack.i.l.bf16 %v11436_v30 }
 0x7ec   :  { %9789 = dma.vmem_to_hbm [thread:$0]  %s9784_s20, 128, %s17602_s8, [#allocation7], %s11723_s6, %s11723_s6, %s11733_s18   ;;  %v11448_v3 = vunpack.i.h.bf16 %v11446_v46  ;;  %v11447_v0 = vunpack.i.l.bf16 %v11446_v46  ;;  %vm18121_vm9 = vcmask 785408   ;;  %vm18123_vm12 = vcmask 850944  }
 0x7ed   :  { %v8706_v57 = vsel %vm18121_vm9, %v17502_v33, %v11427_v5  ;;  %vm18122_vm10 = vmmov %vm18121_vm9  ;;  %s11734_s8 = smov [#allocation4]   ;;  %vm18125_vm0 = vcmask 916480  }
 0x7ee   :  { %v8707_v54 = vsel %vm18122_vm10, %v17497_v48, %v11428_v37  ;;  %v8711_v51 = vsel %vm18123_vm12, %v8706_v57, %v11437_v11  ;;  %vm18124_vm14 = vmmov %vm18123_vm12  ;;  %s9771_s23 = sshll.u32 %s11734_s8, 4  ;;  %s9772_s23 = int_to_ptr.vmem [resolvable:$true] %s9771_s23 }
 0x7ef   :  { %v8712_v60 = vsel %vm18124_vm14, %v8707_v54, %v11438_v42  ;;  %v8716_v9 = vsel %vm18125_vm0, %v8711_v51, %v11447_v0  ;;  %vm18126_vm11 = vmmov %vm18125_vm0  ;;  %s11686_s24 = scalar_lea.vmem %s9772_s23, 256  ;;  %p11691_p9 = scmp.lt.s32.totalorder %s9772_s23, %s9772_s23 }
 0x7f0   :  { %v8717_v10 = vsel %vm18126_vm11, %v8712_v60, %v11448_v3  ;;  %p11687_p8 = scmp.ne.s32.totalorder %s9772_s23, %s11686_s24  ;;  %p11692_p10 = scmp.lt.s32.totalorder %s11686_s24, %s11686_s24 }
 0x7f2   :  { %p11693_p11 = por %p11692_p10, %p11691_p9 }
 0x7f4   :  { %v11456_v26 = vpop.permute.xlu1 %11455  ;;  %p11694_p12 = pnand %p11693_p11, %p11687_p8 }
 0x7f5   :  { %v11458_v21 = vunpack.i.h.bf16 %v11456_v26  ;;  %v11457_v47 = vunpack.i.l.bf16 %v11456_v26 }
 0x7f7   :  { %v8721_v12 = vsel %vm8718_vm7, %v8716_v9, %v11457_v47  ;;  %v8722_v33 = vsel %vm8718_vm7, %v8717_v10, %v11458_v21 }
 0x7f8   :  { %v10421_v27 = vpack.c.bf16 %v8722_v33, %v8721_v12 }
 0x7fa   :  { %10423 = vst [vmem:[#allocation4 + $0x8] sm:$0xff] %v10421_v27  }
 0x7fb   :  { %11697 = shalt.err (!%p11694_p12)
}
 0x7fc   :  { %s11698_s28 = scalar_lea.hbm %s17601_s7, 256 }
 0x7fd   :  { %p11699_p13 = scmp.ne.s32.totalorder %s17601_s7, %s11698_s28  ;;  %p11702_p0 = scmp.lt.u32.totalorder %s11698_s28, %s17601_s7 }
 0x7ff   :  { %p11704_p1 = pnand %p11702_p0, %p11699_p13 }
 0x801   :  { %11707 = shalt.err (!%p11704_p1)
}
 0x802   :  { %9777 = dma.vmem_to_hbm [thread:$0]  %s9772_s23, 256, %s17601_s7, [#allocation5], %s11723_s6, %s11723_s6, %s11733_s18  }
 0x803   :  { %11708 = dma.done.wait [#allocation5], 256  }
 0x804   :  { %11709 = vsyncadd [#allocation5], 4294967040 }
 0x805   :  { %11710 = dma.done.wait [#allocation7], 128  }
 0x806   :  { %11711 = vsyncadd [#allocation7], 4294967168 }
 0x807   :  { %9796 = vsyncpa [#allocation5], 1 }
 0x808   :  { %9797 = vsyncpa [#allocation7], 1 }

</bundles_post_ra>
